<compile_context>
chip_gen: v6e
topology: v6e:2x2x1
jax: 0.10.0
libtpu: 0.0.40
codegen_flags: <defaults>
</compile_context>

<pallas_src>
import functools

import jax
import jax.numpy as jnp
from jax.experimental import pallas as pl
from jax.experimental.pallas import tpu as pltpu


# ---------------------------------------------------------------------------
# In-kernel helpers (values + VMEM scratch refs; one sample per grid step)
# ---------------------------------------------------------------------------
def _zero_border(xp_ref):
    """Zero only the 1-pixel padding border of a (H+2, W+2, C) buffer."""
    hp, wp, c = xp_ref.shape
    zrow = jnp.zeros((1, wp, c), xp_ref.dtype)
    zcol = jnp.zeros((hp, 1, c), xp_ref.dtype)
    xp_ref[0:1, :, :] = zrow
    xp_ref[hp - 1:hp, :, :] = zrow
    xp_ref[:, 0:1, :] = zcol
    xp_ref[:, wp - 1:wp, :] = zcol


def _im2col_s1(xp_ref, pat_ref, h, w, c):
    """Stride-1 3x3 im2col: pat[i*w+j, k*c:(k+1)*c] = xpad[i+dy, j+dx, :]."""
    for dy in range(3):
        for dx in range(3):
            k = dy * 3 + dx
            win = xp_ref[dy:dy + h, dx:dx + w, :]              # (h, w, c) f32
            pat_ref[:, k * c:(k + 1) * c] = (
                win.reshape(h * w, c).astype(pat_ref.dtype))   # bf16 store


def _conv3x3_s1(x, w_ref, b_ref, xp_ref, pat_ref):
    """3x3 conv, stride 1, pad 1 (BN scale folded into w, bias into b).
    x: (h, w, c) f32 value.  Returns flat (h*w, cout) f32 pre-activation."""
    h, w, c = x.shape
    xp_ref[1:h + 1, 1:w + 1, :] = x.astype(xp_ref.dtype)
    _im2col_s1(xp_ref, pat_ref, h, w, c)
    return jnp.dot(pat_ref[...], w_ref[...],
                   preferred_element_type=jnp.float32) + b_ref[...]


def _conv3x3_s2(x, w_ref, b_ref, wd_ref, bd_ref, xp_ref, pat_ref):
    """3x3 conv (stride 2, pad 1) + fused 1x1 stride-2 projection shortcut.

    Stride-2 im2col windows are strided reads of the padded buffer
    (pl.ds stride=2); the 1x1 projection input is the centre tap (dy=dx=1)
    of that im2col, reused at zero cost.
    Returns (conv pre-activation, shortcut), both (ho*wo, cout) f32."""
    h, w, c = x.shape
    ho, wo = h // 2, w // 2
    xp_ref[1:h + 1, 1:w + 1, :] = x.astype(xp_ref.dtype)
    for dy in range(3):
        for dx in range(3):
            k = dy * 3 + dx
            win = xp_ref[pl.ds(dy, ho, 2), pl.ds(dx, wo, 2), :]   # (ho, wo, c)
            pat_ref[0:ho * wo, k * c:(k + 1) * c] = (
                win.reshape(ho * wo, c).astype(pat_ref.dtype))
    p = pat_ref[0:ho * wo, :]                                     # (ho*wo, 9c) bf16
    y = jnp.dot(p, w_ref[...], preferred_element_type=jnp.float32) + b_ref[...]
    sc = jnp.dot(p[:, 4 * c:5 * c], wd_ref[...],
                 preferred_element_type=jnp.float32) + bd_ref[...]
    return y, sc


def _block_s1(x, prm, scr):
    """BasicBlock, stride 1, identity shortcut."""
    h, w, c = x.shape
    w1, b1, w2, b2 = next(prm), next(prm), next(prm), next(prm)
    xp_ref, pat_ref = scr[(h, w, c)]
    a = jnp.maximum(_conv3x3_s1(x, w1, b1, xp_ref, pat_ref), 0.0).reshape(h, w, c)
    y = _conv3x3_s1(a, w2, b2, xp_ref, pat_ref)
    return jnp.maximum(y.reshape(h, w, c) + x, 0.0)


def _block_s2(x, prm, scr):
    """BasicBlock, stride 2, 1x1-conv+BN projection shortcut."""
    h, w, cin = x.shape
    ho, wo = h // 2, w // 2
    w1, b1, w2, b2, wd, bd = (next(prm) for _ in range(6))
    cout = w1.shape[-1]
    xp_in, pat_in = scr[(h, w, cin)]          # strided conv1 reuses prev-shape buffers
    y1, sc = _conv3x3_s2(x, w1, b1, wd, bd, xp_in, pat_in)
    a = jnp.maximum(y1, 0.0).reshape(ho, wo, cout)
    xp_out, pat_out = scr[(ho, wo, cout)]
    y2 = _conv3x3_s1(a, w2, b2, xp_out, pat_out)
    return jnp.maximum((y2 + sc).reshape(ho, wo, cout), 0.0)


def _network_kernel(plan, n_scratch, *refs):
    """Fused per-sample forward: stem -> BasicBlocks (per `plan`) -> GAP -> FC."""
    x_ref = refs[0]
    out_ref = refs[len(refs) - n_scratch - 1]
    scratch = refs[len(refs) - n_scratch:]
    prm = iter(refs[1:len(refs) - n_scratch - 1])

    # pair scratch refs: [xp_0..xp_k, pat_0..pat_k], keyed by conv-input shape
    half = n_scratch // 2
    scr = {}
    for xp_ref, pat_ref in zip(scratch[:half], scratch[half:]):
        hp, wp, c = xp_ref.shape
        scr[(hp - 2, wp - 2, c)] = (xp_ref, pat_ref)

    _, h, w, ci = x_ref.shape                        # one sample per grid step
    w_stem, b_stem = next(prm), next(prm)
    c1 = w_stem.shape[-1]
    stem_key = (h, w, c1)

    # Zero only the padding borders (interiors are fully overwritten before
    # each use).  The stem buffer gets one full zero-fill so the padded input
    # channels ci..c1 are zero.
    for key, (xp_z, _) in scr.items():
        if key == stem_key:
            xp_z[...] = jnp.zeros(xp_z.shape, xp_z.dtype)
        else:
            _zero_border(xp_z)

    # stem: conv3x3 (folded BN) + ReLU; the raw ci-channel image is written
    # into channels 0:ci of the zeroed padded buffer (stem weight rows for
    # channels ci..c1 are zero, so this is exact).
    xp_ref, pat_ref = scr[stem_key]
    xp_ref[1:h + 1, 1:w + 1, 0:ci] = x_ref[0].astype(xp_ref.dtype)
    _im2col_s1(xp_ref, pat_ref, h, w, c1)
    y = jnp.dot(pat_ref[...], w_stem[...],
                preferred_element_type=jnp.float32) + b_stem[...]
    a = jnp.maximum(y, 0.0).reshape(h, w, c1)

    # backbone stages
    for kind in plan:
        a = _block_s1(a, prm, scr) if kind == 's1' else _block_s2(a, prm, scr)

    # module=GAP, x.view(N,-1), classifier=FC (bias=True)  — all fused here
    hh, ww, cc = a.shape
    pooled = a.reshape(hh * ww, cc).sum(axis=0, keepdims=True) * (1.0 / (hh * ww))
    logits = jnp.dot(pooled, next(prm)[...],
                     preferred_element_type=jnp.float32) + next(prm)[...]
    out_ref[...] = logits.reshape(out_ref.shape).astype(out_ref.dtype)


# ---------------------------------------------------------------------------
# Wrapper: BN folding into weights, im2col weight layout, bf16 cast, and the
# single fused pallas_call gridded over the batch.
# ---------------------------------------------------------------------------
def _pack_conv(w, scale, bias):
    kh, kw, cin, cout = w.shape
    wf = (w * scale.reshape(1, 1, 1, cout)).reshape(kh * kw * cin, cout)
    return [wf.astype(jnp.bfloat16), bias.reshape(1, cout).astype(jnp.float32)]


def _pack_conv1x1(w, scale, bias):
    cin, cout = w.shape
    wf = w * scale.reshape(1, cout)
    return [wf.astype(jnp.bfloat16), bias.reshape(1, cout).astype(jnp.float32)]


def _const_spec(a):
    """Full-array VMEM block with a constant index map (resident across grid)."""
    zeros = (0,) * a.ndim
    return pl.BlockSpec(a.shape, lambda b, _z=zeros: _z)


def build_fused_call(params, x_shape, num_classes):
    n, h, w, ci = x_shape                       # raw NHWC image (ci == 3)
    stem_w, stem_s, stem_b = params['stem']
    c1 = stem_w.shape[-1]

    args, plan, conv_shapes = [], [], []

    # stem: pad the weight's input-channel axis to the stage-1 buffer width
    # (padded rows are zero; the kernel zero-fills the matching channels).
    wpad = jnp.pad(stem_w, ((0, 0), (0, 0), (0, c1 - stem_w.shape[2]), (0, 0)))
    args += _pack_conv(wpad, stem_s, stem_b)
    conv_shapes.append((h, w, c1))

    h_cur, w_cur, c_cur = h, w, c1
    for layer in params['layers']:
        for blk in layer:
            cout = blk['w1'].shape[-1]
            args += _pack_conv(blk['w1'], blk['s1'], blk['b1'])
            args += _pack_conv(blk['w2'], blk['s2'], blk['b2'])
            if blk['downsample'] is None:
                assert blk['stride'] == 1 and c_cur == cout
                plan.append('s1')
                conv_shapes.append((h_cur, w_cur, c_cur))
            else:
                assert blk['stride'] == 2
                plan.append('s2')
                args += _pack_conv1x1(*blk['downsample'])
                conv_shapes.append((h_cur, w_cur, c_cur))   # strided conv1
                h_cur //= 2
                w_cur //= 2
                conv_shapes.append((h_cur, w_cur, cout))    # conv2
            c_cur = cout

    args.append(params['fc_w'].astype(jnp.float32))
    args.append(params['fc_b'].reshape(1, -1).astype(jnp.float32))

    # Per-sample VMEM scratch: one (padded-input f32, bf16 im2col patch) pair
    # per distinct conv-input shape.  Stride-2 convs reuse the previous
    # stage's pat buffer (first Ho*Wo rows).
    uniq = sorted(set(conv_shapes))
    scratch = ([pltpu.VMEM((hh + 2, ww + 2, cc), jnp.float32) for hh, ww, cc in uniq]
               + [pltpu.VMEM((hh * ww, 9 * cc), jnp.bfloat16) for hh, ww, cc in uniq])

    # explicit scoped-VMEM budget: weights + scratch + I/O blocks + headroom
    arg_bytes = sum(int(a.size) * a.dtype.itemsize for a in args)
    scratch_bytes = sum((hh + 2) * (ww + 2) * cc * 4 + hh * ww * 9 * cc * 2
                        for hh, ww, cc in uniq)
    io_bytes = h * w * ci * 4 + num_classes * 4
    vmem_limit = int(min(60 * 2 ** 20,
                         2 * (arg_bytes + io_bytes) + scratch_bytes + 24 * 2 ** 20))

    kernel = functools.partial(_network_kernel, tuple(plan), len(scratch))
    call = pl.pallas_call(
        kernel,
        out_shape=jax.ShapeDtypeStruct((n, 1, num_classes), jnp.float32),
        grid=(n,),
        in_specs=([pl.BlockSpec((1, h, w, ci), lambda b: (b, 0, 0, 0))]
                  + [_const_spec(a) for a in args]),
        out_specs=pl.BlockSpec((1, 1, num_classes), lambda b: (b, 0, 0)),
        scratch_shapes=scratch,
        compiler_params=pltpu.CompilerParams(
            dimension_semantics=("parallel",),
            vmem_limit_bytes=vmem_limit),
    )
    return call, args


def network_forward(params, x_nchw):
    """Forward of Network: backbone -> GAP -> flatten -> FC.  x_nchw: NCHW."""
    x = jnp.transpose(x_nchw, (0, 2, 3, 1)).astype(jnp.float32)      # -> NHWC
    num_classes = params['fc_b'].shape[0]
    call, args = build_fused_call(params, x.shape, num_classes)
    out = call(x, *args)
    return out.reshape(x.shape[0], num_classes)


# ---------------------------------------------------------------------------
# Parameter construction (folded eval-mode BN)
# ---------------------------------------------------------------------------
def fold_bn(gamma, beta, mean, var, eps=1e-5):
    scale = gamma / jnp.sqrt(var + eps)
    return scale, beta - mean * scale


def init_params(key, num_classes=10):
    keys = iter(jax.random.split(key, 64))

    def conv_w(cin, cout, k=3):
        fan_in = k * k * cin
        return (jax.random.normal(next(keys), (k, k, cin, cout), jnp.float32)
                * (2.0 / fan_in) ** 0.5)

    def bn(c):
        gamma = 1.0 + 0.1 * jax.random.normal(next(keys), (c,), jnp.float32)
        beta = 0.1 * jax.random.normal(next(keys), (c,), jnp.float32)
        mean = 0.1 * jax.random.normal(next(keys), (c,), jnp.float32)
        var = jnp.abs(jax.random.normal(next(keys), (c,), jnp.float32)) + 0.5
        return fold_bn(gamma, beta, mean, var)

    channels = [16, 32, 64]   # cifar backbone -> feature length 64
    blocks = [1, 1, 1]        # TODO(synk): res32_cifar is [5,5,5]; demo depth
    params = {}
    s, b = bn(channels[0])
    params['stem'] = (conv_w(3, channels[0]), s, b)

    layers = []
    cin = channels[0]
    for li, (cout, nb) in enumerate(zip(channels, blocks)):
        layer = []
        for bi in range(nb):
            stride = 2 if (li > 0 and bi == 0) else 1
            blk = {'stride': stride}
            blk['w1'], (blk['s1'], blk['b1']) = conv_w(cin, cout), bn(cout)
            blk['w2'], (blk['s2'], blk['b2']) = conv_w(cout, cout), bn(cout)
            if stride != 1 or cin != cout:
                sd, bd = bn(cout)
                blk['downsample'] = (conv_w(cin, cout, 1).reshape(cin, cout), sd, bd)
            else:
                blk['downsample'] = None
            layer.append(blk)
            cin = cout
        layers.append(layer)
    params['layers'] = layers

    params['fc_w'] = (jax.random.normal(next(keys), (channels[-1], num_classes),
                                        jnp.float32) * (1.0 / channels[-1]) ** 0.5)
    params['fc_b'] = 0.01 * jax.random.normal(next(keys), (num_classes,), jnp.float32)
    return params


if __name__ == "__main__":
    key = jax.random.PRNGKey(0)
    pkey, xkey = jax.random.split(key)
    num_classes = 10
    params = init_params(pkey, num_classes=num_classes)
    x = jax.random.normal(xkey, (2, 3, 16, 16), jnp.float32)   # NCHW input

    fwd = jax.jit(lambda inp: network_forward(params, inp))
    logits = fwd(x)
    jax.block_until_ready(logits)
    assert logits.shape == (2, num_classes), logits.shape
    assert bool(jnp.all(jnp.isfinite(logits))), "non-finite logits"
    print("KERNEL_OK")
</pallas_src>

<mosaic_0001>
module attributes {stable_mosaic.version = 11 : i64} {
  func.func @_network_kernel(%arg0: i32, %arg1: memref<1x16x16x3xf32, #tpu.memory_space<vmem>>, %arg2: memref<144x16xbf16, #tpu.memory_space<vmem>>, %arg3: memref<1x16xf32, #tpu.memory_space<vmem>>, %arg4: memref<144x16xbf16, #tpu.memory_space<vmem>>, %arg5: memref<1x16xf32, #tpu.memory_space<vmem>>, %arg6: memref<144x16xbf16, #tpu.memory_space<vmem>>, %arg7: memref<1x16xf32, #tpu.memory_space<vmem>>, %arg8: memref<144x32xbf16, #tpu.memory_space<vmem>>, %arg9: memref<1x32xf32, #tpu.memory_space<vmem>>, %arg10: memref<288x32xbf16, #tpu.memory_space<vmem>>, %arg11: memref<1x32xf32, #tpu.memory_space<vmem>>, %arg12: memref<16x32xbf16, #tpu.memory_space<vmem>>, %arg13: memref<1x32xf32, #tpu.memory_space<vmem>>, %arg14: memref<288x64xbf16, #tpu.memory_space<vmem>>, %arg15: memref<1x64xf32, #tpu.memory_space<vmem>>, %arg16: memref<576x64xbf16, #tpu.memory_space<vmem>>, %arg17: memref<1x64xf32, #tpu.memory_space<vmem>>, %arg18: memref<32x64xbf16, #tpu.memory_space<vmem>>, %arg19: memref<1x64xf32, #tpu.memory_space<vmem>>, %arg20: memref<64x10xf32, #tpu.memory_space<vmem>>, %arg21: memref<1x10xf32, #tpu.memory_space<vmem>>, %arg22: memref<1x1x10xf32, #tpu.memory_space<vmem>>, %arg23: memref<6x6x64xf32, #tpu.memory_space<vmem>>, %arg24: memref<10x10x32xf32, #tpu.memory_space<vmem>>, %arg25: memref<18x18x16xf32, #tpu.memory_space<vmem>>, %arg26: memref<16x576xbf16, #tpu.memory_space<vmem>>, %arg27: memref<64x288xbf16, #tpu.memory_space<vmem>>, %arg28: memref<256x144xbf16, #tpu.memory_space<vmem>>) attributes {dimension_semantics = [#tpu.dimension_semantics<parallel>], iteration_bounds = array<i64: 2>, scalar_prefetch = 0 : i64, scratch_operands = 6 : i64, tpu.core_type = #tpu.core_type<tc>, window_params = [{transform_indices = @transform_0, window_bounds = array<i64: 1, 16, 16, 3>}, {pipeline_mode = #tpu.pipeline_mode<synchronous>, transform_indices = @transform_1, window_bounds = array<i64: 144, 16>}, {pipeline_mode = #tpu.pipeline_mode<synchronous>, transform_indices = @transform_2, window_bounds = array<i64: 1, 16>}, {pipeline_mode = #tpu.pipeline_mode<synchronous>, transform_indices = @transform_3, window_bounds = array<i64: 144, 16>}, {pipeline_mode = #tpu.pipeline_mode<synchronous>, transform_indices = @transform_4, window_bounds = array<i64: 1, 16>}, {pipeline_mode = #tpu.pipeline_mode<synchronous>, transform_indices = @transform_5, window_bounds = array<i64: 144, 16>}, {pipeline_mode = #tpu.pipeline_mode<synchronous>, transform_indices = @transform_6, window_bounds = array<i64: 1, 16>}, {pipeline_mode = #tpu.pipeline_mode<synchronous>, transform_indices = @transform_7, window_bounds = array<i64: 144, 32>}, {pipeline_mode = #tpu.pipeline_mode<synchronous>, transform_indices = @transform_8, window_bounds = array<i64: 1, 32>}, {pipeline_mode = #tpu.pipeline_mode<synchronous>, transform_indices = @transform_9, window_bounds = array<i64: 288, 32>}, {pipeline_mode = #tpu.pipeline_mode<synchronous>, transform_indices = @transform_10, window_bounds = array<i64: 1, 32>}, {pipeline_mode = #tpu.pipeline_mode<synchronous>, transform_indices = @transform_11, window_bounds = array<i64: 16, 32>}, {pipeline_mode = #tpu.pipeline_mode<synchronous>, transform_indices = @transform_12, window_bounds = array<i64: 1, 32>}, {pipeline_mode = #tpu.pipeline_mode<synchronous>, transform_indices = @transform_13, window_bounds = array<i64: 288, 64>}, {pipeline_mode = #tpu.pipeline_mode<synchronous>, transform_indices = @transform_14, window_bounds = array<i64: 1, 64>}, {pipeline_mode = #tpu.pipeline_mode<synchronous>, transform_indices = @transform_15, window_bounds = array<i64: 576, 64>}, {pipeline_mode = #tpu.pipeline_mode<synchronous>, transform_indices = @transform_16, window_bounds = array<i64: 1, 64>}, {pipeline_mode = #tpu.pipeline_mode<synchronous>, transform_indices = @transform_17, window_bounds = array<i64: 32, 64>}, {pipeline_mode = #tpu.pipeline_mode<synchronous>, transform_indices = @transform_18, window_bounds = array<i64: 1, 64>}, {pipeline_mode = #tpu.pipeline_mode<synchronous>, transform_indices = @transform_19, window_bounds = array<i64: 64, 10>}, {pipeline_mode = #tpu.pipeline_mode<synchronous>, transform_indices = @transform_20, window_bounds = array<i64: 1, 10>}, {transform_indices = @transform_21, window_bounds = array<i64: 1, 1, 10>}]} {
    %cst = arith.constant 0.000000e+00 : f32
    %0 = vector.broadcast %cst : f32 to vector<1x6x64xf32>
    %cst_0 = arith.constant 0.000000e+00 : f32
    %1 = vector.broadcast %cst_0 : f32 to vector<6x1x64xf32>
    %c0 = arith.constant 0 : index
    %c0_1 = arith.constant 0 : index
    %c0_2 = arith.constant 0 : index
    %2 = vector.load %arg23[%c0, %c0_1, %c0_2] : memref<6x6x64xf32, #tpu.memory_space<vmem>>, vector<1x6x64xf32>
    tpu.vector_store %arg23[%c0, %c0_1, %c0_2], %0 {strides = array<i32>} : memref<6x6x64xf32, #tpu.memory_space<vmem>>, vector<1x6x64xf32>,
    %c5 = arith.constant 5 : index
    %c0_3 = arith.constant 0 : index
    %c0_4 = arith.constant 0 : index
    %3 = vector.load %arg23[%c5, %c0_3, %c0_4] : memref<6x6x64xf32, #tpu.memory_space<vmem>>, vector<1x6x64xf32>
    tpu.vector_store %arg23[%c5, %c0_3, %c0_4], %0 {strides = array<i32>} : memref<6x6x64xf32, #tpu.memory_space<vmem>>, vector<1x6x64xf32>,
    %c0_5 = arith.constant 0 : index
    %c0_6 = arith.constant 0 : index
    %c0_7 = arith.constant 0 : index
    %4 = vector.load %arg23[%c0_5, %c0_6, %c0_7] : memref<6x6x64xf32, #tpu.memory_space<vmem>>, vector<6x1x64xf32>
    tpu.vector_store %arg23[%c0_5, %c0_6, %c0_7], %1 {strides = array<i32>} : memref<6x6x64xf32, #tpu.memory_space<vmem>>, vector<6x1x64xf32>,
    %c0_8 = arith.constant 0 : index
    %c5_9 = arith.constant 5 : index
    %c0_10 = arith.constant 0 : index
    %5 = vector.load %arg23[%c0_8, %c5_9, %c0_10] : memref<6x6x64xf32, #tpu.memory_space<vmem>>, vector<6x1x64xf32>
    tpu.vector_store %arg23[%c0_8, %c5_9, %c0_10], %1 {strides = array<i32>} : memref<6x6x64xf32, #tpu.memory_space<vmem>>, vector<6x1x64xf32>,
    %cst_11 = arith.constant 0.000000e+00 : f32
    %6 = vector.broadcast %cst_11 : f32 to vector<1x10x32xf32>
    %cst_12 = arith.constant 0.000000e+00 : f32
    %7 = vector.broadcast %cst_12 : f32 to vector<10x1x32xf32>
    %c0_13 = arith.constant 0 : index
    %c0_14 = arith.constant 0 : index
    %c0_15 = arith.constant 0 : index
    %8 = vector.load %arg24[%c0_13, %c0_14, %c0_15] : memref<10x10x32xf32, #tpu.memory_space<vmem>>, vector<1x10x32xf32>
    tpu.vector_store %arg24[%c0_13, %c0_14, %c0_15], %6 {strides = array<i32>} : memref<10x10x32xf32, #tpu.memory_space<vmem>>, vector<1x10x32xf32>,
    %c9 = arith.constant 9 : index
    %c0_16 = arith.constant 0 : index
    %c0_17 = arith.constant 0 : index
    %9 = vector.load %arg24[%c9, %c0_16, %c0_17] : memref<10x10x32xf32, #tpu.memory_space<vmem>>, vector<1x10x32xf32>
    tpu.vector_store %arg24[%c9, %c0_16, %c0_17], %6 {strides = array<i32>} : memref<10x10x32xf32, #tpu.memory_space<vmem>>, vector<1x10x32xf32>,
    %c0_18 = arith.constant 0 : index
    %c0_19 = arith.constant 0 : index
    %c0_20 = arith.constant 0 : index
    %10 = vector.load %arg24[%c0_18, %c0_19, %c0_20] : memref<10x10x32xf32, #tpu.memory_space<vmem>>, vector<10x1x32xf32>
    tpu.vector_store %arg24[%c0_18, %c0_19, %c0_20], %7 {strides = array<i32>} : memref<10x10x32xf32, #tpu.memory_space<vmem>>, vector<10x1x32xf32>,
    %c0_21 = arith.constant 0 : index
    %c9_22 = arith.constant 9 : index
    %c0_23 = arith.constant 0 : index
    %11 = vector.load %arg24[%c0_21, %c9_22, %c0_23] : memref<10x10x32xf32, #tpu.memory_space<vmem>>, vector<10x1x32xf32>
    tpu.vector_store %arg24[%c0_21, %c9_22, %c0_23], %7 {strides = array<i32>} : memref<10x10x32xf32, #tpu.memory_space<vmem>>, vector<10x1x32xf32>,
    %cst_24 = arith.constant 0.000000e+00 : f32
    %12 = vector.broadcast %cst_24 : f32 to vector<18x18x16xf32>
    %c0_25 = arith.constant 0 : index
    %c0_26 = arith.constant 0 : index
    %c0_27 = arith.constant 0 : index
    %13 = vector.load %arg25[%c0_25, %c0_26, %c0_27] : memref<18x18x16xf32, #tpu.memory_space<vmem>>, vector<18x18x16xf32>
    tpu.vector_store %arg25[%c0_25, %c0_26, %c0_27], %12 {strides = array<i32>} : memref<18x18x16xf32, #tpu.memory_space<vmem>>, vector<18x18x16xf32>,
    %c0_28 = arith.constant 0 : index
    %c0_29 = arith.constant 0 : index
    %c0_30 = arith.constant 0 : index
    %c0_31 = arith.constant 0 : index
    %14 = vector.load %arg1[%c0_28, %c0_29, %c0_30, %c0_31] : memref<1x16x16x3xf32, #tpu.memory_space<vmem>>, vector<1x16x16x3xf32>
    %15 = vector.shape_cast %14 : vector<1x16x16x3xf32> to vector<16x16x3xf32>
    %c1 = arith.constant 1 : index
    %c1_32 = arith.constant 1 : index
    %c0_33 = arith.constant 0 : index
    %16 = vector.load %arg25[%c1, %c1_32, %c0_33] : memref<18x18x16xf32, #tpu.memory_space<vmem>>, vector<16x16x3xf32>
    tpu.vector_store %arg25[%c1, %c1_32, %c0_33], %15 {strides = array<i32>} : memref<18x18x16xf32, #tpu.memory_space<vmem>>, vector<16x16x3xf32>,
    %c0_34 = arith.constant 0 : index
    %c0_35 = arith.constant 0 : index
    %c0_36 = arith.constant 0 : index
    %17 = vector.load %arg25[%c0_34, %c0_35, %c0_36] : memref<18x18x16xf32, #tpu.memory_space<vmem>>, vector<16x16x16xf32>
    %18 = vector.shape_cast %17 : vector<16x16x16xf32> to vector<256x16xf32>
    %19 = arith.truncf %18 : vector<256x16xf32> to vector<256x16xbf16>
    %c0_37 = arith.constant 0 : index
    %c0_38 = arith.constant 0 : index
    %20 = vector.load %arg28[%c0_37, %c0_38] : memref<256x144xbf16, #tpu.memory_space<vmem>>, vector<256x16xbf16>
    tpu.vector_store %arg28[%c0_37, %c0_38], %19 {strides = array<i32>} : memref<256x144xbf16, #tpu.memory_space<vmem>>, vector<256x16xbf16>,
    %c0_39 = arith.constant 0 : index
    %c1_40 = arith.constant 1 : index
    %c0_41 = arith.constant 0 : index
    %21 = vector.load %arg25[%c0_39, %c1_40, %c0_41] : memref<18x18x16xf32, #tpu.memory_space<vmem>>, vector<16x16x16xf32>
    %22 = vector.shape_cast %21 : vector<16x16x16xf32> to vector<256x16xf32>
    %23 = arith.truncf %22 : vector<256x16xf32> to vector<256x16xbf16>
    %c0_42 = arith.constant 0 : index
    %c16 = arith.constant 16 : index
    %24 = vector.load %arg28[%c0_42, %c16] : memref<256x144xbf16, #tpu.memory_space<vmem>>, vector<256x16xbf16>
    tpu.vector_store %arg28[%c0_42, %c16], %23 {strides = array<i32>} : memref<256x144xbf16, #tpu.memory_space<vmem>>, vector<256x16xbf16>,
    %c0_43 = arith.constant 0 : index
    %c2 = arith.constant 2 : index
    %c0_44 = arith.constant 0 : index
    %25 = vector.load %arg25[%c0_43, %c2, %c0_44] : memref<18x18x16xf32, #tpu.memory_space<vmem>>, vector<16x16x16xf32>
    %26 = vector.shape_cast %25 : vector<16x16x16xf32> to vector<256x16xf32>
    %27 = arith.truncf %26 : vector<256x16xf32> to vector<256x16xbf16>
    %c0_45 = arith.constant 0 : index
    %c32 = arith.constant 32 : index
    %28 = vector.load %arg28[%c0_45, %c32] : memref<256x144xbf16, #tpu.memory_space<vmem>>, vector<256x16xbf16>
    tpu.vector_store %arg28[%c0_45, %c32], %27 {strides = array<i32>} : memref<256x144xbf16, #tpu.memory_space<vmem>>, vector<256x16xbf16>,
    %c1_46 = arith.constant 1 : index
    %c0_47 = arith.constant 0 : index
    %c0_48 = arith.constant 0 : index
    %29 = vector.load %arg25[%c1_46, %c0_47, %c0_48] : memref<18x18x16xf32, #tpu.memory_space<vmem>>, vector<16x16x16xf32>
    %30 = vector.shape_cast %29 : vector<16x16x16xf32> to vector<256x16xf32>
    %31 = arith.truncf %30 : vector<256x16xf32> to vector<256x16xbf16>
    %c0_49 = arith.constant 0 : index
    %c48 = arith.constant 48 : index
    %32 = vector.load %arg28[%c0_49, %c48] : memref<256x144xbf16, #tpu.memory_space<vmem>>, vector<256x16xbf16>
    tpu.vector_store %arg28[%c0_49, %c48], %31 {strides = array<i32>} : memref<256x144xbf16, #tpu.memory_space<vmem>>, vector<256x16xbf16>,
    %c1_50 = arith.constant 1 : index
    %c1_51 = arith.constant 1 : index
    %c0_52 = arith.constant 0 : index
    %33 = vector.load %arg25[%c1_50, %c1_51, %c0_52] : memref<18x18x16xf32, #tpu.memory_space<vmem>>, vector<16x16x16xf32>
    %34 = vector.shape_cast %33 : vector<16x16x16xf32> to vector<256x16xf32>
    %35 = arith.truncf %34 : vector<256x16xf32> to vector<256x16xbf16>
    %c0_53 = arith.constant 0 : index
    %c64 = arith.constant 64 : index
    %36 = vector.load %arg28[%c0_53, %c64] : memref<256x144xbf16, #tpu.memory_space<vmem>>, vector<256x16xbf16>
    tpu.vector_store %arg28[%c0_53, %c64], %35 {strides = array<i32>} : memref<256x144xbf16, #tpu.memory_space<vmem>>, vector<256x16xbf16>,
    %c1_54 = arith.constant 1 : index
    %c2_55 = arith.constant 2 : index
    %c0_56 = arith.constant 0 : index
    %37 = vector.load %arg25[%c1_54, %c2_55, %c0_56] : memref<18x18x16xf32, #tpu.memory_space<vmem>>, vector<16x16x16xf32>
    %38 = vector.shape_cast %37 : vector<16x16x16xf32> to vector<256x16xf32>
    %39 = arith.truncf %38 : vector<256x16xf32> to vector<256x16xbf16>
    %c0_57 = arith.constant 0 : index
    %c80 = arith.constant 80 : index
    %40 = vector.load %arg28[%c0_57, %c80] : memref<256x144xbf16, #tpu.memory_space<vmem>>, vector<256x16xbf16>
    tpu.vector_store %arg28[%c0_57, %c80], %39 {strides = array<i32>} : memref<256x144xbf16, #tpu.memory_space<vmem>>, vector<256x16xbf16>,
    %c2_58 = arith.constant 2 : index
    %c0_59 = arith.constant 0 : index
    %c0_60 = arith.constant 0 : index
    %41 = vector.load %arg25[%c2_58, %c0_59, %c0_60] : memref<18x18x16xf32, #tpu.memory_space<vmem>>, vector<16x16x16xf32>
    %42 = vector.shape_cast %41 : vector<16x16x16xf32> to vector<256x16xf32>
    %43 = arith.truncf %42 : vector<256x16xf32> to vector<256x16xbf16>
    %c0_61 = arith.constant 0 : index
    %c96 = arith.constant 96 : index
    %44 = vector.load %arg28[%c0_61, %c96] : memref<256x144xbf16, #tpu.memory_space<vmem>>, vector<256x16xbf16>
    tpu.vector_store %arg28[%c0_61, %c96], %43 {strides = array<i32>} : memref<256x144xbf16, #tpu.memory_space<vmem>>, vector<256x16xbf16>,
    %c2_62 = arith.constant 2 : index
    %c1_63 = arith.constant 1 : index
    %c0_64 = arith.constant 0 : index
    %45 = vector.load %arg25[%c2_62, %c1_63, %c0_64] : memref<18x18x16xf32, #tpu.memory_space<vmem>>, vector<16x16x16xf32>
    %46 = vector.shape_cast %45 : vector<16x16x16xf32> to vector<256x16xf32>
    %47 = arith.truncf %46 : vector<256x16xf32> to vector<256x16xbf16>
    %c0_65 = arith.constant 0 : index
    %c112 = arith.constant 112 : index
    %48 = vector.load %arg28[%c0_65, %c112] : memref<256x144xbf16, #tpu.memory_space<vmem>>, vector<256x16xbf16>
    tpu.vector_store %arg28[%c0_65, %c112], %47 {strides = array<i32>} : memref<256x144xbf16, #tpu.memory_space<vmem>>, vector<256x16xbf16>,
    %c2_66 = arith.constant 2 : index
    %c2_67 = arith.constant 2 : index
    %c0_68 = arith.constant 0 : index
    %49 = vector.load %arg25[%c2_66, %c2_67, %c0_68] : memref<18x18x16xf32, #tpu.memory_space<vmem>>, vector<16x16x16xf32>
    %50 = vector.shape_cast %49 : vector<16x16x16xf32> to vector<256x16xf32>
    %51 = arith.truncf %50 : vector<256x16xf32> to vector<256x16xbf16>
    %c0_69 = arith.constant 0 : index
    %c128 = arith.constant 128 : index
    %52 = vector.load %arg28[%c0_69, %c128] : memref<256x144xbf16, #tpu.memory_space<vmem>>, vector<256x16xbf16>
    tpu.vector_store %arg28[%c0_69, %c128], %51 {strides = array<i32>} : memref<256x144xbf16, #tpu.memory_space<vmem>>, vector<256x16xbf16>,
    %c0_70 = arith.constant 0 : index
    %c0_71 = arith.constant 0 : index
    %53 = vector.load %arg28[%c0_70, %c0_71] : memref<256x144xbf16, #tpu.memory_space<vmem>>, vector<256x144xbf16>
    %c0_72 = arith.constant 0 : index
    %c0_73 = arith.constant 0 : index
    %54 = vector.load %arg2[%c0_72, %c0_73] : memref<144x16xbf16, #tpu.memory_space<vmem>>, vector<144x16xbf16>
    %cst_74 = arith.constant dense<0.000000e+00> : vector<256x16xf32>
    %55 = tpu.matmul %53, %54, %cst_74 {dimension_numbers = #tpu.dot_dimension_numbers<[1], [0], [0], [1], [0, 0, 1, 1], [], []>} : vector<256x144xbf16>, vector<144x16xbf16>, vector<256x16xf32> -> vector<256x16xf32>
    %c0_75 = arith.constant 0 : index
    %c0_76 = arith.constant 0 : index
    %56 = vector.load %arg3[%c0_75, %c0_76] : memref<1x16xf32, #tpu.memory_space<vmem>>, vector<1x16xf32>
    %57 = vector.broadcast %56 : vector<1x16xf32> to vector<256x16xf32>
    %58 = arith.addf %55, %57 : vector<256x16xf32>
    %cst_77 = arith.constant 0.000000e+00 : f32
    %59 = vector.broadcast %cst_77 : f32 to vector<256x16xf32>
    %60 = arith.maximumf %58, %59 : vector<256x16xf32>
    %61 = vector.shape_cast %60 : vector<256x16xf32> to vector<16x16x16xf32>
    %c1_78 = arith.constant 1 : index
    %c1_79 = arith.constant 1 : index
    %c0_80 = arith.constant 0 : index
    %62 = vector.load %arg25[%c1_78, %c1_79, %c0_80] : memref<18x18x16xf32, #tpu.memory_space<vmem>>, vector<16x16x16xf32>
    tpu.vector_store %arg25[%c1_78, %c1_79, %c0_80], %61 {strides = array<i32>} : memref<18x18x16xf32, #tpu.memory_space<vmem>>, vector<16x16x16xf32>,
    %c0_81 = arith.constant 0 : index
    %c0_82 = arith.constant 0 : index
    %c0_83 = arith.constant 0 : index
    %63 = vector.load %arg25[%c0_81, %c0_82, %c0_83] : memref<18x18x16xf32, #tpu.memory_space<vmem>>, vector<16x16x16xf32>
    %64 = vector.shape_cast %63 : vector<16x16x16xf32> to vector<256x16xf32>
    %65 = arith.truncf %64 : vector<256x16xf32> to vector<256x16xbf16>
    %c0_84 = arith.constant 0 : index
    %c0_85 = arith.constant 0 : index
    %66 = vector.load %arg28[%c0_84, %c0_85] : memref<256x144xbf16, #tpu.memory_space<vmem>>, vector<256x16xbf16>
    tpu.vector_store %arg28[%c0_84, %c0_85], %65 {strides = array<i32>} : memref<256x144xbf16, #tpu.memory_space<vmem>>, vector<256x16xbf16>,
    %c0_86 = arith.constant 0 : index
    %c1_87 = arith.constant 1 : index
    %c0_88 = arith.constant 0 : index
    %67 = vector.load %arg25[%c0_86, %c1_87, %c0_88] : memref<18x18x16xf32, #tpu.memory_space<vmem>>, vector<16x16x16xf32>
    %68 = vector.shape_cast %67 : vector<16x16x16xf32> to vector<256x16xf32>
    %69 = arith.truncf %68 : vector<256x16xf32> to vector<256x16xbf16>
    %c0_89 = arith.constant 0 : index
    %c16_90 = arith.constant 16 : index
    %70 = vector.load %arg28[%c0_89, %c16_90] : memref<256x144xbf16, #tpu.memory_space<vmem>>, vector<256x16xbf16>
    tpu.vector_store %arg28[%c0_89, %c16_90], %69 {strides = array<i32>} : memref<256x144xbf16, #tpu.memory_space<vmem>>, vector<256x16xbf16>,
    %c0_91 = arith.constant 0 : index
    %c2_92 = arith.constant 2 : index
    %c0_93 = arith.constant 0 : index
    %71 = vector.load %arg25[%c0_91, %c2_92, %c0_93] : memref<18x18x16xf32, #tpu.memory_space<vmem>>, vector<16x16x16xf32>
    %72 = vector.shape_cast %71 : vector<16x16x16xf32> to vector<256x16xf32>
    %73 = arith.truncf %72 : vector<256x16xf32> to vector<256x16xbf16>
    %c0_94 = arith.constant 0 : index
    %c32_95 = arith.constant 32 : index
    %74 = vector.load %arg28[%c0_94, %c32_95] : memref<256x144xbf16, #tpu.memory_space<vmem>>, vector<256x16xbf16>
    tpu.vector_store %arg28[%c0_94, %c32_95], %73 {strides = array<i32>} : memref<256x144xbf16, #tpu.memory_space<vmem>>, vector<256x16xbf16>,
    %c1_96 = arith.constant 1 : index
    %c0_97 = arith.constant 0 : index
    %c0_98 = arith.constant 0 : index
    %75 = vector.load %arg25[%c1_96, %c0_97, %c0_98] : memref<18x18x16xf32, #tpu.memory_space<vmem>>, vector<16x16x16xf32>
    %76 = vector.shape_cast %75 : vector<16x16x16xf32> to vector<256x16xf32>
    %77 = arith.truncf %76 : vector<256x16xf32> to vector<256x16xbf16>
    %c0_99 = arith.constant 0 : index
    %c48_100 = arith.constant 48 : index
    %78 = vector.load %arg28[%c0_99, %c48_100] : memref<256x144xbf16, #tpu.memory_space<vmem>>, vector<256x16xbf16>
    tpu.vector_store %arg28[%c0_99, %c48_100], %77 {strides = array<i32>} : memref<256x144xbf16, #tpu.memory_space<vmem>>, vector<256x16xbf16>,
    %c1_101 = arith.constant 1 : index
    %c1_102 = arith.constant 1 : index
    %c0_103 = arith.constant 0 : index
    %79 = vector.load %arg25[%c1_101, %c1_102, %c0_103] : memref<18x18x16xf32, #tpu.memory_space<vmem>>, vector<16x16x16xf32>
    %80 = vector.shape_cast %79 : vector<16x16x16xf32> to vector<256x16xf32>
    %81 = arith.truncf %80 : vector<256x16xf32> to vector<256x16xbf16>
    %c0_104 = arith.constant 0 : index
    %c64_105 = arith.constant 64 : index
    %82 = vector.load %arg28[%c0_104, %c64_105] : memref<256x144xbf16, #tpu.memory_space<vmem>>, vector<256x16xbf16>
    tpu.vector_store %arg28[%c0_104, %c64_105], %81 {strides = array<i32>} : memref<256x144xbf16, #tpu.memory_space<vmem>>, vector<256x16xbf16>,
    %c1_106 = arith.constant 1 : index
    %c2_107 = arith.constant 2 : index
    %c0_108 = arith.constant 0 : index
    %83 = vector.load %arg25[%c1_106, %c2_107, %c0_108] : memref<18x18x16xf32, #tpu.memory_space<vmem>>, vector<16x16x16xf32>
    %84 = vector.shape_cast %83 : vector<16x16x16xf32> to vector<256x16xf32>
    %85 = arith.truncf %84 : vector<256x16xf32> to vector<256x16xbf16>
    %c0_109 = arith.constant 0 : index
    %c80_110 = arith.constant 80 : index
    %86 = vector.load %arg28[%c0_109, %c80_110] : memref<256x144xbf16, #tpu.memory_space<vmem>>, vector<256x16xbf16>
    tpu.vector_store %arg28[%c0_109, %c80_110], %85 {strides = array<i32>} : memref<256x144xbf16, #tpu.memory_space<vmem>>, vector<256x16xbf16>,
    %c2_111 = arith.constant 2 : index
    %c0_112 = arith.constant 0 : index
    %c0_113 = arith.constant 0 : index
    %87 = vector.load %arg25[%c2_111, %c0_112, %c0_113] : memref<18x18x16xf32, #tpu.memory_space<vmem>>, vector<16x16x16xf32>
    %88 = vector.shape_cast %87 : vector<16x16x16xf32> to vector<256x16xf32>
    %89 = arith.truncf %88 : vector<256x16xf32> to vector<256x16xbf16>
    %c0_114 = arith.constant 0 : index
    %c96_115 = arith.constant 96 : index
    %90 = vector.load %arg28[%c0_114, %c96_115] : memref<256x144xbf16, #tpu.memory_space<vmem>>, vector<256x16xbf16>
    tpu.vector_store %arg28[%c0_114, %c96_115], %89 {strides = array<i32>} : memref<256x144xbf16, #tpu.memory_space<vmem>>, vector<256x16xbf16>,
    %c2_116 = arith.constant 2 : index
    %c1_117 = arith.constant 1 : index
    %c0_118 = arith.constant 0 : index
    %91 = vector.load %arg25[%c2_116, %c1_117, %c0_118] : memref<18x18x16xf32, #tpu.memory_space<vmem>>, vector<16x16x16xf32>
    %92 = vector.shape_cast %91 : vector<16x16x16xf32> to vector<256x16xf32>
    %93 = arith.truncf %92 : vector<256x16xf32> to vector<256x16xbf16>
    %c0_119 = arith.constant 0 : index
    %c112_120 = arith.constant 112 : index
    %94 = vector.load %arg28[%c0_119, %c112_120] : memref<256x144xbf16, #tpu.memory_space<vmem>>, vector<256x16xbf16>
    tpu.vector_store %arg28[%c0_119, %c112_120], %93 {strides = array<i32>} : memref<256x144xbf16, #tpu.memory_space<vmem>>, vector<256x16xbf16>,
    %c2_121 = arith.constant 2 : index
    %c2_122 = arith.constant 2 : index
    %c0_123 = arith.constant 0 : index
    %95 = vector.load %arg25[%c2_121, %c2_122, %c0_123] : memref<18x18x16xf32, #tpu.memory_space<vmem>>, vector<16x16x16xf32>
    %96 = vector.shape_cast %95 : vector<16x16x16xf32> to vector<256x16xf32>
    %97 = arith.truncf %96 : vector<256x16xf32> to vector<256x16xbf16>
    %c0_124 = arith.constant 0 : index
    %c128_125 = arith.constant 128 : index
    %98 = vector.load %arg28[%c0_124, %c128_125] : memref<256x144xbf16, #tpu.memory_space<vmem>>, vector<256x16xbf16>
    tpu.vector_store %arg28[%c0_124, %c128_125], %97 {strides = array<i32>} : memref<256x144xbf16, #tpu.memory_space<vmem>>, vector<256x16xbf16>,
    %c0_126 = arith.constant 0 : index
    %c0_127 = arith.constant 0 : index
    %99 = vector.load %arg28[%c0_126, %c0_127] : memref<256x144xbf16, #tpu.memory_space<vmem>>, vector<256x144xbf16>
    %c0_128 = arith.constant 0 : index
    %c0_129 = arith.constant 0 : index
    %100 = vector.load %arg4[%c0_128, %c0_129] : memref<144x16xbf16, #tpu.memory_space<vmem>>, vector<144x16xbf16>
    %cst_130 = arith.constant dense<0.000000e+00> : vector<256x16xf32>
    %101 = tpu.matmul %99, %100, %cst_130 {dimension_numbers = #tpu.dot_dimension_numbers<[1], [0], [0], [1], [0, 0, 1, 1], [], []>} : vector<256x144xbf16>, vector<144x16xbf16>, vector<256x16xf32> -> vector<256x16xf32>
    %c0_131 = arith.constant 0 : index
    %c0_132 = arith.constant 0 : index
    %102 = vector.load %arg5[%c0_131, %c0_132] : memref<1x16xf32, #tpu.memory_space<vmem>>, vector<1x16xf32>
    %103 = vector.broadcast %102 : vector<1x16xf32> to vector<256x16xf32>
    %104 = arith.addf %101, %103 : vector<256x16xf32>
    %cst_133 = arith.constant 0.000000e+00 : f32
    %105 = vector.broadcast %cst_133 : f32 to vector<256x16xf32>
    %106 = arith.maximumf %104, %105 : vector<256x16xf32>
    %107 = vector.shape_cast %106 : vector<256x16xf32> to vector<16x16x16xf32>
    %c1_134 = arith.constant 1 : index
    %c1_135 = arith.constant 1 : index
    %c0_136 = arith.constant 0 : index
    %108 = vector.load %arg25[%c1_134, %c1_135, %c0_136] : memref<18x18x16xf32, #tpu.memory_space<vmem>>, vector<16x16x16xf32>
    tpu.vector_store %arg25[%c1_134, %c1_135, %c0_136], %107 {strides = array<i32>} : memref<18x18x16xf32, #tpu.memory_space<vmem>>, vector<16x16x16xf32>,
    %c0_137 = arith.constant 0 : index
    %c0_138 = arith.constant 0 : index
    %c0_139 = arith.constant 0 : index
    %109 = vector.load %arg25[%c0_137, %c0_138, %c0_139] : memref<18x18x16xf32, #tpu.memory_space<vmem>>, vector<16x16x16xf32>
    %110 = vector.shape_cast %109 : vector<16x16x16xf32> to vector<256x16xf32>
    %111 = arith.truncf %110 : vector<256x16xf32> to vector<256x16xbf16>
    %c0_140 = arith.constant 0 : index
    %c0_141 = arith.constant 0 : index
    %112 = vector.load %arg28[%c0_140, %c0_141] : memref<256x144xbf16, #tpu.memory_space<vmem>>, vector<256x16xbf16>
    tpu.vector_store %arg28[%c0_140, %c0_141], %111 {strides = array<i32>} : memref<256x144xbf16, #tpu.memory_space<vmem>>, vector<256x16xbf16>,
    %c0_142 = arith.constant 0 : index
    %c1_143 = arith.constant 1 : index
    %c0_144 = arith.constant 0 : index
    %113 = vector.load %arg25[%c0_142, %c1_143, %c0_144] : memref<18x18x16xf32, #tpu.memory_space<vmem>>, vector<16x16x16xf32>
    %114 = vector.shape_cast %113 : vector<16x16x16xf32> to vector<256x16xf32>
    %115 = arith.truncf %114 : vector<256x16xf32> to vector<256x16xbf16>
    %c0_145 = arith.constant 0 : index
    %c16_146 = arith.constant 16 : index
    %116 = vector.load %arg28[%c0_145, %c16_146] : memref<256x144xbf16, #tpu.memory_space<vmem>>, vector<256x16xbf16>
    tpu.vector_store %arg28[%c0_145, %c16_146], %115 {strides = array<i32>} : memref<256x144xbf16, #tpu.memory_space<vmem>>, vector<256x16xbf16>,
    %c0_147 = arith.constant 0 : index
    %c2_148 = arith.constant 2 : index
    %c0_149 = arith.constant 0 : index
    %117 = vector.load %arg25[%c0_147, %c2_148, %c0_149] : memref<18x18x16xf32, #tpu.memory_space<vmem>>, vector<16x16x16xf32>
    %118 = vector.shape_cast %117 : vector<16x16x16xf32> to vector<256x16xf32>
    %119 = arith.truncf %118 : vector<256x16xf32> to vector<256x16xbf16>
    %c0_150 = arith.constant 0 : index
    %c32_151 = arith.constant 32 : index
    %120 = vector.load %arg28[%c0_150, %c32_151] : memref<256x144xbf16, #tpu.memory_space<vmem>>, vector<256x16xbf16>
    tpu.vector_store %arg28[%c0_150, %c32_151], %119 {strides = array<i32>} : memref<256x144xbf16, #tpu.memory_space<vmem>>, vector<256x16xbf16>,
    %c1_152 = arith.constant 1 : index
    %c0_153 = arith.constant 0 : index
    %c0_154 = arith.constant 0 : index
    %121 = vector.load %arg25[%c1_152, %c0_153, %c0_154] : memref<18x18x16xf32, #tpu.memory_space<vmem>>, vector<16x16x16xf32>
    %122 = vector.shape_cast %121 : vector<16x16x16xf32> to vector<256x16xf32>
    %123 = arith.truncf %122 : vector<256x16xf32> to vector<256x16xbf16>
    %c0_155 = arith.constant 0 : index
    %c48_156 = arith.constant 48 : index
    %124 = vector.load %arg28[%c0_155, %c48_156] : memref<256x144xbf16, #tpu.memory_space<vmem>>, vector<256x16xbf16>
    tpu.vector_store %arg28[%c0_155, %c48_156], %123 {strides = array<i32>} : memref<256x144xbf16, #tpu.memory_space<vmem>>, vector<256x16xbf16>,
    %c1_157 = arith.constant 1 : index
    %c1_158 = arith.constant 1 : index
    %c0_159 = arith.constant 0 : index
    %125 = vector.load %arg25[%c1_157, %c1_158, %c0_159] : memref<18x18x16xf32, #tpu.memory_space<vmem>>, vector<16x16x16xf32>
    %126 = vector.shape_cast %125 : vector<16x16x16xf32> to vector<256x16xf32>
    %127 = arith.truncf %126 : vector<256x16xf32> to vector<256x16xbf16>
    %c0_160 = arith.constant 0 : index
    %c64_161 = arith.constant 64 : index
    %128 = vector.load %arg28[%c0_160, %c64_161] : memref<256x144xbf16, #tpu.memory_space<vmem>>, vector<256x16xbf16>
    tpu.vector_store %arg28[%c0_160, %c64_161], %127 {strides = array<i32>} : memref<256x144xbf16, #tpu.memory_space<vmem>>, vector<256x16xbf16>,
    %c1_162 = arith.constant 1 : index
    %c2_163 = arith.constant 2 : index
    %c0_164 = arith.constant 0 : index
    %129 = vector.load %arg25[%c1_162, %c2_163, %c0_164] : memref<18x18x16xf32, #tpu.memory_space<vmem>>, vector<16x16x16xf32>
    %130 = vector.shape_cast %129 : vector<16x16x16xf32> to vector<256x16xf32>
    %131 = arith.truncf %130 : vector<256x16xf32> to vector<256x16xbf16>
    %c0_165 = arith.constant 0 : index
    %c80_166 = arith.constant 80 : index
    %132 = vector.load %arg28[%c0_165, %c80_166] : memref<256x144xbf16, #tpu.memory_space<vmem>>, vector<256x16xbf16>
    tpu.vector_store %arg28[%c0_165, %c80_166], %131 {strides = array<i32>} : memref<256x144xbf16, #tpu.memory_space<vmem>>, vector<256x16xbf16>,
    %c2_167 = arith.constant 2 : index
    %c0_168 = arith.constant 0 : index
    %c0_169 = arith.constant 0 : index
    %133 = vector.load %arg25[%c2_167, %c0_168, %c0_169] : memref<18x18x16xf32, #tpu.memory_space<vmem>>, vector<16x16x16xf32>
    %134 = vector.shape_cast %133 : vector<16x16x16xf32> to vector<256x16xf32>
    %135 = arith.truncf %134 : vector<256x16xf32> to vector<256x16xbf16>
    %c0_170 = arith.constant 0 : index
    %c96_171 = arith.constant 96 : index
    %136 = vector.load %arg28[%c0_170, %c96_171] : memref<256x144xbf16, #tpu.memory_space<vmem>>, vector<256x16xbf16>
    tpu.vector_store %arg28[%c0_170, %c96_171], %135 {strides = array<i32>} : memref<256x144xbf16, #tpu.memory_space<vmem>>, vector<256x16xbf16>,
    %c2_172 = arith.constant 2 : index
    %c1_173 = arith.constant 1 : index
    %c0_174 = arith.constant 0 : index
    %137 = vector.load %arg25[%c2_172, %c1_173, %c0_174] : memref<18x18x16xf32, #tpu.memory_space<vmem>>, vector<16x16x16xf32>
    %138 = vector.shape_cast %137 : vector<16x16x16xf32> to vector<256x16xf32>
    %139 = arith.truncf %138 : vector<256x16xf32> to vector<256x16xbf16>
    %c0_175 = arith.constant 0 : index
    %c112_176 = arith.constant 112 : index
    %140 = vector.load %arg28[%c0_175, %c112_176] : memref<256x144xbf16, #tpu.memory_space<vmem>>, vector<256x16xbf16>
    tpu.vector_store %arg28[%c0_175, %c112_176], %139 {strides = array<i32>} : memref<256x144xbf16, #tpu.memory_space<vmem>>, vector<256x16xbf16>,
    %c2_177 = arith.constant 2 : index
    %c2_178 = arith.constant 2 : index
    %c0_179 = arith.constant 0 : index
    %141 = vector.load %arg25[%c2_177, %c2_178, %c0_179] : memref<18x18x16xf32, #tpu.memory_space<vmem>>, vector<16x16x16xf32>
    %142 = vector.shape_cast %141 : vector<16x16x16xf32> to vector<256x16xf32>
    %143 = arith.truncf %142 : vector<256x16xf32> to vector<256x16xbf16>
    %c0_180 = arith.constant 0 : index
    %c128_181 = arith.constant 128 : index
    %144 = vector.load %arg28[%c0_180, %c128_181] : memref<256x144xbf16, #tpu.memory_space<vmem>>, vector<256x16xbf16>
    tpu.vector_store %arg28[%c0_180, %c128_181], %143 {strides = array<i32>} : memref<256x144xbf16, #tpu.memory_space<vmem>>, vector<256x16xbf16>,
    %c0_182 = arith.constant 0 : index
    %c0_183 = arith.constant 0 : index
    %145 = vector.load %arg28[%c0_182, %c0_183] : memref<256x144xbf16, #tpu.memory_space<vmem>>, vector<256x144xbf16>
    %c0_184 = arith.constant 0 : index
    %c0_185 = arith.constant 0 : index
    %146 = vector.load %arg6[%c0_184, %c0_185] : memref<144x16xbf16, #tpu.memory_space<vmem>>, vector<144x16xbf16>
    %cst_186 = arith.constant dense<0.000000e+00> : vector<256x16xf32>
    %147 = tpu.matmul %145, %146, %cst_186 {dimension_numbers = #tpu.dot_dimension_numbers<[1], [0], [0], [1], [0, 0, 1, 1], [], []>} : vector<256x144xbf16>, vector<144x16xbf16>, vector<256x16xf32> -> vector<256x16xf32>
    %c0_187 = arith.constant 0 : index
    %c0_188 = arith.constant 0 : index
    %148 = vector.load %arg7[%c0_187, %c0_188] : memref<1x16xf32, #tpu.memory_space<vmem>>, vector<1x16xf32>
    %149 = vector.broadcast %148 : vector<1x16xf32> to vector<256x16xf32>
    %150 = arith.addf %147, %149 : vector<256x16xf32>
    %151 = vector.shape_cast %150 : vector<256x16xf32> to vector<16x16x16xf32>
    %152 = arith.addf %151, %61 : vector<16x16x16xf32>
    %cst_189 = arith.constant 0.000000e+00 : f32
    %153 = vector.broadcast %cst_189 : f32 to vector<16x16x16xf32>
    %154 = arith.maximumf %152, %153 : vector<16x16x16xf32>
    %c1_190 = arith.constant 1 : index
    %c1_191 = arith.constant 1 : index
    %c0_192 = arith.constant 0 : index
    %155 = vector.load %arg25[%c1_190, %c1_191, %c0_192] : memref<18x18x16xf32, #tpu.memory_space<vmem>>, vector<16x16x16xf32>
    tpu.vector_store %arg25[%c1_190, %c1_191, %c0_192], %154 {strides = array<i32>} : memref<18x18x16xf32, #tpu.memory_space<vmem>>, vector<16x16x16xf32>,
    %c0_193 = arith.constant 0 : index
    %c0_194 = arith.constant 0 : index
    %c0_195 = arith.constant 0 : index
    %156 = tpu.strided_load %arg25[%c0_193, %c0_194, %c0_195] {strides = array<i32: 2, 2, 1>} : memref<18x18x16xf32, #tpu.memory_space<vmem>>, vector<8x8x16xf32>
    %157 = vector.shape_cast %156 : vector<8x8x16xf32> to vector<64x16xf32>
    %158 = arith.truncf %157 : vector<64x16xf32> to vector<64x16xbf16>
    %c0_196 = arith.constant 0 : index
    %c0_197 = arith.constant 0 : index
    %159 = vector.load %arg28[%c0_196, %c0_197] : memref<256x144xbf16, #tpu.memory_space<vmem>>, vector<64x16xbf16>
    tpu.vector_store %arg28[%c0_196, %c0_197], %158 {strides = array<i32>} : memref<256x144xbf16, #tpu.memory_space<vmem>>, vector<64x16xbf16>,
    %c0_198 = arith.constant 0 : index
    %c1_199 = arith.constant 1 : index
    %c0_200 = arith.constant 0 : index
    %160 = tpu.strided_load %arg25[%c0_198, %c1_199, %c0_200] {strides = array<i32: 2, 2, 1>} : memref<18x18x16xf32, #tpu.memory_space<vmem>>, vector<8x8x16xf32>
    %161 = vector.shape_cast %160 : vector<8x8x16xf32> to vector<64x16xf32>
    %162 = arith.truncf %161 : vector<64x16xf32> to vector<64x16xbf16>
    %c0_201 = arith.constant 0 : index
    %c16_202 = arith.constant 16 : index
    %163 = vector.load %arg28[%c0_201, %c16_202] : memref<256x144xbf16, #tpu.memory_space<vmem>>, vector<64x16xbf16>
    tpu.vector_store %arg28[%c0_201, %c16_202], %162 {strides = array<i32>} : memref<256x144xbf16, #tpu.memory_space<vmem>>, vector<64x16xbf16>,
    %c0_203 = arith.constant 0 : index
    %c2_204 = arith.constant 2 : index
    %c0_205 = arith.constant 0 : index
    %164 = tpu.strided_load %arg25[%c0_203, %c2_204, %c0_205] {strides = array<i32: 2, 2, 1>} : memref<18x18x16xf32, #tpu.memory_space<vmem>>, vector<8x8x16xf32>
    %165 = vector.shape_cast %164 : vector<8x8x16xf32> to vector<64x16xf32>
    %166 = arith.truncf %165 : vector<64x16xf32> to vector<64x16xbf16>
    %c0_206 = arith.constant 0 : index
    %c32_207 = arith.constant 32 : index
    %167 = vector.load %arg28[%c0_206, %c32_207] : memref<256x144xbf16, #tpu.memory_space<vmem>>, vector<64x16xbf16>
    tpu.vector_store %arg28[%c0_206, %c32_207], %166 {strides = array<i32>} : memref<256x144xbf16, #tpu.memory_space<vmem>>, vector<64x16xbf16>,
    %c1_208 = arith.constant 1 : index
    %c0_209 = arith.constant 0 : index
    %c0_210 = arith.constant 0 : index
    %168 = tpu.strided_load %arg25[%c1_208, %c0_209, %c0_210] {strides = array<i32: 2, 2, 1>} : memref<18x18x16xf32, #tpu.memory_space<vmem>>, vector<8x8x16xf32>
    %169 = vector.shape_cast %168 : vector<8x8x16xf32> to vector<64x16xf32>
    %170 = arith.truncf %169 : vector<64x16xf32> to vector<64x16xbf16>
    %c0_211 = arith.constant 0 : index
    %c48_212 = arith.constant 48 : index
    %171 = vector.load %arg28[%c0_211, %c48_212] : memref<256x144xbf16, #tpu.memory_space<vmem>>, vector<64x16xbf16>
    tpu.vector_store %arg28[%c0_211, %c48_212], %170 {strides = array<i32>} : memref<256x144xbf16, #tpu.memory_space<vmem>>, vector<64x16xbf16>,
    %c1_213 = arith.constant 1 : index
    %c1_214 = arith.constant 1 : index
    %c0_215 = arith.constant 0 : index
    %172 = tpu.strided_load %arg25[%c1_213, %c1_214, %c0_215] {strides = array<i32: 2, 2, 1>} : memref<18x18x16xf32, #tpu.memory_space<vmem>>, vector<8x8x16xf32>
    %173 = vector.shape_cast %172 : vector<8x8x16xf32> to vector<64x16xf32>
    %174 = arith.truncf %173 : vector<64x16xf32> to vector<64x16xbf16>
    %c0_216 = arith.constant 0 : index
    %c64_217 = arith.constant 64 : index
    %175 = vector.load %arg28[%c0_216, %c64_217] : memref<256x144xbf16, #tpu.memory_space<vmem>>, vector<64x16xbf16>
    tpu.vector_store %arg28[%c0_216, %c64_217], %174 {strides = array<i32>} : memref<256x144xbf16, #tpu.memory_space<vmem>>, vector<64x16xbf16>,
    %c1_218 = arith.constant 1 : index
    %c2_219 = arith.constant 2 : index
    %c0_220 = arith.constant 0 : index
    %176 = tpu.strided_load %arg25[%c1_218, %c2_219, %c0_220] {strides = array<i32: 2, 2, 1>} : memref<18x18x16xf32, #tpu.memory_space<vmem>>, vector<8x8x16xf32>
    %177 = vector.shape_cast %176 : vector<8x8x16xf32> to vector<64x16xf32>
    %178 = arith.truncf %177 : vector<64x16xf32> to vector<64x16xbf16>
    %c0_221 = arith.constant 0 : index
    %c80_222 = arith.constant 80 : index
    %179 = vector.load %arg28[%c0_221, %c80_222] : memref<256x144xbf16, #tpu.memory_space<vmem>>, vector<64x16xbf16>
    tpu.vector_store %arg28[%c0_221, %c80_222], %178 {strides = array<i32>} : memref<256x144xbf16, #tpu.memory_space<vmem>>, vector<64x16xbf16>,
    %c2_223 = arith.constant 2 : index
    %c0_224 = arith.constant 0 : index
    %c0_225 = arith.constant 0 : index
    %180 = tpu.strided_load %arg25[%c2_223, %c0_224, %c0_225] {strides = array<i32: 2, 2, 1>} : memref<18x18x16xf32, #tpu.memory_space<vmem>>, vector<8x8x16xf32>
    %181 = vector.shape_cast %180 : vector<8x8x16xf32> to vector<64x16xf32>
    %182 = arith.truncf %181 : vector<64x16xf32> to vector<64x16xbf16>
    %c0_226 = arith.constant 0 : index
    %c96_227 = arith.constant 96 : index
    %183 = vector.load %arg28[%c0_226, %c96_227] : memref<256x144xbf16, #tpu.memory_space<vmem>>, vector<64x16xbf16>
    tpu.vector_store %arg28[%c0_226, %c96_227], %182 {strides = array<i32>} : memref<256x144xbf16, #tpu.memory_space<vmem>>, vector<64x16xbf16>,
    %c2_228 = arith.constant 2 : index
    %c1_229 = arith.constant 1 : index
    %c0_230 = arith.constant 0 : index
    %184 = tpu.strided_load %arg25[%c2_228, %c1_229, %c0_230] {strides = array<i32: 2, 2, 1>} : memref<18x18x16xf32, #tpu.memory_space<vmem>>, vector<8x8x16xf32>
    %185 = vector.shape_cast %184 : vector<8x8x16xf32> to vector<64x16xf32>
    %186 = arith.truncf %185 : vector<64x16xf32> to vector<64x16xbf16>
    %c0_231 = arith.constant 0 : index
    %c112_232 = arith.constant 112 : index
    %187 = vector.load %arg28[%c0_231, %c112_232] : memref<256x144xbf16, #tpu.memory_space<vmem>>, vector<64x16xbf16>
    tpu.vector_store %arg28[%c0_231, %c112_232], %186 {strides = array<i32>} : memref<256x144xbf16, #tpu.memory_space<vmem>>, vector<64x16xbf16>,
    %c2_233 = arith.constant 2 : index
    %c2_234 = arith.constant 2 : index
    %c0_235 = arith.constant 0 : index
    %188 = tpu.strided_load %arg25[%c2_233, %c2_234, %c0_235] {strides = array<i32: 2, 2, 1>} : memref<18x18x16xf32, #tpu.memory_space<vmem>>, vector<8x8x16xf32>
    %189 = vector.shape_cast %188 : vector<8x8x16xf32> to vector<64x16xf32>
    %190 = arith.truncf %189 : vector<64x16xf32> to vector<64x16xbf16>
    %c0_236 = arith.constant 0 : index
    %c128_237 = arith.constant 128 : index
    %191 = vector.load %arg28[%c0_236, %c128_237] : memref<256x144xbf16, #tpu.memory_space<vmem>>, vector<64x16xbf16>
    tpu.vector_store %arg28[%c0_236, %c128_237], %190 {strides = array<i32>} : memref<256x144xbf16, #tpu.memory_space<vmem>>, vector<64x16xbf16>,
    %c0_238 = arith.constant 0 : index
    %c0_239 = arith.constant 0 : index
    %192 = vector.load %arg28[%c0_238, %c0_239] : memref<256x144xbf16, #tpu.memory_space<vmem>>, vector<64x144xbf16>
    %c0_240 = arith.constant 0 : index
    %c0_241 = arith.constant 0 : index
    %193 = vector.load %arg8[%c0_240, %c0_241] : memref<144x32xbf16, #tpu.memory_space<vmem>>, vector<144x32xbf16>
    %cst_242 = arith.constant dense<0.000000e+00> : vector<64x32xf32>
    %194 = tpu.matmul %192, %193, %cst_242 {dimension_numbers = #tpu.dot_dimension_numbers<[1], [0], [0], [1], [0, 0, 1, 1], [], []>} : vector<64x144xbf16>, vector<144x32xbf16>, vector<64x32xf32> -> vector<64x32xf32>
    %c0_243 = arith.constant 0 : index
    %c0_244 = arith.constant 0 : index
    %195 = vector.load %arg9[%c0_243, %c0_244] : memref<1x32xf32, #tpu.memory_space<vmem>>, vector<1x32xf32>
    %196 = vector.broadcast %195 : vector<1x32xf32> to vector<64x32xf32>
    %197 = arith.addf %194, %196 : vector<64x32xf32>
    %198 = vector.extract_strided_slice %192 {offsets = [0, 64], sizes = [64, 16], strides = [1, 1]} : vector<64x144xbf16> to vector<64x16xbf16>
    %c0_245 = arith.constant 0 : index
    %c0_246 = arith.constant 0 : index
    %199 = vector.load %arg12[%c0_245, %c0_246] : memref<16x32xbf16, #tpu.memory_space<vmem>>, vector<16x32xbf16>
    %cst_247 = arith.constant dense<0.000000e+00> : vector<64x32xf32>
    %200 = tpu.matmul %198, %199, %cst_247 {dimension_numbers = #tpu.dot_dimension_numbers<[1], [0], [0], [1], [0, 0, 1, 1], [], []>} : vector<64x16xbf16>, vector<16x32xbf16>, vector<64x32xf32> -> vector<64x32xf32>
    %c0_248 = arith.constant 0 : index
    %c0_249 = arith.constant 0 : index
    %201 = vector.load %arg13[%c0_248, %c0_249] : memref<1x32xf32, #tpu.memory_space<vmem>>, vector<1x32xf32>
    %202 = vector.broadcast %201 : vector<1x32xf32> to vector<64x32xf32>
    %203 = arith.addf %200, %202 : vector<64x32xf32>
    %cst_250 = arith.constant 0.000000e+00 : f32
    %204 = vector.broadcast %cst_250 : f32 to vector<64x32xf32>
    %205 = arith.maximumf %197, %204 : vector<64x32xf32>
    %206 = vector.shape_cast %205 : vector<64x32xf32> to vector<8x8x32xf32>
    %c1_251 = arith.constant 1 : index
    %c1_252 = arith.constant 1 : index
    %c0_253 = arith.constant 0 : index
    %207 = vector.load %arg24[%c1_251, %c1_252, %c0_253] : memref<10x10x32xf32, #tpu.memory_space<vmem>>, vector<8x8x32xf32>
    tpu.vector_store %arg24[%c1_251, %c1_252, %c0_253], %206 {strides = array<i32>} : memref<10x10x32xf32, #tpu.memory_space<vmem>>, vector<8x8x32xf32>,
    %c0_254 = arith.constant 0 : index
    %c0_255 = arith.constant 0 : index
    %c0_256 = arith.constant 0 : index
    %208 = vector.load %arg24[%c0_254, %c0_255, %c0_256] : memref<10x10x32xf32, #tpu.memory_space<vmem>>, vector<8x8x32xf32>
    %209 = vector.shape_cast %208 : vector<8x8x32xf32> to vector<64x32xf32>
    %210 = arith.truncf %209 : vector<64x32xf32> to vector<64x32xbf16>
    %c0_257 = arith.constant 0 : index
    %c0_258 = arith.constant 0 : index
    %211 = vector.load %arg27[%c0_257, %c0_258] : memref<64x288xbf16, #tpu.memory_space<vmem>>, vector<64x32xbf16>
    tpu.vector_store %arg27[%c0_257, %c0_258], %210 {strides = array<i32>} : memref<64x288xbf16, #tpu.memory_space<vmem>>, vector<64x32xbf16>,
    %c0_259 = arith.constant 0 : index
    %c1_260 = arith.constant 1 : index
    %c0_261 = arith.constant 0 : index
    %212 = vector.load %arg24[%c0_259, %c1_260, %c0_261] : memref<10x10x32xf32, #tpu.memory_space<vmem>>, vector<8x8x32xf32>
    %213 = vector.shape_cast %212 : vector<8x8x32xf32> to vector<64x32xf32>
    %214 = arith.truncf %213 : vector<64x32xf32> to vector<64x32xbf16>
    %c0_262 = arith.constant 0 : index
    %c32_263 = arith.constant 32 : index
    %215 = vector.load %arg27[%c0_262, %c32_263] : memref<64x288xbf16, #tpu.memory_space<vmem>>, vector<64x32xbf16>
    tpu.vector_store %arg27[%c0_262, %c32_263], %214 {strides = array<i32>} : memref<64x288xbf16, #tpu.memory_space<vmem>>, vector<64x32xbf16>,
    %c0_264 = arith.constant 0 : index
    %c2_265 = arith.constant 2 : index
    %c0_266 = arith.constant 0 : index
    %216 = vector.load %arg24[%c0_264, %c2_265, %c0_266] : memref<10x10x32xf32, #tpu.memory_space<vmem>>, vector<8x8x32xf32>
    %217 = vector.shape_cast %216 : vector<8x8x32xf32> to vector<64x32xf32>
    %218 = arith.truncf %217 : vector<64x32xf32> to vector<64x32xbf16>
    %c0_267 = arith.constant 0 : index
    %c64_268 = arith.constant 64 : index
    %219 = vector.load %arg27[%c0_267, %c64_268] : memref<64x288xbf16, #tpu.memory_space<vmem>>, vector<64x32xbf16>
    tpu.vector_store %arg27[%c0_267, %c64_268], %218 {strides = array<i32>} : memref<64x288xbf16, #tpu.memory_space<vmem>>, vector<64x32xbf16>,
    %c1_269 = arith.constant 1 : index
    %c0_270 = arith.constant 0 : index
    %c0_271 = arith.constant 0 : index
    %220 = vector.load %arg24[%c1_269, %c0_270, %c0_271] : memref<10x10x32xf32, #tpu.memory_space<vmem>>, vector<8x8x32xf32>
    %221 = vector.shape_cast %220 : vector<8x8x32xf32> to vector<64x32xf32>
    %222 = arith.truncf %221 : vector<64x32xf32> to vector<64x32xbf16>
    %c0_272 = arith.constant 0 : index
    %c96_273 = arith.constant 96 : index
    %223 = vector.load %arg27[%c0_272, %c96_273] : memref<64x288xbf16, #tpu.memory_space<vmem>>, vector<64x32xbf16>
    tpu.vector_store %arg27[%c0_272, %c96_273], %222 {strides = array<i32>} : memref<64x288xbf16, #tpu.memory_space<vmem>>, vector<64x32xbf16>,
    %c1_274 = arith.constant 1 : index
    %c1_275 = arith.constant 1 : index
    %c0_276 = arith.constant 0 : index
    %224 = vector.load %arg24[%c1_274, %c1_275, %c0_276] : memref<10x10x32xf32, #tpu.memory_space<vmem>>, vector<8x8x32xf32>
    %225 = vector.shape_cast %224 : vector<8x8x32xf32> to vector<64x32xf32>
    %226 = arith.truncf %225 : vector<64x32xf32> to vector<64x32xbf16>
    %c0_277 = arith.constant 0 : index
    %c128_278 = arith.constant 128 : index
    %227 = vector.load %arg27[%c0_277, %c128_278] : memref<64x288xbf16, #tpu.memory_space<vmem>>, vector<64x32xbf16>
    tpu.vector_store %arg27[%c0_277, %c128_278], %226 {strides = array<i32>} : memref<64x288xbf16, #tpu.memory_space<vmem>>, vector<64x32xbf16>,
    %c1_279 = arith.constant 1 : index
    %c2_280 = arith.constant 2 : index
    %c0_281 = arith.constant 0 : index
    %228 = vector.load %arg24[%c1_279, %c2_280, %c0_281] : memref<10x10x32xf32, #tpu.memory_space<vmem>>, vector<8x8x32xf32>
    %229 = vector.shape_cast %228 : vector<8x8x32xf32> to vector<64x32xf32>
    %230 = arith.truncf %229 : vector<64x32xf32> to vector<64x32xbf16>
    %c0_282 = arith.constant 0 : index
    %c160 = arith.constant 160 : index
    %231 = vector.load %arg27[%c0_282, %c160] : memref<64x288xbf16, #tpu.memory_space<vmem>>, vector<64x32xbf16>
    tpu.vector_store %arg27[%c0_282, %c160], %230 {strides = array<i32>} : memref<64x288xbf16, #tpu.memory_space<vmem>>, vector<64x32xbf16>,
    %c2_283 = arith.constant 2 : index
    %c0_284 = arith.constant 0 : index
    %c0_285 = arith.constant 0 : index
    %232 = vector.load %arg24[%c2_283, %c0_284, %c0_285] : memref<10x10x32xf32, #tpu.memory_space<vmem>>, vector<8x8x32xf32>
    %233 = vector.shape_cast %232 : vector<8x8x32xf32> to vector<64x32xf32>
    %234 = arith.truncf %233 : vector<64x32xf32> to vector<64x32xbf16>
    %c0_286 = arith.constant 0 : index
    %c192 = arith.constant 192 : index
    %235 = vector.load %arg27[%c0_286, %c192] : memref<64x288xbf16, #tpu.memory_space<vmem>>, vector<64x32xbf16>
    tpu.vector_store %arg27[%c0_286, %c192], %234 {strides = array<i32>} : memref<64x288xbf16, #tpu.memory_space<vmem>>, vector<64x32xbf16>,
    %c2_287 = arith.constant 2 : index
    %c1_288 = arith.constant 1 : index
    %c0_289 = arith.constant 0 : index
    %236 = vector.load %arg24[%c2_287, %c1_288, %c0_289] : memref<10x10x32xf32, #tpu.memory_space<vmem>>, vector<8x8x32xf32>
    %237 = vector.shape_cast %236 : vector<8x8x32xf32> to vector<64x32xf32>
    %238 = arith.truncf %237 : vector<64x32xf32> to vector<64x32xbf16>
    %c0_290 = arith.constant 0 : index
    %c224 = arith.constant 224 : index
    %239 = vector.load %arg27[%c0_290, %c224] : memref<64x288xbf16, #tpu.memory_space<vmem>>, vector<64x32xbf16>
    tpu.vector_store %arg27[%c0_290, %c224], %238 {strides = array<i32>} : memref<64x288xbf16, #tpu.memory_space<vmem>>, vector<64x32xbf16>,
    %c2_291 = arith.constant 2 : index
    %c2_292 = arith.constant 2 : index
    %c0_293 = arith.constant 0 : index
    %240 = vector.load %arg24[%c2_291, %c2_292, %c0_293] : memref<10x10x32xf32, #tpu.memory_space<vmem>>, vector<8x8x32xf32>
    %241 = vector.shape_cast %240 : vector<8x8x32xf32> to vector<64x32xf32>
    %242 = arith.truncf %241 : vector<64x32xf32> to vector<64x32xbf16>
    %c0_294 = arith.constant 0 : index
    %c256 = arith.constant 256 : index
    %243 = vector.load %arg27[%c0_294, %c256] : memref<64x288xbf16, #tpu.memory_space<vmem>>, vector<64x32xbf16>
    tpu.vector_store %arg27[%c0_294, %c256], %242 {strides = array<i32>} : memref<64x288xbf16, #tpu.memory_space<vmem>>, vector<64x32xbf16>,
    %c0_295 = arith.constant 0 : index
    %c0_296 = arith.constant 0 : index
    %244 = vector.load %arg27[%c0_295, %c0_296] : memref<64x288xbf16, #tpu.memory_space<vmem>>, vector<64x288xbf16>
    %c0_297 = arith.constant 0 : index
    %c0_298 = arith.constant 0 : index
    %245 = vector.load %arg10[%c0_297, %c0_298] : memref<288x32xbf16, #tpu.memory_space<vmem>>, vector<288x32xbf16>
    %cst_299 = arith.constant dense<0.000000e+00> : vector<64x32xf32>
    %246 = tpu.matmul %244, %245, %cst_299 {dimension_numbers = #tpu.dot_dimension_numbers<[1], [0], [0], [1], [0, 0, 1, 1], [], []>} : vector<64x288xbf16>, vector<288x32xbf16>, vector<64x32xf32> -> vector<64x32xf32>
    %c0_300 = arith.constant 0 : index
    %c0_301 = arith.constant 0 : index
    %247 = vector.load %arg11[%c0_300, %c0_301] : memref<1x32xf32, #tpu.memory_space<vmem>>, vector<1x32xf32>
    %248 = vector.broadcast %247 : vector<1x32xf32> to vector<64x32xf32>
    %249 = arith.addf %246, %248 : vector<64x32xf32>
    %250 = arith.addf %249, %203 : vector<64x32xf32>
    %251 = vector.shape_cast %250 : vector<64x32xf32> to vector<8x8x32xf32>
    %cst_302 = arith.constant 0.000000e+00 : f32
    %252 = vector.broadcast %cst_302 : f32 to vector<8x8x32xf32>
    %253 = arith.maximumf %251, %252 : vector<8x8x32xf32>
    %c1_303 = arith.constant 1 : index
    %c1_304 = arith.constant 1 : index
    %c0_305 = arith.constant 0 : index
    %254 = vector.load %arg24[%c1_303, %c1_304, %c0_305] : memref<10x10x32xf32, #tpu.memory_space<vmem>>, vector<8x8x32xf32>
    tpu.vector_store %arg24[%c1_303, %c1_304, %c0_305], %253 {strides = array<i32>} : memref<10x10x32xf32, #tpu.memory_space<vmem>>, vector<8x8x32xf32>,
    %c0_306 = arith.constant 0 : index
    %c0_307 = arith.constant 0 : index
    %c0_308 = arith.constant 0 : index
    %255 = tpu.strided_load %arg24[%c0_306, %c0_307, %c0_308] {strides = array<i32: 2, 2, 1>} : memref<10x10x32xf32, #tpu.memory_space<vmem>>, vector<4x4x32xf32>
    %256 = vector.shape_cast %255 : vector<4x4x32xf32> to vector<16x32xf32>
    %257 = arith.truncf %256 : vector<16x32xf32> to vector<16x32xbf16>
    %c0_309 = arith.constant 0 : index
    %c0_310 = arith.constant 0 : index
    %258 = vector.load %arg27[%c0_309, %c0_310] : memref<64x288xbf16, #tpu.memory_space<vmem>>, vector<16x32xbf16>
    tpu.vector_store %arg27[%c0_309, %c0_310], %257 {strides = array<i32>} : memref<64x288xbf16, #tpu.memory_space<vmem>>, vector<16x32xbf16>,
    %c0_311 = arith.constant 0 : index
    %c1_312 = arith.constant 1 : index
    %c0_313 = arith.constant 0 : index
    %259 = tpu.strided_load %arg24[%c0_311, %c1_312, %c0_313] {strides = array<i32: 2, 2, 1>} : memref<10x10x32xf32, #tpu.memory_space<vmem>>, vector<4x4x32xf32>
    %260 = vector.shape_cast %259 : vector<4x4x32xf32> to vector<16x32xf32>
    %261 = arith.truncf %260 : vector<16x32xf32> to vector<16x32xbf16>
    %c0_314 = arith.constant 0 : index
    %c32_315 = arith.constant 32 : index
    %262 = vector.load %arg27[%c0_314, %c32_315] : memref<64x288xbf16, #tpu.memory_space<vmem>>, vector<16x32xbf16>
    tpu.vector_store %arg27[%c0_314, %c32_315], %261 {strides = array<i32>} : memref<64x288xbf16, #tpu.memory_space<vmem>>, vector<16x32xbf16>,
    %c0_316 = arith.constant 0 : index
    %c2_317 = arith.constant 2 : index
    %c0_318 = arith.constant 0 : index
    %263 = tpu.strided_load %arg24[%c0_316, %c2_317, %c0_318] {strides = array<i32: 2, 2, 1>} : memref<10x10x32xf32, #tpu.memory_space<vmem>>, vector<4x4x32xf32>
    %264 = vector.shape_cast %263 : vector<4x4x32xf32> to vector<16x32xf32>
    %265 = arith.truncf %264 : vector<16x32xf32> to vector<16x32xbf16>
    %c0_319 = arith.constant 0 : index
    %c64_320 = arith.constant 64 : index
    %266 = vector.load %arg27[%c0_319, %c64_320] : memref<64x288xbf16, #tpu.memory_space<vmem>>, vector<16x32xbf16>
    tpu.vector_store %arg27[%c0_319, %c64_320], %265 {strides = array<i32>} : memref<64x288xbf16, #tpu.memory_space<vmem>>, vector<16x32xbf16>,
    %c1_321 = arith.constant 1 : index
    %c0_322 = arith.constant 0 : index
    %c0_323 = arith.constant 0 : index
    %267 = tpu.strided_load %arg24[%c1_321, %c0_322, %c0_323] {strides = array<i32: 2, 2, 1>} : memref<10x10x32xf32, #tpu.memory_space<vmem>>, vector<4x4x32xf32>
    %268 = vector.shape_cast %267 : vector<4x4x32xf32> to vector<16x32xf32>
    %269 = arith.truncf %268 : vector<16x32xf32> to vector<16x32xbf16>
    %c0_324 = arith.constant 0 : index
    %c96_325 = arith.constant 96 : index
    %270 = vector.load %arg27[%c0_324, %c96_325] : memref<64x288xbf16, #tpu.memory_space<vmem>>, vector<16x32xbf16>
    tpu.vector_store %arg27[%c0_324, %c96_325], %269 {strides = array<i32>} : memref<64x288xbf16, #tpu.memory_space<vmem>>, vector<16x32xbf16>,
    %c1_326 = arith.constant 1 : index
    %c1_327 = arith.constant 1 : index
    %c0_328 = arith.constant 0 : index
    %271 = tpu.strided_load %arg24[%c1_326, %c1_327, %c0_328] {strides = array<i32: 2, 2, 1>} : memref<10x10x32xf32, #tpu.memory_space<vmem>>, vector<4x4x32xf32>
    %272 = vector.shape_cast %271 : vector<4x4x32xf32> to vector<16x32xf32>
    %273 = arith.truncf %272 : vector<16x32xf32> to vector<16x32xbf16>
    %c0_329 = arith.constant 0 : index
    %c128_330 = arith.constant 128 : index
    %274 = vector.load %arg27[%c0_329, %c128_330] : memref<64x288xbf16, #tpu.memory_space<vmem>>, vector<16x32xbf16>
    tpu.vector_store %arg27[%c0_329, %c128_330], %273 {strides = array<i32>} : memref<64x288xbf16, #tpu.memory_space<vmem>>, vector<16x32xbf16>,
    %c1_331 = arith.constant 1 : index
    %c2_332 = arith.constant 2 : index
    %c0_333 = arith.constant 0 : index
    %275 = tpu.strided_load %arg24[%c1_331, %c2_332, %c0_333] {strides = array<i32: 2, 2, 1>} : memref<10x10x32xf32, #tpu.memory_space<vmem>>, vector<4x4x32xf32>
    %276 = vector.shape_cast %275 : vector<4x4x32xf32> to vector<16x32xf32>
    %277 = arith.truncf %276 : vector<16x32xf32> to vector<16x32xbf16>
    %c0_334 = arith.constant 0 : index
    %c160_335 = arith.constant 160 : index
    %278 = vector.load %arg27[%c0_334, %c160_335] : memref<64x288xbf16, #tpu.memory_space<vmem>>, vector<16x32xbf16>
    tpu.vector_store %arg27[%c0_334, %c160_335], %277 {strides = array<i32>} : memref<64x288xbf16, #tpu.memory_space<vmem>>, vector<16x32xbf16>,
    %c2_336 = arith.constant 2 : index
    %c0_337 = arith.constant 0 : index
    %c0_338 = arith.constant 0 : index
    %279 = tpu.strided_load %arg24[%c2_336, %c0_337, %c0_338] {strides = array<i32: 2, 2, 1>} : memref<10x10x32xf32, #tpu.memory_space<vmem>>, vector<4x4x32xf32>
    %280 = vector.shape_cast %279 : vector<4x4x32xf32> to vector<16x32xf32>
    %281 = arith.truncf %280 : vector<16x32xf32> to vector<16x32xbf16>
    %c0_339 = arith.constant 0 : index
    %c192_340 = arith.constant 192 : index
    %282 = vector.load %arg27[%c0_339, %c192_340] : memref<64x288xbf16, #tpu.memory_space<vmem>>, vector<16x32xbf16>
    tpu.vector_store %arg27[%c0_339, %c192_340], %281 {strides = array<i32>} : memref<64x288xbf16, #tpu.memory_space<vmem>>, vector<16x32xbf16>,
    %c2_341 = arith.constant 2 : index
    %c1_342 = arith.constant 1 : index
    %c0_343 = arith.constant 0 : index
    %283 = tpu.strided_load %arg24[%c2_341, %c1_342, %c0_343] {strides = array<i32: 2, 2, 1>} : memref<10x10x32xf32, #tpu.memory_space<vmem>>, vector<4x4x32xf32>
    %284 = vector.shape_cast %283 : vector<4x4x32xf32> to vector<16x32xf32>
    %285 = arith.truncf %284 : vector<16x32xf32> to vector<16x32xbf16>
    %c0_344 = arith.constant 0 : index
    %c224_345 = arith.constant 224 : index
    %286 = vector.load %arg27[%c0_344, %c224_345] : memref<64x288xbf16, #tpu.memory_space<vmem>>, vector<16x32xbf16>
    tpu.vector_store %arg27[%c0_344, %c224_345], %285 {strides = array<i32>} : memref<64x288xbf16, #tpu.memory_space<vmem>>, vector<16x32xbf16>,
    %c2_346 = arith.constant 2 : index
    %c2_347 = arith.constant 2 : index
    %c0_348 = arith.constant 0 : index
    %287 = tpu.strided_load %arg24[%c2_346, %c2_347, %c0_348] {strides = array<i32: 2, 2, 1>} : memref<10x10x32xf32, #tpu.memory_space<vmem>>, vector<4x4x32xf32>
    %288 = vector.shape_cast %287 : vector<4x4x32xf32> to vector<16x32xf32>
    %289 = arith.truncf %288 : vector<16x32xf32> to vector<16x32xbf16>
    %c0_349 = arith.constant 0 : index
    %c256_350 = arith.constant 256 : index
    %290 = vector.load %arg27[%c0_349, %c256_350] : memref<64x288xbf16, #tpu.memory_space<vmem>>, vector<16x32xbf16>
    tpu.vector_store %arg27[%c0_349, %c256_350], %289 {strides = array<i32>} : memref<64x288xbf16, #tpu.memory_space<vmem>>, vector<16x32xbf16>,
    %c0_351 = arith.constant 0 : index
    %c0_352 = arith.constant 0 : index
    %291 = vector.load %arg27[%c0_351, %c0_352] : memref<64x288xbf16, #tpu.memory_space<vmem>>, vector<16x288xbf16>
    %c0_353 = arith.constant 0 : index
    %c0_354 = arith.constant 0 : index
    %292 = vector.load %arg14[%c0_353, %c0_354] : memref<288x64xbf16, #tpu.memory_space<vmem>>, vector<288x64xbf16>
    %cst_355 = arith.constant dense<0.000000e+00> : vector<16x64xf32>
    %293 = tpu.matmul %291, %292, %cst_355 {dimension_numbers = #tpu.dot_dimension_numbers<[1], [0], [0], [1], [0, 0, 1, 1], [], []>} : vector<16x288xbf16>, vector<288x64xbf16>, vector<16x64xf32> -> vector<16x64xf32>
    %c0_356 = arith.constant 0 : index
    %c0_357 = arith.constant 0 : index
    %294 = vector.load %arg15[%c0_356, %c0_357] : memref<1x64xf32, #tpu.memory_space<vmem>>, vector<1x64xf32>
    %295 = vector.broadcast %294 : vector<1x64xf32> to vector<16x64xf32>
    %296 = arith.addf %293, %295 : vector<16x64xf32>
    %297 = vector.extract_strided_slice %291 {offsets = [0, 128], sizes = [16, 32], strides = [1, 1]} : vector<16x288xbf16> to vector<16x32xbf16>
    %c0_358 = arith.constant 0 : index
    %c0_359 = arith.constant 0 : index
    %298 = vector.load %arg18[%c0_358, %c0_359] : memref<32x64xbf16, #tpu.memory_space<vmem>>, vector<32x64xbf16>
    %cst_360 = arith.constant dense<0.000000e+00> : vector<16x64xf32>
    %299 = tpu.matmul %297, %298, %cst_360 {dimension_numbers = #tpu.dot_dimension_numbers<[1], [0], [0], [1], [0, 0, 1, 1], [], []>} : vector<16x32xbf16>, vector<32x64xbf16>, vector<16x64xf32> -> vector<16x64xf32>
    %c0_361 = arith.constant 0 : index
    %c0_362 = arith.constant 0 : index
    %300 = vector.load %arg19[%c0_361, %c0_362] : memref<1x64xf32, #tpu.memory_space<vmem>>, vector<1x64xf32>
    %301 = vector.broadcast %300 : vector<1x64xf32> to vector<16x64xf32>
    %302 = arith.addf %299, %301 : vector<16x64xf32>
    %cst_363 = arith.constant 0.000000e+00 : f32
    %303 = vector.broadcast %cst_363 : f32 to vector<16x64xf32>
    %304 = arith.maximumf %296, %303 : vector<16x64xf32>
    %305 = vector.shape_cast %304 : vector<16x64xf32> to vector<4x4x64xf32>
    %c1_364 = arith.constant 1 : index
    %c1_365 = arith.constant 1 : index
    %c0_366 = arith.constant 0 : index
    %306 = vector.load %arg23[%c1_364, %c1_365, %c0_366] : memref<6x6x64xf32, #tpu.memory_space<vmem>>, vector<4x4x64xf32>
    tpu.vector_store %arg23[%c1_364, %c1_365, %c0_366], %305 {strides = array<i32>} : memref<6x6x64xf32, #tpu.memory_space<vmem>>, vector<4x4x64xf32>,
    %c0_367 = arith.constant 0 : index
    %c0_368 = arith.constant 0 : index
    %c0_369 = arith.constant 0 : index
    %307 = vector.load %arg23[%c0_367, %c0_368, %c0_369] : memref<6x6x64xf32, #tpu.memory_space<vmem>>, vector<4x4x64xf32>
    %308 = vector.shape_cast %307 : vector<4x4x64xf32> to vector<16x64xf32>
    %309 = arith.truncf %308 : vector<16x64xf32> to vector<16x64xbf16>
    %c0_370 = arith.constant 0 : index
    %c0_371 = arith.constant 0 : index
    %310 = vector.load %arg26[%c0_370, %c0_371] : memref<16x576xbf16, #tpu.memory_space<vmem>>, vector<16x64xbf16>
    tpu.vector_store %arg26[%c0_370, %c0_371], %309 {strides = array<i32>} : memref<16x576xbf16, #tpu.memory_space<vmem>>, vector<16x64xbf16>,
    %c0_372 = arith.constant 0 : index
    %c1_373 = arith.constant 1 : index
    %c0_374 = arith.constant 0 : index
    %311 = vector.load %arg23[%c0_372, %c1_373, %c0_374] : memref<6x6x64xf32, #tpu.memory_space<vmem>>, vector<4x4x64xf32>
    %312 = vector.shape_cast %311 : vector<4x4x64xf32> to vector<16x64xf32>
    %313 = arith.truncf %312 : vector<16x64xf32> to vector<16x64xbf16>
    %c0_375 = arith.constant 0 : index
    %c64_376 = arith.constant 64 : index
    %314 = vector.load %arg26[%c0_375, %c64_376] : memref<16x576xbf16, #tpu.memory_space<vmem>>, vector<16x64xbf16>
    tpu.vector_store %arg26[%c0_375, %c64_376], %313 {strides = array<i32>} : memref<16x576xbf16, #tpu.memory_space<vmem>>, vector<16x64xbf16>,
    %c0_377 = arith.constant 0 : index
    %c2_378 = arith.constant 2 : index
    %c0_379 = arith.constant 0 : index
    %315 = vector.load %arg23[%c0_377, %c2_378, %c0_379] : memref<6x6x64xf32, #tpu.memory_space<vmem>>, vector<4x4x64xf32>
    %316 = vector.shape_cast %315 : vector<4x4x64xf32> to vector<16x64xf32>
    %317 = arith.truncf %316 : vector<16x64xf32> to vector<16x64xbf16>
    %c0_380 = arith.constant 0 : index
    %c128_381 = arith.constant 128 : index
    %318 = vector.load %arg26[%c0_380, %c128_381] : memref<16x576xbf16, #tpu.memory_space<vmem>>, vector<16x64xbf16>
    tpu.vector_store %arg26[%c0_380, %c128_381], %317 {strides = array<i32>} : memref<16x576xbf16, #tpu.memory_space<vmem>>, vector<16x64xbf16>,
    %c1_382 = arith.constant 1 : index
    %c0_383 = arith.constant 0 : index
    %c0_384 = arith.constant 0 : index
    %319 = vector.load %arg23[%c1_382, %c0_383, %c0_384] : memref<6x6x64xf32, #tpu.memory_space<vmem>>, vector<4x4x64xf32>
    %320 = vector.shape_cast %319 : vector<4x4x64xf32> to vector<16x64xf32>
    %321 = arith.truncf %320 : vector<16x64xf32> to vector<16x64xbf16>
    %c0_385 = arith.constant 0 : index
    %c192_386 = arith.constant 192 : index
    %322 = vector.load %arg26[%c0_385, %c192_386] : memref<16x576xbf16, #tpu.memory_space<vmem>>, vector<16x64xbf16>
    tpu.vector_store %arg26[%c0_385, %c192_386], %321 {strides = array<i32>} : memref<16x576xbf16, #tpu.memory_space<vmem>>, vector<16x64xbf16>,
    %c1_387 = arith.constant 1 : index
    %c1_388 = arith.constant 1 : index
    %c0_389 = arith.constant 0 : index
    %323 = vector.load %arg23[%c1_387, %c1_388, %c0_389] : memref<6x6x64xf32, #tpu.memory_space<vmem>>, vector<4x4x64xf32>
    %324 = vector.shape_cast %323 : vector<4x4x64xf32> to vector<16x64xf32>
    %325 = arith.truncf %324 : vector<16x64xf32> to vector<16x64xbf16>
    %c0_390 = arith.constant 0 : index
    %c256_391 = arith.constant 256 : index
    %326 = vector.load %arg26[%c0_390, %c256_391] : memref<16x576xbf16, #tpu.memory_space<vmem>>, vector<16x64xbf16>
    tpu.vector_store %arg26[%c0_390, %c256_391], %325 {strides = array<i32>} : memref<16x576xbf16, #tpu.memory_space<vmem>>, vector<16x64xbf16>,
    %c1_392 = arith.constant 1 : index
    %c2_393 = arith.constant 2 : index
    %c0_394 = arith.constant 0 : index
    %327 = vector.load %arg23[%c1_392, %c2_393, %c0_394] : memref<6x6x64xf32, #tpu.memory_space<vmem>>, vector<4x4x64xf32>
    %328 = vector.shape_cast %327 : vector<4x4x64xf32> to vector<16x64xf32>
    %329 = arith.truncf %328 : vector<16x64xf32> to vector<16x64xbf16>
    %c0_395 = arith.constant 0 : index
    %c320 = arith.constant 320 : index
    %330 = vector.load %arg26[%c0_395, %c320] : memref<16x576xbf16, #tpu.memory_space<vmem>>, vector<16x64xbf16>
    tpu.vector_store %arg26[%c0_395, %c320], %329 {strides = array<i32>} : memref<16x576xbf16, #tpu.memory_space<vmem>>, vector<16x64xbf16>,
    %c2_396 = arith.constant 2 : index
    %c0_397 = arith.constant 0 : index
    %c0_398 = arith.constant 0 : index
    %331 = vector.load %arg23[%c2_396, %c0_397, %c0_398] : memref<6x6x64xf32, #tpu.memory_space<vmem>>, vector<4x4x64xf32>
    %332 = vector.shape_cast %331 : vector<4x4x64xf32> to vector<16x64xf32>
    %333 = arith.truncf %332 : vector<16x64xf32> to vector<16x64xbf16>
    %c0_399 = arith.constant 0 : index
    %c384 = arith.constant 384 : index
    %334 = vector.load %arg26[%c0_399, %c384] : memref<16x576xbf16, #tpu.memory_space<vmem>>, vector<16x64xbf16>
    tpu.vector_store %arg26[%c0_399, %c384], %333 {strides = array<i32>} : memref<16x576xbf16, #tpu.memory_space<vmem>>, vector<16x64xbf16>,
    %c2_400 = arith.constant 2 : index
    %c1_401 = arith.constant 1 : index
    %c0_402 = arith.constant 0 : index
    %335 = vector.load %arg23[%c2_400, %c1_401, %c0_402] : memref<6x6x64xf32, #tpu.memory_space<vmem>>, vector<4x4x64xf32>
    %336 = vector.shape_cast %335 : vector<4x4x64xf32> to vector<16x64xf32>
    %337 = arith.truncf %336 : vector<16x64xf32> to vector<16x64xbf16>
    %c0_403 = arith.constant 0 : index
    %c448 = arith.constant 448 : index
    %338 = vector.load %arg26[%c0_403, %c448] : memref<16x576xbf16, #tpu.memory_space<vmem>>, vector<16x64xbf16>
    tpu.vector_store %arg26[%c0_403, %c448], %337 {strides = array<i32>} : memref<16x576xbf16, #tpu.memory_space<vmem>>, vector<16x64xbf16>,
    %c2_404 = arith.constant 2 : index
    %c2_405 = arith.constant 2 : index
    %c0_406 = arith.constant 0 : index
    %339 = vector.load %arg23[%c2_404, %c2_405, %c0_406] : memref<6x6x64xf32, #tpu.memory_space<vmem>>, vector<4x4x64xf32>
    %340 = vector.shape_cast %339 : vector<4x4x64xf32> to vector<16x64xf32>
    %341 = arith.truncf %340 : vector<16x64xf32> to vector<16x64xbf16>
    %c0_407 = arith.constant 0 : index
    %c512 = arith.constant 512 : index
    %342 = vector.load %arg26[%c0_407, %c512] : memref<16x576xbf16, #tpu.memory_space<vmem>>, vector<16x64xbf16>
    tpu.vector_store %arg26[%c0_407, %c512], %341 {strides = array<i32>} : memref<16x576xbf16, #tpu.memory_space<vmem>>, vector<16x64xbf16>,
    %c0_408 = arith.constant 0 : index
    %c0_409 = arith.constant 0 : index
    %343 = vector.load %arg26[%c0_408, %c0_409] : memref<16x576xbf16, #tpu.memory_space<vmem>>, vector<16x576xbf16>
    %c0_410 = arith.constant 0 : index
    %c0_411 = arith.constant 0 : index
    %344 = vector.load %arg16[%c0_410, %c0_411] : memref<576x64xbf16, #tpu.memory_space<vmem>>, vector<576x64xbf16>
    %cst_412 = arith.constant dense<0.000000e+00> : vector<16x64xf32>
    %345 = tpu.matmul %343, %344, %cst_412 {dimension_numbers = #tpu.dot_dimension_numbers<[1], [0], [0], [1], [0, 0, 1, 1], [], []>} : vector<16x576xbf16>, vector<576x64xbf16>, vector<16x64xf32> -> vector<16x64xf32>
    %c0_413 = arith.constant 0 : index
    %c0_414 = arith.constant 0 : index
    %346 = vector.load %arg17[%c0_413, %c0_414] : memref<1x64xf32, #tpu.memory_space<vmem>>, vector<1x64xf32>
    %347 = vector.broadcast %346 : vector<1x64xf32> to vector<16x64xf32>
    %348 = arith.addf %345, %347 : vector<16x64xf32>
    %349 = arith.addf %348, %302 : vector<16x64xf32>
    %350 = vector.shape_cast %349 : vector<16x64xf32> to vector<4x4x64xf32>
    %cst_415 = arith.constant 0.000000e+00 : f32
    %351 = vector.broadcast %cst_415 : f32 to vector<4x4x64xf32>
    %352 = arith.maximumf %350, %351 : vector<4x4x64xf32>
    %353 = vector.shape_cast %352 : vector<4x4x64xf32> to vector<16x64xf32>
    %cst_416 = arith.constant dense<0.000000e+00> : vector<64xf32>
    %354 = vector.multi_reduction <add>, %353, %cst_416 [0] : vector<16x64xf32> to vector<64xf32>
    %355 = vector.shape_cast %354 : vector<64xf32> to vector<1x64xf32>
    %cst_417 = arith.constant 6.250000e-02 : f32
    %356 = vector.broadcast %cst_417 : f32 to vector<1x64xf32>
    %357 = arith.mulf %355, %356 : vector<1x64xf32>
    %c0_418 = arith.constant 0 : index
    %c0_419 = arith.constant 0 : index
    %358 = vector.load %arg20[%c0_418, %c0_419] : memref<64x10xf32, #tpu.memory_space<vmem>>, vector<64x10xf32>
    %cst_420 = arith.constant dense<0.000000e+00> : vector<1x10xf32>
    %359 = tpu.matmul %357, %358, %cst_420 {dimension_numbers = #tpu.dot_dimension_numbers<[1], [0], [0], [1], [0, 0, 1, 1], [], []>} : vector<1x64xf32>, vector<64x10xf32>, vector<1x10xf32> -> vector<1x10xf32>
    %c0_421 = arith.constant 0 : index
    %c0_422 = arith.constant 0 : index
    %360 = vector.load %arg21[%c0_421, %c0_422] : memref<1x10xf32, #tpu.memory_space<vmem>>, vector<1x10xf32>
    %361 = arith.addf %359, %360 : vector<1x10xf32>
    %362 = vector.shape_cast %361 : vector<1x10xf32> to vector<1x1x10xf32>
    %c0_423 = arith.constant 0 : index
    %c0_424 = arith.constant 0 : index
    %c0_425 = arith.constant 0 : index
    %363 = vector.load %arg22[%c0_423, %c0_424, %c0_425] : memref<1x1x10xf32, #tpu.memory_space<vmem>>, vector<1x1x10xf32>
    tpu.vector_store %arg22[%c0_423, %c0_424, %c0_425], %362 {strides = array<i32>} : memref<1x1x10xf32, #tpu.memory_space<vmem>>, vector<1x1x10xf32>,
    return
  }
  func.func @transform_0(%arg0: i32) -> (i32, i32, i32, i32) {
    %c0_i32 = arith.constant 0 : i32
    %c0_i32_0 = arith.constant 0 : i32
    %c0_i32_1 = arith.constant 0 : i32
    %c0_i32_2 = arith.constant 0 : i32
    return %arg0, %c0_i32, %c0_i32_0, %c0_i32_1 : i32, i32, i32, i32
  }
  func.func @transform_1(%arg0: i32) -> (i32, i32) {
    %c0_i32 = arith.constant 0 : i32
    %c0_i32_0 = arith.constant 0 : i32
    %c0_i32_1 = arith.constant 0 : i32
    return %c0_i32, %c0_i32_0 : i32, i32
  }
  func.func @transform_2(%arg0: i32) -> (i32, i32) {
    %c0_i32 = arith.constant 0 : i32
    %c0_i32_0 = arith.constant 0 : i32
    %c0_i32_1 = arith.constant 0 : i32
    return %c0_i32, %c0_i32_0 : i32, i32
  }
  func.func @transform_3(%arg0: i32) -> (i32, i32) {
    %c0_i32 = arith.constant 0 : i32
    %c0_i32_0 = arith.constant 0 : i32
    %c0_i32_1 = arith.constant 0 : i32
    return %c0_i32, %c0_i32_0 : i32, i32
  }
  func.func @transform_4(%arg0: i32) -> (i32, i32) {
    %c0_i32 = arith.constant 0 : i32
    %c0_i32_0 = arith.constant 0 : i32
    %c0_i32_1 = arith.constant 0 : i32
    return %c0_i32, %c0_i32_0 : i32, i32
  }
  func.func @transform_5(%arg0: i32) -> (i32, i32) {
    %c0_i32 = arith.constant 0 : i32
    %c0_i32_0 = arith.constant 0 : i32
    %c0_i32_1 = arith.constant 0 : i32
    return %c0_i32, %c0_i32_0 : i32, i32
  }
  func.func @transform_6(%arg0: i32) -> (i32, i32) {
    %c0_i32 = arith.constant 0 : i32
    %c0_i32_0 = arith.constant 0 : i32
    %c0_i32_1 = arith.constant 0 : i32
    return %c0_i32, %c0_i32_0 : i32, i32
  }
  func.func @transform_7(%arg0: i32) -> (i32, i32) {
    %c0_i32 = arith.constant 0 : i32
    %c0_i32_0 = arith.constant 0 : i32
    %c0_i32_1 = arith.constant 0 : i32
    return %c0_i32, %c0_i32_0 : i32, i32
  }
  func.func @transform_8(%arg0: i32) -> (i32, i32) {
    %c0_i32 = arith.constant 0 : i32
    %c0_i32_0 = arith.constant 0 : i32
    %c0_i32_1 = arith.constant 0 : i32
    return %c0_i32, %c0_i32_0 : i32, i32
  }
  func.func @transform_9(%arg0: i32) -> (i32, i32) {
    %c0_i32 = arith.constant 0 : i32
    %c0_i32_0 = arith.constant 0 : i32
    %c0_i32_1 = arith.constant 0 : i32
    return %c0_i32, %c0_i32_0 : i32, i32
  }
  func.func @transform_10(%arg0: i32) -> (i32, i32) {
    %c0_i32 = arith.constant 0 : i32
    %c0_i32_0 = arith.constant 0 : i32
    %c0_i32_1 = arith.constant 0 : i32
    return %c0_i32, %c0_i32_0 : i32, i32
  }
  func.func @transform_11(%arg0: i32) -> (i32, i32) {
    %c0_i32 = arith.constant 0 : i32
    %c0_i32_0 = arith.constant 0 : i32
    %c0_i32_1 = arith.constant 0 : i32
    return %c0_i32, %c0_i32_0 : i32, i32
  }
  func.func @transform_12(%arg0: i32) -> (i32, i32) {
    %c0_i32 = arith.constant 0 : i32
    %c0_i32_0 = arith.constant 0 : i32
    %c0_i32_1 = arith.constant 0 : i32
    return %c0_i32, %c0_i32_0 : i32, i32
  }
  func.func @transform_13(%arg0: i32) -> (i32, i32) {
    %c0_i32 = arith.constant 0 : i32
    %c0_i32_0 = arith.constant 0 : i32
    %c0_i32_1 = arith.constant 0 : i32
    return %c0_i32, %c0_i32_0 : i32, i32
  }
  func.func @transform_14(%arg0: i32) -> (i32, i32) {
    %c0_i32 = arith.constant 0 : i32
    %c0_i32_0 = arith.constant 0 : i32
    %c0_i32_1 = arith.constant 0 : i32
    return %c0_i32, %c0_i32_0 : i32, i32
  }
  func.func @transform_15(%arg0: i32) -> (i32, i32) {
    %c0_i32 = arith.constant 0 : i32
    %c0_i32_0 = arith.constant 0 : i32
    %c0_i32_1 = arith.constant 0 : i32
    return %c0_i32, %c0_i32_0 : i32, i32
  }
  func.func @transform_16(%arg0: i32) -> (i32, i32) {
    %c0_i32 = arith.constant 0 : i32
    %c0_i32_0 = arith.constant 0 : i32
    %c0_i32_1 = arith.constant 0 : i32
    return %c0_i32, %c0_i32_0 : i32, i32
  }
  func.func @transform_17(%arg0: i32) -> (i32, i32) {
    %c0_i32 = arith.constant 0 : i32
    %c0_i32_0 = arith.constant 0 : i32
    %c0_i32_1 = arith.constant 0 : i32
    return %c0_i32, %c0_i32_0 : i32, i32
  }
  func.func @transform_18(%arg0: i32) -> (i32, i32) {
    %c0_i32 = arith.constant 0 : i32
    %c0_i32_0 = arith.constant 0 : i32
    %c0_i32_1 = arith.constant 0 : i32
    return %c0_i32, %c0_i32_0 : i32, i32
  }
  func.func @transform_19(%arg0: i32) -> (i32, i32) {
    %c0_i32 = arith.constant 0 : i32
    %c0_i32_0 = arith.constant 0 : i32
    %c0_i32_1 = arith.constant 0 : i32
    return %c0_i32, %c0_i32_0 : i32, i32
  }
  func.func @transform_20(%arg0: i32) -> (i32, i32) {
    %c0_i32 = arith.constant 0 : i32
    %c0_i32_0 = arith.constant 0 : i32
    %c0_i32_1 = arith.constant 0 : i32
    return %c0_i32, %c0_i32_0 : i32, i32
  }
  func.func @transform_21(%arg0: i32) -> (i32, i32, i32) {
    %c0_i32 = arith.constant 0 : i32
    %c0_i32_0 = arith.constant 0 : i32
    %c0_i32_1 = arith.constant 0 : i32
    return %arg0, %c0_i32, %c0_i32_0 : i32, i32, i32
  }
}

</mosaic_0001>

<bundles_post_ra>
// kernel: _lambda_.1
= control target key start
LH: loop header
LB: loop body
LE: loop exit
PB: predicated region body
PF: predicated region fallthrough
CT: control target
= control target key end

     0   :  { %s19973_s0 = inlined_call_operand.vmem [shape: f32[2,16,16,3], index: 0, kind: input, shape index: {}]   ;;  %s19974_s1 = inlined_call_operand.hbm [shape: bf16[144,16], index: 1, kind: input, shape index: {}]   ;;  %s19975_s2 = inlined_call_operand.vmem [shape: f32[1,16], index: 2, kind: input, shape index: {}]   ;;  %s19976_s3 = inlined_call_operand.hbm [shape: bf16[144,16], index: 3, kind: input, shape index: {}]   ;;  %s19977_s4 = inlined_call_operand.vmem [shape: f32[1,16], index: 4, kind: input, shape index: {}]   ;;  %s19978_s5 = inlined_call_operand.hbm [shape: bf16[144,16], index: 5, kind: input, shape index: {}]   ;;  %s19979_s6 = inlined_call_operand.vmem [shape: f32[1,16], index: 6, kind: input, shape index: {}]   ;;  %s19980_s7 = inlined_call_operand.hbm [shape: bf16[144,32], index: 7, kind: input, shape index: {}]   ;;  %s19981_s8 = inlined_call_operand.vmem [shape: f32[1,32], index: 8, kind: input, shape index: {}]   ;;  %s19982_s9 = inlined_call_operand.vmem [shape: bf16[288,32], index: 9, kind: input, shape index: {}]   ;;  %s19983_s10 = inlined_call_operand.vmem [shape: f32[1,32], index: 10, kind: input, shape index: {}]   ;;  %s19984_s11 = inlined_call_operand.vmem [shape: bf16[16,32], index: 11, kind: input, shape index: {}]   ;;  %s19985_s12 = inlined_call_operand.vmem [shape: f32[1,32], index: 12, kind: input, shape index: {}]   ;;  %s19986_s13 = inlined_call_operand.vmem [shape: bf16[288,64], index: 13, kind: input, shape index: {}]   ;;  %s19987_s14 = inlined_call_operand.vmem [shape: f32[1,64], index: 14, kind: input, shape index: {}]   ;;  %s19988_s15 = inlined_call_operand.vmem [shape: bf16[576,64], index: 15, kind: input, shape index: {}]   ;;  %s19989_s16 = inlined_call_operand.vmem [shape: f32[1,64], index: 16, kind: input, shape index: {}]   ;;  %s19990_s17 = inlined_call_operand.vmem [shape: bf16[32,64], index: 17, kind: input, shape index: {}]   ;;  %s19991_s18 = inlined_call_operand.vmem [shape: f32[1,64], index: 18, kind: input, shape index: {}]   ;;  %s19992_s19 = inlined_call_operand.hbm [shape: f32[64,10], index: 19, kind: input, shape index: {}]   ;;  %s19993_s20 = inlined_call_operand.hbm [shape: f32[1,10], index: 20, kind: input, shape index: {}]   ;;  %s19994_s21 = inlined_call_operand.hbm [shape: f32[2,1,10], index: 21, kind: output, shape index: {}]  }
   0x1   :  { %20040 = sst [smem:[#allocation32_spill]] %s19973_s0 }
   0x2   :  { %20041 = sst [smem:[#allocation33_spill]] %s19974_s1 }
   0x3   :  { %20042 = sst [smem:[#allocation34_spill]] %s19975_s2 }
   0x4   :  { %20043 = sst [smem:[#allocation35_spill]] %s19976_s3 }
   0x5   :  { %20044 = sst [smem:[#allocation36_spill]] %s19977_s4 }
   0x6   :  { %20045 = sst [smem:[#allocation37_spill]] %s19978_s5 }
   0x7   :  { %20046 = sst [smem:[#allocation38_spill]] %s19979_s6 }
   0x8   :  { %20047 = sst [smem:[#allocation39_spill]] %s19980_s7 }
   0x9   :  { %20048 = sst [smem:[#allocation40_spill]] %s19994_s21 }
   0xa   :  { %26 = vsyncpa [#allocation9], 0 }
   0xb   :  { %27 = vsyncpa [#allocation12], 0 }
   0xc   :  { %28 = vsyncpa [#allocation15], 0 }
   0xd   :  { %29 = vsyncpa [#allocation18], 0 }
   0xe   :  { %30 = vsyncpa [#allocation10], 0 }
   0xf   :  { %32 = vsyncpa [#allocation10 + $0x1], 0  ;;  %s15814_s2 = smov 0   ;;  %s15816_s25 = smov 0  }
  0x10   :  { %s15818_s26 = smov 0   ;;  %s15820_s27 = smov 0  }
  0x11 LB: > { %20049 = sst [smem:[#allocation25_spill]] %s15669_s2  ;;  %s15835_s3 = sadd.s32 4294967295, %s15681_s27   ;;  %s15681_s27 = sphi %s15820_s27, %s20113_s27   ;;  %s15677_s26 = sphi %s15818_s26, %s20115_s26   ;;  %s15673_s25 = sphi %s15816_s25, %s20117_s25   ;;  %s15669_s2 = sphi %s15814_s2, %s20116_s2  }
  0x12   : > { %20050 = sst [smem:[#allocation26_spill]] %s15677_s26  ;;  %s12487_s28 = sadd.s32 4294967294, %s15681_s27  }
  0x13   : > { %20051 = sst [smem:[#allocation27_spill]] %s15681_s27  ;;  %s15839_s29 = sadd.s32 1, %s15681_s27  }
  0x14   : > { %20052 = sst [smem:[#allocation28_spill]] %s15839_s29  ;;  %s491_s0 = sadd.s32 1, %s15677_s26 }
  0x15   : > { %s488_s4 = ssub.s32 %s15681_s27, %s15839_s29  ;;  %p501_p0 = scmp.ne.s32.totalorder %s15677_s26, %s15673_s25 }
  0x16   : > { %p489_p1 = scmp.eq.s32.totalorder %s488_s4, 0  ;;  %p502_p2 = scmp.eq.s32.totalorder %s15835_s3, 1 }
  0x17   : > { %p507_p3 = scmp.ne.s32.totalorder %s15673_s25, %s15669_s2  ;;  %p508_p4 = scmp.eq.s32.totalorder %s12487_s28, 1 }
  0x18   : > { %s15850_s30 = scalar_select %p489_p1, %s15677_s26, %s491_s0  }
  0x19   : > { %p15852_p5 = por %p502_p2, %p501_p0  ;;  %p15856_p6 = por %p508_p4, %p507_p3 }
  0x1a   : > { %20053 = sst [smem:[#allocation29_spill]] %s15850_s30  ;;  %p12488_p7 = scmp.ge.s32.totalorder %s15681_s27, 1 }
  0x1b   : > { %s20054_s5 = scalar_select %p15852_p5, 1, 0 }
  0x1c   : > { %s20056_s22 = scalar_select %p15856_p6, 1, 0 }
  0x1d   : > { %20055 = sst [smem:[#allocation30_spill]] %s20054_s5  ;;  %p515_p8 = scmp.lt.s32.totalorder %s15681_s27, 3 }
  0x1e   : > { %20057 = sst [smem:[#allocation31_spill]] %s20056_s22  ;;  %p20006_p9 = scmp.eq.s32.totalorder %s15835_s3, 0 }
  0x1f   : > { %p15863_p10 = pnand %p12488_p7, %p515_p8  ;;  %s15683_s1 = smov [#allocation11]  }
  0x20   : > { %s543_s24 = sshll.u32 %s15683_s1, 4  ;;  %s15684_s0 = smov [#allocation14]   ;;  %s544_s24 = int_to_ptr.vmem [resolvable:$true] %s543_s24 }
  0x21   : > { %p15137_p11 = pneg %p15863_p10  ;;  %s575_s4 = sshll.u32 %s15684_s0, 4  ;;  %s576_s4 = int_to_ptr.vmem [resolvable:$true] %s575_s4 }
  0x22   : > { %s15685_s30 = smov [#allocation8]   ;;  %s15460_s22 = scalar_lea.vmem %s544_s24, 1152 }
  0x23   : > { %p15871_p12 = pnand %p20006_p9, %p15137_p11  ;;  %s527_s26 = sshll.u32 %s15685_s30, 4  ;;  %s528_s26 = int_to_ptr.vmem [resolvable:$true] %s527_s26 }
  0x24   : > { %p15461_p0 = scmp.ne.s32.totalorder %s544_s24, %s15460_s22  ;;  %p15468_p3 = scmp.lt.s32.totalorder %s544_s24, %s544_s24 }
  0x25   : > { %p15877_p13 = pneg %p15871_p12  ;;  %p15469_p4 = scmp.lt.s32.totalorder %s15460_s22, %s15460_s22 }
  0x27   : > { %p15463_p1 = pnand %p15461_p0, %p15877_p13  ;;  %p15470_p7 = por %p15469_p4, %p15468_p3 }
  0x29   : > { %p15464_p2 = pneg %p15463_p1 }
  0x2b   : > { %p15471_p8 = pnand %p15470_p7, %p15464_p2 }
  0x2d   : > { %15474 = shalt.err (!%p15471_p8)
}
  0x2e   : > { %s15686_s1 = smov 64   ;;  %s15687_s30 = smov 4  }
  0x2f   : > { %s20061_s27 = sld [smem:[#allocation35_spill]]  ;;  %s15486_s21 = scalar_lea.vmem %s576_s4, 1152 }
  0x30   : > { %p15487_p11 = scmp.ne.s32.totalorder %s576_s4, %s15486_s21  ;;  %p15494_p3 = scmp.lt.s32.totalorder %s576_s4, %s576_s4 }
  0x31   : > { %p15495_p2 = scmp.lt.s32.totalorder %s15486_s21, %s15486_s21 }
  0x32   : > { %p15489_p0 = pnand %p15487_p11, %p15877_p13 }
  0x33   : > { %p15496_p4 = por %p15495_p2, %p15494_p3 }
  0x34   : > { %p15490_p1 = pneg %p15489_p0 }
  0x35   : > { %15143 = dma.hbm_to_vmem [thread:$0]  (!%p15871_p12), %s20061_s27, 1152, %s544_s24, [#allocation12], %s15686_s1, %s15686_s1, %s15687_s30  }
  0x36   : > { %p15497_p7 = pnand %p15496_p4, %p15490_p1 }
  0x38   : > { %15500 = shalt.err (!%p15497_p7)
}
  0x39   : > { %s20062_s7 = sld [smem:[#allocation39_spill]]  ;;  %s15512_s2 = scalar_lea.vmem %s528_s26, 1152 }
  0x3a   : > { %p15513_p8 = scmp.ne.s32.totalorder %s528_s26, %s15512_s2  ;;  %p15520_p9 = scmp.lt.s32.totalorder %s528_s26, %s528_s26 }
  0x3b   : > { %p15521_p3 = scmp.lt.s32.totalorder %s15512_s2, %s15512_s2 }
  0x3c   : > { %p15515_p11 = pnand %p15513_p8, %p15877_p13 }
  0x3d   : > { %p15522_p1 = por %p15521_p3, %p15520_p9 }
  0x3e   : > { %p15516_p0 = pneg %p15515_p11 }
  0x3f   : > { %15149 = dma.hbm_to_vmem [thread:$0]  (!%p15871_p12), %s20062_s7, 1152, %s576_s4, [#allocation15], %s15686_s1, %s15686_s1, %s15687_s30  }
  0x40   : > { %p15523_p2 = pnand %p15522_p1, %p15516_p0 }
  0x42   : > { %15526 = shalt.err (!%p15523_p2)
}
  0x43   : > { %s20063_s5 = sld [smem:[#allocation33_spill]]  ;;  %s15688_s24 = smov [#allocation13]  }
  0x44   : > { %s559_s4 = sshll.u32 %s15688_s24, 4  ;;  %s15689_s0 = smov [#allocation16]   ;;  %s560_s4 = int_to_ptr.vmem [resolvable:$true] %s559_s4 }
  0x45   : > { %s621_s22 = sshll.u32 %s15689_s0, 4  ;;  %s15538_s7 = scalar_lea.vmem %s560_s4, 1152  ;;  %s622_s22 = int_to_ptr.vmem [resolvable:$true] %s621_s22 }
  0x46   : > { %p15539_p4 = scmp.ne.s32.totalorder %s560_s4, %s15538_s7  ;;  %p15546_p8 = scmp.lt.s32.totalorder %s560_s4, %s560_s4 }
  0x47   : > { %p15547_p11 = scmp.lt.s32.totalorder %s15538_s7, %s15538_s7 }
  0x48   : > { %p15541_p9 = pnand %p15539_p4, %p15877_p13 }
  0x49   : > { %15140 = dma.hbm_to_vmem [thread:$0]  (!%p15871_p12), %s20063_s5, 1152, %s528_s26, [#allocation9], %s15686_s1, %s15686_s1, %s15687_s30  }
  0x4a   : > { %p15542_p7 = pneg %p15541_p9  ;;  %p15548_p0 = por %p15547_p11, %p15546_p8 }
  0x4c   : > { %p15549_p3 = pnand %p15548_p0, %p15542_p7 }
  0x4e   : > { %15552 = shalt.err (!%p15549_p3)
}
  0x4f   : > { %s20064_s21 = sld [smem:[#allocation37_spill]]  ;;  %s15564_s27 = scalar_lea.vmem %s622_s22, 1024 }
  0x50   : > { %p15565_p1 = scmp.ne.s32.totalorder %s622_s22, %s15564_s27  ;;  %p15572_p9 = scmp.lt.s32.totalorder %s622_s22, %s622_s22 }
  0x51   : > { %p15573_p8 = scmp.lt.s32.totalorder %s15564_s27, %s15564_s27 }
  0x52   : > { %p15567_p2 = pnand %p15565_p1, %p15877_p13 }
  0x53   : > { %p15574_p7 = por %p15573_p8, %p15572_p9 }
  0x54   : > { %p15568_p4 = pneg %p15567_p2 }
  0x55   : > { %15146 = dma.hbm_to_vmem [thread:$0]  (!%p15871_p12), %s20064_s21, 1152, %s560_s4, [#allocation12], %s15686_s1, %s15686_s1, %s15687_s30  }
  0x56   : > { %p15575_p11 = pnand %p15574_p7, %p15568_p4 }
  0x58   : > { %15578 = shalt.err (!%p15575_p11)
}
  0x59   : > { %s15690_s7 = smov 128   ;;  %s15691_s5 = smov 8  }
  0x5a   : > { %15152 = dma.hbm_to_vmem [thread:$0]  (!%p15871_p12), %s19992_s19, 1024, %s622_s22, [#allocation15], %s15690_s7, %s15690_s7, %s15691_s5  }
  0x5b   : > { %s15692_s1 = smov [#allocation17]  }
  0x5c   : > { %s635_s30 = sshll.u32 %s15692_s1, 4  ;;  %s636_s30 = int_to_ptr.vmem [resolvable:$true] %s635_s30 }
  0x5d   : > { %s15590_s4 = scalar_lea.vmem %s636_s30, 16  ;;  %s15597_s26 = scalar_lea.vmem %s636_s30, 32 }
  0x5e   : > { %p15591_p0 = scmp.ne.s32.totalorder %s636_s30, %s15590_s4  ;;  %p15598_p2 = scmp.lt.s32.totalorder %s636_s30, %s636_s30 }
  0x5f   : > { %p15599_p4 = scmp.lt.s32.totalorder %s15597_s26, %s15590_s4 }
  0x60   : > { %p15593_p3 = pnand %p15591_p0, %p15877_p13 }
  0x61   : > { %p15600_p9 = por %p15599_p4, %p15598_p2 }
  0x62   : > { %p15594_p1 = pneg %p15593_p3 }
  0x64   : > { %p15601_p8 = pnand %p15600_p9, %p15594_p1 }
  0x66   : > { %15604 = shalt.err (!%p15601_p8)
}
  0x67   : > { %15155 = dma.hbm_to_vmem [thread:$0]  (!%p15871_p12), %s19993_s20, 16, %s636_s30, [#allocation18]  }
  0x68   : > { %656 = sbr.rel (%p15863_p10) target bundleno = 3487 (0xd9f), region = 104  ;;  %p20065_p7 = scmp.eq.s32.totalorder (!%p15863_p10), %s15835_s3, 0 }
  0x6d   : > { %15648 = dma.done.wait (%p20065_p7), [#allocation9], 1152   ;;  %p20066_p13 = pmov %p20065_p7 }
  0x6e   : > { %p20067_p11 = pmov %p20065_p7 }
  0x6f   : > { %15650 = vsyncadd (%p20066_p13), [#allocation9], 4294966144 }
  0x70   : > { %15652 = dma.done.wait (%p20067_p11), [#allocation12], 2304   ;;  %p20068_p0 = pmov %p20065_p7 }
  0x72   : > { %15654 = vsyncadd (%p20068_p0), [#allocation12], 4294964992  ;;  %p20069_p3 = pmov %p20068_p0 }
  0x73   : > { %p20070_p12 = pmov %p20068_p0 }
  0x74   : > { %15656 = dma.done.wait (%p20069_p3), [#allocation15], 2176  }
  0x75   : > { %15658 = vsyncadd (%p20070_p12), [#allocation15], 4294965120  ;;  %p20071_p10 = pmov %p20068_p0 }
  0x76   : > { %p20072_p1 = pmov %p20068_p0 }
  0x77   : > { %15660 = dma.done.wait (%p20071_p10), [#allocation18], 16  }
  0x78   : > { %15662 = vsyncadd (%p20072_p1), [#allocation18], 4294967280  ;;  %vm786_vm0 = vcmask 130048   ;;  %v20007_v0 = vmov 0.0   ;;  %vm789_vm1 = vcmask 123904   ;;  %p735_p2 = scmp.lt.s32.totalorder %s15835_s3, 1 }
  0x79   : > { %787 = vst.msk [vmem:[#allocation4] sm:$0xff] %vm786_vm0, %v20007_v0  ;;  %788 = vst.msk [vmem:[#allocation4 + $0x8] sm:$0xff] %vm786_vm0, %v20007_v0  ;;  %v20035_v1 = vmov 0   ;;  %vm875_vm2 = vcmask 23552   ;;  %s20073_s27 = sld [smem:[#allocation32_spill]]  ;;  %s15695_s5 = smov 32  }
  0x7a   : > { %791 = vst.msk [vmem:[#allocation4 + $0x18] sm:$0xff] %vm786_vm0, %v20007_v0  ;;  %792 = vst.msk [vmem:[#allocation4 + $0x20] sm:$0xff] %vm786_vm0, %v20007_v0  ;;  %3396 = vmatprep.subr.bf16.mxu0 %v20035_v1  ;;  %6100 = vmatprep.subr.bf16.mxu1 %v20035_v1  ;;  %s736_s29 = scalar_select %p735_p2, %s15835_s3, 1  ;;  %vm1068_vm3 = vcmask 125952   ;;  %v15225_v22 = vld [vmem:[#allocation8 + $0x38] sm:$0xff]   ;;  %v15226_v25 = vld [vmem:[#allocation8 + $0x30] sm:$0xff]  }
  0x7b   : > { %794 = vst.msk [vmem:[#allocation4 + $0x30] sm:$0xff] %vm786_vm0, %v20007_v0  ;;  %795 = vst.msk [vmem:[#allocation4 + $0x38] sm:$0xff] %vm786_vm0, %v20007_v0  ;;  %s15696_s24 = smov 16   ;;  %3397 = vmatpush1.bf16.msra.mxu0 %v15225_v22  ;;  %s15697_s0 = smov 48   ;;  %vm1325_vm4 = vcmask 257152   ;;  %vm1582_vm5 = vcmask 388352  }
  0x7c   : > { %797 = vst.msk [vmem:[#allocation4 + $0x48] sm:$0xff] %vm786_vm0, %v20007_v0  ;;  %798 = vst.msk [vmem:[#allocation4 + $0x50] sm:$0xff] %vm786_vm0, %v20007_v0  ;;  %s13860_s23 = sshll.u32 %s736_s29, 8  ;;  %3398 = vmatprep.subr.bf16.mxu0 %v20035_v1  ;;  %s15698_s1 = smov 64   ;;  %vm1839_vm6 = vcmask 519552   ;;  %vm2096_vm7 = vcmask 650752  }
  0x7d   : > { %800 = vst.msk [vmem:[#allocation4 + $0x60] sm:$0xff] %vm786_vm0, %v20007_v0  ;;  %801 = vst.msk [vmem:[#allocation4 + $0x68] sm:$0xff] %vm786_vm0, %v20007_v0  ;;  %s15699_s30 = smov 80   ;;  %s15700_s4 = smov 96   ;;  %vm2353_vm8 = vcmask 781952   ;;  %vm2611_vm9 = vcmask 913152  }
  0x7e   : > { %803 = vst.msk [vmem:[#allocation4 + $0x78] sm:$0xff] %vm786_vm0, %v20007_v0  ;;  %804 = vst.msk [vmem:[#allocation4 + $0x80] sm:$0xff] %vm786_vm0, %v20007_v0  ;;  %s15701_s26 = smov 112   ;;  %vm2868_vm10 = vcmask 1044352   ;;  %s20074_s29 = sld [smem:[#allocation34_spill]]  ;;  %vm758_vm11 = vcmask 261120  }
  0x7f   : > { %806 = vst.msk [vmem:[#allocation4 + $0x90] sm:$0xff] %vm786_vm0, %v20007_v0  ;;  %807 = vst.msk [vmem:[#allocation4 + $0x98] sm:$0xff] %vm786_vm0, %v20007_v0  ;;  %s16070_s7 = scalar_lea.vmem %s20073_s27, %s13860_s23  ;;  %3399 = vmatpush1.bf16.msra.mxu0 %v15226_v25  ;;  %s20075_s21 = sld [smem:[#allocation36_spill]]  ;;  %vm760_vm12 = vcmask 254976   ;;  %vm765_vm13 = vcmask 253952   ;;  %vm10031_vm14 = vcmask 257024  }
  0x80   : > { %809 = vst.msk [vmem:[#allocation4 + $0xa8] sm:$0xff] %vm786_vm0, %v20007_v0  ;;  %810 = vst.msk [vmem:[#allocation4 + $0xb0] sm:$0xff] %vm786_vm0, %v20007_v0  ;;  %v842_v2 = vld [vmem:[%s16070_s7] sm:$0xff]  ;;  %v843_v3 = vld [vmem:[%s16070_s7 + $0x8] sm:$0xff]  ;;  %3400 = vmatprep.subr.bf16.mxu0 %v20035_v1  ;;  %s20076_s6 = sld [smem:[#allocation38_spill]]  ;;  %vm10096_vm15 = vcmask 519424  }
  0x81   : > { %812 = vst.msk [vmem:[#allocation4 + $0xc0] sm:$0xff] %vm786_vm0, %v20007_v0  ;;  %813 = vst.msk [vmem:[#allocation4 + $0xc8] sm:$0xff] %vm786_vm0, %v20007_v0  ;;  %v844_v4 = vld [vmem:[%s16070_s7 + $0x10] sm:$0xff]  ;;  %v845_v7 = vld [vmem:[%s16070_s7 + $0x18] sm:$0xff]  ;;  %s733_s2 = sand.u32 1, %s15673_s25   ;;  %s13857_s23 = sshll.u32 %s15835_s3, 4 }
  0x82   : > { %815 = vst.msk [vmem:[#allocation4 + $0xd8] sm:$0xff] %vm786_vm0, %v20007_v0  ;;  %816 = vst.msk [vmem:[#allocation4 + $0xe0] sm:$0xff] %vm786_vm0, %v20007_v0  ;;  %v1358_v5 = vld [vmem:[#allocation4 + $0x2] sm:$0xff]  ;;  %v846_v12 = vld [vmem:[%s16070_s7 + $0x20] sm:$0xff]  ;;  %s734_s28 = scalar_lea.vmem [#allocation19], %s733_s2  ;;  %s12292_s22 = scalar_lea.sflag [#allocation10], %s733_s2 }
  0x83   : > { %818 = vst.msk [vmem:[#allocation4 + $0xf0] sm:$0xff] %vm786_vm0, %v20007_v0  ;;  %819 = vst.msk [vmem:[#allocation4 + $0xf8] sm:$0xff] %vm786_vm0, %v20007_v0  ;;  %v1101_v6 = vld [vmem:[#allocation4 + $0x1] sm:$0xff]  ;;  %v13925_v8 = vpack.c.bf16 %v1358_v5, %v1358_v5  ;;  %v847_v13 = vld [vmem:[%s16070_s7 + $0x28] sm:$0xff]  ;;  %s15703_s3 = smov [#allocation19]  }
  0x84   : > { %821 = vst.msk [vmem:[#allocation4 + $0x108] sm:$0xff] %vm786_vm0, %v20007_v0  ;;  %822 = vst.msk [vmem:[#allocation4 + $0x110] sm:$0xff] %vm786_vm0, %v20007_v0  ;;  %v13893_v9 = vpack.c.bf16 %v1101_v6, %v1101_v6  ;;  %v848_v14 = vld [vmem:[%s16070_s7 + $0x30] sm:$0xff]  ;;  %v849_v15 = vld [vmem:[%s16070_s7 + $0x38] sm:$0xff]  ;;  %s15609_s27 = sshll.u32 %s15703_s3, 4  ;;  %s15610_s27 = int_to_ptr.vmem [resolvable:$false] %s15609_s27 }
  0x85   : > { %824 = vst.msk [vmem:[#allocation4 + $0x120] sm:$0xff] %vm786_vm0, %v20007_v0  ;;  %825 = vst.msk [vmem:[#allocation4 + $0x128] sm:$0xff] %vm786_vm0, %v20007_v0  ;;  %1486 = vrot.lane.b32.xlu1 %v13925_v8, %s15695_s5  ;;  %v850_v18 = vld [vmem:[%s16070_s7 + $0x40] sm:$0xff]  ;;  %v851_v19 = vld [vmem:[%s16070_s7 + $0x48] sm:$0xff] }
  0x86   : > { %827 = vst.msk [vmem:[#allocation4 + $0x138] sm:$0xff] %vm786_vm0, %v20007_v0  ;;  %828 = vst.msk [vmem:[#allocation4 + $0x140] sm:$0xff] %vm786_vm0, %v20007_v0  ;;  %1229 = vrot.lane.b32.xlu0 %v13893_v9, %s15696_s24  ;;  %v908_v20 = vld [vmem:[#allocation4] sm:$0xff]  ;;  %v909_v23 = vld [vmem:[#allocation4 + $0x8] sm:$0xff] }
  0x87   : > { %830 = vst.msk [vmem:[#allocation4 + $0x150] sm:$0xff] %vm786_vm0, %v20007_v0  ;;  %831 = vst.msk [vmem:[#allocation4 + $0x158] sm:$0xff] %vm786_vm0, %v20007_v0  ;;  %v16094_v21 = vpack.c.bf16 %v908_v20, %v908_v20  ;;  %v16098_v24 = vpack.c.bf16 %v909_v23, %v909_v23  ;;  %v853_v8 = vld [vmem:[%s16070_s7 + $0x58] sm:$0xff]  ;;  %v15228_v9 = vld [vmem:[#allocation8 + $0x20] sm:$0xff]  }
  0x88   : > { %833 = vst.msk [vmem:[#allocation4 + $0x168] sm:$0xff] %vm786_vm0, %v20007_v0  ;;  %834 = vst.msk [vmem:[#allocation4 + $0x170] sm:$0xff] %vm786_vm0, %v20007_v0  ;;  %v15231_v20 = vld [vmem:[#allocation8 + $0x8] sm:$0xff]  }
  0x89   : > { %836 = vst.msk [vmem:[#allocation4 + $0x180] sm:$0xff] %vm786_vm0, %v20007_v0  ;;  %837 = vst.msk [vmem:[#allocation4 + $0x188] sm:$0xff] %vm786_vm0, %v20007_v0 }
  0x8a   : > { %839 = vst.msk [vmem:[#allocation4 + $0x198] sm:$0xff] %vm786_vm0, %v20007_v0  ;;  %840 = vst.msk [vmem:[#allocation4 + $0x1a0] sm:$0xff] %vm786_vm0, %v20007_v0 }
  0x8b   : > { %790 = vst.msk [vmem:[#allocation4 + $0x10] sm:$0x3] %vm789_vm1, %v20007_v0  ;;  %793 = vst.msk [vmem:[#allocation4 + $0x28] sm:$0x3] %vm789_vm1, %v20007_v0 }
  0x8c   : > { %796 = vst.msk [vmem:[#allocation4 + $0x40] sm:$0x3] %vm789_vm1, %v20007_v0  ;;  %799 = vst.msk [vmem:[#allocation4 + $0x58] sm:$0x3] %vm789_vm1, %v20007_v0 }
  0x8d   : > { %802 = vst.msk [vmem:[#allocation4 + $0x70] sm:$0x3] %vm789_vm1, %v20007_v0  ;;  %805 = vst.msk [vmem:[#allocation4 + $0x88] sm:$0x3] %vm789_vm1, %v20007_v0 }
  0x8e   : > { %808 = vst.msk [vmem:[#allocation4 + $0xa0] sm:$0x3] %vm789_vm1, %v20007_v0  ;;  %811 = vst.msk [vmem:[#allocation4 + $0xb8] sm:$0x3] %vm789_vm1, %v20007_v0 }
  0x8f   : > { %814 = vst.msk [vmem:[#allocation4 + $0xd0] sm:$0x3] %vm789_vm1, %v20007_v0  ;;  %817 = vst.msk [vmem:[#allocation4 + $0xe8] sm:$0x3] %vm789_vm1, %v20007_v0 }
  0x90   : > { %820 = vst.msk [vmem:[#allocation4 + $0x100] sm:$0x3] %vm789_vm1, %v20007_v0  ;;  %823 = vst.msk [vmem:[#allocation4 + $0x118] sm:$0x3] %vm789_vm1, %v20007_v0 }
  0x91   : > { %826 = vst.msk [vmem:[#allocation4 + $0x130] sm:$0x3] %vm789_vm1, %v20007_v0  ;;  %829 = vst.msk [vmem:[#allocation4 + $0x148] sm:$0x3] %vm789_vm1, %v20007_v0 }
  0x92   : > { %832 = vst.msk [vmem:[#allocation4 + $0x160] sm:$0x3] %vm789_vm1, %v20007_v0  ;;  %835 = vst.msk [vmem:[#allocation4 + $0x178] sm:$0x3] %vm789_vm1, %v20007_v0  ;;  %v1359_v10 = vld [vmem:[#allocation4 + $0xa] sm:$0xff] }
  0x93   : > { %838 = vst.msk [vmem:[#allocation4 + $0x190] sm:$0x3] %vm789_vm1, %v20007_v0  ;;  %841 = vst.msk [vmem:[#allocation4 + $0x1a8] sm:$0x3] %vm789_vm1, %v20007_v0  ;;  %v1102_v11 = vld [vmem:[#allocation4 + $0x9] sm:$0xff]  ;;  %v13926_v16 = vpack.c.bf16 %v1359_v10, %v1359_v10  ;;  %vm10161_vm1 = vcmask 781824  }
  0x94   : > { %876 = vst.msk [vmem:[#allocation4 + $0x19] sm:$0xff] %vm875_vm2, %v842_v2  ;;  %877 = vst.msk [vmem:[#allocation4 + $0x21] sm:$0xff] %vm875_vm2, %v843_v3  ;;  %v13894_v17 = vpack.c.bf16 %v1102_v11, %v1102_v11 }
  0x95   : > { %878 = vst.msk [vmem:[#allocation4 + $0x31] sm:$0xff] %vm875_vm2, %v844_v4  ;;  %879 = vst.msk [vmem:[#allocation4 + $0x39] sm:$0xff] %vm875_vm2, %v845_v7  ;;  %1488 = vrot.lane.b32.xlu1 %v13926_v16, %s15695_s5  ;;  %v15227_v4 = vld [vmem:[#allocation8 + $0x28] sm:$0xff]  }
  0x96   : > { %880 = vst.msk [vmem:[#allocation4 + $0x49] sm:$0xff] %vm875_vm2, %v846_v12  ;;  %881 = vst.msk [vmem:[#allocation4 + $0x51] sm:$0xff] %vm875_vm2, %v847_v13  ;;  %1231 = vrot.lane.b32.xlu0 %v13894_v17, %s15696_s24  ;;  %v852_v7 = vld [vmem:[%s16070_s7 + $0x50] sm:$0xff]  ;;  %3401 = vmatpush1.bf16.msra.mxu0 %v15227_v4  ;;  %v15229_v12 = vld [vmem:[#allocation8 + $0x18] sm:$0xff]  }
  0x97   : > { %882 = vst.msk [vmem:[#allocation4 + $0x61] sm:$0xff] %vm875_vm2, %v848_v14  ;;  %883 = vst.msk [vmem:[#allocation4 + $0x69] sm:$0xff] %vm875_vm2, %v849_v15  ;;  %3402 = vmatprep.subr.bf16.mxu0 %v20035_v1  ;;  %v854_v13 = vld [vmem:[%s16070_s7 + $0x60] sm:$0xff]  ;;  %v855_v14 = vld [vmem:[%s16070_s7 + $0x68] sm:$0xff] }
  0x98   : > { %884 = vst.msk [vmem:[#allocation4 + $0x79] sm:$0xff] %vm875_vm2, %v850_v18  ;;  %885 = vst.msk [vmem:[#allocation4 + $0x81] sm:$0xff] %vm875_vm2, %v851_v19  ;;  %v15230_v19 = vld [vmem:[#allocation8 + $0x10] sm:$0xff]  }
  0x99   : > { %1069 = vst.msk [vmem:[#allocation7] sm:$0xf] %vm1068_vm3, %v16094_v21  ;;  %1070 = vst.msk [vmem:[#allocation7 + $0x8] sm:$0xf] %vm1068_vm3, %v16098_v24 }
  0x9a   : > { %886 = vst.msk [vmem:[#allocation4 + $0x91] sm:$0xff] %vm875_vm2, %v852_v7  ;;  %887 = vst.msk [vmem:[#allocation4 + $0x99] sm:$0xff] %vm875_vm2, %v853_v8  ;;  %3403 = vmatpush1.bf16.msra.mxu0 %v15228_v9 }
  0x9b   : > { %v1616_v26 = vld [vmem:[#allocation4 + $0x20] sm:$0xff]  ;;  %v1615_v27 = vld [vmem:[#allocation4 + $0x18] sm:$0xff]  ;;  %3404 = vmatprep.subr.bf16.mxu0 %v20035_v1  ;;  %888 = vst.msk [vmem:[#allocation4 + $0xa9] sm:$0xff] %vm875_vm2, %v854_v13  ;;  %889 = vst.msk [vmem:[#allocation4 + $0xb1] sm:$0xff] %vm875_vm2, %v855_v14 }
  0x9c   : > { %v13958_v28 = vpack.c.bf16 %v1616_v26, %v1616_v26  ;;  %v13957_v29 = vpack.c.bf16 %v1615_v27, %v1615_v27  ;;  %v1873_v30 = vld [vmem:[#allocation4 + $0x21] sm:$0xff]  ;;  %v1872_v31 = vld [vmem:[#allocation4 + $0x19] sm:$0xff]  ;;  %v2387_v38 = vld [vmem:[#allocation4 + $0x30] sm:$0xff] }
  0x9d   : > { %v2388_v32 = vld [vmem:[#allocation4 + $0x38] sm:$0xff]  ;;  %v16115_v39 = vpack.c.bf16 %v1873_v30, %v1873_v30  ;;  %v16117_v40 = vpack.c.bf16 %v1872_v31, %v1872_v31  ;;  %v16119_v41 = vpack.c.bf16 %v2387_v38, %v2387_v38  ;;  %v2390_v42 = vld [vmem:[#allocation4 + $0x50] sm:$0xff]  ;;  %v2130_v45 = vld [vmem:[#allocation4 + $0x22] sm:$0xff] }
  0x9e   : > { %v2901_v33 = vld [vmem:[#allocation4 + $0x32] sm:$0xff]  ;;  %v2902_v34 = vld [vmem:[#allocation4 + $0x3a] sm:$0xff]  ;;  %v16105_v35 = vpack.c.bf16 %v2388_v32, %v2388_v32  ;;  %1072 = vst.msk [vmem:[#allocation7 + $0x18] sm:$0xf] %vm1068_vm3, %v13958_v28  ;;  %1071 = vst.msk [vmem:[#allocation7 + $0x10] sm:$0xf] %vm1068_vm3, %v13957_v29  ;;  %1745 = vrot.lane.b32.xlu1 %v13958_v28, %s15697_s0  ;;  %1743 = vrot.lane.b32.xlu0 %v13957_v29, %s15697_s0  ;;  %v16125_v47 = vpack.c.bf16 %v2390_v42, %v2390_v42 }
  0x9f   : > { %v16107_v36 = vpack.c.bf16 %v2901_v33, %v2901_v33  ;;  %v16109_v37 = vpack.c.bf16 %v2902_v34, %v2902_v34  ;;  %v2903_v43 = vld [vmem:[#allocation4 + $0x4a] sm:$0xff]  ;;  %v2904_v44 = vld [vmem:[#allocation4 + $0x52] sm:$0xff]  ;;  %v2129_v46 = vld [vmem:[#allocation4 + $0x1a] sm:$0xff]  ;;  %1073 = vst.msk [vmem:[#allocation7 + $0x20] sm:$0xf] %vm1068_vm3, %v16119_v41  ;;  %v14022_v59 = vpack.c.bf16 %v2130_v45, %v2130_v45  ;;  %3405 = vmatpush1.bf16.msra.mxu0 %v15229_v12 }
  0xa0   : > { %v16127_v48 = vpack.c.bf16 %v2903_v43, %v2903_v43  ;;  %v16129_v49 = vpack.c.bf16 %v2904_v44, %v2904_v44  ;;  %v2389_v50 = vld [vmem:[#allocation4 + $0x48] sm:$0xff]  ;;  %1074 = vst.msk [vmem:[#allocation7 + $0x28] sm:$0xf] %vm1068_vm3, %v16105_v35  ;;  %v2391_v58 = vld [vmem:[#allocation4 + $0x60] sm:$0xff]  ;;  %1076 = vst.msk [vmem:[#allocation7 + $0x38] sm:$0xf] %vm1068_vm3, %v16125_v47  ;;  %v14021_v60 = vpack.c.bf16 %v2129_v46, %v2129_v46  ;;  %3406 = vmatprep.subr.bf16.mxu0 %v20035_v1 }
  0xa1   : > { %3061 = vst.msk [vmem:[#allocation7 + $0x4] sm:$0xf] %vm1068_vm3, %v16107_v36  ;;  %3062 = vst.msk [vmem:[#allocation7 + $0xc] sm:$0xf] %vm1068_vm3, %v16109_v37  ;;  %v16134_v51 = vpack.c.bf16 %v2389_v50, %v2389_v50  ;;  %v2392_v52 = vld [vmem:[#allocation4 + $0x68] sm:$0xff]  ;;  %v16154_v61 = vpack.c.bf16 %v2391_v58, %v2391_v58  ;;  %v2907_v62 = vld [vmem:[#allocation4 + $0x7a] sm:$0xff] }
  0xa2   : > { %v2905_v53 = vld [vmem:[#allocation4 + $0x62] sm:$0xff]  ;;  %v2906_v54 = vld [vmem:[#allocation4 + $0x6a] sm:$0xff]  ;;  %3063 = vst.msk [vmem:[#allocation7 + $0x14] sm:$0xf] %vm1068_vm3, %v16127_v48  ;;  %3064 = vst.msk [vmem:[#allocation7 + $0x1c] sm:$0xf] %vm1068_vm3, %v16129_v49  ;;  %v16142_v55 = vpack.c.bf16 %v2392_v52, %v2392_v52  ;;  %2002 = vrot.lane.b32.xlu1 %v16115_v39, %s15698_s1  ;;  %2000 = vrot.lane.b32.xlu0 %v16117_v40, %s15698_s1  ;;  %v16162_v2 = vpack.c.bf16 %v2907_v62, %v2907_v62 }
  0xa3   : > { %v16144_v56 = vpack.c.bf16 %v2905_v53, %v2905_v53  ;;  %v16146_v57 = vpack.c.bf16 %v2906_v54, %v2906_v54  ;;  %v2908_v63 = vld [vmem:[#allocation4 + $0x82] sm:$0xff]  ;;  %1075 = vst.msk [vmem:[#allocation7 + $0x30] sm:$0xf] %vm1068_vm3, %v16134_v51  ;;  %1077 = vst.msk [vmem:[#allocation7 + $0x40] sm:$0xf] %vm1068_vm3, %v16154_v61  ;;  %v2645_v5 = vld [vmem:[#allocation4 + $0x39] sm:$0xff]  ;;  %3407 = vmatpush1.bf16.msra.mxu0 %v15230_v19 }
  0xa4   : > { %v16164_v3 = vpack.c.bf16 %v2908_v63, %v2908_v63  ;;  %1078 = vst.msk [vmem:[#allocation7 + $0x48] sm:$0xf] %vm1068_vm3, %v16142_v55  ;;  %3067 = vst.msk [vmem:[#allocation7 + $0x34] sm:$0xf] %vm1068_vm3, %v16162_v2  ;;  %v2644_v6 = vld [vmem:[#allocation4 + $0x31] sm:$0xff]  ;;  %v16185_v10 = vpack.c.bf16 %v2645_v5, %v2645_v5  ;;  %v2910_v16 = vld [vmem:[#allocation4 + $0x9a] sm:$0xff]  ;;  %3408 = vmatprep.subr.bf16.mxu0 %v20035_v1 }
  0xa5   : > { %3065 = vst.msk [vmem:[#allocation7 + $0x24] sm:$0xf] %vm1068_vm3, %v16144_v56  ;;  %3066 = vst.msk [vmem:[#allocation7 + $0x2c] sm:$0xf] %vm1068_vm3, %v16146_v57  ;;  %v16187_v11 = vpack.c.bf16 %v2644_v6, %v2644_v6  ;;  %v2909_v15 = vld [vmem:[#allocation4 + $0x92] sm:$0xff]  ;;  %v16200_v18 = vpack.c.bf16 %v2910_v16, %v2910_v16  ;;  %v2397_v23 = vld [vmem:[#allocation4 + $0xa8] sm:$0xff] }
  0xa6   : > { %3068 = vst.msk [vmem:[#allocation7 + $0x3c] sm:$0xf] %vm1068_vm3, %v16164_v3  ;;  %2259 = vrot.lane.b32.xlu1 %v14022_v59, %s15699_s30  ;;  %2257 = vrot.lane.b32.xlu0 %v14021_v60, %s15699_s30  ;;  %v16198_v17 = vpack.c.bf16 %v2909_v15, %v2909_v15  ;;  %v2398_v22 = vld [vmem:[#allocation4 + $0xb0] sm:$0xff]  ;;  %v16214_v26 = vpack.c.bf16 %v2397_v23, %v2397_v23  ;;  %v15232_v31 = vld [vmem:[#allocation8] sm:$0xff]   ;;  %v2651_v7 = vld [vmem:[#allocation4 + $0x81] sm:$0xff] }
  0xa7   : > { %3070 = vst.msk [vmem:[#allocation7 + $0x4c] sm:$0xf] %vm1068_vm3, %v16200_v18  ;;  %v16212_v25 = vpack.c.bf16 %v2398_v22, %v2398_v22  ;;  %v2911_v27 = vld [vmem:[#allocation4 + $0xaa] sm:$0xff]  ;;  %v2912_v28 = vld [vmem:[#allocation4 + $0xb2] sm:$0xff]  ;;  %3409 = vmatpush1.bf16.msra.mxu0 %v15231_v20 }
  0xa8   : > { %3069 = vst.msk [vmem:[#allocation7 + $0x44] sm:$0xf] %vm1068_vm3, %v16198_v17  ;;  %v16218_v29 = vpack.c.bf16 %v2911_v27, %v2911_v27  ;;  %v16220_v30 = vpack.c.bf16 %v2912_v28, %v2912_v28  ;;  %1083 = vst.msk [vmem:[#allocation7 + $0x70] sm:$0xf] %vm1068_vm3, %v16214_v26  ;;  %3410 = vmatprep.subr.bf16.mxu0 %v20035_v1  ;;  %v15233_v32 = vld [vmem:[#allocation8 + $0x40] sm:$0xff]   ;;  %v2646_v34 = vld [vmem:[#allocation4 + $0x49] sm:$0xff] }
  0xa9   : > { %1084 = vst.msk [vmem:[#allocation7 + $0x78] sm:$0xf] %vm1068_vm3, %v16212_v25  ;;  %v2647_v33 = vld [vmem:[#allocation4 + $0x51] sm:$0xff]  ;;  %v14087_v38 = vpack.c.bf16 %v2646_v34, %v2646_v34  ;;  %v2650_v9 = vld [vmem:[#allocation4 + $0x79] sm:$0xff]  ;;  %v861_v12 = vld [vmem:[%s16070_s7 + $0x98] sm:$0xff] }
  0xaa   : > { %2517 = vrot.lane.b32.xlu1 %v16105_v35, %s15700_s4  ;;  %2515 = vrot.lane.b32.xlu0 %v16119_v41, %s15700_s4  ;;  %3071 = vst.msk [vmem:[#allocation7 + $0x54] sm:$0xf] %vm1068_vm3, %v16218_v29  ;;  %3072 = vst.msk [vmem:[#allocation7 + $0x5c] sm:$0xf] %vm1068_vm3, %v16220_v30  ;;  %v858_v53 = vld [vmem:[%s16070_s7 + $0x80] sm:$0xff]  ;;  %v859_v54 = vld [vmem:[%s16070_s7 + $0x88] sm:$0xff] }
  0xab   : > { %3411 = vmatpush1.bf16.msra.mxu0 %v15232_v31  ;;  %892 = vst.msk [vmem:[#allocation4 + $0xd9] sm:$0xff] %vm875_vm2, %v858_v53  ;;  %893 = vst.msk [vmem:[#allocation4 + $0xe1] sm:$0xff] %vm875_vm2, %v859_v54  ;;  %v919_v31 = vld [vmem:[#allocation4 + $0x80] sm:$0xff]  ;;  %v862_v53 = vld [vmem:[%s16070_s7 + $0xa0] sm:$0xff] }
  0xac   : > { %3426 = vmatprep.subr.bf16.mxu0 %v20035_v1  ;;  %895 = vst.msk [vmem:[#allocation4 + $0xf9] sm:$0xff] %vm875_vm2, %v861_v12  ;;  %v863_v54 = vld [vmem:[%s16070_s7 + $0xa8] sm:$0xff]  ;;  %896 = vst.msk [vmem:[#allocation4 + $0x109] sm:$0xff] %vm875_vm2, %v862_v53 }
  0xad   : > { %897 = vst.msk [vmem:[#allocation4 + $0x111] sm:$0xff] %vm875_vm2, %v863_v54 }
  0xae   : > { %2774 = vrot.lane.b32.xlu1 %v16185_v10, %s15701_s26  ;;  %2772 = vrot.lane.b32.xlu0 %v16187_v11, %s15701_s26 }
  0xaf   : > { %3427 = vmatpush2.bf16.msra.mxu0 %v15233_v32  ;;  %v918_v32 = vld [vmem:[#allocation4 + $0x78] sm:$0xff] }
  0xb0   : > { %8804 = vmatprep.subr.bf16.mxu0 %v20035_v1  ;;  %v13871_v34 = vpack.c.bf16 %v918_v32, %v918_v32 }
  0xb2   : > { %1235 = vrot.lane.b32.xlu1 %v16115_v39, %s15696_s24  ;;  %1233 = vrot.lane.b32.xlu0 %v16117_v40, %s15696_s24  ;;  %v856_v39 = vld [vmem:[%s16070_s7 + $0x70] sm:$0xff]  ;;  %v857_v40 = vld [vmem:[%s16070_s7 + $0x78] sm:$0xff]  ;;  %1079 = vst.msk [vmem:[#allocation7 + $0x50] sm:$0xf] %vm1068_vm3, %v13871_v34 }
  0xb3   : > { %890 = vst.msk [vmem:[#allocation4 + $0xc1] sm:$0xff] %vm875_vm2, %v856_v39  ;;  %891 = vst.msk [vmem:[#allocation4 + $0xc9] sm:$0xff] %vm875_vm2, %v857_v40  ;;  %v2402_v58 = vld [vmem:[#allocation4 + $0xe0] sm:$0xff] }
  0xb4   : > { %v2915_v63 = vld [vmem:[#allocation4 + $0xda] sm:$0xff]  ;;  %v2916_v4 = vld [vmem:[#allocation4 + $0xe2] sm:$0xff] }
  0xb5   : > { %v16309_v5 = vpack.c.bf16 %v2915_v63, %v2915_v63  ;;  %v16311_v6 = vpack.c.bf16 %v2916_v4, %v2916_v4  ;;  %v2918_v20 = vld [vmem:[#allocation4 + $0xfa] sm:$0xff] }
  0xb6   : > { %1492 = vrot.lane.b32.xlu1 %v14022_v59, %s15695_s5  ;;  %1490 = vrot.lane.b32.xlu0 %v14021_v60, %s15695_s5  ;;  %v2401_v59 = vld [vmem:[#allocation4 + $0xd8] sm:$0xff]  ;;  %v16301_v60 = vpack.c.bf16 %v2402_v58, %v2402_v58  ;;  %v16357_v23 = vpack.c.bf16 %v2918_v20, %v2918_v20  ;;  %v864_v34 = vld [vmem:[%s16070_s7 + $0xb0] sm:$0xff] }
  0xb7   : > { %v16303_v62 = vpack.c.bf16 %v2401_v59, %v2401_v59  ;;  %3075 = vst.msk [vmem:[#allocation7 + $0x74] sm:$0xf] %vm1068_vm3, %v16309_v5  ;;  %3076 = vst.msk [vmem:[#allocation7 + $0x7c] sm:$0xf] %vm1068_vm3, %v16311_v6 }
  0xb8   : > { %1088 = vst.msk [vmem:[#allocation7 + $0x98] sm:$0xf] %vm1068_vm3, %v16301_v60  ;;  %3078 = vst.msk [vmem:[#allocation7 + $0x8c] sm:$0xf] %vm1068_vm3, %v16357_v23 }
  0xb9   : > { %1087 = vst.msk [vmem:[#allocation7 + $0x90] sm:$0xf] %vm1068_vm3, %v16303_v62 }
  0xba   : > { %1749 = vrot.lane.b32.xlu1 %v16105_v35, %s15697_s0  ;;  %1747 = vrot.lane.b32.xlu0 %v16119_v41, %s15697_s0  ;;  %v14088_v35 = vpack.c.bf16 %v2647_v33, %v2647_v33  ;;  %v2400_v41 = vld [vmem:[#allocation4 + $0xc8] sm:$0xff]  ;;  %v2399_v42 = vld [vmem:[#allocation4 + $0xc0] sm:$0xff]  ;;  %v13872_v33 = vpack.c.bf16 %v919_v31, %v919_v31  ;;  %898 = vst.msk [vmem:[#allocation4 + $0x121] sm:$0xff] %vm875_vm2, %v864_v34 }
  0xbb   : > { %v16259_v43 = vpack.c.bf16 %v2400_v41, %v2400_v41  ;;  %v16261_v44 = vpack.c.bf16 %v2399_v42, %v2399_v42  ;;  %v2913_v45 = vld [vmem:[#allocation4 + $0xc2] sm:$0xff]  ;;  %v2914_v46 = vld [vmem:[#allocation4 + $0xca] sm:$0xff]  ;;  %v2658_v34 = vld [vmem:[#allocation4 + $0xd9] sm:$0xff] }
  0xbc   : > { %v16267_v50 = vpack.c.bf16 %v2913_v45, %v2913_v45  ;;  %v16269_v52 = vpack.c.bf16 %v2914_v46, %v2914_v46  ;;  %1080 = vst.msk [vmem:[#allocation7 + $0x58] sm:$0xf] %vm1068_vm3, %v13872_v33  ;;  %v2653_v45 = vld [vmem:[#allocation4 + $0x99] sm:$0xff]  ;;  %v2652_v46 = vld [vmem:[#allocation4 + $0x91] sm:$0xff] }
  0xbd   : > { %1086 = vst.msk [vmem:[#allocation7 + $0x88] sm:$0xf] %vm1068_vm3, %v16259_v43  ;;  %1085 = vst.msk [vmem:[#allocation7 + $0x80] sm:$0xf] %vm1068_vm3, %v16261_v44 }
  0xbe   : > { %2006 = vrot.lane.b32.xlu1 %v16185_v10, %s15698_s1  ;;  %2004 = vrot.lane.b32.xlu0 %v16187_v11, %s15698_s1  ;;  %3073 = vst.msk [vmem:[#allocation7 + $0x64] sm:$0xf] %vm1068_vm3, %v16267_v50  ;;  %3074 = vst.msk [vmem:[#allocation7 + $0x6c] sm:$0xf] %vm1068_vm3, %v16269_v52 }
  0xc2   : > { %2263 = vrot.lane.b32.xlu1 %v16109_v37, %s15699_s30  ;;  %2261 = vrot.lane.b32.xlu0 %v16107_v36, %s15699_s30 }
  0xc6   : > { %2521 = vrot.lane.b32.xlu1 %v16125_v47, %s15700_s4  ;;  %2519 = vrot.lane.b32.xlu0 %v16134_v51, %s15700_s4 }
  0xca   : > { %2778 = vrot.lane.b32.xlu1 %v14088_v35, %s15701_s26  ;;  %2776 = vrot.lane.b32.xlu0 %v14087_v38, %s15701_s26 }
  0xce   : > { %1239 = vrot.lane.b32.xlu1 %v16185_v10, %s15696_s24  ;;  %1237 = vrot.lane.b32.xlu0 %v16187_v11, %s15696_s24  ;;  %v16335_v10 = vpack.c.bf16 %v2650_v9, %v2650_v9  ;;  %v860_v11 = vld [vmem:[%s16070_s7 + $0x90] sm:$0xff] }
  0xcf   : > { %894 = vst.msk [vmem:[#allocation4 + $0xf1] sm:$0xff] %vm875_vm2, %v860_v11 }
  0xd2   : > { %1496 = vrot.lane.b32.xlu1 %v16109_v37, %s15695_s5  ;;  %1494 = vrot.lane.b32.xlu0 %v16107_v36, %s15695_s5  ;;  %v2649_v36 = vld [vmem:[#allocation4 + $0x69] sm:$0xff]  ;;  %v2648_v37 = vld [vmem:[#allocation4 + $0x61] sm:$0xff] }
  0xd6   : > { %1753 = vrot.lane.b32.xlu1 %v16125_v47, %s15697_s0  ;;  %1751 = vrot.lane.b32.xlu0 %v16134_v51, %s15697_s0  ;;  %v14090_v47 = vpack.c.bf16 %v2649_v36, %v2649_v36  ;;  %v14089_v51 = vpack.c.bf16 %v2648_v37, %v2648_v37  ;;  %v2403_v13 = vld [vmem:[#allocation4 + $0xf0] sm:$0xff] }
  0xd7   : > { %v16347_v16 = vpack.c.bf16 %v2403_v13, %v2403_v13  ;;  %v2917_v19 = vld [vmem:[#allocation4 + $0xf2] sm:$0xff] }
  0xd8   : > { %v16355_v22 = vpack.c.bf16 %v2917_v19, %v2917_v19 }
  0xd9   : > { %1089 = vst.msk [vmem:[#allocation7 + $0xa0] sm:$0xf] %vm1068_vm3, %v16347_v16 }
  0xda   : > { %2010 = vrot.lane.b32.xlu1 %v14088_v35, %s15698_s1  ;;  %2008 = vrot.lane.b32.xlu0 %v14087_v38, %s15698_s1  ;;  %3077 = vst.msk [vmem:[#allocation7 + $0x84] sm:$0xf] %vm1068_vm3, %v16355_v22 }
  0xde   : > { %2267 = vrot.lane.b32.xlu1 %v16129_v49, %s15699_s30  ;;  %2265 = vrot.lane.b32.xlu0 %v16127_v48, %s15699_s30 }
  0xe2   : > { %2525 = vrot.lane.b32.xlu1 %v16142_v55, %s15700_s4  ;;  %2523 = vrot.lane.b32.xlu0 %v16154_v61, %s15700_s4 }
  0xe6   : > { %2782 = vrot.lane.b32.xlu1 %v14090_v47, %s15701_s26  ;;  %2780 = vrot.lane.b32.xlu0 %v14089_v51, %s15701_s26 }
  0xea   : > { %1243 = vrot.lane.b32.xlu1 %v14088_v35, %s15696_s24  ;;  %1241 = vrot.lane.b32.xlu0 %v14087_v38, %s15696_s24  ;;  %v2396_v35 = vld [vmem:[#allocation4 + $0x98] sm:$0xff]  ;;  %v2395_v38 = vld [vmem:[#allocation4 + $0x90] sm:$0xff] }
  0xeb   : > { %v14062_v41 = vpack.c.bf16 %v2396_v35, %v2396_v35  ;;  %v14061_v42 = vpack.c.bf16 %v2395_v38, %v2395_v38  ;;  %v865_v35 = vld [vmem:[%s16070_s7 + $0xb8] sm:$0xff] }
  0xec   : > { %899 = vst.msk [vmem:[#allocation4 + $0x129] sm:$0xff] %vm875_vm2, %v865_v35 }
  0xee   : > { %1500 = vrot.lane.b32.xlu1 %v16129_v49, %s15695_s5  ;;  %1498 = vrot.lane.b32.xlu0 %v16127_v48, %s15695_s5  ;;  %v2394_v48 = vld [vmem:[#allocation4 + $0x80] sm:$0xff]  ;;  %v2393_v49 = vld [vmem:[#allocation4 + $0x78] sm:$0xff] }
  0xef   : > { %v14060_v8 = vpack.c.bf16 %v2394_v48, %v2394_v48 }
  0xf2   : > { %1757 = vrot.lane.b32.xlu1 %v16142_v55, %s15697_s0  ;;  %1755 = vrot.lane.b32.xlu0 %v16154_v61, %s15697_s0  ;;  %v14059_v55 = vpack.c.bf16 %v2393_v49, %v2393_v49  ;;  %v16333_v61 = vpack.c.bf16 %v2651_v7, %v2651_v7  ;;  %v2919_v7 = vld [vmem:[#allocation4 + $0x10a] sm:$0xff] }
  0xf6   : > { %2014 = vrot.lane.b32.xlu1 %v14090_v47, %s15698_s1  ;;  %2012 = vrot.lane.b32.xlu0 %v14089_v51, %s15698_s1 }
  0xf7   : > { %v1487_v14 = vpop.permute.xlu1 %1486 }
  0xf8   : > { %v1230_v15 = vpop.permute.xlu0 %1229 }
  0xf9   : > { %1326 = vst.msk [vmem:[#allocation7] sm:$0xf] %vm1325_vm4, %v1230_v15 }
  0xfa   : > { %2271 = vrot.lane.b32.xlu1 %v16146_v57, %s15699_s30  ;;  %2269 = vrot.lane.b32.xlu0 %v16144_v56, %s15699_s30  ;;  %1583 = vst.msk [vmem:[#allocation7] sm:$0xf] %vm1582_vm5, %v1487_v14 }
  0xfe   : > { %2529 = vrot.lane.b32.xlu1 %v14060_v8, %s15700_s4  ;;  %2527 = vrot.lane.b32.xlu0 %v14059_v55, %s15700_s4 }
 0x102   : > { %2786 = vrot.lane.b32.xlu1 %v16333_v61, %s15701_s26  ;;  %2784 = vrot.lane.b32.xlu0 %v16335_v10, %s15701_s26 }
 0x106   : > { %1247 = vrot.lane.b32.xlu1 %v14090_v47, %s15696_s24  ;;  %1245 = vrot.lane.b32.xlu0 %v14089_v51, %s15696_s24  ;;  %v16387_v47 = vpack.c.bf16 %v2653_v45, %v2653_v45  ;;  %v16389_v51 = vpack.c.bf16 %v2652_v46, %v2652_v46  ;;  %v2921_v46 = vld [vmem:[#allocation4 + $0x122] sm:$0xff] }
 0x107   : > { %v1489_v27 = vpop.permute.xlu1 %1488 }
 0x108   : > { %v1232_v28 = vpop.permute.xlu0 %1231 }
 0x109   : > { %1327 = vst.msk [vmem:[#allocation7 + $0x8] sm:$0xf] %vm1325_vm4, %v1232_v28  ;;  %v2655_v28 = vld [vmem:[#allocation4 + $0xb1] sm:$0xff] }
 0x10a   : > { %1504 = vrot.lane.b32.xlu1 %v16146_v57, %s15695_s5  ;;  %1502 = vrot.lane.b32.xlu0 %v16144_v56, %s15695_s5  ;;  %1584 = vst.msk [vmem:[#allocation7 + $0x8] sm:$0xf] %vm1582_vm5, %v1489_v27  ;;  %v16450_v32 = vpack.c.bf16 %v2655_v28, %v2655_v28 }
 0x10e   : > { %1761 = vrot.lane.b32.xlu1 %v14060_v8, %s15697_s0  ;;  %1759 = vrot.lane.b32.xlu0 %v14059_v55, %s15697_s0  ;;  %v2920_v8 = vld [vmem:[#allocation4 + $0x112] sm:$0xff]  ;;  %v16413_v55 = vpack.c.bf16 %v2919_v7, %v2919_v7 }
 0x10f   : > { %v16415_v9 = vpack.c.bf16 %v2920_v8, %v2920_v8 }
 0x110   : > { %v1746_v56 = vpop.permute.xlu1 %1745  ;;  %v1744_v57 = vpop.permute.xlu0 %1743  ;;  %3079 = vst.msk [vmem:[#allocation7 + $0x94] sm:$0xf] %vm1068_vm3, %v16413_v55 }
 0x111   : > { %1841 = vst.msk [vmem:[#allocation7 + $0x8] sm:$0xf] %vm1839_vm6, %v1746_v56  ;;  %1840 = vst.msk [vmem:[#allocation7] sm:$0xf] %vm1839_vm6, %v1744_v57  ;;  %v2654_v56 = vld [vmem:[#allocation4 + $0xa9] sm:$0xff] }
 0x112   : > { %2018 = vrot.lane.b32.xlu1 %v16333_v61, %s15698_s1  ;;  %2016 = vrot.lane.b32.xlu0 %v16335_v10, %s15698_s1  ;;  %3080 = vst.msk [vmem:[#allocation7 + $0x9c] sm:$0xf] %vm1068_vm3, %v16415_v9  ;;  %v16452_v33 = vpack.c.bf16 %v2654_v56, %v2654_v56 }
 0x114   : > { %v2003_v39 = vpop.permute.xlu1 %2002  ;;  %v2001_v40 = vpop.permute.xlu0 %2000 }
 0x115   : > { %2098 = vst.msk [vmem:[#allocation7 + $0x8] sm:$0xf] %vm2096_vm7, %v2003_v39  ;;  %2097 = vst.msk [vmem:[#allocation7] sm:$0xf] %vm2096_vm7, %v2001_v40 }
 0x116   : > { %2275 = vrot.lane.b32.xlu1 %v16164_v3, %s15699_s30  ;;  %2273 = vrot.lane.b32.xlu0 %v16162_v2, %s15699_s30 }
 0x118   : > { %v2260_v36 = vpop.permute.xlu1 %2259  ;;  %v2258_v37 = vpop.permute.xlu0 %2257 }
 0x119   : > { %2355 = vst.msk [vmem:[#allocation7 + $0x8] sm:$0xf] %vm2353_vm8, %v2260_v36  ;;  %2354 = vst.msk [vmem:[#allocation7] sm:$0xf] %vm2353_vm8, %v2258_v37  ;;  %v2922_v36 = vld [vmem:[#allocation4 + $0x12a] sm:$0xff]  ;;  %v16476_v37 = vpack.c.bf16 %v2921_v46, %v2921_v46 }
 0x11a   : > { %2533 = vrot.lane.b32.xlu1 %v14062_v41, %s15700_s4  ;;  %2531 = vrot.lane.b32.xlu0 %v14061_v42, %s15700_s4  ;;  %v869_v46 = vld [vmem:[%s16070_s7 + $0xd8] sm:$0xff] }
 0x11b   : > { %3081 = vst.msk [vmem:[#allocation7 + $0xa4] sm:$0xf] %vm1068_vm3, %v16476_v37 }
 0x11c   : > { %v2518_v58 = vpop.permute.xlu1 %2517  ;;  %v2516_v59 = vpop.permute.xlu0 %2515  ;;  %903 = vst.msk [vmem:[#allocation4 + $0x159] sm:$0xff] %vm875_vm2, %v869_v46 }
 0x11d   : > { %2613 = vst.msk [vmem:[#allocation7 + $0x8] sm:$0xf] %vm2611_vm9, %v2518_v58  ;;  %2612 = vst.msk [vmem:[#allocation7] sm:$0xf] %vm2611_vm9, %v2516_v59 }
 0x11e   : > { %2790 = vrot.lane.b32.xlu1 %v16387_v47, %s15701_s26  ;;  %2788 = vrot.lane.b32.xlu0 %v16389_v51, %s15701_s26 }
 0x120   : > { %v2775_v63 = vpop.permute.xlu1 %2774  ;;  %v2773_v4 = vpop.permute.xlu0 %2772 }
 0x121   : > { %2870 = vst.msk [vmem:[#allocation7 + $0x8] sm:$0xf] %vm2868_vm10, %v2775_v63  ;;  %2869 = vst.msk [vmem:[#allocation7] sm:$0xf] %vm2868_vm10, %v2773_v4 }
 0x122   : > { %1251 = vrot.lane.b32.xlu1 %v16333_v61, %s15696_s24  ;;  %1249 = vrot.lane.b32.xlu0 %v16335_v10, %s15696_s24 }
 0x124   : > { %v1236_v48 = vpop.permute.xlu1 %1235  ;;  %v1234_v49 = vpop.permute.xlu0 %1233 }
 0x125   : > { %1329 = vst.msk [vmem:[#allocation7 + $0x18] sm:$0xf] %vm1325_vm4, %v1236_v48  ;;  %1328 = vst.msk [vmem:[#allocation7 + $0x10] sm:$0xf] %vm1325_vm4, %v1234_v49  ;;  %v2656_v48 = vld [vmem:[#allocation4 + $0xc1] sm:$0xff] }
 0x126   : > { %1508 = vrot.lane.b32.xlu1 %v16164_v3, %s15695_s5  ;;  %1506 = vrot.lane.b32.xlu0 %v16162_v2, %s15695_s5 }
 0x128   : > { %v3094_v61 = vld [vmem:[#allocation7 + $0x8] sm:$0xff]  ;;  %v3093_v10 = vld [vmem:[#allocation7] sm:$0xff]  ;;  %v1493_v11 = vpop.permute.xlu1 %1492  ;;  %v1491_v12 = vpop.permute.xlu0 %1490 }
 0x129   : > { %3782 = vst.msk [vmem:[#allocation7 + $0x8] sm:$0xf] %vm1068_vm3, %v16098_v24  ;;  %3781 = vst.msk [vmem:[#allocation7] sm:$0xf] %vm1068_vm3, %v16094_v21  ;;  %v12795_v2 = vcombine.high %v3093_v10, %v3094_v61  ;;  %v12794_v3 = vcombine.low %v3093_v10, %v3094_v61  ;;  %v921_v21 = vld [vmem:[#allocation4 + $0x98] sm:$0xff]  ;;  %v920_v24 = vld [vmem:[#allocation4 + $0x90] sm:$0xff]  ;;  %v16511_v61 = vpack.c.bf16 %v2656_v48, %v2656_v48 }
 0x12a   : > { %1586 = vst.msk [vmem:[#allocation7 + $0x18] sm:$0xf] %vm1582_vm5, %v1493_v11  ;;  %1585 = vst.msk [vmem:[#allocation7 + $0x10] sm:$0xf] %vm1582_vm5, %v1491_v12  ;;  %1765 = vrot.lane.b32.xlu1 %v14062_v41, %s15697_s0  ;;  %1763 = vrot.lane.b32.xlu0 %v14061_v42, %s15697_s0  ;;  %v13874_v15 = vpack.c.bf16 %v921_v21, %v921_v21  ;;  %v13873_v19 = vpack.c.bf16 %v920_v24, %v920_v24  ;;  %v866_v10 = vld [vmem:[%s16070_s7 + $0xc0] sm:$0xff]  ;;  %v867_v11 = vld [vmem:[%s16070_s7 + $0xc8] sm:$0xff] }
 0x12b   : > { %12835 = vmatprep.mubr.msk.bf16.mxu0 %vm786_vm0, %v12795_v2  ;;  %900 = vst.msk [vmem:[#allocation4 + $0x139] sm:$0xff] %vm875_vm2, %v866_v10  ;;  %901 = vst.msk [vmem:[#allocation4 + $0x141] sm:$0xff] %vm875_vm2, %v867_v11  ;;  %v2660_v10 = vld [vmem:[#allocation4 + $0xf1] sm:$0xff] }
 0x12c   : > { %v1750_v13 = vpop.permute.xlu1 %1749  ;;  %v1748_v14 = vpop.permute.xlu0 %1747  ;;  %3429 = vmatmul.mubr.bf16.vlgmr.msra.gmra.mxu0 %v12794_v3  ;;  %1082 = vst.msk [vmem:[#allocation7 + $0x68] sm:$0xf] %vm1068_vm3, %v13874_v15  ;;  %1081 = vst.msk [vmem:[#allocation7 + $0x60] sm:$0xf] %vm1068_vm3, %v13873_v19 }
 0x12d   : > { %1843 = vst.msk [vmem:[#allocation7 + $0x18] sm:$0xf] %vm1839_vm6, %v1750_v13  ;;  %1842 = vst.msk [vmem:[#allocation7 + $0x10] sm:$0xf] %vm1839_vm6, %v1748_v14 }
 0x12e   : > { %2022 = vrot.lane.b32.xlu1 %v16387_v47, %s15698_s1  ;;  %2020 = vrot.lane.b32.xlu0 %v16389_v51, %s15698_s1 }
 0x130   : > { %v2007_v20 = vpop.permute.xlu1 %2006  ;;  %v2005_v27 = vpop.permute.xlu0 %2004 }
 0x131   : > { %2100 = vst.msk [vmem:[#allocation7 + $0x18] sm:$0xf] %vm2096_vm7, %v2007_v20  ;;  %2099 = vst.msk [vmem:[#allocation7 + $0x10] sm:$0xf] %vm2096_vm7, %v2005_v27 }
 0x132   : > { %2279 = vrot.lane.b32.xlu1 %v16200_v18, %s15699_s30  ;;  %2277 = vrot.lane.b32.xlu0 %v16198_v17, %s15699_s30  ;;  %v2923_v24 = vld [vmem:[#allocation4 + $0x13a] sm:$0xff]  ;;  %v2924_v15 = vld [vmem:[#allocation4 + $0x142] sm:$0xff] }
 0x133   : > { %v16535_v19 = vpack.c.bf16 %v2923_v24, %v2923_v24  ;;  %v16537_v20 = vpack.c.bf16 %v2924_v15, %v2924_v15  ;;  %v871_v24 = vld [vmem:[%s16070_s7 + $0xe8] sm:$0xff] }
 0x134   : > { %v2264_v57 = vpop.permute.xlu1 %2263  ;;  %v2262_v31 = vpop.permute.xlu0 %2261  ;;  %905 = vst.msk [vmem:[#allocation4 + $0x171] sm:$0xff] %vm875_vm2, %v871_v24  ;;  %v930_v24 = vld [vmem:[#allocation4 + $0x108] sm:$0xff] }
 0x135   : > { %2357 = vst.msk [vmem:[#allocation7 + $0x18] sm:$0xf] %vm2353_vm8, %v2264_v57  ;;  %2356 = vst.msk [vmem:[#allocation7 + $0x10] sm:$0xf] %vm2353_vm8, %v2262_v31 }
 0x136   : > { %2537 = vrot.lane.b32.xlu1 %v16212_v25, %s15700_s4  ;;  %2535 = vrot.lane.b32.xlu0 %v16214_v26, %s15700_s4  ;;  %3083 = vst.msk [vmem:[#allocation7 + $0xb4] sm:$0xf] %vm1068_vm3, %v16535_v19  ;;  %3084 = vst.msk [vmem:[#allocation7 + $0xbc] sm:$0xf] %vm1068_vm3, %v16537_v20 }
 0x138   : > { %v2522_v38 = vpop.permute.xlu1 %2521  ;;  %v2520_v39 = vpop.permute.xlu0 %2519 }
 0x139   : > { %2615 = vst.msk [vmem:[#allocation7 + $0x18] sm:$0xf] %vm2611_vm9, %v2522_v38  ;;  %2614 = vst.msk [vmem:[#allocation7 + $0x10] sm:$0xf] %vm2611_vm9, %v2520_v39 }
 0x13a   : > { %2794 = vrot.lane.b32.xlu1 %v16450_v32, %s15701_s26  ;;  %2792 = vrot.lane.b32.xlu0 %v16452_v33, %s15701_s26 }
 0x13c   : > { %v2779_v40 = vpop.permute.xlu1 %2778  ;;  %v2777_v41 = vpop.permute.xlu0 %2776 }
 0x13d   : > { %2872 = vst.msk [vmem:[#allocation7 + $0x18] sm:$0xf] %vm2868_vm10, %v2779_v40  ;;  %2871 = vst.msk [vmem:[#allocation7 + $0x10] sm:$0xf] %vm2868_vm10, %v2777_v41  ;;  %v16570_v40 = vpack.c.bf16 %v2658_v34, %v2658_v34 }
 0x13e   : > { %1255 = vrot.lane.b32.xlu1 %v16387_v47, %s15696_s24  ;;  %1253 = vrot.lane.b32.xlu0 %v16389_v51, %s15696_s24  ;;  %v16478_v47 = vpack.c.bf16 %v2922_v36, %v2922_v36 }
 0x140   : > { %v1240_v42 = vpop.permute.xlu1 %1239  ;;  %v1238_v45 = vpop.permute.xlu0 %1237  ;;  %3082 = vst.msk [vmem:[#allocation7 + $0xac] sm:$0xf] %vm1068_vm3, %v16478_v47 }
 0x141   : > { %1331 = vst.msk [vmem:[#allocation7 + $0x28] sm:$0xf] %vm1325_vm4, %v1240_v42  ;;  %1330 = vst.msk [vmem:[#allocation7 + $0x20] sm:$0xf] %vm1325_vm4, %v1238_v45  ;;  %v868_v45 = vld [vmem:[%s16070_s7 + $0xd0] sm:$0xff] }
 0x142   : > { %1512 = vrot.lane.b32.xlu1 %v16200_v18, %s15695_s5  ;;  %1510 = vrot.lane.b32.xlu0 %v16198_v17, %s15695_s5  ;;  %902 = vst.msk [vmem:[#allocation4 + $0x151] sm:$0xff] %vm875_vm2, %v868_v45 }
 0x144   : > { %v3096_v53 = vld [vmem:[#allocation7 + $0x18] sm:$0xff]  ;;  %v3095_v51 = vld [vmem:[#allocation7 + $0x10] sm:$0xff]  ;;  %v1497_v54 = vpop.permute.xlu1 %1496  ;;  %v1495_v58 = vpop.permute.xlu0 %1494 }
 0x145   : > { %1588 = vst.msk [vmem:[#allocation7 + $0x28] sm:$0xf] %vm1582_vm5, %v1497_v54  ;;  %1587 = vst.msk [vmem:[#allocation7 + $0x20] sm:$0xf] %vm1582_vm5, %v1495_v58  ;;  %v12797_v18 = vcombine.high %v3095_v51, %v3096_v53  ;;  %v12796_v17 = vcombine.low %v3095_v51, %v3096_v53 }
 0x146   : > { %1769 = vrot.lane.b32.xlu1 %v16212_v25, %s15697_s0  ;;  %1767 = vrot.lane.b32.xlu0 %v16214_v26, %s15697_s0  ;;  %v2657_v26 = vld [vmem:[#allocation4 + $0xc9] sm:$0xff] }
 0x147   : > { %12836 = vmatprep.mubr.msk.bf16.mxu0 %vm786_vm0, %v12797_v18  ;;  %v16509_v8 = vpack.c.bf16 %v2657_v26, %v2657_v26  ;;  %v2926_v18 = vld [vmem:[#allocation4 + $0x15a] sm:$0xff] }
 0x148   : > { %v1754_v59 = vpop.permute.xlu1 %1753  ;;  %v1752_v63 = vpop.permute.xlu0 %1751  ;;  %3437 = vmatmul.mubr.bf16.gmra.mxu0 %v12796_v17 }
 0x149   : > { %1845 = vst.msk [vmem:[#allocation7 + $0x28] sm:$0xf] %vm1839_vm6, %v1754_v59  ;;  %1844 = vst.msk [vmem:[#allocation7 + $0x20] sm:$0xf] %vm1839_vm6, %v1752_v63  ;;  %v2925_v58 = vld [vmem:[#allocation4 + $0x152] sm:$0xff]  ;;  %v16596_v59 = vpack.c.bf16 %v2926_v18, %v2926_v18 }
 0x14a   : > { %2026 = vrot.lane.b32.xlu1 %v16450_v32, %s15698_s1  ;;  %2024 = vrot.lane.b32.xlu0 %v16452_v33, %s15698_s1  ;;  %v16594_v17 = vpack.c.bf16 %v2925_v58, %v2925_v58 }
 0x14b   : > { %3086 = vst.msk [vmem:[#allocation7 + $0xcc] sm:$0xf] %vm1068_vm3, %v16596_v59 }
 0x14c   : > { %v2011_v4 = vpop.permute.xlu1 %2010  ;;  %v2009_v25 = vpop.permute.xlu0 %2008  ;;  %3085 = vst.msk [vmem:[#allocation7 + $0xc4] sm:$0xf] %vm1068_vm3, %v16594_v17 }
 0x14d   : > { %2102 = vst.msk [vmem:[#allocation7 + $0x28] sm:$0xf] %vm2096_vm7, %v2011_v4  ;;  %2101 = vst.msk [vmem:[#allocation7 + $0x20] sm:$0xf] %vm2096_vm7, %v2009_v25 }
 0x14e   : > { %2283 = vrot.lane.b32.xlu1 %v16220_v30, %s15699_s30  ;;  %2281 = vrot.lane.b32.xlu0 %v16218_v29, %s15699_s30 }
 0x150   : > { %v2268_v49 = vpop.permute.xlu1 %2267  ;;  %v2266_v7 = vpop.permute.xlu0 %2265 }
 0x151   : > { %2359 = vst.msk [vmem:[#allocation7 + $0x28] sm:$0xf] %vm2353_vm8, %v2268_v49  ;;  %2358 = vst.msk [vmem:[#allocation7 + $0x20] sm:$0xf] %vm2353_vm8, %v2266_v7  ;;  %v2404_v7 = vld [vmem:[#allocation4 + $0xf8] sm:$0xff] }
 0x152   : > { %2541 = vrot.lane.b32.xlu1 %v16259_v43, %s15700_s4  ;;  %2539 = vrot.lane.b32.xlu0 %v16261_v44, %s15700_s4 }
 0x154   : > { %v2526_v12 = vpop.permute.xlu1 %2525  ;;  %v2524_v2 = vpop.permute.xlu0 %2523 }
 0x155   : > { %2617 = vst.msk [vmem:[#allocation7 + $0x28] sm:$0xf] %vm2611_vm9, %v2526_v12  ;;  %2616 = vst.msk [vmem:[#allocation7 + $0x20] sm:$0xf] %vm2611_vm9, %v2524_v2 }
 0x156   : > { %2798 = vrot.lane.b32.xlu1 %v16509_v8, %s15701_s26  ;;  %2796 = vrot.lane.b32.xlu0 %v16511_v61, %s15701_s26 }
 0x158   : > { %v2783_v3 = vpop.permute.xlu1 %2782  ;;  %v2781_v13 = vpop.permute.xlu0 %2780 }
 0x159   : > { %2874 = vst.msk [vmem:[#allocation7 + $0x28] sm:$0xf] %vm2868_vm10, %v2783_v3  ;;  %2873 = vst.msk [vmem:[#allocation7 + $0x20] sm:$0xf] %vm2868_vm10, %v2781_v13  ;;  %v16628_v3 = vpack.c.bf16 %v2660_v10, %v2660_v10 }
 0x15a   : > { %1259 = vrot.lane.b32.xlu1 %v16450_v32, %s15696_s24  ;;  %1257 = vrot.lane.b32.xlu0 %v16452_v33, %s15696_s24 }
 0x15c   : > { %v1244_v14 = vpop.permute.xlu1 %1243  ;;  %v1242_v21 = vpop.permute.xlu0 %1241 }
 0x15d   : > { %1333 = vst.msk [vmem:[#allocation7 + $0x38] sm:$0xf] %vm1325_vm4, %v1244_v14  ;;  %1332 = vst.msk [vmem:[#allocation7 + $0x30] sm:$0xf] %vm1325_vm4, %v1242_v21  ;;  %v870_v21 = vld [vmem:[%s16070_s7 + $0xe0] sm:$0xff] }
 0x15e   : > { %1516 = vrot.lane.b32.xlu1 %v16220_v30, %s15695_s5  ;;  %1514 = vrot.lane.b32.xlu0 %v16218_v29, %s15695_s5  ;;  %904 = vst.msk [vmem:[#allocation4 + $0x169] sm:$0xff] %vm875_vm2, %v870_v21  ;;  %v931_v21 = vld [vmem:[#allocation4 + $0x110] sm:$0xff] }
 0x160   : > { %v3098_v27 = vld [vmem:[#allocation7 + $0x28] sm:$0xff]  ;;  %v3097_v28 = vld [vmem:[#allocation7 + $0x20] sm:$0xff]  ;;  %v1501_v56 = vpop.permute.xlu1 %1500  ;;  %v1499_v57 = vpop.permute.xlu0 %1498 }
 0x161   : > { %1590 = vst.msk [vmem:[#allocation7 + $0x38] sm:$0xf] %vm1582_vm5, %v1501_v56  ;;  %1589 = vst.msk [vmem:[#allocation7 + $0x30] sm:$0xf] %vm1582_vm5, %v1499_v57  ;;  %v12799_v30 = vcombine.high %v3097_v28, %v3098_v27  ;;  %v12798_v29 = vcombine.low %v3097_v28, %v3098_v27 }
 0x162   : > { %1773 = vrot.lane.b32.xlu1 %v16259_v43, %s15697_s0  ;;  %1771 = vrot.lane.b32.xlu0 %v16261_v44, %s15697_s0  ;;  %v2659_v44 = vld [vmem:[#allocation4 + $0xe1] sm:$0xff] }
 0x163   : > { %12837 = vmatprep.mubr.msk.bf16.mxu0 %vm786_vm0, %v12799_v30  ;;  %v16568_v39 = vpack.c.bf16 %v2659_v44, %v2659_v44 }
 0x164   : > { %v1758_v31 = vpop.permute.xlu1 %1757  ;;  %v1756_v32 = vpop.permute.xlu0 %1755  ;;  %3445 = vmatmul.mubr.bf16.gmra.mxu0 %v12798_v29  ;;  %v2928_v29 = vld [vmem:[#allocation4 + $0x172] sm:$0xff] }
 0x165   : > { %1847 = vst.msk [vmem:[#allocation7 + $0x38] sm:$0xf] %vm1839_vm6, %v1758_v31  ;;  %1846 = vst.msk [vmem:[#allocation7 + $0x30] sm:$0xf] %vm1839_vm6, %v1756_v32  ;;  %v2413_v57 = vld [vmem:[#allocation4 + $0x168] sm:$0xff] }
 0x166   : > { %2030 = vrot.lane.b32.xlu1 %v16509_v8, %s15698_s1  ;;  %2028 = vrot.lane.b32.xlu0 %v16511_v61, %s15698_s1  ;;  %v2927_v30 = vld [vmem:[#allocation4 + $0x16a] sm:$0xff]  ;;  %v16648_v31 = vpack.c.bf16 %v2413_v57, %v2413_v57 }
 0x167   : > { %v16654_v32 = vpack.c.bf16 %v2927_v30, %v2927_v30 }
 0x168   : > { %v2015_v33 = vpop.permute.xlu1 %2014  ;;  %v2013_v43 = vpop.permute.xlu0 %2012  ;;  %1099 = vst.msk [vmem:[#allocation7 + $0xf0] sm:$0xf] %vm1068_vm3, %v16648_v31 }
 0x169   : > { %2104 = vst.msk [vmem:[#allocation7 + $0x38] sm:$0xf] %vm2096_vm7, %v2015_v33  ;;  %2103 = vst.msk [vmem:[#allocation7 + $0x30] sm:$0xf] %vm2096_vm7, %v2013_v43  ;;  %v16656_v33 = vpack.c.bf16 %v2928_v29, %v2928_v29 }
 0x16a   : > { %2287 = vrot.lane.b32.xlu1 %v16269_v52, %s15699_s30  ;;  %2285 = vrot.lane.b32.xlu0 %v16267_v50, %s15699_s30  ;;  %3087 = vst.msk [vmem:[#allocation7 + $0xd4] sm:$0xf] %vm1068_vm3, %v16654_v32 }
 0x16b   : > { %3088 = vst.msk [vmem:[#allocation7 + $0xdc] sm:$0xf] %vm1068_vm3, %v16656_v33 }
 0x16c   : > { %v2272_v35 = vpop.permute.xlu1 %2271  ;;  %v2270_v38 = vpop.permute.xlu0 %2269 }
 0x16d   : > { %2361 = vst.msk [vmem:[#allocation7 + $0x38] sm:$0xf] %vm2353_vm8, %v2272_v35  ;;  %2360 = vst.msk [vmem:[#allocation7 + $0x30] sm:$0xf] %vm2353_vm8, %v2270_v38 }
 0x16e   : > { %2545 = vrot.lane.b32.xlu1 %v16301_v60, %s15700_s4  ;;  %2543 = vrot.lane.b32.xlu0 %v16303_v62, %s15700_s4 }
 0x170   : > { %v2530_v41 = vpop.permute.xlu1 %2529  ;;  %v2528_v42 = vpop.permute.xlu0 %2527 }
 0x171   : > { %2619 = vst.msk [vmem:[#allocation7 + $0x38] sm:$0xf] %vm2611_vm9, %v2530_v41  ;;  %2618 = vst.msk [vmem:[#allocation7 + $0x30] sm:$0xf] %vm2611_vm9, %v2528_v42  ;;  %v2406_v41 = vld [vmem:[#allocation4 + $0x110] sm:$0xff]  ;;  %v2405_v42 = vld [vmem:[#allocation4 + $0x108] sm:$0xff] }
 0x172   : > { %2802 = vrot.lane.b32.xlu1 %v16568_v39, %s15701_s26  ;;  %2800 = vrot.lane.b32.xlu0 %v16570_v40, %s15701_s26 }
 0x174   : > { %v2787_v36 = vpop.permute.xlu1 %2786  ;;  %v2785_v53 = vpop.permute.xlu0 %2784 }
 0x175   : > { %2876 = vst.msk [vmem:[#allocation7 + $0x38] sm:$0xf] %vm2868_vm10, %v2787_v36  ;;  %2875 = vst.msk [vmem:[#allocation7 + $0x30] sm:$0xf] %vm2868_vm10, %v2785_v53  ;;  %v14072_v36 = vpack.c.bf16 %v2406_v41, %v2406_v41  ;;  %v14071_v53 = vpack.c.bf16 %v2405_v42, %v2405_v42 }
 0x176   : > { %1263 = vrot.lane.b32.xlu1 %v16509_v8, %s15696_s24  ;;  %1261 = vrot.lane.b32.xlu0 %v16511_v61, %s15696_s24  ;;  %v2661_v61 = vld [vmem:[#allocation4 + $0xf9] sm:$0xff] }
 0x177   : > { %v16626_v2 = vpack.c.bf16 %v2661_v61, %v2661_v61 }
 0x178   : > { %v1248_v51 = vpop.permute.xlu1 %1247  ;;  %v1246_v54 = vpop.permute.xlu0 %1245 }
 0x179   : > { %1335 = vst.msk [vmem:[#allocation7 + $0x48] sm:$0xf] %vm1325_vm4, %v1248_v51  ;;  %1334 = vst.msk [vmem:[#allocation7 + $0x40] sm:$0xf] %vm1325_vm4, %v1246_v54  ;;  %v2663_v51 = vld [vmem:[#allocation4 + $0x111] sm:$0xff]  ;;  %v2662_v54 = vld [vmem:[#allocation4 + $0x109] sm:$0xff] }
 0x17a   : > { %1520 = vrot.lane.b32.xlu1 %v16269_v52, %s15695_s5  ;;  %1518 = vrot.lane.b32.xlu0 %v16267_v50, %s15695_s5 }
 0x17c   : > { %v3100_v63 = vld [vmem:[#allocation7 + $0x38] sm:$0xff]  ;;  %v3099_v4 = vld [vmem:[#allocation7 + $0x30] sm:$0xff]  ;;  %v1505_v25 = vpop.permute.xlu1 %1504  ;;  %v1503_v26 = vpop.permute.xlu0 %1502 }
 0x17d   : > { %1592 = vst.msk [vmem:[#allocation7 + $0x48] sm:$0xf] %vm1582_vm5, %v1505_v25  ;;  %1591 = vst.msk [vmem:[#allocation7 + $0x40] sm:$0xf] %vm1582_vm5, %v1503_v26  ;;  %v12801_v52 = vcombine.high %v3099_v4, %v3100_v63  ;;  %v12800_v50 = vcombine.low %v3099_v4, %v3100_v63  ;;  %v16687_v63 = vpack.c.bf16 %v2663_v51, %v2663_v51 }
 0x17e   : > { %1777 = vrot.lane.b32.xlu1 %v16301_v60, %s15697_s0  ;;  %1775 = vrot.lane.b32.xlu0 %v16303_v62, %s15697_s0  ;;  %v14070_v62 = vpack.c.bf16 %v2404_v7, %v2404_v7  ;;  %v16689_v4 = vpack.c.bf16 %v2662_v54, %v2662_v54 }
 0x17f   : > { %12838 = vmatprep.mubr.msk.bf16.mxu0 %vm786_vm0, %v12801_v52  ;;  %v872_v52 = vld [vmem:[%s16070_s7 + $0xf0] sm:$0xff] }
 0x180   : > { %v1762_v48 = vpop.permute.xlu1 %1761  ;;  %v1760_v49 = vpop.permute.xlu0 %1759  ;;  %3453 = vmatmul.mubr.bf16.gmra.mxu0 %v12800_v50  ;;  %v873_v50 = vld [vmem:[%s16070_s7 + $0xf8] sm:$0xff]  ;;  %906 = vst.msk [vmem:[#allocation4 + $0x181] sm:$0xff] %vm875_vm2, %v872_v52  ;;  %v932_v52 = vld [vmem:[#allocation4 + $0x120] sm:$0xff] }
 0x181   : > { %1849 = vst.msk [vmem:[#allocation7 + $0x48] sm:$0xf] %vm1839_vm6, %v1762_v48  ;;  %1848 = vst.msk [vmem:[#allocation7 + $0x40] sm:$0xf] %vm1839_vm6, %v1760_v49 }
 0x182   : > { %2034 = vrot.lane.b32.xlu1 %v16568_v39, %s15698_s1  ;;  %2032 = vrot.lane.b32.xlu0 %v16570_v40, %s15698_s1  ;;  %907 = vst.msk [vmem:[#allocation4 + $0x189] sm:$0xff] %vm875_vm2, %v873_v50  ;;  %v2410_v50 = vld [vmem:[#allocation4 + $0x140] sm:$0xff]  ;;  %vm10226_vm2 = vcmask 1044224  }
 0x184   : > { %v2019_v60 = vpop.permute.xlu1 %2018  ;;  %v2017_v8 = vpop.permute.xlu0 %2016 }
 0x185   : > { %2106 = vst.msk [vmem:[#allocation7 + $0x48] sm:$0xf] %vm2096_vm7, %v2019_v60  ;;  %2105 = vst.msk [vmem:[#allocation7 + $0x40] sm:$0xf] %vm2096_vm7, %v2017_v8 }
 0x186   : > { %2291 = vrot.lane.b32.xlu1 %v16311_v6, %s15699_s30  ;;  %2289 = vrot.lane.b32.xlu0 %v16309_v5, %s15699_s30 }
 0x188   : > { %v2276_v11 = vpop.permute.xlu1 %2275  ;;  %v2274_v12 = vpop.permute.xlu0 %2273 }
 0x189   : > { %2363 = vst.msk [vmem:[#allocation7 + $0x48] sm:$0xf] %vm2353_vm8, %v2276_v11  ;;  %2362 = vst.msk [vmem:[#allocation7 + $0x40] sm:$0xf] %vm2353_vm8, %v2274_v12  ;;  %v2929_v8 = vld [vmem:[#allocation4 + $0x182] sm:$0xff] }
 0x18a   : > { %2549 = vrot.lane.b32.xlu1 %v14070_v62, %s15700_s4  ;;  %2547 = vrot.lane.b32.xlu0 %v16347_v16, %s15700_s4  ;;  %v16713_v61 = vpack.c.bf16 %v2929_v8, %v2929_v8 }
 0x18c   : > { %v2534_v13 = vpop.permute.xlu1 %2533  ;;  %v2532_v14 = vpop.permute.xlu0 %2531  ;;  %3089 = vst.msk [vmem:[#allocation7 + $0xe4] sm:$0xf] %vm1068_vm3, %v16713_v61 }
 0x18d   : > { %2621 = vst.msk [vmem:[#allocation7 + $0x48] sm:$0xf] %vm2611_vm9, %v2534_v13  ;;  %2620 = vst.msk [vmem:[#allocation7 + $0x40] sm:$0xf] %vm2611_vm9, %v2532_v14 }
 0x18e   : > { %2806 = vrot.lane.b32.xlu1 %v16626_v2, %s15701_s26  ;;  %2804 = vrot.lane.b32.xlu0 %v16628_v3, %s15701_s26 }
 0x190   : > { %v2791_v15 = vpop.permute.xlu1 %2790  ;;  %v2789_v27 = vpop.permute.xlu0 %2788 }
 0x191   : > { %2878 = vst.msk [vmem:[#allocation7 + $0x48] sm:$0xf] %vm2868_vm10, %v2791_v15  ;;  %2877 = vst.msk [vmem:[#allocation7 + $0x40] sm:$0xf] %vm2868_vm10, %v2789_v27  ;;  %v2408_v15 = vld [vmem:[#allocation4 + $0x128] sm:$0xff]  ;;  %v2407_v27 = vld [vmem:[#allocation4 + $0x120] sm:$0xff] }
 0x192   : > { %1267 = vrot.lane.b32.xlu1 %v16568_v39, %s15696_s24  ;;  %1265 = vrot.lane.b32.xlu0 %v16570_v40, %s15696_s24  ;;  %v929_v40 = vld [vmem:[#allocation4 + $0xf8] sm:$0xff]  ;;  %v14074_v29 = vpack.c.bf16 %v2408_v15, %v2408_v15 }
 0x193   : > { %v13882_v45 = vpack.c.bf16 %v929_v40, %v929_v40 }
 0x194   : > { %v1252_v28 = vpop.permute.xlu1 %1251  ;;  %v1250_v56 = vpop.permute.xlu0 %1249 }
 0x195   : > { %1337 = vst.msk [vmem:[#allocation7 + $0x58] sm:$0xf] %vm1325_vm4, %v1252_v28  ;;  %1336 = vst.msk [vmem:[#allocation7 + $0x50] sm:$0xf] %vm1325_vm4, %v1250_v56  ;;  %v13884_v28 = vpack.c.bf16 %v931_v21, %v931_v21  ;;  %v13883_v56 = vpack.c.bf16 %v930_v24, %v930_v24 }
 0x196   : > { %1524 = vrot.lane.b32.xlu1 %v16311_v6, %s15695_s5  ;;  %1522 = vrot.lane.b32.xlu0 %v16309_v5, %s15695_s5  ;;  %1090 = vst.msk [vmem:[#allocation7 + $0xa8] sm:$0xf] %vm1068_vm3, %v13882_v45 }
 0x197   : > { %1092 = vst.msk [vmem:[#allocation7 + $0xb8] sm:$0xf] %vm1068_vm3, %v13884_v28  ;;  %1091 = vst.msk [vmem:[#allocation7 + $0xb0] sm:$0xf] %vm1068_vm3, %v13883_v56  ;;  %v16822_v56 = vld [vmem:[%s20074_s29] ss:$0 sm:$0xff] }
 0x198   : > { %v3102_v43 = vld [vmem:[#allocation7 + $0x48] sm:$0xff]  ;;  %v3101_v44 = vld [vmem:[#allocation7 + $0x40] sm:$0xff]  ;;  %v1509_v34 = vpop.permute.xlu1 %1508  ;;  %v1507_v35 = vpop.permute.xlu0 %1506 }
 0x199   : > { %1594 = vst.msk [vmem:[#allocation7 + $0x58] sm:$0xf] %vm1582_vm5, %v1509_v34  ;;  %1593 = vst.msk [vmem:[#allocation7 + $0x50] sm:$0xf] %vm1582_vm5, %v1507_v35  ;;  %v12803_v5 = vcombine.high %v3101_v44, %v3102_v43  ;;  %v12802_v6 = vcombine.low %v3101_v44, %v3102_v43  ;;  %v14073_v43 = vpack.c.bf16 %v2407_v27, %v2407_v27  ;;  %v2665_v44 = vld [vmem:[#allocation4 + $0x129] sm:$0xff]  ;;  %v2664_v34 = vld [vmem:[#allocation4 + $0x121] sm:$0xff] }
 0x19a   : > { %1781 = vrot.lane.b32.xlu1 %v14070_v62, %s15697_s0  ;;  %1779 = vrot.lane.b32.xlu0 %v16347_v16, %s15697_s0  ;;  %v2930_v62 = vld [vmem:[#allocation4 + $0x18a] sm:$0xff] }
 0x19b   : > { %12839 = vmatprep.mubr.msk.bf16.mxu0 %vm786_vm0, %v12803_v5  ;;  %v16715_v10 = vpack.c.bf16 %v2930_v62, %v2930_v62  ;;  %v14076_v62 = vpack.c.bf16 %v2410_v50, %v2410_v50 }
 0x19c   : > { %v1766_v38 = vpop.permute.xlu1 %1765  ;;  %v1764_v39 = vpop.permute.xlu0 %1763  ;;  %3461 = vmatmul.mubr.bf16.gmra.mxu0 %v12802_v6  ;;  %v16744_v6 = vpack.c.bf16 %v2665_v44, %v2665_v44 }
 0x19d   : > { %1851 = vst.msk [vmem:[#allocation7 + $0x58] sm:$0xf] %vm1839_vm6, %v1766_v38  ;;  %1850 = vst.msk [vmem:[#allocation7 + $0x50] sm:$0xf] %vm1839_vm6, %v1764_v39  ;;  %v16746_v38 = vpack.c.bf16 %v2664_v34, %v2664_v34 }
 0x19e   : > { %2038 = vrot.lane.b32.xlu1 %v16626_v2, %s15698_s1  ;;  %2036 = vrot.lane.b32.xlu0 %v16628_v3, %s15698_s1  ;;  %3090 = vst.msk [vmem:[#allocation7 + $0xec] sm:$0xf] %vm1068_vm3, %v16715_v10 }
 0x1a0   : > { %v2023_v16 = vpop.permute.xlu1 %2022  ;;  %v2021_v46 = vpop.permute.xlu0 %2020 }
 0x1a1   : > { %2108 = vst.msk [vmem:[#allocation7 + $0x58] sm:$0xf] %vm2096_vm7, %v2023_v16  ;;  %2107 = vst.msk [vmem:[#allocation7 + $0x50] sm:$0xf] %vm2096_vm7, %v2021_v46  ;;  %v2931_v46 = vld [vmem:[#allocation4 + $0x19a] sm:$0xff] }
 0x1a2   : > { %2295 = vrot.lane.b32.xlu1 %v16357_v23, %s15699_s30  ;;  %2293 = vrot.lane.b32.xlu0 %v16355_v22, %s15699_s30 }
 0x1a4   : > { %v2280_v58 = vpop.permute.xlu1 %2279  ;;  %v2278_v18 = vpop.permute.xlu0 %2277 }
 0x1a5   : > { %2365 = vst.msk [vmem:[#allocation7 + $0x58] sm:$0xf] %vm2353_vm8, %v2280_v58  ;;  %2364 = vst.msk [vmem:[#allocation7 + $0x50] sm:$0xf] %vm2353_vm8, %v2278_v18 }
 0x1a6   : > { %2553 = vrot.lane.b32.xlu1 %v14072_v36, %s15700_s4  ;;  %2551 = vrot.lane.b32.xlu0 %v14071_v53, %s15700_s4 }
 0x1a8   : > { %v2538_v25 = vpop.permute.xlu1 %2537  ;;  %v2536_v26 = vpop.permute.xlu0 %2535 }
 0x1a9   : > { %2623 = vst.msk [vmem:[#allocation7 + $0x58] sm:$0xf] %vm2611_vm9, %v2538_v25  ;;  %2622 = vst.msk [vmem:[#allocation7 + $0x50] sm:$0xf] %vm2611_vm9, %v2536_v26  ;;  %v933_v26 = vld [vmem:[#allocation4 + $0x128] sm:$0xff] }
 0x1aa   : > { %2810 = vrot.lane.b32.xlu1 %v16687_v63, %s15701_s26  ;;  %2808 = vrot.lane.b32.xlu0 %v16689_v4, %s15701_s26 }
 0x1ac   : > { %v2795_v48 = vpop.permute.xlu1 %2794  ;;  %v2793_v49 = vpop.permute.xlu0 %2792 }
 0x1ad   : > { %2880 = vst.msk [vmem:[#allocation7 + $0x58] sm:$0xf] %vm2868_vm10, %v2795_v48  ;;  %2879 = vst.msk [vmem:[#allocation7 + $0x50] sm:$0xf] %vm2868_vm10, %v2793_v49  ;;  %v2409_v48 = vld [vmem:[#allocation4 + $0x138] sm:$0xff]  ;;  %v13886_v49 = vpack.c.bf16 %v933_v26, %v933_v26 }
 0x1ae   : > { %1271 = vrot.lane.b32.xlu1 %v16626_v2, %s15696_s24  ;;  %1269 = vrot.lane.b32.xlu0 %v16628_v3, %s15696_s24 }
 0x1af   : > { %1094 = vst.msk [vmem:[#allocation7 + $0xc8] sm:$0xf] %vm1068_vm3, %v13886_v49 }
 0x1b0   : > { %v1256_v7 = vpop.permute.xlu1 %1255  ;;  %v1254_v60 = vpop.permute.xlu0 %1253 }
 0x1b1   : > { %1339 = vst.msk [vmem:[#allocation7 + $0x68] sm:$0xf] %vm1325_vm4, %v1256_v7  ;;  %1338 = vst.msk [vmem:[#allocation7 + $0x60] sm:$0xf] %vm1325_vm4, %v1254_v60  ;;  %v13885_v7 = vpack.c.bf16 %v932_v52, %v932_v52 }
 0x1b2   : > { %1528 = vrot.lane.b32.xlu1 %v16357_v23, %s15695_s5  ;;  %1526 = vrot.lane.b32.xlu0 %v16355_v22, %s15695_s5 }
 0x1b3   : > { %1093 = vst.msk [vmem:[#allocation7 + $0xc0] sm:$0xf] %vm1068_vm3, %v13885_v7 }
 0x1b4   : > { %v3104_v11 = vld [vmem:[#allocation7 + $0x58] sm:$0xff]  ;;  %v3103_v12 = vld [vmem:[#allocation7 + $0x50] sm:$0xff]  ;;  %v1513_v2 = vpop.permute.xlu1 %1512  ;;  %v1511_v3 = vpop.permute.xlu0 %1510 }
 0x1b5   : > { %1596 = vst.msk [vmem:[#allocation7 + $0x68] sm:$0xf] %vm1582_vm5, %v1513_v2  ;;  %1595 = vst.msk [vmem:[#allocation7 + $0x60] sm:$0xf] %vm1582_vm5, %v1511_v3  ;;  %v12805_v23 = vcombine.high %v3103_v12, %v3104_v11  ;;  %v12804_v22 = vcombine.low %v3103_v12, %v3104_v11  ;;  %v14075_v11 = vpack.c.bf16 %v2409_v48, %v2409_v48  ;;  %v2667_v12 = vld [vmem:[#allocation4 + $0x141] sm:$0xff]  ;;  %v2666_v2 = vld [vmem:[#allocation4 + $0x139] sm:$0xff] }
 0x1b6   : > { %1785 = vrot.lane.b32.xlu1 %v14072_v36, %s15697_s0  ;;  %1783 = vrot.lane.b32.xlu0 %v14071_v53, %s15697_s0  ;;  %v16766_v36 = vpack.c.bf16 %v2931_v46, %v2931_v46  ;;  %v934_v46 = vld [vmem:[#allocation4 + $0x138] sm:$0xff] }
 0x1b7   : > { %12840 = vmatprep.mubr.msk.bf16.mxu0 %vm786_vm0, %v12805_v23 }
 0x1b8   : > { %v1770_v13 = vpop.permute.xlu1 %1769  ;;  %v1768_v14 = vpop.permute.xlu0 %1767  ;;  %3469 = vmatmul.mubr.bf16.gmra.mxu0 %v12804_v22  ;;  %3091 = vst.msk [vmem:[#allocation7 + $0xf4] sm:$0xf] %vm1068_vm3, %v16766_v36  ;;  %v16797_v22 = vpack.c.bf16 %v2667_v12, %v2667_v12 }
 0x1b9   : > { %1853 = vst.msk [vmem:[#allocation7 + $0x68] sm:$0xf] %vm1839_vm6, %v1770_v13  ;;  %1852 = vst.msk [vmem:[#allocation7 + $0x60] sm:$0xf] %vm1839_vm6, %v1768_v14  ;;  %v16799_v13 = vpack.c.bf16 %v2666_v2, %v2666_v2 }
 0x1ba   : > { %2042 = vrot.lane.b32.xlu1 %v16687_v63, %s15698_s1  ;;  %2040 = vrot.lane.b32.xlu0 %v16689_v4, %s15698_s1 }
 0x1bc   : > { %v2027_v57 = vpop.permute.xlu1 %2026  ;;  %v2025_v30 = vpop.permute.xlu0 %2024 }
 0x1bd   : > { %2110 = vst.msk [vmem:[#allocation7 + $0x68] sm:$0xf] %vm2096_vm7, %v2027_v57  ;;  %2109 = vst.msk [vmem:[#allocation7 + $0x60] sm:$0xf] %vm2096_vm7, %v2025_v30 }
 0x1be   : > { %2299 = vrot.lane.b32.xlu1 %v16415_v9, %s15699_s30  ;;  %2297 = vrot.lane.b32.xlu0 %v16413_v55, %s15699_s30 }
 0x1c0   : > { %v2284_v35 = vpop.permute.xlu1 %2283  ;;  %v2282_v5 = vpop.permute.xlu0 %2281 }
 0x1c1   : > { %2367 = vst.msk [vmem:[#allocation7 + $0x68] sm:$0xf] %vm2353_vm8, %v2284_v35  ;;  %2366 = vst.msk [vmem:[#allocation7 + $0x60] sm:$0xf] %vm2353_vm8, %v2282_v5 }
 0x1c2   : > { %2557 = vrot.lane.b32.xlu1 %v14074_v29, %s15700_s4  ;;  %2555 = vrot.lane.b32.xlu0 %v14073_v43, %s15700_s4 }
 0x1c4   : > { %v2542_v39 = vpop.permute.xlu1 %2541  ;;  %v2540_v40 = vpop.permute.xlu0 %2539 }
 0x1c5   : > { %2625 = vst.msk [vmem:[#allocation7 + $0x68] sm:$0xf] %vm2611_vm9, %v2542_v39  ;;  %2624 = vst.msk [vmem:[#allocation7 + $0x60] sm:$0xf] %vm2611_vm9, %v2540_v40 }
 0x1c6   : > { %2814 = vrot.lane.b32.xlu1 %v16744_v6, %s15701_s26  ;;  %2812 = vrot.lane.b32.xlu0 %v16746_v38, %s15701_s26 }
 0x1c8   : > { %v2799_v41 = vpop.permute.xlu1 %2798  ;;  %v2797_v42 = vpop.permute.xlu0 %2796 }
 0x1c9   : > { %2882 = vst.msk [vmem:[#allocation7 + $0x68] sm:$0xf] %vm2868_vm10, %v2799_v41  ;;  %2881 = vst.msk [vmem:[#allocation7 + $0x60] sm:$0xf] %vm2868_vm10, %v2797_v42  ;;  %v2412_v41 = vld [vmem:[#allocation4 + $0x158] sm:$0xff] }
 0x1ca   : > { %1275 = vrot.lane.b32.xlu1 %v16687_v63, %s15696_s24  ;;  %1273 = vrot.lane.b32.xlu0 %v16689_v4, %s15696_s24 }
 0x1cc   : > { %v1260_v45 = vpop.permute.xlu1 %1259  ;;  %v1258_v16 = vpop.permute.xlu0 %1257 }
 0x1cd   : > { %1341 = vst.msk [vmem:[#allocation7 + $0x78] sm:$0xf] %vm1325_vm4, %v1260_v45  ;;  %1340 = vst.msk [vmem:[#allocation7 + $0x70] sm:$0xf] %vm1325_vm4, %v1258_v16  ;;  %v2411_v45 = vld [vmem:[#allocation4 + $0x150] sm:$0xff]  ;;  %v935_v16 = vld [vmem:[#allocation4 + $0x140] sm:$0xff] }
 0x1ce   : > { %1532 = vrot.lane.b32.xlu1 %v16415_v9, %s15695_s5  ;;  %1530 = vrot.lane.b32.xlu0 %v16413_v55, %s15695_s5  ;;  %v2932_v9 = vld [vmem:[#allocation4 + $0x1a2] sm:$0xff] }
 0x1cf   : > { %v16774_v55 = vpack.c.bf16 %v2932_v9, %v2932_v9  ;;  %v14077_v9 = vpack.c.bf16 %v2411_v45, %v2411_v45 }
 0x1d0   : > { %v3106_v53 = vld [vmem:[#allocation7 + $0x68] sm:$0xff]  ;;  %v3105_v51 = vld [vmem:[#allocation7 + $0x60] sm:$0xff]  ;;  %v1517_v54 = vpop.permute.xlu1 %1516  ;;  %v1515_v58 = vpop.permute.xlu0 %1514 }
 0x1d1   : > { %1598 = vst.msk [vmem:[#allocation7 + $0x78] sm:$0xf] %vm1582_vm5, %v1517_v54  ;;  %1597 = vst.msk [vmem:[#allocation7 + $0x70] sm:$0xf] %vm1582_vm5, %v1515_v58  ;;  %v12807_v18 = vcombine.high %v3105_v51, %v3106_v53  ;;  %v12806_v63 = vcombine.low %v3105_v51, %v3106_v53  ;;  %v13888_v58 = vpack.c.bf16 %v935_v16, %v935_v16  ;;  %v2671_v16 = vld [vmem:[#allocation4 + $0x171] sm:$0xff] }
 0x1d2   : > { %1789 = vrot.lane.b32.xlu1 %v14074_v29, %s15697_s0  ;;  %1787 = vrot.lane.b32.xlu0 %v14073_v43, %s15697_s0  ;;  %3092 = vst.msk [vmem:[#allocation7 + $0xfc] sm:$0xf] %vm1068_vm3, %v16774_v55 }
 0x1d3   : > { %12841 = vmatprep.mubr.msk.bf16.mxu0 %vm786_vm0, %v12807_v18  ;;  %v13887_v18 = vpack.c.bf16 %v934_v46, %v934_v46  ;;  %1096 = vst.msk [vmem:[#allocation7 + $0xd8] sm:$0xf] %vm1068_vm3, %v13888_v58  ;;  %v2670_v46 = vld [vmem:[#allocation4 + $0x169] sm:$0xff] }
 0x1d4   : > { %v1774_v4 = vpop.permute.xlu1 %1773  ;;  %v1772_v25 = vpop.permute.xlu0 %1771  ;;  %3477 = vmatmul.mubr.bf16.gmra.mxu0 %v12806_v63  ;;  %v14078_v63 = vpack.c.bf16 %v2412_v41, %v2412_v41 }
 0x1d5   : > { %1855 = vst.msk [vmem:[#allocation7 + $0x78] sm:$0xf] %vm1839_vm6, %v1774_v4  ;;  %1854 = vst.msk [vmem:[#allocation7 + $0x70] sm:$0xf] %vm1839_vm6, %v1772_v25  ;;  %v2669_v4 = vld [vmem:[#allocation4 + $0x159] sm:$0xff]  ;;  %v2668_v25 = vld [vmem:[#allocation4 + $0x151] sm:$0xff] }
 0x1d6   : > { %2046 = vrot.lane.b32.xlu1 %v16744_v6, %s15698_s1  ;;  %2044 = vrot.lane.b32.xlu0 %v16746_v38, %s15698_s1  ;;  %1095 = vst.msk [vmem:[#allocation7 + $0xd0] sm:$0xf] %vm1068_vm3, %v13887_v18  ;;  %v16861_v48 = vpack.c.bf16 %v2669_v4, %v2669_v4  ;;  %v16863_v49 = vpack.c.bf16 %v2668_v25, %v2668_v25 }
 0x1d7   : > { %v16929_v18 = vpack.c.bf16 %v2671_v16, %v2671_v16  ;;  %v2672_v16 = vld [vmem:[#allocation4 + $0x181] sm:$0xff] }
 0x1d8   : > { %v2031_v60 = vpop.permute.xlu1 %2030  ;;  %v2029_v8 = vpop.permute.xlu0 %2028 }
 0x1d9   : > { %2112 = vst.msk [vmem:[#allocation7 + $0x78] sm:$0xf] %vm2096_vm7, %v2031_v60  ;;  %2111 = vst.msk [vmem:[#allocation7 + $0x70] sm:$0xf] %vm2096_vm7, %v2029_v8 }
 0x1da   : > { %2303 = vrot.lane.b32.xlu1 %v16478_v47, %s15699_s30  ;;  %2301 = vrot.lane.b32.xlu0 %v16476_v37, %s15699_s30 }
 0x1dc   : > { %v2288_v3 = vpop.permute.xlu1 %2287  ;;  %v2286_v23 = vpop.permute.xlu0 %2285 }
 0x1dd   : > { %2369 = vst.msk [vmem:[#allocation7 + $0x78] sm:$0xf] %vm2353_vm8, %v2288_v3  ;;  %2368 = vst.msk [vmem:[#allocation7 + $0x70] sm:$0xf] %vm2353_vm8, %v2286_v23 }
 0x1de   : > { %2561 = vrot.lane.b32.xlu1 %v14076_v62, %s15700_s4  ;;  %2559 = vrot.lane.b32.xlu0 %v14075_v11, %s15700_s4 }
 0x1e0   : > { %v2546_v14 = vpop.permute.xlu1 %2545  ;;  %v2544_v21 = vpop.permute.xlu0 %2543 }
 0x1e1   : > { %2627 = vst.msk [vmem:[#allocation7 + $0x78] sm:$0xf] %vm2611_vm9, %v2546_v14  ;;  %2626 = vst.msk [vmem:[#allocation7 + $0x70] sm:$0xf] %vm2611_vm9, %v2544_v21 }
 0x1e2   : > { %2818 = vrot.lane.b32.xlu1 %v16797_v22, %s15701_s26  ;;  %2816 = vrot.lane.b32.xlu0 %v16799_v13, %s15701_s26 }
 0x1e4   : > { %v2803_v24 = vpop.permute.xlu1 %2802  ;;  %v2801_v15 = vpop.permute.xlu0 %2800 }
 0x1e5   : > { %2884 = vst.msk [vmem:[#allocation7 + $0x78] sm:$0xf] %vm2868_vm10, %v2803_v24  ;;  %2883 = vst.msk [vmem:[#allocation7 + $0x70] sm:$0xf] %vm2868_vm10, %v2801_v15 }
 0x1e6   : > { %1279 = vrot.lane.b32.xlu1 %v16744_v6, %s15696_s24  ;;  %1277 = vrot.lane.b32.xlu0 %v16746_v38, %s15696_s24 }
 0x1e8   : > { %v1264_v27 = vpop.permute.xlu1 %1263  ;;  %v1262_v28 = vpop.permute.xlu0 %1261 }
 0x1e9   : > { %1343 = vst.msk [vmem:[#allocation7 + $0x88] sm:$0xf] %vm1325_vm4, %v1264_v27  ;;  %1342 = vst.msk [vmem:[#allocation7 + $0x80] sm:$0xf] %vm1325_vm4, %v1262_v28 }
 0x1ea   : > { %1536 = vrot.lane.b32.xlu1 %v16478_v47, %s15695_s5  ;;  %1534 = vrot.lane.b32.xlu0 %v16476_v37, %s15695_s5 }
 0x1ec   : > { %v3108_v57 = vld [vmem:[#allocation7 + $0x78] sm:$0xff]  ;;  %v3107_v30 = vld [vmem:[#allocation7 + $0x70] sm:$0xff]  ;;  %v1521_v29 = vpop.permute.xlu1 %1520  ;;  %v1519_v43 = vpop.permute.xlu0 %1518 }
 0x1ed   : > { %1600 = vst.msk [vmem:[#allocation7 + $0x88] sm:$0xf] %vm1582_vm5, %v1521_v29  ;;  %1599 = vst.msk [vmem:[#allocation7 + $0x80] sm:$0xf] %vm1582_vm5, %v1519_v43  ;;  %v3430_v44 = vpop.f32.mrf.mxu0  ;;  %v12809_v34 = vcombine.high %v3107_v30, %v3108_v57  ;;  %v12808_v35 = vcombine.low %v3107_v30, %v3108_v57 }
 0x1ee   : > { %v16827_v47 = vadd.f32 %v16822_v56, %v3430_v44  ;;  %1793 = vrot.lane.b32.xlu1 %v14076_v62, %s15697_s0  ;;  %1791 = vrot.lane.b32.xlu0 %v14075_v11, %s15697_s0 }
 0x1ef   : > { %v3432_v37 = vpop.f32.mrf.mxu0  ;;  %12842 = vmatprep.mubr.msk.bf16.mxu0 %vm786_vm0, %v12809_v34  ;;  %v2414_v34 = vld [vmem:[#allocation4 + $0x170] sm:$0xff] }
 0x1f0   : > { %v3557_v5 = vmax.f32 %v16827_v47, 0.0  ;;  %v1778_v6 = vpop.permute.xlu1 %1777  ;;  %v1776_v38 = vpop.permute.xlu0 %1775  ;;  %3485 = vmatmul.mubr.bf16.gmra.mxu0 %v12808_v35  ;;  %v937_v35 = vld [vmem:[#allocation4 + $0x158] sm:$0xff]  ;;  %v936_v37 = vld [vmem:[#allocation4 + $0x150] sm:$0xff]  ;;  %v14080_v45 = vpack.c.bf16 %v2414_v34, %v2414_v34 }
 0x1f1   : > { %1857 = vst.msk [vmem:[#allocation7 + $0x88] sm:$0xf] %vm1839_vm6, %v1778_v6  ;;  %1856 = vst.msk [vmem:[#allocation7 + $0x80] sm:$0xf] %vm1839_vm6, %v1776_v38  ;;  %v3433_v39 = vpop.f32.mrf.mxu0  ;;  %v13890_v41 = vpack.c.bf16 %v937_v35, %v937_v35  ;;  %v939_v34 = vld [vmem:[#allocation4 + $0x170] sm:$0xff] }
 0x1f2   : > { %3589 = vst.msk [vmem:[#allocation4 + $0x19] sm:$0xff] %vm786_vm0, %v3557_v5  ;;  %v16839_v40 = vadd.f32 %v16822_v56, %v3433_v39  ;;  %2050 = vrot.lane.b32.xlu1 %v16797_v22, %s15698_s1  ;;  %2048 = vrot.lane.b32.xlu0 %v16799_v13, %s15698_s1 }
 0x1f3   : > { %v3435_v42 = vpop.f32.mrf.mxu0  ;;  %1098 = vst.msk [vmem:[#allocation7 + $0xe8] sm:$0xf] %vm1068_vm3, %v13890_v41 }
 0x1f4   : > { %v3558_v53 = vmax.f32 %v16839_v40, 0.0  ;;  %v2035_v51 = vpop.permute.xlu1 %2034  ;;  %v2033_v54 = vpop.permute.xlu0 %2032  ;;  %v13889_v42 = vpack.c.bf16 %v936_v37, %v936_v37 }
 0x1f5   : > { %2114 = vst.msk [vmem:[#allocation7 + $0x88] sm:$0xf] %vm2096_vm7, %v2035_v51  ;;  %2113 = vst.msk [vmem:[#allocation7 + $0x80] sm:$0xf] %vm2096_vm7, %v2033_v54 }
 0x1f6   : > { %3590 = vst.msk [vmem:[#allocation4 + $0x21] sm:$0xff] %vm786_vm0, %v3558_v53  ;;  %2307 = vrot.lane.b32.xlu1 %v16537_v20, %s15699_s30  ;;  %2305 = vrot.lane.b32.xlu0 %v16535_v19, %s15699_s30 }
 0x1f7   : > { %1097 = vst.msk [vmem:[#allocation7 + $0xe0] sm:$0xf] %vm1068_vm3, %v13889_v42 }
 0x1f8   : > { %v2292_v26 = vpop.permute.xlu1 %2291  ;;  %v2290_v52 = vpop.permute.xlu0 %2289 }
 0x1f9   : > { %2371 = vst.msk [vmem:[#allocation7 + $0x88] sm:$0xf] %vm2353_vm8, %v2292_v26  ;;  %2370 = vst.msk [vmem:[#allocation7 + $0x80] sm:$0xf] %vm2353_vm8, %v2290_v52  ;;  %v4325_v50 = vld [vmem:[#allocation4 + $0x18] sm:$0xff] }
 0x1fa   : > { %2565 = vrot.lane.b32.xlu1 %v14078_v63, %s15700_s4  ;;  %2563 = vrot.lane.b32.xlu0 %v14077_v9, %s15700_s4  ;;  %v16865_v7 = vpack.c.bf16 %v4325_v50, %v4325_v50 }
 0x1fc   : > { %v2550_v60 = vpop.permute.xlu1 %2549  ;;  %v2548_v8 = vpop.permute.xlu0 %2547  ;;  %3783 = vst.msk [vmem:[#allocation7 + $0x10] sm:$0xf] %vm1068_vm3, %v16865_v7 }
 0x1fd   : > { %2629 = vst.msk [vmem:[#allocation7 + $0x88] sm:$0xf] %vm2611_vm9, %v2550_v60  ;;  %2628 = vst.msk [vmem:[#allocation7 + $0x80] sm:$0xf] %vm2611_vm9, %v2548_v8  ;;  %v4326_v62 = vld [vmem:[#allocation4 + $0x20] sm:$0xff] }
 0x1fe   : > { %2822 = vrot.lane.b32.xlu1 %v16861_v48, %s15701_s26  ;;  %2820 = vrot.lane.b32.xlu0 %v16863_v49, %s15701_s26  ;;  %v16875_v11 = vpack.c.bf16 %v4326_v62, %v4326_v62 }
 0x200   : > { %v2807_v12 = vpop.permute.xlu1 %2806  ;;  %v2805_v2 = vpop.permute.xlu0 %2804  ;;  %3784 = vst.msk [vmem:[#allocation7 + $0x18] sm:$0xf] %vm1068_vm3, %v16875_v11 }
 0x201   : > { %2886 = vst.msk [vmem:[#allocation7 + $0x88] sm:$0xf] %vm2868_vm10, %v2807_v12  ;;  %2885 = vst.msk [vmem:[#allocation7 + $0x80] sm:$0xf] %vm2868_vm10, %v2805_v2 }
 0x202   : > { %1283 = vrot.lane.b32.xlu1 %v16797_v22, %s15696_s24  ;;  %1281 = vrot.lane.b32.xlu0 %v16799_v13, %s15696_s24 }
 0x204   : > { %v1268_v3 = vpop.permute.xlu1 %1267  ;;  %v1266_v23 = vpop.permute.xlu0 %1265 }
 0x205   : > { %1345 = vst.msk [vmem:[#allocation7 + $0x98] sm:$0xf] %vm1325_vm4, %v1268_v3  ;;  %1344 = vst.msk [vmem:[#allocation7 + $0x90] sm:$0xf] %vm1325_vm4, %v1266_v23 }
 0x206   : > { %1540 = vrot.lane.b32.xlu1 %v16537_v20, %s15695_s5  ;;  %1538 = vrot.lane.b32.xlu0 %v16535_v19, %s15695_s5 }
 0x208   : > { %v3110_v14 = vld [vmem:[#allocation7 + $0x88] sm:$0xff]  ;;  %v3109_v21 = vld [vmem:[#allocation7 + $0x80] sm:$0xff]  ;;  %v1525_v24 = vpop.permute.xlu1 %1524  ;;  %v1523_v15 = vpop.permute.xlu0 %1522 }
 0x209   : > { %1602 = vst.msk [vmem:[#allocation7 + $0x98] sm:$0xf] %vm1582_vm5, %v1525_v24  ;;  %1601 = vst.msk [vmem:[#allocation7 + $0x90] sm:$0xf] %vm1582_vm5, %v1523_v15  ;;  %v3438_v22 = vpop.f32.mrf.mxu0  ;;  %v12811_v13 = vcombine.high %v3109_v21, %v3110_v14  ;;  %v12810_v27 = vcombine.low %v3109_v21, %v3110_v14 }
 0x20a   : > { %v16894_v28 = vadd.f32 %v16822_v56, %v3438_v22  ;;  %1797 = vrot.lane.b32.xlu1 %v14078_v63, %s15697_s0  ;;  %1795 = vrot.lane.b32.xlu0 %v14077_v9, %s15697_s0  ;;  %v16931_v63 = vpack.c.bf16 %v2670_v46, %v2670_v46 }
 0x20b   : > { %v3440_v20 = vpop.f32.mrf.mxu0  ;;  %12843 = vmatprep.mubr.msk.bf16.mxu0 %vm786_vm0, %v12811_v13 }
 0x20c   : > { %v3559_v19 = vmax.f32 %v16894_v28, 0.0  ;;  %v1782_v57 = vpop.permute.xlu1 %1781  ;;  %v1780_v30 = vpop.permute.xlu0 %1779  ;;  %3493 = vmatmul.mubr.bf16.gmra.mxu0 %v12810_v27 }
 0x20d   : > { %1859 = vst.msk [vmem:[#allocation7 + $0x98] sm:$0xf] %vm1839_vm6, %v1782_v57  ;;  %1858 = vst.msk [vmem:[#allocation7 + $0x90] sm:$0xf] %vm1839_vm6, %v1780_v30  ;;  %v3441_v29 = vpop.f32.mrf.mxu0 }
 0x20e   : > { %3591 = vst.msk [vmem:[#allocation4 + $0x31] sm:$0xff] %vm786_vm0, %v3559_v19  ;;  %v16906_v43 = vadd.f32 %v16822_v56, %v3441_v29  ;;  %2054 = vrot.lane.b32.xlu1 %v16861_v48, %s15698_s1  ;;  %2052 = vrot.lane.b32.xlu0 %v16863_v49, %s15698_s1  ;;  %v2416_v29 = vld [vmem:[#allocation4 + $0x188] sm:$0xff] }
 0x20f   : > { %v3443_v44 = vpop.f32.mrf.mxu0  ;;  %v14082_v41 = vpack.c.bf16 %v2416_v29, %v2416_v29 }
 0x210   : > { %v20039_v6 = vmax.f32 %v16906_v43, 0.0  ;;  %v2039_v38 = vpop.permute.xlu1 %2038  ;;  %v2037_v39 = vpop.permute.xlu0 %2036  ;;  %v2415_v44 = vld [vmem:[#allocation4 + $0x180] sm:$0xff]  ;;  %v20077_v28 = vmax.f32 %v16906_v43, 0.0 }
 0x211   : > { %2116 = vst.msk [vmem:[#allocation7 + $0x98] sm:$0xf] %vm2096_vm7, %v2039_v38  ;;  %2115 = vst.msk [vmem:[#allocation7 + $0x90] sm:$0xf] %vm2096_vm7, %v2037_v39  ;;  %v13892_v39 = vpack.c.bf16 %v939_v34, %v939_v34  ;;  %v14081_v42 = vpack.c.bf16 %v2415_v44, %v2415_v44  ;;  %v2418_v34 = vld [vmem:[#allocation4 + $0x1a0] sm:$0xff] }
 0x212   : > { %3592 = vst.msk [vmem:[#allocation4 + $0x39] sm:$0xff] %vm786_vm0, %v20039_v6  ;;  %2311 = vrot.lane.b32.xlu1 %v16596_v59, %s15699_s30  ;;  %2309 = vrot.lane.b32.xlu0 %v16594_v17, %s15699_s30 }
 0x213   : > { %1100 = vst.msk [vmem:[#allocation7 + $0xf8] sm:$0xf] %vm1068_vm3, %v13892_v39 }
 0x214   : > { %v2296_v51 = vpop.permute.xlu1 %2295  ;;  %v2294_v54 = vpop.permute.xlu0 %2293 }
 0x215   : > { %2373 = vst.msk [vmem:[#allocation7 + $0x98] sm:$0xf] %vm2353_vm8, %v2296_v51  ;;  %2372 = vst.msk [vmem:[#allocation7 + $0x90] sm:$0xf] %vm2353_vm8, %v2294_v54  ;;  %v3625_v58 = vld [vmem:[#allocation4 + $0x30] sm:$0xff] }
 0x216   : > { %2569 = vrot.lane.b32.xlu1 %v14080_v45, %s15700_s4  ;;  %2567 = vrot.lane.b32.xlu0 %v16648_v31, %s15700_s4  ;;  %v14153_v9 = vpack.c.bf16 %v3625_v58, %v3625_v58 }
 0x218   : > { %v2554_v4 = vpop.permute.xlu1 %2553  ;;  %v2552_v25 = vpop.permute.xlu0 %2551  ;;  %3785 = vst.msk [vmem:[#allocation7 + $0x20] sm:$0xf] %vm1068_vm3, %v14153_v9  ;;  %v14113_v9 = vpack.c.bf16 %v2672_v16, %v2672_v16 }
 0x219   : > { %2631 = vst.msk [vmem:[#allocation7 + $0x98] sm:$0xf] %vm2611_vm9, %v2554_v4  ;;  %2630 = vst.msk [vmem:[#allocation7 + $0x90] sm:$0xf] %vm2611_vm9, %v2552_v25  ;;  %v4840_v26 = vld [vmem:[#allocation4 + $0x3a] sm:$0xff]  ;;  %v4839_v50 = vld [vmem:[#allocation4 + $0x32] sm:$0xff] }
 0x21a   : > { %2826 = vrot.lane.b32.xlu1 %v16929_v18, %s15701_s26  ;;  %2824 = vrot.lane.b32.xlu0 %v16931_v63, %s15701_s26  ;;  %v16940_v52 = vpack.c.bf16 %v4840_v26, %v4840_v26  ;;  %v3626_v60 = vld [vmem:[#allocation4 + $0x38] sm:$0xff]  ;;  %v16942_v8 = vpack.c.bf16 %v4839_v50, %v4839_v50 }
 0x21b   : > { %v14154_v62 = vpack.c.bf16 %v3626_v60, %v3626_v60 }
 0x21c   : > { %v2811_v12 = vpop.permute.xlu1 %2810  ;;  %v2809_v2 = vpop.permute.xlu0 %2808  ;;  %5766 = vst.msk [vmem:[#allocation7 + $0xc] sm:$0xf] %vm1068_vm3, %v16940_v52  ;;  %5765 = vst.msk [vmem:[#allocation7 + $0x4] sm:$0xf] %vm1068_vm3, %v16942_v8 }
 0x21d   : > { %2888 = vst.msk [vmem:[#allocation7 + $0x98] sm:$0xf] %vm2868_vm10, %v2811_v12  ;;  %2887 = vst.msk [vmem:[#allocation7 + $0x90] sm:$0xf] %vm2868_vm10, %v2809_v2 }
 0x21e   : > { %3786 = vst.msk [vmem:[#allocation7 + $0x28] sm:$0xf] %vm1068_vm3, %v14154_v62  ;;  %1287 = vrot.lane.b32.xlu1 %v16861_v48, %s15696_s24  ;;  %1285 = vrot.lane.b32.xlu0 %v16863_v49, %s15696_s24 }
 0x220   : > { %v1272_v3 = vpop.permute.xlu1 %1271  ;;  %v1270_v23 = vpop.permute.xlu0 %1269 }
 0x221   : > { %1347 = vst.msk [vmem:[#allocation7 + $0xa8] sm:$0xf] %vm1325_vm4, %v1272_v3  ;;  %1346 = vst.msk [vmem:[#allocation7 + $0xa0] sm:$0xf] %vm1325_vm4, %v1270_v23 }
 0x222   : > { %1544 = vrot.lane.b32.xlu1 %v16596_v59, %s15695_s5  ;;  %1542 = vrot.lane.b32.xlu0 %v16594_v17, %s15695_s5 }
 0x224   : > { %v3112_v14 = vld [vmem:[#allocation7 + $0x98] sm:$0xff]  ;;  %v3111_v21 = vld [vmem:[#allocation7 + $0x90] sm:$0xff]  ;;  %v1529_v24 = vpop.permute.xlu1 %1528  ;;  %v1527_v15 = vpop.permute.xlu0 %1526 }
 0x225   : > { %1604 = vst.msk [vmem:[#allocation7 + $0xa8] sm:$0xf] %vm1582_vm5, %v1529_v24  ;;  %1603 = vst.msk [vmem:[#allocation7 + $0xa0] sm:$0xf] %vm1582_vm5, %v1527_v15  ;;  %v3446_v48 = vpop.f32.mrf.mxu0  ;;  %v12813_v49 = vcombine.high %v3111_v21, %v3112_v14  ;;  %v12812_v22 = vcombine.low %v3111_v21, %v3112_v14 }
 0x226   : > { %v16964_v13 = vadd.f32 %v16822_v56, %v3446_v48  ;;  %1801 = vrot.lane.b32.xlu1 %v14080_v45, %s15697_s0  ;;  %1799 = vrot.lane.b32.xlu0 %v16648_v31, %s15697_s0  ;;  %v2673_v45 = vld [vmem:[#allocation4 + $0x189] sm:$0xff] }
 0x227   : > { %v3448_v17 = vpop.f32.mrf.mxu0  ;;  %12844 = vmatprep.mubr.msk.bf16.mxu0 %vm786_vm0, %v12813_v49  ;;  %v14114_v58 = vpack.c.bf16 %v2673_v45, %v2673_v45  ;;  %v14084_v45 = vpack.c.bf16 %v2418_v34, %v2418_v34 }
 0x228   : > { %v20038_v59 = vmax.f32 %v16964_v13, 0.0  ;;  %v1786_v27 = vpop.permute.xlu1 %1785  ;;  %v1784_v20 = vpop.permute.xlu0 %1783  ;;  %3501 = vmatmul.mubr.bf16.gmra.mxu0 %v12812_v22 }
 0x229   : > { %1861 = vst.msk [vmem:[#allocation7 + $0xa8] sm:$0xf] %vm1839_vm6, %v1786_v27  ;;  %1860 = vst.msk [vmem:[#allocation7 + $0xa0] sm:$0xf] %vm1839_vm6, %v1784_v20  ;;  %v3449_v57 = vpop.f32.mrf.mxu0 }
 0x22a   : > { %3593 = vst.msk [vmem:[#allocation4 + $0x49] sm:$0xff] %vm786_vm0, %v20038_v59  ;;  %v16977_v30 = vadd.f32 %v16822_v56, %v3449_v57  ;;  %2058 = vrot.lane.b32.xlu1 %v16929_v18, %s15698_s1  ;;  %2056 = vrot.lane.b32.xlu0 %v16931_v63, %s15698_s1 }
 0x22b   : > { %v3451_v31 = vpop.f32.mrf.mxu0 }
 0x22c   : > { %v20037_v35 = vmax.f32 %v16977_v30, 0.0  ;;  %v2043_v37 = vpop.permute.xlu1 %2042  ;;  %v2041_v38 = vpop.permute.xlu0 %2040 }
 0x22d   : > { %2118 = vst.msk [vmem:[#allocation7 + $0xa8] sm:$0xf] %vm2096_vm7, %v2043_v37  ;;  %2117 = vst.msk [vmem:[#allocation7 + $0xa0] sm:$0xf] %vm2096_vm7, %v2041_v38  ;;  %v2417_v37 = vld [vmem:[#allocation4 + $0x198] sm:$0xff] }
 0x22e   : > { %3594 = vst.msk [vmem:[#allocation4 + $0x51] sm:$0xff] %vm786_vm0, %v20037_v35  ;;  %2315 = vrot.lane.b32.xlu1 %v16656_v33, %s15699_s30  ;;  %2313 = vrot.lane.b32.xlu0 %v16654_v32, %s15699_s30  ;;  %v14083_v16 = vpack.c.bf16 %v2417_v37, %v2417_v37  ;;  %v15238_v37 = vld [vmem:[#allocation11 + $0x18] sm:$0xff]  }
 0x230   : > { %v2300_v46 = vpop.permute.xlu1 %2299  ;;  %v2298_v51 = vpop.permute.xlu0 %2297 }
 0x231   : > { %2375 = vst.msk [vmem:[#allocation7 + $0xa8] sm:$0xf] %vm2353_vm8, %v2300_v46  ;;  %2374 = vst.msk [vmem:[#allocation7 + $0xa0] sm:$0xf] %vm2353_vm8, %v2298_v51  ;;  %v3627_v54 = vld [vmem:[#allocation4 + $0x48] sm:$0xff]  ;;  %v2674_v51 = vld [vmem:[#allocation4 + $0x199] sm:$0xff] }
 0x232   : > { %2573 = vrot.lane.b32.xlu1 %v14082_v41, %s15700_s4  ;;  %2571 = vrot.lane.b32.xlu0 %v14081_v42, %s15700_s4  ;;  %v14155_v4 = vpack.c.bf16 %v3627_v54, %v3627_v54  ;;  %v2675_v46 = vld [vmem:[#allocation4 + $0x1a1] sm:$0xff] }
 0x234   : > { %v2558_v25 = vpop.permute.xlu1 %2557  ;;  %v2556_v26 = vpop.permute.xlu0 %2555  ;;  %3787 = vst.msk [vmem:[#allocation7 + $0x30] sm:$0xf] %vm1068_vm3, %v14155_v4 }
 0x235   : > { %2633 = vst.msk [vmem:[#allocation7 + $0xa8] sm:$0xf] %vm2611_vm9, %v2558_v25  ;;  %2632 = vst.msk [vmem:[#allocation7 + $0xa0] sm:$0xf] %vm2611_vm9, %v2556_v26  ;;  %v4842_v50 = vld [vmem:[#allocation4 + $0x52] sm:$0xff]  ;;  %v4841_v62 = vld [vmem:[#allocation4 + $0x4a] sm:$0xff] }
 0x236   : > { %2830 = vrot.lane.b32.xlu1 %v14114_v58, %s15701_s26  ;;  %2828 = vrot.lane.b32.xlu0 %v14113_v9, %s15701_s26  ;;  %v17003_v60 = vpack.c.bf16 %v4842_v50, %v4842_v50  ;;  %v3628_v12 = vld [vmem:[#allocation4 + $0x50] sm:$0xff]  ;;  %v17005_v2 = vpack.c.bf16 %v4841_v62, %v4841_v62  ;;  %v3813_v26 = vld [vmem:[#allocation4 + $0x1] sm:$0xff] }
 0x237   : > { %v14156_v3 = vpack.c.bf16 %v3628_v12, %v3628_v12  ;;  %v3814_v25 = vld [vmem:[#allocation4 + $0x9] sm:$0xff] }
 0x238   : > { %v2815_v23 = vpop.permute.xlu1 %2814  ;;  %v2813_v14 = vpop.permute.xlu0 %2812  ;;  %5768 = vst.msk [vmem:[#allocation7 + $0x1c] sm:$0xf] %vm1068_vm3, %v17003_v60  ;;  %5767 = vst.msk [vmem:[#allocation7 + $0x14] sm:$0xf] %vm1068_vm3, %v17005_v2 }
 0x239   : > { %2890 = vst.msk [vmem:[#allocation7 + $0xa8] sm:$0xf] %vm2868_vm10, %v2815_v23  ;;  %2889 = vst.msk [vmem:[#allocation7 + $0xa0] sm:$0xf] %vm2868_vm10, %v2813_v14  ;;  %v14182_v23 = vpack.c.bf16 %v3814_v25, %v3814_v25  ;;  %v14181_v14 = vpack.c.bf16 %v3813_v26, %v3813_v26 }
 0x23a   : > { %3788 = vst.msk [vmem:[#allocation7 + $0x38] sm:$0xf] %vm1068_vm3, %v14156_v3  ;;  %1291 = vrot.lane.b32.xlu1 %v16929_v18, %s15696_s24  ;;  %1289 = vrot.lane.b32.xlu0 %v16931_v63, %s15696_s24 }
 0x23c   : > { %v1276_v21 = vpop.permute.xlu1 %1275  ;;  %v1274_v24 = vpop.permute.xlu0 %1273 }
 0x23d   : > { %1349 = vst.msk [vmem:[#allocation7 + $0xb8] sm:$0xf] %vm1325_vm4, %v1276_v21  ;;  %1348 = vst.msk [vmem:[#allocation7 + $0xb0] sm:$0xf] %vm1325_vm4, %v1274_v24 }
 0x23e   : > { %1548 = vrot.lane.b32.xlu1 %v16656_v33, %s15695_s5  ;;  %1546 = vrot.lane.b32.xlu0 %v16654_v32, %s15695_s5 }
 0x240   : > { %v3114_v15 = vld [vmem:[#allocation7 + $0xa8] sm:$0xff]  ;;  %v3113_v48 = vld [vmem:[#allocation7 + $0xa0] sm:$0xff]  ;;  %v1533_v49 = vpop.permute.xlu1 %1532  ;;  %v1531_v22 = vpop.permute.xlu0 %1530 }
 0x241   : > { %1606 = vst.msk [vmem:[#allocation7 + $0xb8] sm:$0xf] %vm1582_vm5, %v1533_v49  ;;  %1605 = vst.msk [vmem:[#allocation7 + $0xb0] sm:$0xf] %vm1582_vm5, %v1531_v22  ;;  %v3454_v18 = vpop.f32.mrf.mxu0  ;;  %v12815_v63 = vcombine.high %v3113_v48, %v3114_v15  ;;  %v12814_v17 = vcombine.low %v3113_v48, %v3114_v15  ;;  %v15236_v15 = vld [vmem:[#allocation11 + $0x28] sm:$0xff]  }
 0x242   : > { %v17027_v27 = vadd.f32 %v16822_v56, %v3454_v18  ;;  %1805 = vrot.lane.b32.xlu1 %v14082_v41, %s15697_s0  ;;  %1803 = vrot.lane.b32.xlu0 %v14081_v42, %s15697_s0  ;;  %v15234_v42 = vld [vmem:[#allocation11 + $0x38] sm:$0xff]   ;;  %v4070_v49 = vld [vmem:[#allocation4 + $0xa] sm:$0xff]  ;;  %v4069_v22 = vld [vmem:[#allocation4 + $0x2] sm:$0xff] }
 0x243   : > { %v3456_v33 = vpop.f32.mrf.mxu0  ;;  %12845 = vmatprep.mubr.msk.bf16.mxu0 %vm786_vm0, %v12815_v63  ;;  %6101 = vmatpush1.bf16.msra.mxu1 %v15234_v42 }
 0x244   : > { %v20034_v32 = vmax.f32 %v17027_v27, 0.0  ;;  %v1790_v20 = vpop.permute.xlu1 %1789  ;;  %v1788_v57 = vpop.permute.xlu0 %1787  ;;  %3509 = vmatmul.mubr.bf16.gmra.mxu0 %v12814_v17  ;;  %6102 = vmatprep.subr.bf16.mxu1 %v20035_v1 }
 0x245   : > { %1863 = vst.msk [vmem:[#allocation7 + $0xb8] sm:$0xf] %vm1839_vm6, %v1790_v20  ;;  %1862 = vst.msk [vmem:[#allocation7 + $0xb0] sm:$0xf] %vm1839_vm6, %v1788_v57  ;;  %v3457_v31 = vpop.f32.mrf.mxu0  ;;  %v15237_v20 = vld [vmem:[#allocation11 + $0x20] sm:$0xff]   ;;  %v14214_v57 = vpack.c.bf16 %v4070_v49, %v4070_v49 }
 0x246   : > { %3595 = vst.msk [vmem:[#allocation4 + $0x61] sm:$0xff] %vm786_vm0, %v20034_v32  ;;  %v17039_v29 = vadd.f32 %v16822_v56, %v3457_v31  ;;  %2062 = vrot.lane.b32.xlu1 %v14114_v58, %s15698_s1  ;;  %2060 = vrot.lane.b32.xlu0 %v14113_v9, %s15698_s1  ;;  %v15235_v9 = vld [vmem:[#allocation11 + $0x30] sm:$0xff]   ;;  %v14213_v31 = vpack.c.bf16 %v4069_v22, %v4069_v22 }
 0x247   : > { %v3459_v44 = vpop.f32.mrf.mxu0  ;;  %6103 = vmatpush1.bf16.msra.mxu1 %v15235_v9  ;;  %v15239_v9 = vld [vmem:[#allocation11 + $0x10] sm:$0xff]  }
 0x248   : > { %v20033_v38 = vmax.f32 %v17039_v29, 0.0  ;;  %v2047_v39 = vpop.permute.xlu1 %2046  ;;  %v2045_v41 = vpop.permute.xlu0 %2044  ;;  %6104 = vmatprep.subr.bf16.mxu1 %v20035_v1 }
 0x249   : > { %2120 = vst.msk [vmem:[#allocation7 + $0xb8] sm:$0xf] %vm2096_vm7, %v2047_v39  ;;  %2119 = vst.msk [vmem:[#allocation7 + $0xb0] sm:$0xf] %vm2096_vm7, %v2045_v41 }
 0x24a   : > { %3596 = vst.msk [vmem:[#allocation4 + $0x69] sm:$0xff] %vm786_vm0, %v20033_v38  ;;  %2319 = vrot.lane.b32.xlu1 %v16715_v10, %s15699_s30  ;;  %2317 = vrot.lane.b32.xlu0 %v16713_v61, %s15699_s30  ;;  %v14116_v10 = vpack.c.bf16 %v2675_v46, %v2675_v46  ;;  %v14115_v61 = vpack.c.bf16 %v2674_v51, %v2674_v51 }
 0x24b   : > { %6105 = vmatpush1.bf16.msra.mxu1 %v15236_v15 }
 0x24c   : > { %v2304_v54 = vpop.permute.xlu1 %2303  ;;  %v2302_v58 = vpop.permute.xlu0 %2301  ;;  %6106 = vmatprep.subr.bf16.mxu1 %v20035_v1 }
 0x24d   : > { %2377 = vst.msk [vmem:[#allocation7 + $0xb8] sm:$0xf] %vm2353_vm8, %v2304_v54  ;;  %2376 = vst.msk [vmem:[#allocation7 + $0xb0] sm:$0xf] %vm2353_vm8, %v2302_v58  ;;  %v3629_v4 = vld [vmem:[#allocation4 + $0x60] sm:$0xff] }
 0x24e   : > { %2577 = vrot.lane.b32.xlu1 %v14084_v45, %s15700_s4  ;;  %2575 = vrot.lane.b32.xlu0 %v14083_v16, %s15700_s4  ;;  %v14157_v50 = vpack.c.bf16 %v3629_v4, %v3629_v4  ;;  %v4582_v54 = vld [vmem:[#allocation4 + $0x21] sm:$0xff]  ;;  %v4581_v58 = vld [vmem:[#allocation4 + $0x19] sm:$0xff] }
 0x24f   : > { %6107 = vmatpush1.bf16.msra.mxu1 %v15237_v20 }
 0x250   : > { %v2562_v62 = vpop.permute.xlu1 %2561  ;;  %v2560_v12 = vpop.permute.xlu0 %2559  ;;  %3789 = vst.msk [vmem:[#allocation7 + $0x40] sm:$0xf] %vm1068_vm3, %v14157_v50  ;;  %6108 = vmatprep.subr.bf16.mxu1 %v20035_v1  ;;  %v17095_v50 = vpack.c.bf16 %v4582_v54, %v4582_v54 }
 0x251   : > { %2635 = vst.msk [vmem:[#allocation7 + $0xb8] sm:$0xf] %vm2611_vm9, %v2562_v62  ;;  %2634 = vst.msk [vmem:[#allocation7 + $0xb0] sm:$0xf] %vm2611_vm9, %v2560_v12  ;;  %v4844_v3 = vld [vmem:[#allocation4 + $0x6a] sm:$0xff]  ;;  %v4843_v24 = vld [vmem:[#allocation4 + $0x62] sm:$0xff]  ;;  %v17097_v62 = vpack.c.bf16 %v4581_v58, %v4581_v58 }
 0x252   : > { %2834 = vrot.lane.b32.xlu1 %v14116_v10, %s15701_s26  ;;  %2832 = vrot.lane.b32.xlu0 %v14115_v61, %s15701_s26  ;;  %v17064_v21 = vpack.c.bf16 %v4844_v3, %v4844_v3  ;;  %v3630_v48 = vld [vmem:[#allocation4 + $0x68] sm:$0xff]  ;;  %v17066_v18 = vpack.c.bf16 %v4843_v24, %v4843_v24 }
 0x253   : > { %v14158_v63 = vpack.c.bf16 %v3630_v48, %v3630_v48  ;;  %6109 = vmatpush1.bf16.msra.mxu1 %v15238_v37  ;;  %v4838_v12 = vld [vmem:[#allocation4 + $0x22] sm:$0xff]  ;;  %v5349_v37 = vld [vmem:[#allocation4 + $0x31] sm:$0xff] }
 0x254   : > { %v2819_v17 = vpop.permute.xlu1 %2818  ;;  %v2817_v33 = vpop.permute.xlu0 %2816  ;;  %5770 = vst.msk [vmem:[#allocation7 + $0x2c] sm:$0xf] %vm1068_vm3, %v17064_v21  ;;  %5769 = vst.msk [vmem:[#allocation7 + $0x24] sm:$0xf] %vm1068_vm3, %v17066_v18  ;;  %6110 = vmatprep.subr.bf16.mxu1 %v20035_v1  ;;  %v15240_v3 = vld [vmem:[#allocation11 + $0x8] sm:$0xff]   ;;  %v14310_v49 = vpack.c.bf16 %v4838_v12, %v4838_v12 }
 0x255   : > { %2892 = vst.msk [vmem:[#allocation7 + $0xb8] sm:$0xf] %vm2868_vm10, %v2819_v17  ;;  %2891 = vst.msk [vmem:[#allocation7 + $0xb0] sm:$0xf] %vm2868_vm10, %v2817_v33  ;;  %v5093_v17 = vld [vmem:[#allocation4 + $0x30] sm:$0xff]  ;;  %v15241_v33 = vld [vmem:[#allocation11] sm:$0xff]  }
 0x256   : > { %3790 = vst.msk [vmem:[#allocation7 + $0x48] sm:$0xf] %vm1068_vm3, %v14158_v63  ;;  %3943 = vrot.lane.b32.xlu1 %v14182_v23, %s15696_s24  ;;  %3941 = vrot.lane.b32.xlu0 %v14181_v14, %s15696_s24  ;;  %v5094_v63 = vld [vmem:[#allocation4 + $0x38] sm:$0xff] }
 0x257   : > { %6111 = vmatpush1.bf16.msra.mxu1 %v15239_v9 }
 0x258   : > { %v1280_v44 = vpop.permute.xlu1 %1279  ;;  %v1278_v34 = vpop.permute.xlu0 %1277  ;;  %6112 = vmatprep.subr.bf16.mxu1 %v20035_v1 }
 0x259   : > { %1351 = vst.msk [vmem:[#allocation7 + $0xc8] sm:$0xf] %vm1325_vm4, %v1280_v44  ;;  %1350 = vst.msk [vmem:[#allocation7 + $0xc0] sm:$0xf] %vm1325_vm4, %v1278_v34  ;;  %v14341_v44 = vpack.c.bf16 %v5093_v17, %v5093_v17  ;;  %v5350_v34 = vld [vmem:[#allocation4 + $0x39] sm:$0xff] }
 0x25a   : > { %4199 = vrot.lane.b32.xlu1 %v14214_v57, %s15695_s5  ;;  %4197 = vrot.lane.b32.xlu0 %v14213_v31, %s15695_s5  ;;  %v14342_v31 = vpack.c.bf16 %v5094_v63, %v5094_v63 }
 0x25b   : > { %6113 = vmatpush1.bf16.msra.mxu1 %v15240_v3 }
 0x25c   : > { %v3116_v39 = vld [vmem:[#allocation7 + $0xb8] sm:$0xff]  ;;  %v3115_v41 = vld [vmem:[#allocation7 + $0xb0] sm:$0xff]  ;;  %v1537_v42 = vpop.permute.xlu1 %1536  ;;  %v1535_v45 = vpop.permute.xlu0 %1534  ;;  %6114 = vmatprep.subr.bf16.mxu1 %v20035_v1 }
 0x25d   : > { %1608 = vst.msk [vmem:[#allocation7 + $0xc8] sm:$0xf] %vm1582_vm5, %v1537_v42  ;;  %1607 = vst.msk [vmem:[#allocation7 + $0xc0] sm:$0xf] %vm1582_vm5, %v1535_v45  ;;  %v3462_v16 = vpop.f32.mrf.mxu0  ;;  %v12817_v46 = vcombine.high %v3115_v41, %v3116_v39  ;;  %v12816_v51 = vcombine.low %v3115_v41, %v3116_v39  ;;  %v15242_v39 = vld [vmem:[#allocation11 + $0x40] sm:$0xff]  }
 0x25e   : > { %v17087_v10 = vadd.f32 %v16822_v56, %v3462_v16  ;;  %4455 = vrot.lane.b32.xlu1 %v16875_v11, %s15697_s0  ;;  %4453 = vrot.lane.b32.xlu0 %v16865_v7, %s15697_s0  ;;  %v4837_v7 = vld [vmem:[#allocation4 + $0x1a] sm:$0xff] }
 0x25f   : > { %v3464_v61 = vpop.f32.mrf.mxu0  ;;  %12846 = vmatprep.mubr.msk.bf16.mxu0 %vm786_vm0, %v12817_v46  ;;  %v14309_v22 = vpack.c.bf16 %v4837_v7, %v4837_v7  ;;  %6115 = vmatpush1.bf16.msra.mxu1 %v15241_v33  ;;  %v17126_v46 = vpack.c.bf16 %v5350_v34, %v5350_v34 }
 0x260   : > { %v20030_v4 = vmax.f32 %v17087_v10, 0.0  ;;  %v1794_v25 = vpop.permute.xlu1 %1793  ;;  %v1792_v26 = vpop.permute.xlu0 %1791  ;;  %3517 = vmatmul.mubr.bf16.gmra.mxu0 %v12816_v51  ;;  %6130 = vmatprep.subr.bf16.mxu1 %v20035_v1  ;;  %v17128_v51 = vpack.c.bf16 %v5349_v37, %v5349_v37 }
 0x261   : > { %1865 = vst.msk [vmem:[#allocation7 + $0xc8] sm:$0xf] %vm1839_vm6, %v1794_v25  ;;  %1864 = vst.msk [vmem:[#allocation7 + $0xc0] sm:$0xf] %vm1839_vm6, %v1792_v26  ;;  %v3465_v11 = vpop.f32.mrf.mxu0 }
 0x262   : > { %3597 = vst.msk [vmem:[#allocation4 + $0x79] sm:$0xff] %vm786_vm0, %v20030_v4  ;;  %v17106_v23 = vadd.f32 %v16822_v56, %v3465_v11  ;;  %4711 = vrot.lane.b32.xlu1 %v17095_v50, %s15698_s1  ;;  %4709 = vrot.lane.b32.xlu0 %v17097_v62, %s15698_s1 }
 0x263   : > { %v3467_v14 = vpop.f32.mrf.mxu0  ;;  %6131 = vmatpush2.bf16.msra.mxu1 %v15242_v39 }
 0x264   : > { %v20029_v24 = vmax.f32 %v17106_v23, 0.0  ;;  %v2051_v15 = vpop.permute.xlu1 %2050  ;;  %v2049_v48 = vpop.permute.xlu0 %2048  ;;  %9809 = vmatprep.subr.bf16.mxu1 %v20035_v1 }
 0x265   : > { %2122 = vst.msk [vmem:[#allocation7 + $0xc8] sm:$0xf] %vm2096_vm7, %v2051_v15  ;;  %2121 = vst.msk [vmem:[#allocation7 + $0xc0] sm:$0xf] %vm2096_vm7, %v2049_v48 }
 0x266   : > { %3598 = vst.msk [vmem:[#allocation4 + $0x81] sm:$0xff] %vm786_vm0, %v20029_v24  ;;  %4967 = vrot.lane.b32.xlu1 %v14310_v49, %s15699_s30  ;;  %4965 = vrot.lane.b32.xlu0 %v14309_v22, %s15699_s30 }
 0x268   : > { %v2308_v20 = vpop.permute.xlu1 %2307  ;;  %v2306_v57 = vpop.permute.xlu0 %2305 }
 0x269   : > { %2379 = vst.msk [vmem:[#allocation7 + $0xc8] sm:$0xf] %vm2353_vm8, %v2308_v20  ;;  %2378 = vst.msk [vmem:[#allocation7 + $0xc0] sm:$0xf] %vm2353_vm8, %v2306_v57  ;;  %v3631_v41 = vld [vmem:[#allocation4 + $0x78] sm:$0xff] }
 0x26a   : > { %5223 = vrot.lane.b32.xlu1 %v14342_v31, %s15700_s4  ;;  %5221 = vrot.lane.b32.xlu0 %v14341_v44, %s15700_s4  ;;  %v14159_v42 = vpack.c.bf16 %v3631_v41, %v3631_v41 }
 0x26c   : > { %v2566_v45 = vpop.permute.xlu1 %2565  ;;  %v2564_v16 = vpop.permute.xlu0 %2563  ;;  %3791 = vst.msk [vmem:[#allocation7 + $0x50] sm:$0xf] %vm1068_vm3, %v14159_v42  ;;  %v5096_v42 = vld [vmem:[#allocation4 + $0x50] sm:$0xff] }
 0x26d   : > { %2637 = vst.msk [vmem:[#allocation7 + $0xc8] sm:$0xf] %vm2611_vm9, %v2566_v45  ;;  %2636 = vst.msk [vmem:[#allocation7 + $0xc0] sm:$0xf] %vm2611_vm9, %v2564_v16  ;;  %v4846_v54 = vld [vmem:[#allocation4 + $0x82] sm:$0xff]  ;;  %v4845_v9 = vld [vmem:[#allocation4 + $0x7a] sm:$0xff] }
 0x26e   : > { %5479 = vrot.lane.b32.xlu1 %v17126_v46, %s15701_s26  ;;  %5477 = vrot.lane.b32.xlu0 %v17128_v51, %s15701_s26  ;;  %v17138_v58 = vpack.c.bf16 %v4846_v54, %v4846_v54  ;;  %v3632_v61 = vld [vmem:[#allocation4 + $0x80] sm:$0xff]  ;;  %v17140_v25 = vpack.c.bf16 %v4845_v9, %v4845_v9  ;;  %v5095_v45 = vld [vmem:[#allocation4 + $0x48] sm:$0xff]  ;;  %v14344_v54 = vpack.c.bf16 %v5096_v42, %v5096_v42 }
 0x26f   : > { %v14160_v26 = vpack.c.bf16 %v3632_v61, %v3632_v61  ;;  %v14343_v9 = vpack.c.bf16 %v5095_v45, %v5095_v45  ;;  %v5352_v61 = vld [vmem:[#allocation4 + $0x51] sm:$0xff] }
 0x270   : > { %v2823_v11 = vpop.permute.xlu1 %2822  ;;  %v2821_v12 = vpop.permute.xlu0 %2820  ;;  %5772 = vst.msk [vmem:[#allocation7 + $0x3c] sm:$0xf] %vm1068_vm3, %v17138_v58  ;;  %5771 = vst.msk [vmem:[#allocation7 + $0x34] sm:$0xf] %vm1068_vm3, %v17140_v25 }
 0x271   : > { %2894 = vst.msk [vmem:[#allocation7 + $0xc8] sm:$0xf] %vm2868_vm10, %v2823_v11  ;;  %2893 = vst.msk [vmem:[#allocation7 + $0xc0] sm:$0xf] %vm2868_vm10, %v2821_v12 }
 0x272   : > { %3792 = vst.msk [vmem:[#allocation7 + $0x58] sm:$0xf] %vm1068_vm3, %v14160_v26  ;;  %3947 = vrot.lane.b32.xlu1 %v17095_v50, %s15696_s24  ;;  %3945 = vrot.lane.b32.xlu0 %v17097_v62, %s15696_s24  ;;  %v5351_v26 = vld [vmem:[#allocation4 + $0x49] sm:$0xff] }
 0x274   : > { %v1284_v7 = vpop.permute.xlu1 %1283  ;;  %v1282_v3 = vpop.permute.xlu0 %1281 }
 0x275   : > { %1353 = vst.msk [vmem:[#allocation7 + $0xd8] sm:$0xf] %vm1325_vm4, %v1284_v7  ;;  %1352 = vst.msk [vmem:[#allocation7 + $0xd0] sm:$0xf] %vm1325_vm4, %v1282_v3 }
 0x276   : > { %4203 = vrot.lane.b32.xlu1 %v14310_v49, %s15695_s5  ;;  %4201 = vrot.lane.b32.xlu0 %v14309_v22, %s15695_s5 }
 0x278   : > { %v3118_v14 = vld [vmem:[#allocation7 + $0xc8] sm:$0xff]  ;;  %v3117_v15 = vld [vmem:[#allocation7 + $0xc0] sm:$0xff]  ;;  %v1541_v48 = vpop.permute.xlu1 %1540  ;;  %v1539_v63 = vpop.permute.xlu0 %1538 }
 0x279   : > { %1610 = vst.msk [vmem:[#allocation7 + $0xd8] sm:$0xf] %vm1582_vm5, %v1541_v48  ;;  %1609 = vst.msk [vmem:[#allocation7 + $0xd0] sm:$0xf] %vm1582_vm5, %v1539_v63  ;;  %v3470_v50 = vpop.f32.mrf.mxu0  ;;  %v12819_v62 = vcombine.high %v3117_v15, %v3118_v14  ;;  %v12818_v17 = vcombine.low %v3117_v15, %v3118_v14  ;;  %v17192_v14 = vpack.c.bf16 %v5352_v61, %v5352_v61 }
 0x27a   : > { %v17160_v33 = vadd.f32 %v16822_v56, %v3470_v50  ;;  %4459 = vrot.lane.b32.xlu1 %v14342_v31, %s15697_s0  ;;  %4457 = vrot.lane.b32.xlu0 %v14341_v44, %s15697_s0  ;;  %v17194_v15 = vpack.c.bf16 %v5351_v26, %v5351_v26 }
 0x27b   : > { %v3472_v49 = vpop.f32.mrf.mxu0  ;;  %12847 = vmatprep.mubr.msk.bf16.mxu0 %vm786_vm0, %v12819_v62 }
 0x27c   : > { %v20026_v22 = vmax.f32 %v17160_v33, 0.0  ;;  %v1798_v20 = vpop.permute.xlu1 %1797  ;;  %v1796_v57 = vpop.permute.xlu0 %1795  ;;  %3525 = vmatmul.mubr.bf16.gmra.mxu0 %v12818_v17 }
 0x27d   : > { %1867 = vst.msk [vmem:[#allocation7 + $0xd8] sm:$0xf] %vm1839_vm6, %v1798_v20  ;;  %1866 = vst.msk [vmem:[#allocation7 + $0xd0] sm:$0xf] %vm1839_vm6, %v1796_v57  ;;  %v3473_v34 = vpop.f32.mrf.mxu0 }
 0x27e   : > { %3599 = vst.msk [vmem:[#allocation4 + $0x91] sm:$0xff] %vm786_vm0, %v20026_v22  ;;  %v17172_v31 = vadd.f32 %v16822_v56, %v3473_v34  ;;  %4715 = vrot.lane.b32.xlu1 %v17126_v46, %s15698_s1  ;;  %4713 = vrot.lane.b32.xlu0 %v17128_v51, %s15698_s1 }
 0x27f   : > { %v3475_v44 = vpop.f32.mrf.mxu0 }
 0x280   : > { %v20025_v37 = vmax.f32 %v17172_v31, 0.0  ;;  %v2055_v39 = vpop.permute.xlu1 %2054  ;;  %v2053_v41 = vpop.permute.xlu0 %2052 }
 0x281   : > { %2124 = vst.msk [vmem:[#allocation7 + $0xd8] sm:$0xf] %vm2096_vm7, %v2055_v39  ;;  %2123 = vst.msk [vmem:[#allocation7 + $0xd0] sm:$0xf] %vm2096_vm7, %v2053_v41 }
 0x282   : > { %3600 = vst.msk [vmem:[#allocation4 + $0x99] sm:$0xff] %vm786_vm0, %v20025_v37  ;;  %4971 = vrot.lane.b32.xlu1 %v16940_v52, %s15699_s30  ;;  %4969 = vrot.lane.b32.xlu0 %v16942_v8, %s15699_s30 }
 0x284   : > { %v2312_v56 = vpop.permute.xlu1 %2311  ;;  %v2310_v16 = vpop.permute.xlu0 %2309 }
 0x285   : > { %2381 = vst.msk [vmem:[#allocation7 + $0xd8] sm:$0xf] %vm2353_vm8, %v2312_v56  ;;  %2380 = vst.msk [vmem:[#allocation7 + $0xd0] sm:$0xf] %vm2353_vm8, %v2310_v16  ;;  %v3633_v11 = vld [vmem:[#allocation4 + $0x90] sm:$0xff] }
 0x286   : > { %5227 = vrot.lane.b32.xlu1 %v14344_v54, %s15700_s4  ;;  %5225 = vrot.lane.b32.xlu0 %v14343_v9, %s15700_s4  ;;  %v14161_v12 = vpack.c.bf16 %v3633_v11, %v3633_v11  ;;  %v17229_v16 = vld [vmem:[%s20074_s29] ss:$0 sm:$0xff] }
 0x288   : > { %v2570_v7 = vpop.permute.xlu1 %2569  ;;  %v2568_v3 = vpop.permute.xlu0 %2567  ;;  %3793 = vst.msk [vmem:[#allocation7 + $0x60] sm:$0xf] %vm1068_vm3, %v14161_v12 }
 0x289   : > { %2639 = vst.msk [vmem:[#allocation7 + $0xd8] sm:$0xf] %vm2611_vm9, %v2570_v7  ;;  %2638 = vst.msk [vmem:[#allocation7 + $0xd0] sm:$0xf] %vm2611_vm9, %v2568_v3  ;;  %v4848_v48 = vld [vmem:[#allocation4 + $0x9a] sm:$0xff]  ;;  %v4847_v50 = vld [vmem:[#allocation4 + $0x92] sm:$0xff] }
 0x28a   : > { %5483 = vrot.lane.b32.xlu1 %v17192_v14, %s15701_s26  ;;  %5481 = vrot.lane.b32.xlu0 %v17194_v15, %s15701_s26  ;;  %v17203_v63 = vpack.c.bf16 %v4848_v48, %v4848_v48  ;;  %v3634_v62 = vld [vmem:[#allocation4 + $0x98] sm:$0xff]  ;;  %v17205_v17 = vpack.c.bf16 %v4847_v50, %v4847_v50  ;;  %v5098_v50 = vld [vmem:[#allocation4 + $0x68] sm:$0xff] }
 0x28b   : > { %v14162_v49 = vpack.c.bf16 %v3634_v62, %v3634_v62  ;;  %v5097_v62 = vld [vmem:[#allocation4 + $0x60] sm:$0xff] }
 0x28c   : > { %v2827_v20 = vpop.permute.xlu1 %2826  ;;  %v2825_v57 = vpop.permute.xlu0 %2824  ;;  %5774 = vst.msk [vmem:[#allocation7 + $0x4c] sm:$0xf] %vm1068_vm3, %v17203_v63  ;;  %5773 = vst.msk [vmem:[#allocation7 + $0x44] sm:$0xf] %vm1068_vm3, %v17205_v17 }
 0x28d   : > { %2896 = vst.msk [vmem:[#allocation7 + $0xd8] sm:$0xf] %vm2868_vm10, %v2827_v20  ;;  %2895 = vst.msk [vmem:[#allocation7 + $0xd0] sm:$0xf] %vm2868_vm10, %v2825_v57  ;;  %v14346_v57 = vpack.c.bf16 %v5098_v50, %v5098_v50 }
 0x28e   : > { %3794 = vst.msk [vmem:[#allocation7 + $0x68] sm:$0xf] %vm1068_vm3, %v14162_v49  ;;  %3951 = vrot.lane.b32.xlu1 %v17126_v46, %s15696_s24  ;;  %3949 = vrot.lane.b32.xlu0 %v17128_v51, %s15696_s24 }
 0x290   : > { %v1288_v34 = vpop.permute.xlu1 %1287  ;;  %v1286_v44 = vpop.permute.xlu0 %1285 }
 0x291   : > { %1355 = vst.msk [vmem:[#allocation7 + $0xe8] sm:$0xf] %vm1325_vm4, %v1288_v34  ;;  %1354 = vst.msk [vmem:[#allocation7 + $0xe0] sm:$0xf] %vm1325_vm4, %v1286_v44  ;;  %v14345_v34 = vpack.c.bf16 %v5097_v62, %v5097_v62  ;;  %v5354_v44 = vld [vmem:[#allocation4 + $0x69] sm:$0xff] }
 0x292   : > { %4207 = vrot.lane.b32.xlu1 %v16940_v52, %s15695_s5  ;;  %4205 = vrot.lane.b32.xlu0 %v16942_v8, %s15695_s5 }
 0x294   : > { %v3120_v39 = vld [vmem:[#allocation7 + $0xd8] sm:$0xff]  ;;  %v3119_v41 = vld [vmem:[#allocation7 + $0xd0] sm:$0xff]  ;;  %v1545_v42 = vpop.permute.xlu1 %1544  ;;  %v1543_v45 = vpop.permute.xlu0 %1542 }
 0x295   : > { %1612 = vst.msk [vmem:[#allocation7 + $0xe8] sm:$0xf] %vm1582_vm5, %v1545_v42  ;;  %1611 = vst.msk [vmem:[#allocation7 + $0xe0] sm:$0xf] %vm1582_vm5, %v1543_v45  ;;  %v3478_v46 = vpop.f32.mrf.mxu0  ;;  %v12821_v51 = vcombine.high %v3119_v41, %v3120_v39  ;;  %v12820_v56 = vcombine.low %v3119_v41, %v3120_v39  ;;  %v5353_v39 = vld [vmem:[#allocation4 + $0x61] sm:$0xff] }
 0x296   : > { %v17232_v52 = vadd.f32 %v17229_v16, %v3478_v46  ;;  %4463 = vrot.lane.b32.xlu1 %v14344_v54, %s15697_s0  ;;  %4461 = vrot.lane.b32.xlu0 %v14343_v9, %s15697_s0 }
 0x297   : > { %v3480_v8 = vpop.f32.mrf.mxu0  ;;  %12848 = vmatprep.mubr.msk.bf16.mxu0 %vm786_vm0, %v12821_v51  ;;  %v17264_v51 = vpack.c.bf16 %v5354_v44, %v5354_v44 }
 0x298   : > { %v20024_v61 = vmax.f32 %v17232_v52, 0.0  ;;  %v1802_v26 = vpop.permute.xlu1 %1801  ;;  %v1800_v11 = vpop.permute.xlu0 %1799  ;;  %3533 = vmatmul.mubr.bf16.gmra.mxu0 %v12820_v56  ;;  %v17266_v56 = vpack.c.bf16 %v5353_v39, %v5353_v39 }
 0x299   : > { %1869 = vst.msk [vmem:[#allocation7 + $0xe8] sm:$0xf] %vm1839_vm6, %v1802_v26  ;;  %1868 = vst.msk [vmem:[#allocation7 + $0xe0] sm:$0xf] %vm1839_vm6, %v1800_v11  ;;  %v3481_v12 = vpop.f32.mrf.mxu0 }
 0x29a   : > { %3601 = vst.msk [vmem:[#allocation4 + $0xa9] sm:$0xff] %vm786_vm0, %v20024_v61  ;;  %v17244_v54 = vadd.f32 %v17229_v16, %v3481_v12  ;;  %4719 = vrot.lane.b32.xlu1 %v17192_v14, %s15698_s1  ;;  %4717 = vrot.lane.b32.xlu0 %v17194_v15, %s15698_s1 }
 0x29b   : > { %v3483_v9 = vpop.f32.mrf.mxu0 }
 0x29c   : > { %v20021_v7 = vmax.f32 %v17244_v54, 0.0  ;;  %v2059_v3 = vpop.permute.xlu1 %2058  ;;  %v2057_v48 = vpop.permute.xlu0 %2056 }
 0x29d   : > { %2126 = vst.msk [vmem:[#allocation7 + $0xe8] sm:$0xf] %vm2096_vm7, %v2059_v3  ;;  %2125 = vst.msk [vmem:[#allocation7 + $0xe0] sm:$0xf] %vm2096_vm7, %v2057_v48 }
 0x29e   : > { %3602 = vst.msk [vmem:[#allocation4 + $0xb1] sm:$0xff] %vm786_vm0, %v20021_v7  ;;  %4975 = vrot.lane.b32.xlu1 %v17003_v60, %s15699_s30  ;;  %4973 = vrot.lane.b32.xlu0 %v17005_v2, %s15699_s30 }
 0x2a0   : > { %v2316_v49 = vpop.permute.xlu1 %2315  ;;  %v2314_v20 = vpop.permute.xlu0 %2313 }
 0x2a1   : > { %2383 = vst.msk [vmem:[#allocation7 + $0xe8] sm:$0xf] %vm2353_vm8, %v2316_v49  ;;  %2382 = vst.msk [vmem:[#allocation7 + $0xe0] sm:$0xf] %vm2353_vm8, %v2314_v20  ;;  %v3635_v41 = vld [vmem:[#allocation4 + $0xa8] sm:$0xff] }
 0x2a2   : > { %5231 = vrot.lane.b32.xlu1 %v14346_v57, %s15700_s4  ;;  %5229 = vrot.lane.b32.xlu0 %v14345_v34, %s15700_s4  ;;  %v14163_v42 = vpack.c.bf16 %v3635_v41, %v3635_v41 }
 0x2a4   : > { %v2574_v45 = vpop.permute.xlu1 %2573  ;;  %v2572_v46 = vpop.permute.xlu0 %2571  ;;  %3795 = vst.msk [vmem:[#allocation7 + $0x70] sm:$0xf] %vm1068_vm3, %v14163_v42 }
 0x2a5   : > { %2641 = vst.msk [vmem:[#allocation7 + $0xe8] sm:$0xf] %vm2611_vm9, %v2574_v45  ;;  %2640 = vst.msk [vmem:[#allocation7 + $0xe0] sm:$0xf] %vm2611_vm9, %v2572_v46  ;;  %v4850_v8 = vld [vmem:[#allocation4 + $0xb2] sm:$0xff]  ;;  %v4849_v11 = vld [vmem:[#allocation4 + $0xaa] sm:$0xff] }
 0x2a6   : > { %5487 = vrot.lane.b32.xlu1 %v17264_v51, %s15701_s26  ;;  %5485 = vrot.lane.b32.xlu0 %v17266_v56, %s15701_s26  ;;  %v17275_v26 = vpack.c.bf16 %v4850_v8, %v4850_v8  ;;  %v3636_v12 = vld [vmem:[#allocation4 + $0xb0] sm:$0xff]  ;;  %v17277_v9 = vpack.c.bf16 %v4849_v11, %v4849_v11 }
 0x2a7   : > { %v14164_v3 = vpack.c.bf16 %v3636_v12, %v3636_v12 }
 0x2a8   : > { %v2831_v48 = vpop.permute.xlu1 %2830  ;;  %v2829_v50 = vpop.permute.xlu0 %2828  ;;  %5776 = vst.msk [vmem:[#allocation7 + $0x5c] sm:$0xf] %vm1068_vm3, %v17275_v26  ;;  %5775 = vst.msk [vmem:[#allocation7 + $0x54] sm:$0xf] %vm1068_vm3, %v17277_v9 }
 0x2a9   : > { %2898 = vst.msk [vmem:[#allocation7 + $0xe8] sm:$0xf] %vm2868_vm10, %v2831_v48  ;;  %2897 = vst.msk [vmem:[#allocation7 + $0xe0] sm:$0xf] %vm2868_vm10, %v2829_v50  ;;  %v5100_v50 = vld [vmem:[#allocation4 + $0x80] sm:$0xff] }
 0x2aa   : > { %3796 = vst.msk [vmem:[#allocation7 + $0x78] sm:$0xf] %vm1068_vm3, %v14164_v3  ;;  %3955 = vrot.lane.b32.xlu1 %v17192_v14, %s15696_s24  ;;  %3953 = vrot.lane.b32.xlu0 %v17194_v15, %s15696_s24 }
 0x2ac   : > { %v1292_v62 = vpop.permute.xlu1 %1291  ;;  %v1290_v49 = vpop.permute.xlu0 %1289 }
 0x2ad   : > { %1357 = vst.msk [vmem:[#allocation7 + $0xf8] sm:$0xf] %vm1325_vm4, %v1292_v62  ;;  %1356 = vst.msk [vmem:[#allocation7 + $0xf0] sm:$0xf] %vm1325_vm4, %v1290_v49  ;;  %v5099_v62 = vld [vmem:[#allocation4 + $0x78] sm:$0xff] }
 0x2ae   : > { %4211 = vrot.lane.b32.xlu1 %v17003_v60, %s15695_s5  ;;  %4209 = vrot.lane.b32.xlu0 %v17005_v2, %s15695_s5 }
 0x2b0   : > { %v3122_v20 = vld [vmem:[#allocation7 + $0xe8] sm:$0xff]  ;;  %v3121_v44 = vld [vmem:[#allocation7 + $0xe0] sm:$0xff]  ;;  %v1549_v39 = vpop.permute.xlu1 %1548  ;;  %v1547_v41 = vpop.permute.xlu0 %1546 }
 0x2b1   : > { %1614 = vst.msk [vmem:[#allocation7 + $0xf8] sm:$0xf] %vm1582_vm5, %v1549_v39  ;;  %1613 = vst.msk [vmem:[#allocation7 + $0xf0] sm:$0xf] %vm1582_vm5, %v1547_v41  ;;  %v3486_v14 = vpop.f32.mrf.mxu0  ;;  %v12823_v15 = vcombine.high %v3121_v44, %v3122_v20  ;;  %v12822_v42 = vcombine.low %v3121_v44, %v3122_v20  ;;  %v14348_v44 = vpack.c.bf16 %v5100_v50, %v5100_v50  ;;  %v5356_v41 = vld [vmem:[#allocation4 + $0x81] sm:$0xff] }
 0x2b2   : > { %v17299_v45 = vadd.f32 %v17229_v16, %v3486_v14  ;;  %4467 = vrot.lane.b32.xlu1 %v14346_v57, %s15697_s0  ;;  %4465 = vrot.lane.b32.xlu0 %v14345_v34, %s15697_s0  ;;  %v14347_v39 = vpack.c.bf16 %v5099_v62, %v5099_v62  ;;  %v5355_v14 = vld [vmem:[#allocation4 + $0x79] sm:$0xff] }
 0x2b3   : > { %v3488_v60 = vpop.f32.mrf.mxu0  ;;  %12849 = vmatprep.mubr.msk.bf16.mxu0 %vm786_vm0, %v12823_v15 }
 0x2b4   : > { %v20018_v2 = vmax.f32 %v17299_v45, 0.0  ;;  %v1806_v46 = vpop.permute.xlu1 %1805  ;;  %v1804_v8 = vpop.permute.xlu0 %1803  ;;  %3541 = vmatmul.mubr.bf16.gmra.mxu0 %v12822_v42 }
 0x2b5   : > { %1871 = vst.msk [vmem:[#allocation7 + $0xf8] sm:$0xf] %vm1839_vm6, %v1806_v46  ;;  %1870 = vst.msk [vmem:[#allocation7 + $0xf0] sm:$0xf] %vm1839_vm6, %v1804_v8  ;;  %v3489_v11 = vpop.f32.mrf.mxu0  ;;  %v17331_v8 = vpack.c.bf16 %v5356_v41, %v5356_v41 }
 0x2b6   : > { %3603 = vst.msk [vmem:[#allocation4 + $0xc1] sm:$0xff] %vm786_vm0, %v20018_v2  ;;  %v17311_v57 = vadd.f32 %v17229_v16, %v3489_v11  ;;  %4723 = vrot.lane.b32.xlu1 %v17264_v51, %s15698_s1  ;;  %4721 = vrot.lane.b32.xlu0 %v17266_v56, %s15698_s1  ;;  %v17333_v11 = vpack.c.bf16 %v5355_v14, %v5355_v14 }
 0x2b7   : > { %v3491_v34 = vpop.f32.mrf.mxu0 }
 0x2b8   : > { %v20017_v12 = vmax.f32 %v17311_v57, 0.0  ;;  %v2063_v3 = vpop.permute.xlu1 %2062  ;;  %v2061_v48 = vpop.permute.xlu0 %2060 }
 0x2b9   : > { %2128 = vst.msk [vmem:[#allocation7 + $0xf8] sm:$0xf] %vm2096_vm7, %v2063_v3  ;;  %2127 = vst.msk [vmem:[#allocation7 + $0xf0] sm:$0xf] %vm2096_vm7, %v2061_v48 }
 0x2ba   : > { %3604 = vst.msk [vmem:[#allocation4 + $0xc9] sm:$0xff] %vm786_vm0, %v20017_v12  ;;  %4979 = vrot.lane.b32.xlu1 %v17064_v21, %s15699_s30  ;;  %4977 = vrot.lane.b32.xlu0 %v17066_v18, %s15699_s30 }
 0x2bc   : > { %v2320_v49 = vpop.permute.xlu1 %2319  ;;  %v2318_v20 = vpop.permute.xlu0 %2317 }
 0x2bd   : > { %2385 = vst.msk [vmem:[#allocation7 + $0xf8] sm:$0xf] %vm2353_vm8, %v2320_v49  ;;  %2384 = vst.msk [vmem:[#allocation7 + $0xf0] sm:$0xf] %vm2353_vm8, %v2318_v20  ;;  %v3637_v15 = vld [vmem:[#allocation4 + $0xc0] sm:$0xff] }
 0x2be   : > { %5235 = vrot.lane.b32.xlu1 %v14348_v44, %s15700_s4  ;;  %5233 = vrot.lane.b32.xlu0 %v14347_v39, %s15700_s4  ;;  %v14165_v42 = vpack.c.bf16 %v3637_v15, %v3637_v15 }
 0x2c0   : > { %v2578_v60 = vpop.permute.xlu1 %2577  ;;  %v2576_v46 = vpop.permute.xlu0 %2575  ;;  %3797 = vst.msk [vmem:[#allocation7 + $0x80] sm:$0xf] %vm1068_vm3, %v14165_v42 }
 0x2c1   : > { %2643 = vst.msk [vmem:[#allocation7 + $0xf8] sm:$0xf] %vm2611_vm9, %v2578_v60  ;;  %2642 = vst.msk [vmem:[#allocation7 + $0xf0] sm:$0xf] %vm2611_vm9, %v2576_v46  ;;  %v4852_v34 = vld [vmem:[#allocation4 + $0xca] sm:$0xff]  ;;  %v4851_v48 = vld [vmem:[#allocation4 + $0xc2] sm:$0xff] }
 0x2c2   : > { %5491 = vrot.lane.b32.xlu1 %v17331_v8, %s15701_s26  ;;  %5489 = vrot.lane.b32.xlu0 %v17333_v11, %s15701_s26  ;;  %v17342_v3 = vpack.c.bf16 %v4852_v34, %v4852_v34  ;;  %v3638_v50 = vld [vmem:[#allocation4 + $0xc8] sm:$0xff]  ;;  %v17344_v62 = vpack.c.bf16 %v4851_v48, %v4851_v48 }
 0x2c3   : > { %v14166_v49 = vpack.c.bf16 %v3638_v50, %v3638_v50 }
 0x2c4   : > { %v2835_v20 = vpop.permute.xlu1 %2834  ;;  %v2833_v41 = vpop.permute.xlu0 %2832  ;;  %5778 = vst.msk [vmem:[#allocation7 + $0x6c] sm:$0xf] %vm1068_vm3, %v17342_v3  ;;  %5777 = vst.msk [vmem:[#allocation7 + $0x64] sm:$0xf] %vm1068_vm3, %v17344_v62 }
 0x2c5   : > { %2900 = vst.msk [vmem:[#allocation7 + $0xf8] sm:$0xf] %vm2868_vm10, %v2835_v20  ;;  %2899 = vst.msk [vmem:[#allocation7 + $0xf0] sm:$0xf] %vm2868_vm10, %v2833_v41 }
 0x2c6   : > { %3798 = vst.msk [vmem:[#allocation7 + $0x88] sm:$0xf] %vm1068_vm3, %v14166_v49  ;;  %3959 = vrot.lane.b32.xlu1 %v17264_v51, %s15696_s24  ;;  %3957 = vrot.lane.b32.xlu0 %v17266_v56, %s15696_s24 }
 0x2c8   : > { %v3944_v14 = vpop.permute.xlu1 %3943  ;;  %v3942_v15 = vpop.permute.xlu0 %3941 }
 0x2c9   : > { %4038 = vst.msk [vmem:[#allocation7 + $0x8] sm:$0xf] %vm1325_vm4, %v3944_v14  ;;  %4037 = vst.msk [vmem:[#allocation7] sm:$0xf] %vm1325_vm4, %v3942_v15  ;;  %v5102_v15 = vld [vmem:[#allocation4 + $0x98] sm:$0xff] }
 0x2ca   : > { %4215 = vrot.lane.b32.xlu1 %v17064_v21, %s15695_s5  ;;  %4213 = vrot.lane.b32.xlu0 %v17066_v18, %s15695_s5 }
 0x2cc   : > { %v3124_v42 = vld [vmem:[#allocation7 + $0xf8] sm:$0xff]  ;;  %v3123_v60 = vld [vmem:[#allocation7 + $0xf0] sm:$0xff]  ;;  %v4200_v46 = vpop.permute.xlu1 %4199  ;;  %v4198_v34 = vpop.permute.xlu0 %4197 }
 0x2cd   : > { %5796 = vst.msk [vmem:[#allocation7 + $0xfc] sm:$0xf] %vm1068_vm3, %v16774_v55  ;;  %5795 = vst.msk [vmem:[#allocation7 + $0xf4] sm:$0xf] %vm1068_vm3, %v16766_v36  ;;  %v3494_v51 = vpop.f32.mrf.mxu0  ;;  %v12825_v56 = vcombine.high %v3123_v60, %v3124_v42  ;;  %v12824_v21 = vcombine.low %v3123_v60, %v3124_v42  ;;  %v5101_v42 = vld [vmem:[#allocation4 + $0x90] sm:$0xff] }
 0x2ce   : > { %4294 = vst.msk [vmem:[#allocation7 + $0x8] sm:$0xf] %vm1582_vm5, %v4200_v46  ;;  %4293 = vst.msk [vmem:[#allocation7] sm:$0xf] %vm1582_vm5, %v4198_v34  ;;  %v17370_v48 = vadd.f32 %v17229_v16, %v3494_v51  ;;  %4471 = vrot.lane.b32.xlu1 %v14348_v44, %s15697_s0  ;;  %4469 = vrot.lane.b32.xlu0 %v14347_v39, %s15697_s0  ;;  %v14350_v34 = vpack.c.bf16 %v5102_v15, %v5102_v15 }
 0x2cf   : > { %v3496_v18 = vpop.f32.mrf.mxu0  ;;  %12850 = vmatprep.mubr.msk.bf16.mxu0 %vm786_vm0, %v12825_v56  ;;  %v14349_v51 = vpack.c.bf16 %v5101_v42, %v5101_v42  ;;  %v5358_v56 = vld [vmem:[#allocation4 + $0x99] sm:$0xff] }
 0x2d0   : > { %v20014_v55 = vmax.f32 %v17370_v48, 0.0  ;;  %3549 = vmatmul.mubr.bf16.gmra.mxu0 %v12824_v21  ;;  %v4456_v36 = vpop.permute.xlu1 %4455  ;;  %v4454_v50 = vpop.permute.xlu0 %4453  ;;  %v5357_v21 = vld [vmem:[#allocation4 + $0x91] sm:$0xff] }
 0x2d1   : > { %v3497_v49 = vpop.f32.mrf.mxu0  ;;  %4550 = vst.msk [vmem:[#allocation7 + $0x8] sm:$0xf] %vm1839_vm6, %v4456_v36  ;;  %4549 = vst.msk [vmem:[#allocation7] sm:$0xf] %vm1839_vm6, %v4454_v50 }
 0x2d2   : > { %3605 = vst.msk [vmem:[#allocation4 + $0xd9] sm:$0xff] %vm786_vm0, %v20014_v55  ;;  %v17382_v44 = vadd.f32 %v17229_v16, %v3497_v49  ;;  %4727 = vrot.lane.b32.xlu1 %v17331_v8, %s15698_s1  ;;  %4725 = vrot.lane.b32.xlu0 %v17333_v11, %s15698_s1 }
 0x2d3   : > { %v3499_v39 = vpop.f32.mrf.mxu0 }
 0x2d4   : > { %v20013_v20 = vmax.f32 %v17382_v44, 0.0  ;;  %v4712_v41 = vpop.permute.xlu1 %4711  ;;  %v4710_v14 = vpop.permute.xlu0 %4709  ;;  %v17402_v39 = vpack.c.bf16 %v5358_v56, %v5358_v56 }
 0x2d5   : > { %4806 = vst.msk [vmem:[#allocation7 + $0x8] sm:$0xf] %vm2096_vm7, %v4712_v41  ;;  %4805 = vst.msk [vmem:[#allocation7] sm:$0xf] %vm2096_vm7, %v4710_v14  ;;  %v17404_v41 = vpack.c.bf16 %v5357_v21, %v5357_v21 }
 0x2d6   : > { %3606 = vst.msk [vmem:[#allocation4 + $0xe1] sm:$0xff] %vm786_vm0, %v20013_v20  ;;  %4983 = vrot.lane.b32.xlu1 %v17138_v58, %s15699_s30  ;;  %4981 = vrot.lane.b32.xlu0 %v17140_v25, %s15699_s30 }
 0x2d8   : > { %v4968_v60 = vpop.permute.xlu1 %4967  ;;  %v4966_v46 = vpop.permute.xlu0 %4965 }
 0x2d9   : > { %5062 = vst.msk [vmem:[#allocation7 + $0x8] sm:$0xf] %vm2353_vm8, %v4968_v60  ;;  %5061 = vst.msk [vmem:[#allocation7] sm:$0xf] %vm2353_vm8, %v4966_v46  ;;  %v3639_v18 = vld [vmem:[#allocation4 + $0xd8] sm:$0xff] }
 0x2da   : > { %5239 = vrot.lane.b32.xlu1 %v14350_v34, %s15700_s4  ;;  %5237 = vrot.lane.b32.xlu0 %v14349_v51, %s15700_s4  ;;  %v14167_v36 = vpack.c.bf16 %v3639_v18, %v3639_v18 }
 0x2dc   : > { %v5224_v50 = vpop.permute.xlu1 %5223  ;;  %v5222_v49 = vpop.permute.xlu0 %5221  ;;  %3799 = vst.msk [vmem:[#allocation7 + $0x90] sm:$0xf] %vm1068_vm3, %v14167_v36  ;;  %v6326_v36 = vld [vmem:[#allocation4 + $0x8] sm:$0xff] }
 0x2dd   : > { %5318 = vst.msk [vmem:[#allocation7 + $0x8] sm:$0xf] %vm2611_vm9, %v5224_v50  ;;  %5317 = vst.msk [vmem:[#allocation7] sm:$0xf] %vm2611_vm9, %v5222_v49  ;;  %v4854_v14 = vld [vmem:[#allocation4 + $0xe2] sm:$0xff]  ;;  %v4853_v42 = vld [vmem:[#allocation4 + $0xda] sm:$0xff] }
 0x2de   : > { %5495 = vrot.lane.b32.xlu1 %v17402_v39, %s15701_s26  ;;  %5493 = vrot.lane.b32.xlu0 %v17404_v41, %s15701_s26  ;;  %v17413_v15 = vpack.c.bf16 %v4854_v14, %v4854_v14  ;;  %v3640_v60 = vld [vmem:[#allocation4 + $0xe0] sm:$0xff]  ;;  %v17415_v46 = vpack.c.bf16 %v4853_v42, %v4853_v42  ;;  %v14438_v42 = vpack.c.bf16 %v6326_v36, %v6326_v36 }
 0x2df   : > { %v14168_v56 = vpack.c.bf16 %v3640_v60, %v3640_v60  ;;  %v6325_v50 = vld [vmem:[#allocation4] sm:$0xff] }
 0x2e0   : > { %v5480_v21 = vpop.permute.xlu1 %5479  ;;  %v5478_v18 = vpop.permute.xlu0 %5477  ;;  %5780 = vst.msk [vmem:[#allocation7 + $0x7c] sm:$0xf] %vm1068_vm3, %v17413_v15  ;;  %5779 = vst.msk [vmem:[#allocation7 + $0x74] sm:$0xf] %vm1068_vm3, %v17415_v46  ;;  %v14437_v60 = vpack.c.bf16 %v6325_v50, %v6325_v50 }
 0x2e1   : > { %5574 = vst.msk [vmem:[#allocation7 + $0x8] sm:$0xf] %vm2868_vm10, %v5480_v21  ;;  %5573 = vst.msk [vmem:[#allocation7] sm:$0xf] %vm2868_vm10, %v5478_v18 }
 0x2e2   : > { %3800 = vst.msk [vmem:[#allocation7 + $0x98] sm:$0xf] %vm1068_vm3, %v14168_v56  ;;  %3963 = vrot.lane.b32.xlu1 %v17331_v8, %s15696_s24  ;;  %3961 = vrot.lane.b32.xlu0 %v17333_v11, %s15696_s24 }
 0x2e4   : > { %v3948_v49 = vpop.permute.xlu1 %3947  ;;  %v3946_v14 = vpop.permute.xlu0 %3945 }
 0x2e5   : > { %4040 = vst.msk [vmem:[#allocation7 + $0x18] sm:$0xf] %vm1325_vm4, %v3948_v49  ;;  %4039 = vst.msk [vmem:[#allocation7 + $0x10] sm:$0xf] %vm1325_vm4, %v3946_v14 }
 0x2e6   : > { %4219 = vrot.lane.b32.xlu1 %v17138_v58, %s15695_s5  ;;  %4217 = vrot.lane.b32.xlu0 %v17140_v25, %s15695_s5 }
 0x2e8   : > { %v5798_v56 = vld [vmem:[#allocation7 + $0x8] sm:$0xff]  ;;  %v5797_v21 = vld [vmem:[#allocation7] sm:$0xff]  ;;  %v3502_v8 = vpop.f32.mrf.mxu0  ;;  %v4204_v18 = vpop.permute.xlu1 %4203 }
 0x2e9   : > { %6486 = vst.msk [vmem:[#allocation7 + $0x8] sm:$0xf] %vm1068_vm3, %v14438_v42  ;;  %6485 = vst.msk [vmem:[#allocation7] sm:$0xf] %vm1068_vm3, %v14437_v60  ;;  %v17437_v11 = vadd.f32 %v17229_v16, %v3502_v8  ;;  %v4202_v36 = vpop.permute.xlu0 %4201  ;;  %v13141_v50 = vcombine.high %v5797_v21, %v5798_v56  ;;  %v13140_v49 = vcombine.low %v5797_v21, %v5798_v56 }
 0x2ea   : > { %4296 = vst.msk [vmem:[#allocation7 + $0x18] sm:$0xf] %vm1582_vm5, %v4204_v18  ;;  %4295 = vst.msk [vmem:[#allocation7 + $0x10] sm:$0xf] %vm1582_vm5, %v4202_v36  ;;  %v3504_v58 = vpop.f32.mrf.mxu0  ;;  %4475 = vrot.lane.b32.xlu1 %v14350_v34, %s15697_s0  ;;  %4473 = vrot.lane.b32.xlu0 %v14349_v51, %s15697_s0  ;;  %v5104_v18 = vld [vmem:[#allocation4 + $0xb0] sm:$0xff]  ;;  %v5103_v36 = vld [vmem:[#allocation4 + $0xa8] sm:$0xff] }
 0x2eb   : > { %v20010_v25 = vmax.f32 %v17437_v11, 0.0  ;;  %13181 = vmatprep.mubr.msk.bf16.mxu1 %vm786_vm0, %v13141_v50  ;;  %v14351_v58 = vpack.c.bf16 %v5103_v36, %v5103_v36 }
 0x2ec   : > { %v3505_v14 = vpop.f32.mrf.mxu0  ;;  %v4460_v42 = vpop.permute.xlu1 %4459  ;;  %6133 = vmatmul.mubr.bf16.vlgmr.msra.gmra.mxu1 %v13140_v49  ;;  %v14352_v49 = vpack.c.bf16 %v5104_v18, %v5104_v18 }
 0x2ed   : > { %3607 = vst.msk [vmem:[#allocation4 + $0xf1] sm:$0xff] %vm786_vm0, %v20010_v25  ;;  %v17449_v60 = vadd.f32 %v17229_v16, %v3505_v14  ;;  %v4458_v56 = vpop.permute.xlu0 %4457 }
 0x2ee   : > { %4552 = vst.msk [vmem:[#allocation7 + $0x18] sm:$0xf] %vm1839_vm6, %v4460_v42  ;;  %4551 = vst.msk [vmem:[#allocation7 + $0x10] sm:$0xf] %vm1839_vm6, %v4458_v56  ;;  %v3507_v34 = vpop.f32.mrf.mxu0  ;;  %4731 = vrot.lane.b32.xlu1 %v17402_v39, %s15698_s1  ;;  %4729 = vrot.lane.b32.xlu0 %v17404_v41, %s15698_s1  ;;  %v5360_v56 = vld [vmem:[#allocation4 + $0xb1] sm:$0xff] }
 0x2ef   : > { %v20009_v51 = vmax.f32 %v17449_v60, 0.0  ;;  %v5359_v34 = vld [vmem:[#allocation4 + $0xa9] sm:$0xff]  ;;  %v17472_v0 = vpack.c.bf16 %v5360_v56, %v5360_v56 }
 0x2f0   : > { %v4716_v21 = vpop.permute.xlu1 %4715  ;;  %v17474_v18 = vpack.c.bf16 %v5359_v34, %v5359_v34 }
 0x2f1   : > { %3608 = vst.msk [vmem:[#allocation4 + $0xf9] sm:$0xff] %vm786_vm0, %v20009_v51  ;;  %v4714_v8 = vpop.permute.xlu0 %4713 }
 0x2f2   : > { %4808 = vst.msk [vmem:[#allocation7 + $0x18] sm:$0xf] %vm2096_vm7, %v4716_v21  ;;  %4807 = vst.msk [vmem:[#allocation7 + $0x10] sm:$0xf] %vm2096_vm7, %v4714_v8  ;;  %4987 = vrot.lane.b32.xlu1 %v17203_v63, %s15699_s30  ;;  %4985 = vrot.lane.b32.xlu0 %v17205_v17, %s15699_s30 }
 0x2f4   : > { %v4972_v50 = vpop.permute.xlu1 %4971  ;;  %v3641_v14 = vld [vmem:[#allocation4 + $0xf0] sm:$0xff] }
 0x2f5   : > { %5064 = vst.msk [vmem:[#allocation7 + $0x18] sm:$0xf] %vm2353_vm8, %v4972_v50  ;;  %v4970_v42 = vpop.permute.xlu0 %4969  ;;  %v14169_v21 = vpack.c.bf16 %v3641_v14, %v3641_v14 }
 0x2f6   : > { %5063 = vst.msk [vmem:[#allocation7 + $0x10] sm:$0xf] %vm2353_vm8, %v4970_v42  ;;  %5243 = vrot.lane.b32.xlu1 %v14352_v49, %s15700_s4  ;;  %5241 = vrot.lane.b32.xlu0 %v14351_v58, %s15700_s4 }
 0x2f7   : > { %3801 = vst.msk [vmem:[#allocation7 + $0xa0] sm:$0xf] %vm1068_vm3, %v14169_v21 }
 0x2f8   : > { %v5228_v8 = vpop.permute.xlu1 %5227  ;;  %v4856_v36 = vld [vmem:[#allocation4 + $0xfa] sm:$0xff]  ;;  %v4855_v14 = vld [vmem:[#allocation4 + $0xf2] sm:$0xff] }
 0x2f9   : > { %5320 = vst.msk [vmem:[#allocation7 + $0x18] sm:$0xf] %vm2611_vm9, %v5228_v8  ;;  %v5226_v50 = vpop.permute.xlu0 %5225  ;;  %v17477_v51 = vpack.c.bf16 %v4856_v36, %v4856_v36  ;;  %v3642_v25 = vld [vmem:[#allocation4 + $0xf8] sm:$0xff]  ;;  %v17484_v42 = vpack.c.bf16 %v4855_v14, %v4855_v14 }
 0x2fa   : > { %5319 = vst.msk [vmem:[#allocation7 + $0x10] sm:$0xf] %vm2611_vm9, %v5226_v50  ;;  %5499 = vrot.lane.b32.xlu1 %v17472_v0, %s15701_s26  ;;  %5497 = vrot.lane.b32.xlu0 %v17474_v18, %s15701_s26  ;;  %v14170_v56 = vpack.c.bf16 %v3642_v25, %v3642_v25 }
 0x2fb   : > { %5782 = vst.msk [vmem:[#allocation7 + $0x8c] sm:$0xf] %vm1068_vm3, %v17477_v51  ;;  %5781 = vst.msk [vmem:[#allocation7 + $0x84] sm:$0xf] %vm1068_vm3, %v17484_v42 }
 0x2fc   : > { %v5484_v34 = vpop.permute.xlu1 %5483  ;;  %3802 = vst.msk [vmem:[#allocation7 + $0xa8] sm:$0xf] %vm1068_vm3, %v14170_v56 }
 0x2fd   : > { %5576 = vst.msk [vmem:[#allocation7 + $0x18] sm:$0xf] %vm2868_vm10, %v5484_v34  ;;  %v5482_v21 = vpop.permute.xlu0 %5481 }
 0x2fe   : > { %5575 = vst.msk [vmem:[#allocation7 + $0x10] sm:$0xf] %vm2868_vm10, %v5482_v21  ;;  %3967 = vrot.lane.b32.xlu1 %v17402_v39, %s15696_s24  ;;  %3965 = vrot.lane.b32.xlu0 %v17404_v41, %s15696_s24 }
 0x300   : > { %v3952_v25 = vpop.permute.xlu1 %3951 }
 0x301   : > { %4042 = vst.msk [vmem:[#allocation7 + $0x28] sm:$0xf] %vm1325_vm4, %v3952_v25  ;;  %v3950_v8 = vpop.permute.xlu0 %3949 }
 0x302   : > { %4041 = vst.msk [vmem:[#allocation7 + $0x20] sm:$0xf] %vm1325_vm4, %v3950_v8  ;;  %4223 = vrot.lane.b32.xlu1 %v17203_v63, %s15695_s5  ;;  %4221 = vrot.lane.b32.xlu0 %v17205_v17, %s15695_s5 }
 0x304   : > { %v5800_v36 = vld [vmem:[#allocation7 + $0x18] sm:$0xff]  ;;  %v3510_v50 = vpop.f32.mrf.mxu0  ;;  %v4208_v14 = vpop.permute.xlu1 %4207 }
 0x305   : > { %v5799_v56 = vld [vmem:[#allocation7 + $0x10] sm:$0xff]  ;;  %v17504_v39 = vadd.f32 %v17229_v16, %v3510_v50  ;;  %4298 = vst.msk [vmem:[#allocation7 + $0x28] sm:$0xf] %vm1582_vm5, %v4208_v14  ;;  %v4206_v41 = vpop.permute.xlu0 %4205 }
 0x306   : > { %4297 = vst.msk [vmem:[#allocation7 + $0x20] sm:$0xf] %vm1582_vm5, %v4206_v41  ;;  %v3512_v34 = vpop.f32.mrf.mxu0  ;;  %4479 = vrot.lane.b32.xlu1 %v14352_v49, %s15697_s0  ;;  %4477 = vrot.lane.b32.xlu0 %v14351_v58, %s15697_s0  ;;  %v13143_v63 = vcombine.high %v5799_v56, %v5800_v36  ;;  %v13142_v21 = vcombine.low %v5799_v56, %v5800_v36  ;;  %v5106_v41 = vld [vmem:[#allocation4 + $0xc8] sm:$0xff] }
 0x307   : > { %v20012_v17 = vmax.f32 %v17504_v39, 0.0  ;;  %v5105_v34 = vld [vmem:[#allocation4 + $0xc0] sm:$0xff] }
 0x308   : > { %13182 = vmatprep.mubr.msk.bf16.mxu1 %vm786_vm0, %v13143_v63  ;;  %v3513_v25 = vpop.f32.mrf.mxu0  ;;  %v4464_v8 = vpop.permute.xlu1 %4463 }
 0x309   : > { %3609 = vst.msk [vmem:[#allocation4 + $0x109] sm:$0xff] %vm786_vm0, %v20012_v17  ;;  %v17516_v50 = vadd.f32 %v17229_v16, %v3513_v25  ;;  %v4462_v49 = vpop.permute.xlu0 %4461  ;;  %6141 = vmatmul.mubr.bf16.gmra.mxu1 %v13142_v21  ;;  %v14354_v21 = vpack.c.bf16 %v5106_v41, %v5106_v41  ;;  %v14353_v25 = vpack.c.bf16 %v5105_v34, %v5105_v34 }
 0x30a   : > { %4554 = vst.msk [vmem:[#allocation7 + $0x28] sm:$0xf] %vm1839_vm6, %v4464_v8  ;;  %4553 = vst.msk [vmem:[#allocation7 + $0x20] sm:$0xf] %vm1839_vm6, %v4462_v49  ;;  %v3515_v58 = vpop.f32.mrf.mxu0  ;;  %4735 = vrot.lane.b32.xlu1 %v17472_v0, %s15698_s1  ;;  %4733 = vrot.lane.b32.xlu0 %v17474_v18, %s15698_s1 }
 0x30b   : > { %v20011_v36 = vmax.f32 %v17516_v50, 0.0  ;;  %v5362_v58 = vld [vmem:[#allocation4 + $0xc9] sm:$0xff] }
 0x30c   : > { %v4720_v14 = vpop.permute.xlu1 %4719  ;;  %v17539_v17 = vpack.c.bf16 %v5362_v58, %v5362_v58 }
 0x30d   : > { %3610 = vst.msk [vmem:[#allocation4 + $0x111] sm:$0xff] %vm786_vm0, %v20011_v36  ;;  %v4718_v56 = vpop.permute.xlu0 %4717 }
 0x30e   : > { %4810 = vst.msk [vmem:[#allocation7 + $0x28] sm:$0xf] %vm2096_vm7, %v4720_v14  ;;  %4809 = vst.msk [vmem:[#allocation7 + $0x20] sm:$0xf] %vm2096_vm7, %v4718_v56  ;;  %4991 = vrot.lane.b32.xlu1 %v17275_v26, %s15699_s30  ;;  %4989 = vrot.lane.b32.xlu0 %v17277_v9, %s15699_s30  ;;  %v5361_v14 = vld [vmem:[#allocation4 + $0xc1] sm:$0xff] }
 0x30f   : > { %v17541_v41 = vpack.c.bf16 %v5361_v14, %v5361_v14 }
 0x310   : > { %v4976_v63 = vpop.permute.xlu1 %4975  ;;  %v3643_v8 = vld [vmem:[#allocation4 + $0x108] sm:$0xff] }
 0x311   : > { %5066 = vst.msk [vmem:[#allocation7 + $0x28] sm:$0xf] %vm2353_vm8, %v4976_v63  ;;  %v4974_v49 = vpop.permute.xlu0 %4973  ;;  %v14171_v36 = vpack.c.bf16 %v3643_v8, %v3643_v8 }
 0x312   : > { %5065 = vst.msk [vmem:[#allocation7 + $0x20] sm:$0xf] %vm2353_vm8, %v4974_v49  ;;  %5247 = vrot.lane.b32.xlu1 %v14354_v21, %s15700_s4  ;;  %5245 = vrot.lane.b32.xlu0 %v14353_v25, %s15700_s4 }
 0x313   : > { %3803 = vst.msk [vmem:[#allocation7 + $0xb0] sm:$0xf] %vm1068_vm3, %v14171_v36 }
 0x314   : > { %v5232_v56 = vpop.permute.xlu1 %5231  ;;  %v4858_v34 = vld [vmem:[#allocation4 + $0x112] sm:$0xff]  ;;  %v4857_v8 = vld [vmem:[#allocation4 + $0x10a] sm:$0xff] }
 0x315   : > { %5322 = vst.msk [vmem:[#allocation7 + $0x28] sm:$0xf] %vm2611_vm9, %v5232_v56  ;;  %v5230_v63 = vpop.permute.xlu0 %5229  ;;  %v17544_v20 = vpack.c.bf16 %v4858_v34, %v4858_v34  ;;  %v3644_v55 = vld [vmem:[#allocation4 + $0x110] sm:$0xff]  ;;  %v17551_v36 = vpack.c.bf16 %v4857_v8, %v4857_v8 }
 0x316   : > { %5321 = vst.msk [vmem:[#allocation7 + $0x20] sm:$0xf] %vm2611_vm9, %v5230_v63  ;;  %5503 = vrot.lane.b32.xlu1 %v17539_v17, %s15701_s26  ;;  %5501 = vrot.lane.b32.xlu0 %v17541_v41, %s15701_s26  ;;  %v14172_v49 = vpack.c.bf16 %v3644_v55, %v3644_v55 }
 0x317   : > { %5784 = vst.msk [vmem:[#allocation7 + $0x9c] sm:$0xf] %vm1068_vm3, %v17544_v20  ;;  %5783 = vst.msk [vmem:[#allocation7 + $0x94] sm:$0xf] %vm1068_vm3, %v17551_v36 }
 0x318   : > { %v5488_v58 = vpop.permute.xlu1 %5487  ;;  %3804 = vst.msk [vmem:[#allocation7 + $0xb8] sm:$0xf] %vm1068_vm3, %v14172_v49 }
 0x319   : > { %5578 = vst.msk [vmem:[#allocation7 + $0x28] sm:$0xf] %vm2868_vm10, %v5488_v58  ;;  %v5486_v14 = vpop.permute.xlu0 %5485 }
 0x31a   : > { %5577 = vst.msk [vmem:[#allocation7 + $0x20] sm:$0xf] %vm2868_vm10, %v5486_v14  ;;  %3971 = vrot.lane.b32.xlu1 %v17472_v0, %s15696_s24  ;;  %3969 = vrot.lane.b32.xlu0 %v17474_v18, %s15696_s24 }
 0x31c   : > { %v3956_v55 = vpop.permute.xlu1 %3955 }
 0x31d   : > { %4044 = vst.msk [vmem:[#allocation7 + $0x38] sm:$0xf] %vm1325_vm4, %v3956_v55  ;;  %v3954_v56 = vpop.permute.xlu0 %3953 }
 0x31e   : > { %4043 = vst.msk [vmem:[#allocation7 + $0x30] sm:$0xf] %vm1325_vm4, %v3954_v56  ;;  %4227 = vrot.lane.b32.xlu1 %v17275_v26, %s15695_s5  ;;  %4225 = vrot.lane.b32.xlu0 %v17277_v9, %s15695_s5 }
 0x320   : > { %v5802_v34 = vld [vmem:[#allocation7 + $0x28] sm:$0xff]  ;;  %v3518_v63 = vpop.f32.mrf.mxu0  ;;  %v4212_v8 = vpop.permute.xlu1 %4211 }
 0x321   : > { %v5801_v49 = vld [vmem:[#allocation7 + $0x20] sm:$0xff]  ;;  %v17571_v0 = vadd.f32 %v17229_v16, %v3518_v63  ;;  %4300 = vst.msk [vmem:[#allocation7 + $0x38] sm:$0xf] %vm1582_vm5, %v4212_v8  ;;  %v4210_v18 = vpop.permute.xlu0 %4209 }
 0x322   : > { %4299 = vst.msk [vmem:[#allocation7 + $0x30] sm:$0xf] %vm1582_vm5, %v4210_v18  ;;  %v3520_v58 = vpop.f32.mrf.mxu0  ;;  %4483 = vrot.lane.b32.xlu1 %v14354_v21, %s15697_s0  ;;  %4481 = vrot.lane.b32.xlu0 %v14353_v25, %s15697_s0  ;;  %v13145_v26 = vcombine.high %v5801_v49, %v5802_v34  ;;  %v13144_v14 = vcombine.low %v5801_v49, %v5802_v34  ;;  %v5108_v18 = vld [vmem:[#allocation4 + $0xe0] sm:$0xff] }
 0x323   : > { %v20016_v9 = vmax.f32 %v17571_v0, 0.0  ;;  %v5107_v58 = vld [vmem:[#allocation4 + $0xd8] sm:$0xff] }
 0x324   : > { %13183 = vmatprep.mubr.msk.bf16.mxu1 %vm786_vm0, %v13145_v26  ;;  %v3521_v55 = vpop.f32.mrf.mxu0  ;;  %v4468_v56 = vpop.permute.xlu1 %4467 }
 0x325   : > { %3611 = vst.msk [vmem:[#allocation4 + $0x121] sm:$0xff] %vm786_vm0, %v20016_v9  ;;  %v17583_v63 = vadd.f32 %v17229_v16, %v3521_v55  ;;  %v4466_v21 = vpop.permute.xlu0 %4465  ;;  %6149 = vmatmul.mubr.bf16.gmra.mxu1 %v13144_v14  ;;  %v14356_v14 = vpack.c.bf16 %v5108_v18, %v5108_v18  ;;  %v14355_v55 = vpack.c.bf16 %v5107_v58, %v5107_v58 }
 0x326   : > { %4556 = vst.msk [vmem:[#allocation7 + $0x38] sm:$0xf] %vm1839_vm6, %v4468_v56  ;;  %4555 = vst.msk [vmem:[#allocation7 + $0x30] sm:$0xf] %vm1839_vm6, %v4466_v21  ;;  %v3523_v25 = vpop.f32.mrf.mxu0  ;;  %4739 = vrot.lane.b32.xlu1 %v17539_v17, %s15698_s1  ;;  %4737 = vrot.lane.b32.xlu0 %v17541_v41, %s15698_s1 }
 0x327   : > { %v20015_v34 = vmax.f32 %v17583_v63, 0.0  ;;  %v5364_v25 = vld [vmem:[#allocation4 + $0xe1] sm:$0xff] }
 0x328   : > { %v4724_v8 = vpop.permute.xlu1 %4723  ;;  %v17606_v9 = vpack.c.bf16 %v5364_v25, %v5364_v25 }
 0x329   : > { %3612 = vst.msk [vmem:[#allocation4 + $0x129] sm:$0xff] %vm786_vm0, %v20015_v34  ;;  %v4722_v49 = vpop.permute.xlu0 %4721 }
 0x32a   : > { %4812 = vst.msk [vmem:[#allocation7 + $0x38] sm:$0xf] %vm2096_vm7, %v4724_v8  ;;  %4811 = vst.msk [vmem:[#allocation7 + $0x30] sm:$0xf] %vm2096_vm7, %v4722_v49  ;;  %4995 = vrot.lane.b32.xlu1 %v17342_v3, %s15699_s30  ;;  %4993 = vrot.lane.b32.xlu0 %v17344_v62, %s15699_s30  ;;  %v5363_v8 = vld [vmem:[#allocation4 + $0xd9] sm:$0xff] }
 0x32b   : > { %v17608_v18 = vpack.c.bf16 %v5363_v8, %v5363_v8 }
 0x32c   : > { %v4980_v26 = vpop.permute.xlu1 %4979  ;;  %v3645_v56 = vld [vmem:[#allocation4 + $0x120] sm:$0xff] }
 0x32d   : > { %5068 = vst.msk [vmem:[#allocation7 + $0x38] sm:$0xf] %vm2353_vm8, %v4980_v26  ;;  %v4978_v21 = vpop.permute.xlu0 %4977  ;;  %v14173_v34 = vpack.c.bf16 %v3645_v56, %v3645_v56 }
 0x32e   : > { %5067 = vst.msk [vmem:[#allocation7 + $0x30] sm:$0xf] %vm2353_vm8, %v4978_v21  ;;  %5251 = vrot.lane.b32.xlu1 %v14356_v14, %s15700_s4  ;;  %5249 = vrot.lane.b32.xlu0 %v14355_v55, %s15700_s4 }
 0x32f   : > { %3805 = vst.msk [vmem:[#allocation7 + $0xc0] sm:$0xf] %vm1068_vm3, %v14173_v34 }
 0x330   : > { %v5236_v49 = vpop.permute.xlu1 %5235  ;;  %v4860_v58 = vld [vmem:[#allocation4 + $0x12a] sm:$0xff]  ;;  %v4859_v56 = vld [vmem:[#allocation4 + $0x122] sm:$0xff] }
 0x331   : > { %5324 = vst.msk [vmem:[#allocation7 + $0x38] sm:$0xf] %vm2611_vm9, %v5236_v49  ;;  %v5234_v26 = vpop.permute.xlu0 %5233  ;;  %v17611_v12 = vpack.c.bf16 %v4860_v58, %v4860_v58  ;;  %v3646_v2 = vld [vmem:[#allocation4 + $0x128] sm:$0xff]  ;;  %v17618_v34 = vpack.c.bf16 %v4859_v56, %v4859_v56 }
 0x332   : > { %5323 = vst.msk [vmem:[#allocation7 + $0x30] sm:$0xf] %vm2611_vm9, %v5234_v26  ;;  %5507 = vrot.lane.b32.xlu1 %v17606_v9, %s15701_s26  ;;  %5505 = vrot.lane.b32.xlu0 %v17608_v18, %s15701_s26  ;;  %v14174_v21 = vpack.c.bf16 %v3646_v2, %v3646_v2 }
 0x333   : > { %5786 = vst.msk [vmem:[#allocation7 + $0xac] sm:$0xf] %vm1068_vm3, %v17611_v12  ;;  %5785 = vst.msk [vmem:[#allocation7 + $0xa4] sm:$0xf] %vm1068_vm3, %v17618_v34 }
 0x334   : > { %v5492_v25 = vpop.permute.xlu1 %5491  ;;  %3806 = vst.msk [vmem:[#allocation7 + $0xc8] sm:$0xf] %vm1068_vm3, %v14174_v21 }
 0x335   : > { %5580 = vst.msk [vmem:[#allocation7 + $0x38] sm:$0xf] %vm2868_vm10, %v5492_v25  ;;  %v5490_v8 = vpop.permute.xlu0 %5489 }
 0x336   : > { %5579 = vst.msk [vmem:[#allocation7 + $0x30] sm:$0xf] %vm2868_vm10, %v5490_v8  ;;  %3975 = vrot.lane.b32.xlu1 %v17539_v17, %s15696_s24  ;;  %3973 = vrot.lane.b32.xlu0 %v17541_v41, %s15696_s24 }
 0x338   : > { %v3960_v2 = vpop.permute.xlu1 %3959 }
 0x339   : > { %4046 = vst.msk [vmem:[#allocation7 + $0x48] sm:$0xf] %vm1325_vm4, %v3960_v2  ;;  %v3958_v49 = vpop.permute.xlu0 %3957 }
 0x33a   : > { %4045 = vst.msk [vmem:[#allocation7 + $0x40] sm:$0xf] %vm1325_vm4, %v3958_v49  ;;  %4231 = vrot.lane.b32.xlu1 %v17342_v3, %s15695_s5  ;;  %4229 = vrot.lane.b32.xlu0 %v17344_v62, %s15695_s5 }
 0x33c   : > { %v5804_v58 = vld [vmem:[#allocation7 + $0x38] sm:$0xff]  ;;  %v3526_v26 = vpop.f32.mrf.mxu0  ;;  %v4216_v56 = vpop.permute.xlu1 %4215 }
 0x33d   : > { %v5803_v21 = vld [vmem:[#allocation7 + $0x30] sm:$0xff]  ;;  %v17638_v17 = vadd.f32 %v17229_v16, %v3526_v26  ;;  %4302 = vst.msk [vmem:[#allocation7 + $0x48] sm:$0xf] %vm1582_vm5, %v4216_v56  ;;  %v4214_v41 = vpop.permute.xlu0 %4213 }
 0x33e   : > { %4301 = vst.msk [vmem:[#allocation7 + $0x40] sm:$0xf] %vm1582_vm5, %v4214_v41  ;;  %v3528_v25 = vpop.f32.mrf.mxu0  ;;  %4487 = vrot.lane.b32.xlu1 %v14356_v14, %s15697_s0  ;;  %4485 = vrot.lane.b32.xlu0 %v14355_v55, %s15697_s0  ;;  %v13147_v3 = vcombine.high %v5803_v21, %v5804_v58  ;;  %v13146_v8 = vcombine.low %v5803_v21, %v5804_v58  ;;  %v5110_v21 = vld [vmem:[#allocation4 + $0xf8] sm:$0xff]  ;;  %v5109_v41 = vld [vmem:[#allocation4 + $0xf0] sm:$0xff] }
 0x33f   : > { %v20020_v62 = vmax.f32 %v17638_v17, 0.0 }
 0x340   : > { %13184 = vmatprep.mubr.msk.bf16.mxu1 %vm786_vm0, %v13147_v3  ;;  %v3529_v2 = vpop.f32.mrf.mxu0  ;;  %v4472_v49 = vpop.permute.xlu1 %4471  ;;  %v14358_v3 = vpack.c.bf16 %v5110_v21, %v5110_v21 }
 0x341   : > { %3613 = vst.msk [vmem:[#allocation4 + $0x139] sm:$0xff] %vm786_vm0, %v20020_v62  ;;  %v17650_v26 = vadd.f32 %v17229_v16, %v3529_v2  ;;  %v4470_v14 = vpop.permute.xlu0 %4469  ;;  %6157 = vmatmul.mubr.bf16.gmra.mxu1 %v13146_v8  ;;  %v14357_v8 = vpack.c.bf16 %v5109_v41, %v5109_v41 }
 0x342   : > { %4558 = vst.msk [vmem:[#allocation7 + $0x48] sm:$0xf] %vm1839_vm6, %v4472_v49  ;;  %4557 = vst.msk [vmem:[#allocation7 + $0x40] sm:$0xf] %vm1839_vm6, %v4470_v14  ;;  %v3531_v55 = vpop.f32.mrf.mxu0  ;;  %4743 = vrot.lane.b32.xlu1 %v17606_v9, %s15698_s1  ;;  %4741 = vrot.lane.b32.xlu0 %v17608_v18, %s15698_s1  ;;  %v5366_v14 = vld [vmem:[#allocation4 + $0xf9] sm:$0xff] }
 0x343   : > { %v20019_v58 = vmax.f32 %v17650_v26, 0.0  ;;  %v5365_v55 = vld [vmem:[#allocation4 + $0xf1] sm:$0xff] }
 0x344   : > { %v4728_v56 = vpop.permute.xlu1 %4727  ;;  %v17675_v21 = vpack.c.bf16 %v5365_v55, %v5365_v55 }
 0x345   : > { %3614 = vst.msk [vmem:[#allocation4 + $0x141] sm:$0xff] %vm786_vm0, %v20019_v58  ;;  %v4726_v16 = vpop.permute.xlu0 %4725  ;;  %v17673_v58 = vpack.c.bf16 %v5366_v14, %v5366_v14 }
 0x346   : > { %4814 = vst.msk [vmem:[#allocation7 + $0x48] sm:$0xf] %vm2096_vm7, %v4728_v56  ;;  %4813 = vst.msk [vmem:[#allocation7 + $0x40] sm:$0xf] %vm2096_vm7, %v4726_v16  ;;  %4999 = vrot.lane.b32.xlu1 %v17413_v15, %s15699_s30  ;;  %4997 = vrot.lane.b32.xlu0 %v17415_v46, %s15699_s30 }
 0x348   : > { %v4984_v25 = vpop.permute.xlu1 %4983  ;;  %v3647_v2 = vld [vmem:[#allocation4 + $0x138] sm:$0xff] }
 0x349   : > { %5070 = vst.msk [vmem:[#allocation7 + $0x48] sm:$0xf] %vm2353_vm8, %v4984_v25  ;;  %v4982_v49 = vpop.permute.xlu0 %4981  ;;  %v14175_v56 = vpack.c.bf16 %v3647_v2, %v3647_v2 }
 0x34a   : > { %5069 = vst.msk [vmem:[#allocation7 + $0x40] sm:$0xf] %vm2353_vm8, %v4982_v49  ;;  %5255 = vrot.lane.b32.xlu1 %v14358_v3, %s15700_s4  ;;  %5253 = vrot.lane.b32.xlu0 %v14357_v8, %s15700_s4 }
 0x34b   : > { %3807 = vst.msk [vmem:[#allocation7 + $0xd0] sm:$0xf] %vm1068_vm3, %v14175_v56 }
 0x34c   : > { %v5240_v16 = vpop.permute.xlu1 %5239  ;;  %v4862_v41 = vld [vmem:[#allocation4 + $0x142] sm:$0xff]  ;;  %v4861_v2 = vld [vmem:[#allocation4 + $0x13a] sm:$0xff] }
 0x34d   : > { %5326 = vst.msk [vmem:[#allocation7 + $0x48] sm:$0xf] %vm2611_vm9, %v5240_v16  ;;  %v5238_v25 = vpop.permute.xlu0 %5237  ;;  %v17678_v62 = vpack.c.bf16 %v4862_v41, %v4862_v41  ;;  %v3648_v7 = vld [vmem:[#allocation4 + $0x140] sm:$0xff]  ;;  %v17685_v49 = vpack.c.bf16 %v4861_v2, %v4861_v2 }
 0x34e   : > { %5325 = vst.msk [vmem:[#allocation7 + $0x40] sm:$0xf] %vm2611_vm9, %v5238_v25  ;;  %5511 = vrot.lane.b32.xlu1 %v17673_v58, %s15701_s26  ;;  %5509 = vrot.lane.b32.xlu0 %v17675_v21, %s15701_s26  ;;  %v14176_v14 = vpack.c.bf16 %v3648_v7, %v3648_v7 }
 0x34f   : > { %5788 = vst.msk [vmem:[#allocation7 + $0xbc] sm:$0xf] %vm1068_vm3, %v17678_v62  ;;  %5787 = vst.msk [vmem:[#allocation7 + $0xb4] sm:$0xf] %vm1068_vm3, %v17685_v49 }
 0x350   : > { %v5496_v55 = vpop.permute.xlu1 %5495  ;;  %3808 = vst.msk [vmem:[#allocation7 + $0xd8] sm:$0xf] %vm1068_vm3, %v14176_v14 }
 0x351   : > { %5582 = vst.msk [vmem:[#allocation7 + $0x48] sm:$0xf] %vm2868_vm10, %v5496_v55  ;;  %v5494_v56 = vpop.permute.xlu0 %5493 }
 0x352   : > { %5581 = vst.msk [vmem:[#allocation7 + $0x40] sm:$0xf] %vm2868_vm10, %v5494_v56  ;;  %3979 = vrot.lane.b32.xlu1 %v17606_v9, %s15696_s24  ;;  %3977 = vrot.lane.b32.xlu0 %v17608_v18, %s15696_s24  ;;  %v17707_v9 = vld [vmem:[%s20074_s29] ss:$0 sm:$0xff]  ;;  %v15243_v56 = vld [vmem:[#allocation7 + $0x44] ss:$8 sps:$4 sm:$0xff]  }
 0x353   : > { %13185 = vmatprep.mubr.msk.bf16.mxu1 %vm786_vm0, %v15243_v56  ;;  %v5112_v56 = vld [vmem:[#allocation4 + $0x110] sm:$0xff] }
 0x354   : > { %v3964_v7 = vpop.permute.xlu1 %3963 }
 0x355   : > { %4048 = vst.msk [vmem:[#allocation7 + $0x58] sm:$0xf] %vm1325_vm4, %v3964_v7  ;;  %v3962_v16 = vpop.permute.xlu0 %3961 }
 0x356   : > { %4047 = vst.msk [vmem:[#allocation7 + $0x50] sm:$0xf] %vm1325_vm4, %v3962_v16  ;;  %4235 = vrot.lane.b32.xlu1 %v17413_v15, %s15695_s5  ;;  %4233 = vrot.lane.b32.xlu0 %v17415_v46, %s15695_s5 }
 0x358   : > { %v3534_v41 = vpop.f32.mrf.mxu0  ;;  %v4220_v25 = vpop.permute.xlu1 %4219  ;;  %v5806_v2 = vld [vmem:[#allocation7 + $0x48] sm:$0xff] }
 0x359   : > { %v17710_v18 = vadd.f32 %v17707_v9, %v3534_v41  ;;  %4304 = vst.msk [vmem:[#allocation7 + $0x58] sm:$0xf] %vm1582_vm5, %v4220_v25  ;;  %v4218_v14 = vpop.permute.xlu0 %4217  ;;  %v5805_v55 = vld [vmem:[#allocation7 + $0x40] sm:$0xff] }
 0x35a   : > { %4303 = vst.msk [vmem:[#allocation7 + $0x50] sm:$0xf] %vm1582_vm5, %v4218_v14  ;;  %v3536_v15 = vpop.f32.mrf.mxu0  ;;  %4491 = vrot.lane.b32.xlu1 %v14358_v3, %s15697_s0  ;;  %4489 = vrot.lane.b32.xlu0 %v14357_v8, %s15697_s0  ;;  %v13148_v46 = vcombine.low %v5805_v55, %v5806_v2 }
 0x35b   : > { %v20023_v7 = vmax.f32 %v17710_v18, 0.0  ;;  %v5111_v15 = vld [vmem:[#allocation4 + $0x108] sm:$0xff] }
 0x35c   : > { %v3537_v16 = vpop.f32.mrf.mxu0  ;;  %v4476_v41 = vpop.permute.xlu1 %4475  ;;  %6165 = vmatmul.mubr.bf16.gmra.mxu1 %v13148_v46 }
 0x35d   : > { %3615 = vst.msk [vmem:[#allocation4 + $0x151] sm:$0xff] %vm786_vm0, %v20023_v7  ;;  %v17722_v25 = vadd.f32 %v17707_v9, %v3537_v16  ;;  %v4474_v3 = vpop.permute.xlu0 %4473  ;;  %v14360_v16 = vpack.c.bf16 %v5112_v56, %v5112_v56 }
 0x35e   : > { %4560 = vst.msk [vmem:[#allocation7 + $0x58] sm:$0xf] %vm1839_vm6, %v4476_v41  ;;  %4559 = vst.msk [vmem:[#allocation7 + $0x50] sm:$0xf] %vm1839_vm6, %v4474_v3  ;;  %v3539_v8 = vpop.f32.mrf.mxu0  ;;  %4747 = vrot.lane.b32.xlu1 %v17673_v58, %s15698_s1  ;;  %4745 = vrot.lane.b32.xlu0 %v17675_v21, %s15698_s1  ;;  %v14359_v41 = vpack.c.bf16 %v5111_v15, %v5111_v15 }
 0x35f   : > { %v20022_v2 = vmax.f32 %v17722_v25, 0.0 }
 0x360   : > { %v4732_v14 = vpop.permute.xlu1 %4731 }
 0x361   : > { %3616 = vst.msk [vmem:[#allocation4 + $0x159] sm:$0xff] %vm786_vm0, %v20022_v2  ;;  %v4730_v55 = vpop.permute.xlu0 %4729  ;;  %v5368_v2 = vld [vmem:[#allocation4 + $0x111] sm:$0xff] }
 0x362   : > { %4816 = vst.msk [vmem:[#allocation7 + $0x58] sm:$0xf] %vm2096_vm7, %v4732_v14  ;;  %4815 = vst.msk [vmem:[#allocation7 + $0x50] sm:$0xf] %vm2096_vm7, %v4730_v55  ;;  %5003 = vrot.lane.b32.xlu1 %v17477_v51, %s15699_s30  ;;  %5001 = vrot.lane.b32.xlu0 %v17484_v42, %s15699_s30  ;;  %v5367_v14 = vld [vmem:[#allocation4 + $0x109] sm:$0xff]  ;;  %v17745_v61 = vpack.c.bf16 %v5368_v2, %v5368_v2 }
 0x363   : > { %v17747_v56 = vpack.c.bf16 %v5367_v14, %v5367_v14 }
 0x364   : > { %v4988_v46 = vpop.permute.xlu1 %4987  ;;  %v3649_v3 = vld [vmem:[#allocation4 + $0x150] sm:$0xff] }
 0x365   : > { %5072 = vst.msk [vmem:[#allocation7 + $0x58] sm:$0xf] %vm2353_vm8, %v4988_v46  ;;  %v4986_v8 = vpop.permute.xlu0 %4985  ;;  %v14177_v7 = vpack.c.bf16 %v3649_v3, %v3649_v3 }
 0x366   : > { %5071 = vst.msk [vmem:[#allocation7 + $0x50] sm:$0xf] %vm2353_vm8, %v4986_v8  ;;  %5259 = vrot.lane.b32.xlu1 %v14360_v16, %s15700_s4  ;;  %5257 = vrot.lane.b32.xlu0 %v14359_v41, %s15700_s4 }
 0x367   : > { %3809 = vst.msk [vmem:[#allocation7 + $0xe0] sm:$0xf] %vm1068_vm3, %v14177_v7 }
 0x368   : > { %v5244_v55 = vpop.permute.xlu1 %5243  ;;  %v4864_v15 = vld [vmem:[#allocation4 + $0x15a] sm:$0xff]  ;;  %v4863_v3 = vld [vmem:[#allocation4 + $0x152] sm:$0xff] }
 0x369   : > { %5328 = vst.msk [vmem:[#allocation7 + $0x58] sm:$0xf] %vm2611_vm9, %v5244_v55  ;;  %v5242_v46 = vpop.permute.xlu0 %5241  ;;  %v17750_v37 = vpack.c.bf16 %v4864_v15, %v4864_v15  ;;  %v3650_v22 = vld [vmem:[#allocation4 + $0x158] sm:$0xff]  ;;  %v17757_v7 = vpack.c.bf16 %v4863_v3, %v4863_v3 }
 0x36a   : > { %5327 = vst.msk [vmem:[#allocation7 + $0x50] sm:$0xf] %vm2611_vm9, %v5242_v46  ;;  %5515 = vrot.lane.b32.xlu1 %v17745_v61, %s15701_s26  ;;  %5513 = vrot.lane.b32.xlu0 %v17747_v56, %s15701_s26  ;;  %v14178_v2 = vpack.c.bf16 %v3650_v22, %v3650_v22 }
 0x36b   : > { %5790 = vst.msk [vmem:[#allocation7 + $0xcc] sm:$0xf] %vm1068_vm3, %v17750_v37  ;;  %5789 = vst.msk [vmem:[#allocation7 + $0xc4] sm:$0xf] %vm1068_vm3, %v17757_v7 }
 0x36c   : > { %v5500_v8 = vpop.permute.xlu1 %5499  ;;  %3810 = vst.msk [vmem:[#allocation7 + $0xe8] sm:$0xf] %vm1068_vm3, %v14178_v2 }
 0x36d   : > { %5584 = vst.msk [vmem:[#allocation7 + $0x58] sm:$0xf] %vm2868_vm10, %v5500_v8  ;;  %v5498_v14 = vpop.permute.xlu0 %5497  ;;  %v15245_v8 = vld [vmem:[#allocation7 + $0x54] ss:$8 sps:$4 sm:$0xff]  }
 0x36e   : > { %5583 = vst.msk [vmem:[#allocation7 + $0x50] sm:$0xf] %vm2868_vm10, %v5498_v14  ;;  %3983 = vrot.lane.b32.xlu1 %v17673_v58, %s15696_s24  ;;  %3981 = vrot.lane.b32.xlu0 %v17675_v21, %s15696_s24 }
 0x36f   : > { %13186 = vmatprep.mubr.msk.bf16.mxu1 %vm786_vm0, %v15245_v8  ;;  %v5113_v8 = vld [vmem:[#allocation4 + $0x120] sm:$0xff] }
 0x370   : > { %v3968_v22 = vpop.permute.xlu1 %3967 }
 0x371   : > { %4050 = vst.msk [vmem:[#allocation7 + $0x68] sm:$0xf] %vm1325_vm4, %v3968_v22  ;;  %v3966_v55 = vpop.permute.xlu0 %3965 }
 0x372   : > { %4049 = vst.msk [vmem:[#allocation7 + $0x60] sm:$0xf] %vm1325_vm4, %v3966_v55  ;;  %4239 = vrot.lane.b32.xlu1 %v17477_v51, %s15695_s5  ;;  %4237 = vrot.lane.b32.xlu0 %v17484_v42, %s15695_s5 }
 0x374   : > { %v3542_v15 = vpop.f32.mrf.mxu0  ;;  %v4224_v46 = vpop.permute.xlu1 %4223  ;;  %v5808_v3 = vld [vmem:[#allocation7 + $0x58] sm:$0xff] }
 0x375   : > { %v17777_v58 = vadd.f32 %v17707_v9, %v3542_v15  ;;  %4306 = vst.msk [vmem:[#allocation7 + $0x68] sm:$0xf] %vm1582_vm5, %v4224_v46  ;;  %v4222_v21 = vpop.permute.xlu0 %4221  ;;  %v5807_v2 = vld [vmem:[#allocation7 + $0x50] sm:$0xff] }
 0x376   : > { %4305 = vst.msk [vmem:[#allocation7 + $0x60] sm:$0xf] %vm1582_vm5, %v4222_v21  ;;  %v3544_v14 = vpop.f32.mrf.mxu0  ;;  %4495 = vrot.lane.b32.xlu1 %v14360_v16, %s15697_s0  ;;  %4493 = vrot.lane.b32.xlu0 %v14359_v41, %s15697_s0  ;;  %v13150_v51 = vcombine.low %v5807_v2, %v5808_v3  ;;  %v5114_v2 = vld [vmem:[#allocation4 + $0x128] sm:$0xff] }
 0x377   : > { %v20028_v42 = vmax.f32 %v17777_v58, 0.0 }
 0x378   : > { %v3545_v22 = vpop.f32.mrf.mxu0  ;;  %v4480_v55 = vpop.permute.xlu1 %4479  ;;  %6173 = vmatmul.mubr.bf16.gmra.mxu1 %v13150_v51  ;;  %v14362_v51 = vpack.c.bf16 %v5114_v2, %v5114_v2 }
 0x379   : > { %3617 = vst.msk [vmem:[#allocation4 + $0x169] sm:$0xff] %vm786_vm0, %v20028_v42  ;;  %v17789_v15 = vadd.f32 %v17707_v9, %v3545_v22  ;;  %v4478_v16 = vpop.permute.xlu0 %4477  ;;  %v14361_v22 = vpack.c.bf16 %v5113_v8, %v5113_v8 }
 0x37a   : > { %4562 = vst.msk [vmem:[#allocation7 + $0x68] sm:$0xf] %vm1839_vm6, %v4480_v55  ;;  %4561 = vst.msk [vmem:[#allocation7 + $0x60] sm:$0xf] %vm1839_vm6, %v4478_v16  ;;  %v3547_v41 = vpop.f32.mrf.mxu0  ;;  %4751 = vrot.lane.b32.xlu1 %v17745_v61, %s15698_s1  ;;  %4749 = vrot.lane.b32.xlu0 %v17747_v56, %s15698_s1 }
 0x37b   : > { %v20027_v46 = vmax.f32 %v17789_v15, 0.0  ;;  %v5370_v41 = vld [vmem:[#allocation4 + $0x129] sm:$0xff] }
 0x37c   : > { %v4736_v3 = vpop.permute.xlu1 %4735  ;;  %v17812_v42 = vpack.c.bf16 %v5370_v41, %v5370_v41 }
 0x37d   : > { %3618 = vst.msk [vmem:[#allocation4 + $0x171] sm:$0xff] %vm786_vm0, %v20027_v46  ;;  %v4734_v21 = vpop.permute.xlu0 %4733 }
 0x37e   : > { %4818 = vst.msk [vmem:[#allocation7 + $0x68] sm:$0xf] %vm2096_vm7, %v4736_v3  ;;  %4817 = vst.msk [vmem:[#allocation7 + $0x60] sm:$0xf] %vm2096_vm7, %v4734_v21  ;;  %5007 = vrot.lane.b32.xlu1 %v17544_v20, %s15699_s30  ;;  %5005 = vrot.lane.b32.xlu0 %v17551_v36, %s15699_s30  ;;  %v5369_v3 = vld [vmem:[#allocation4 + $0x121] sm:$0xff] }
 0x37f   : > { %v17814_v2 = vpack.c.bf16 %v5369_v3, %v5369_v3 }
 0x380   : > { %v4992_v14 = vpop.permute.xlu1 %4991  ;;  %v3651_v55 = vld [vmem:[#allocation4 + $0x168] sm:$0xff] }
 0x381   : > { %5074 = vst.msk [vmem:[#allocation7 + $0x68] sm:$0xf] %vm2353_vm8, %v4992_v14  ;;  %v4990_v16 = vpop.permute.xlu0 %4989  ;;  %v14179_v46 = vpack.c.bf16 %v3651_v55, %v3651_v55 }
 0x382   : > { %5073 = vst.msk [vmem:[#allocation7 + $0x60] sm:$0xf] %vm2353_vm8, %v4990_v16  ;;  %5263 = vrot.lane.b32.xlu1 %v14362_v51, %s15700_s4  ;;  %5261 = vrot.lane.b32.xlu0 %v14361_v22, %s15700_s4 }
 0x383   : > { %3811 = vst.msk [vmem:[#allocation7 + $0xf0] sm:$0xf] %vm1068_vm3, %v14179_v46 }
 0x384   : > { %v5248_v21 = vpop.permute.xlu1 %5247  ;;  %v4866_v8 = vld [vmem:[#allocation4 + $0x172] sm:$0xff]  ;;  %v4865_v55 = vld [vmem:[#allocation4 + $0x16a] sm:$0xff] }
 0x385   : > { %5330 = vst.msk [vmem:[#allocation7 + $0x68] sm:$0xf] %vm2611_vm9, %v5248_v21  ;;  %v5246_v14 = vpop.permute.xlu0 %5245  ;;  %v17817_v24 = vpack.c.bf16 %v4866_v8, %v4866_v8  ;;  %v3652_v4 = vld [vmem:[#allocation4 + $0x170] sm:$0xff]  ;;  %v17824_v46 = vpack.c.bf16 %v4865_v55, %v4865_v55 }
 0x386   : > { %5329 = vst.msk [vmem:[#allocation7 + $0x60] sm:$0xf] %vm2611_vm9, %v5246_v14  ;;  %5519 = vrot.lane.b32.xlu1 %v17812_v42, %s15701_s26  ;;  %5517 = vrot.lane.b32.xlu0 %v17814_v2, %s15701_s26  ;;  %v14180_v16 = vpack.c.bf16 %v3652_v4, %v3652_v4 }
 0x387   : > { %5792 = vst.msk [vmem:[#allocation7 + $0xdc] sm:$0xf] %vm1068_vm3, %v17817_v24  ;;  %5791 = vst.msk [vmem:[#allocation7 + $0xd4] sm:$0xf] %vm1068_vm3, %v17824_v46 }
 0x388   : > { %v5504_v41 = vpop.permute.xlu1 %5503  ;;  %3812 = vst.msk [vmem:[#allocation7 + $0xf8] sm:$0xf] %vm1068_vm3, %v14180_v16 }
 0x389   : > { %5586 = vst.msk [vmem:[#allocation7 + $0x68] sm:$0xf] %vm2868_vm10, %v5504_v41  ;;  %v5502_v3 = vpop.permute.xlu0 %5501  ;;  %v15247_v41 = vld [vmem:[#allocation7 + $0x64] ss:$8 sps:$4 sm:$0xff]  }
 0x38a   : > { %5585 = vst.msk [vmem:[#allocation7 + $0x60] sm:$0xf] %vm2868_vm10, %v5502_v3  ;;  %3987 = vrot.lane.b32.xlu1 %v17745_v61, %s15696_s24  ;;  %3985 = vrot.lane.b32.xlu0 %v17747_v56, %s15696_s24 }
 0x38b   : > { %13187 = vmatprep.mubr.msk.bf16.mxu1 %vm786_vm0, %v15247_v41 }
 0x38c   : > { %v3972_v4 = vpop.permute.xlu1 %3971 }
 0x38d   : > { %4052 = vst.msk [vmem:[#allocation7 + $0x78] sm:$0xf] %vm1325_vm4, %v3972_v4  ;;  %v3970_v21 = vpop.permute.xlu0 %3969 }
 0x38e   : > { %4051 = vst.msk [vmem:[#allocation7 + $0x70] sm:$0xf] %vm1325_vm4, %v3970_v21  ;;  %4243 = vrot.lane.b32.xlu1 %v17544_v20, %s15695_s5  ;;  %4241 = vrot.lane.b32.xlu0 %v17551_v36, %s15695_s5 }
 0x390   : > { %v3550_v8 = vpop.f32.mrf.mxu0  ;;  %v4228_v14 = vpop.permute.xlu1 %4227  ;;  %v5810_v55 = vld [vmem:[#allocation7 + $0x68] sm:$0xff] }
 0x391   : > { %v17844_v61 = vadd.f32 %v17707_v9, %v3550_v8  ;;  %4308 = vst.msk [vmem:[#allocation7 + $0x78] sm:$0xf] %vm1582_vm5, %v4228_v14  ;;  %v4226_v56 = vpop.permute.xlu0 %4225  ;;  %v5809_v16 = vld [vmem:[#allocation7 + $0x60] sm:$0xff] }
 0x392   : > { %4307 = vst.msk [vmem:[#allocation7 + $0x70] sm:$0xf] %vm1582_vm5, %v4226_v56  ;;  %v3552_v3 = vpop.f32.mrf.mxu0  ;;  %4499 = vrot.lane.b32.xlu1 %v14362_v51, %s15697_s0  ;;  %4497 = vrot.lane.b32.xlu0 %v14361_v22, %s15697_s0  ;;  %v13152_v20 = vcombine.low %v5809_v16, %v5810_v55  ;;  %v5116_v56 = vld [vmem:[#allocation4 + $0x140] sm:$0xff]  ;;  %v5115_v16 = vld [vmem:[#allocation4 + $0x138] sm:$0xff] }
 0x393   : > { %v20032_v36 = vmax.f32 %v17844_v61, 0.0  ;;  %v14364_v3 = vpack.c.bf16 %v5116_v56, %v5116_v56 }
 0x394   : > { %v3553_v4 = vpop.f32.mrf.mxu0  ;;  %v4484_v21 = vpop.permute.xlu1 %4483  ;;  %6181 = vmatmul.mubr.bf16.gmra.mxu1 %v13152_v20  ;;  %v14363_v20 = vpack.c.bf16 %v5115_v16, %v5115_v16 }
 0x395   : > { %3619 = vst.msk [vmem:[#allocation4 + $0x181] sm:$0xff] %vm786_vm0, %v20032_v36  ;;  %v17856_v8 = vadd.f32 %v17707_v9, %v3553_v4  ;;  %v4482_v51 = vpop.permute.xlu0 %4481 }
 0x396   : > { %4564 = vst.msk [vmem:[#allocation7 + $0x78] sm:$0xf] %vm1839_vm6, %v4484_v21  ;;  %4563 = vst.msk [vmem:[#allocation7 + $0x70] sm:$0xf] %vm1839_vm6, %v4482_v51  ;;  %v3555_v22 = vpop.f32.mrf.mxu0  ;;  %4755 = vrot.lane.b32.xlu1 %v17812_v42, %s15698_s1  ;;  %4753 = vrot.lane.b32.xlu0 %v17814_v2, %s15698_s1  ;;  %v5372_v21 = vld [vmem:[#allocation4 + $0x141] sm:$0xff]  ;;  %v5371_v51 = vld [vmem:[#allocation4 + $0x139] sm:$0xff] }
 0x397   : > { %v20031_v14 = vmax.f32 %v17856_v8, 0.0 }
 0x398   : > { %v4740_v55 = vpop.permute.xlu1 %4739 }
 0x399   : > { %3620 = vst.msk [vmem:[#allocation4 + $0x189] sm:$0xff] %vm786_vm0, %v20031_v14  ;;  %v4738_v9 = vpop.permute.xlu0 %4737 }
 0x39a   : > { %4820 = vst.msk [vmem:[#allocation7 + $0x78] sm:$0xf] %vm2096_vm7, %v4740_v55  ;;  %4819 = vst.msk [vmem:[#allocation7 + $0x70] sm:$0xf] %vm2096_vm7, %v4738_v9  ;;  %5011 = vrot.lane.b32.xlu1 %v17611_v12, %s15699_s30  ;;  %5009 = vrot.lane.b32.xlu0 %v17618_v34, %s15699_s30  ;;  %v17878_v55 = vpack.c.bf16 %v5372_v21, %v5372_v21  ;;  %v17880_v9 = vpack.c.bf16 %v5371_v51, %v5371_v51  ;;  %v17911_v51 = vld [vmem:[%s20075_s21] ss:$0 sm:$0xff] }
 0x39c   : > { %v4996_v41 = vpop.permute.xlu1 %4995 }
 0x39d   : > { %5076 = vst.msk [vmem:[#allocation7 + $0x78] sm:$0xf] %vm2353_vm8, %v4996_v41  ;;  %v4994_v4 = vpop.permute.xlu0 %4993 }
 0x39e   : > { %5075 = vst.msk [vmem:[#allocation7 + $0x70] sm:$0xf] %vm2353_vm8, %v4994_v4  ;;  %5267 = vrot.lane.b32.xlu1 %v14364_v3, %s15700_s4  ;;  %5265 = vrot.lane.b32.xlu0 %v14363_v20, %s15700_s4 }
 0x3a0   : > { %v5252_v22 = vpop.permute.xlu1 %5251  ;;  %v5633_v14 = vld [vmem:[#allocation4 + $0x182] sm:$0xff]  ;;  %v5634_v36 = vld [vmem:[#allocation4 + $0x18a] sm:$0xff] }
 0x3a1   : > { %5332 = vst.msk [vmem:[#allocation7 + $0x78] sm:$0xf] %vm2611_vm9, %v5252_v22  ;;  %v5250_v56 = vpop.permute.xlu0 %5249  ;;  %v17883_v16 = vpack.c.bf16 %v5634_v36, %v5634_v36  ;;  %v17885_v41 = vpack.c.bf16 %v5633_v14, %v5633_v14 }
 0x3a2   : > { %5331 = vst.msk [vmem:[#allocation7 + $0x70] sm:$0xf] %vm2611_vm9, %v5250_v56  ;;  %5523 = vrot.lane.b32.xlu1 %v17878_v55, %s15701_s26  ;;  %5521 = vrot.lane.b32.xlu0 %v17880_v9, %s15701_s26 }
 0x3a3   : > { %5794 = vst.msk [vmem:[#allocation7 + $0xec] sm:$0xf] %vm1068_vm3, %v17883_v16  ;;  %5793 = vst.msk [vmem:[#allocation7 + $0xe4] sm:$0xf] %vm1068_vm3, %v17885_v41 }
 0x3a4   : > { %v5508_v4 = vpop.permute.xlu1 %5507 }
 0x3a5   : > { %5588 = vst.msk [vmem:[#allocation7 + $0x78] sm:$0xf] %vm2868_vm10, %v5508_v4  ;;  %v5506_v36 = vpop.permute.xlu0 %5505 }
 0x3a6   : > { %5587 = vst.msk [vmem:[#allocation7 + $0x70] sm:$0xf] %vm2868_vm10, %v5506_v36  ;;  %3991 = vrot.lane.b32.xlu1 %v17812_v42, %s15696_s24  ;;  %3989 = vrot.lane.b32.xlu0 %v17814_v2, %s15696_s24 }
 0x3a8   : > { %v3976_v14 = vpop.permute.xlu1 %3975 }
 0x3a9   : > { %4054 = vst.msk [vmem:[#allocation7 + $0x88] sm:$0xf] %vm1325_vm4, %v3976_v14  ;;  %v3974_v21 = vpop.permute.xlu0 %3973  ;;  %v15249_v14 = vld [vmem:[#allocation7 + $0x74] ss:$8 sps:$4 sm:$0xff]  }
 0x3aa   : > { %4053 = vst.msk [vmem:[#allocation7 + $0x80] sm:$0xf] %vm1325_vm4, %v3974_v21  ;;  %4247 = vrot.lane.b32.xlu1 %v17611_v12, %s15695_s5  ;;  %4245 = vrot.lane.b32.xlu0 %v17618_v34, %s15695_s5 }
 0x3ab   : > { %13188 = vmatprep.mubr.msk.bf16.mxu1 %vm786_vm0, %v15249_v14 }
 0x3ac   : > { %v4232_v42 = vpop.permute.xlu1 %4231  ;;  %v6134_v22 = vpop.f32.mrf.mxu1  ;;  %v5812_v2 = vld [vmem:[#allocation7 + $0x78] sm:$0xff] }
 0x3ad   : > { %4310 = vst.msk [vmem:[#allocation7 + $0x88] sm:$0xf] %vm1582_vm5, %v4232_v42  ;;  %v6135_v56 = vadd.f32 %v17911_v51, %v6134_v22  ;;  %v4230_v4 = vpop.permute.xlu0 %4229  ;;  %v5811_v36 = vld [vmem:[#allocation7 + $0x70] sm:$0xff] }
 0x3ae   : > { %4309 = vst.msk [vmem:[#allocation7 + $0x80] sm:$0xf] %vm1582_vm5, %v4230_v4  ;;  %4503 = vrot.lane.b32.xlu1 %v14364_v3, %s15697_s0  ;;  %v6136_v12 = vpop.f32.mrf.mxu1  ;;  %4501 = vrot.lane.b32.xlu0 %v14363_v20, %s15697_s0  ;;  %v13154_v34 = vcombine.low %v5811_v36, %v5812_v2  ;;  %v5117_v4 = vld [vmem:[#allocation4 + $0x150] sm:$0xff] }
 0x3af   : > { %v6261_v21 = vmax.f32 %v6135_v56, 0.0  ;;  %v14365_v14 = vpack.c.bf16 %v5117_v4, %v5117_v4 }
 0x3b0   : > { %v4488_v38 = vpop.permute.xlu1 %4487  ;;  %v6137_v32 = vpop.f32.mrf.mxu1  ;;  %6189 = vmatmul.mubr.bf16.gmra.mxu1 %v13154_v34 }
 0x3b1   : > { %6293 = vst.msk [vmem:[#allocation4 + $0x19] sm:$0xff] %vm786_vm0, %v6261_v21  ;;  %v6138_v42 = vadd.f32 %v17911_v51, %v6137_v32  ;;  %v4486_v22 = vpop.permute.xlu0 %4485  ;;  %v5374_v21 = vld [vmem:[#allocation4 + $0x159] sm:$0xff] }
 0x3b2   : > { %4566 = vst.msk [vmem:[#allocation7 + $0x88] sm:$0xf] %vm1839_vm6, %v4488_v38  ;;  %4565 = vst.msk [vmem:[#allocation7 + $0x80] sm:$0xf] %vm1839_vm6, %v4486_v22  ;;  %4759 = vrot.lane.b32.xlu1 %v17878_v55, %s15698_s1  ;;  %v6139_v3 = vpop.f32.mrf.mxu1  ;;  %4757 = vrot.lane.b32.xlu0 %v17880_v9, %s15698_s1  ;;  %v5118_v38 = vld [vmem:[#allocation4 + $0x158] sm:$0xff] }
 0x3b3   : > { %v6262_v20 = vmax.f32 %v6138_v42, 0.0  ;;  %v14366_v36 = vpack.c.bf16 %v5118_v38, %v5118_v38  ;;  %v5373_v42 = vld [vmem:[#allocation4 + $0x151] sm:$0xff] }
 0x3b4   : > { %v4744_v2 = vpop.permute.xlu1 %4743 }
 0x3b5   : > { %6294 = vst.msk [vmem:[#allocation4 + $0x21] sm:$0xff] %vm786_vm0, %v6262_v20  ;;  %v4742_v56 = vpop.permute.xlu0 %4741  ;;  %v17942_v20 = vpack.c.bf16 %v5374_v21, %v5374_v21 }
 0x3b6   : > { %4822 = vst.msk [vmem:[#allocation7 + $0x88] sm:$0xf] %vm2096_vm7, %v4744_v2  ;;  %4821 = vst.msk [vmem:[#allocation7 + $0x80] sm:$0xf] %vm2096_vm7, %v4742_v56  ;;  %5015 = vrot.lane.b32.xlu1 %v17678_v62, %s15699_s30  ;;  %5013 = vrot.lane.b32.xlu0 %v17685_v49, %s15699_s30  ;;  %v17944_v2 = vpack.c.bf16 %v5373_v42, %v5373_v42 }
 0x3b8   : > { %v5000_v32 = vpop.permute.xlu1 %4999  ;;  %v7029_v12 = vld [vmem:[#allocation4 + $0x18] sm:$0xff] }
 0x3b9   : > { %5078 = vst.msk [vmem:[#allocation7 + $0x88] sm:$0xf] %vm2353_vm8, %v5000_v32  ;;  %v4998_v34 = vpop.permute.xlu0 %4997  ;;  %v17935_v22 = vpack.c.bf16 %v7029_v12, %v7029_v12 }
 0x3ba   : > { %5077 = vst.msk [vmem:[#allocation7 + $0x80] sm:$0xf] %vm2353_vm8, %v4998_v34  ;;  %5271 = vrot.lane.b32.xlu1 %v14366_v36, %s15700_s4  ;;  %5269 = vrot.lane.b32.xlu0 %v14365_v14, %s15700_s4 }
 0x3bb   : > { %6487 = vst.msk [vmem:[#allocation7 + $0x10] sm:$0xf] %vm1068_vm3, %v17935_v22 }
 0x3bc   : > { %v5256_v3 = vpop.permute.xlu1 %5255  ;;  %v7030_v56 = vld [vmem:[#allocation4 + $0x20] sm:$0xff] }
 0x3bd   : > { %5334 = vst.msk [vmem:[#allocation7 + $0x88] sm:$0xf] %vm2611_vm9, %v5256_v3  ;;  %v5254_v38 = vpop.permute.xlu0 %5253  ;;  %v17947_v4 = vpack.c.bf16 %v7030_v56, %v7030_v56 }
 0x3be   : > { %5333 = vst.msk [vmem:[#allocation7 + $0x80] sm:$0xf] %vm2611_vm9, %v5254_v38  ;;  %5527 = vrot.lane.b32.xlu1 %v17942_v20, %s15701_s26  ;;  %5525 = vrot.lane.b32.xlu0 %v17944_v2, %s15701_s26 }
 0x3bf   : > { %6488 = vst.msk [vmem:[#allocation7 + $0x18] sm:$0xf] %vm1068_vm3, %v17947_v4 }
 0x3c0   : > { %v5512_v32 = vpop.permute.xlu1 %5511 }
 0x3c1   : > { %5590 = vst.msk [vmem:[#allocation7 + $0x88] sm:$0xf] %vm2868_vm10, %v5512_v32  ;;  %v5510_v12 = vpop.permute.xlu0 %5509 }
 0x3c2   : > { %5589 = vst.msk [vmem:[#allocation7 + $0x80] sm:$0xf] %vm2868_vm10, %v5510_v12  ;;  %3995 = vrot.lane.b32.xlu1 %v17878_v55, %s15696_s24  ;;  %3993 = vrot.lane.b32.xlu0 %v17880_v9, %s15696_s24  ;;  %v15251_v9 = vld [vmem:[#allocation7 + $0x84] ss:$8 sps:$4 sm:$0xff]  }
 0x3c3   : > { %13189 = vmatprep.mubr.msk.bf16.mxu1 %vm786_vm0, %v15251_v9  ;;  %v5119_v9 = vld [vmem:[#allocation4 + $0x168] sm:$0xff] }
 0x3c4   : > { %v3980_v34 = vpop.permute.xlu1 %3979 }
 0x3c5   : > { %4056 = vst.msk [vmem:[#allocation7 + $0x98] sm:$0xf] %vm1325_vm4, %v3980_v34  ;;  %v3978_v21 = vpop.permute.xlu0 %3977 }
 0x3c6   : > { %4055 = vst.msk [vmem:[#allocation7 + $0x90] sm:$0xf] %vm1325_vm4, %v3978_v21  ;;  %4251 = vrot.lane.b32.xlu1 %v17678_v62, %s15695_s5  ;;  %4249 = vrot.lane.b32.xlu0 %v17685_v49, %s15695_s5 }
 0x3c8   : > { %v4236_v42 = vpop.permute.xlu1 %4235  ;;  %v5814_v3 = vld [vmem:[#allocation7 + $0x88] sm:$0xff] }
 0x3c9   : > { %4312 = vst.msk [vmem:[#allocation7 + $0x98] sm:$0xf] %vm1582_vm5, %v4236_v42  ;;  %v4234_v55 = vpop.permute.xlu0 %4233  ;;  %v6142_v56 = vpop.f32.mrf.mxu1  ;;  %v5813_v38 = vld [vmem:[#allocation7 + $0x80] sm:$0xff] }
 0x3ca   : > { %4311 = vst.msk [vmem:[#allocation7 + $0x90] sm:$0xf] %vm1582_vm5, %v4234_v55  ;;  %v6143_v32 = vadd.f32 %v17911_v51, %v6142_v56  ;;  %4507 = vrot.lane.b32.xlu1 %v14366_v36, %s15697_s0  ;;  %4505 = vrot.lane.b32.xlu0 %v14365_v14, %s15697_s0  ;;  %v13156_v62 = vcombine.low %v5813_v38, %v5814_v3  ;;  %v5120_v38 = vld [vmem:[#allocation4 + $0x170] sm:$0xff] }
 0x3cb   : > { %v6144_v12 = vpop.f32.mrf.mxu1 }
 0x3cc   : > { %v6263_v49 = vmax.f32 %v6143_v32, 0.0  ;;  %v4492_v34 = vpop.permute.xlu1 %4491  ;;  %6197 = vmatmul.mubr.bf16.gmra.mxu1 %v13156_v62  ;;  %v14368_v62 = vpack.c.bf16 %v5120_v38, %v5120_v38  ;;  %v14367_v12 = vpack.c.bf16 %v5119_v9, %v5119_v9 }
 0x3cd   : > { %4568 = vst.msk [vmem:[#allocation7 + $0x98] sm:$0xf] %vm1839_vm6, %v4492_v34  ;;  %v4490_v21 = vpop.permute.xlu0 %4489  ;;  %v6145_v42 = vpop.f32.mrf.mxu1  ;;  %v5376_v34 = vld [vmem:[#allocation4 + $0x171] sm:$0xff] }
 0x3ce   : > { %6295 = vst.msk [vmem:[#allocation4 + $0x31] sm:$0xff] %vm786_vm0, %v6263_v49  ;;  %v6146_v55 = vadd.f32 %v17911_v51, %v6145_v42  ;;  %4763 = vrot.lane.b32.xlu1 %v17942_v20, %s15698_s1  ;;  %4761 = vrot.lane.b32.xlu0 %v17944_v2, %s15698_s1 }
 0x3cf   : > { %4567 = vst.msk [vmem:[#allocation7 + $0x90] sm:$0xf] %vm1839_vm6, %v4490_v21  ;;  %v6147_v36 = vpop.f32.mrf.mxu1  ;;  %v5375_v21 = vld [vmem:[#allocation4 + $0x169] sm:$0xff] }
 0x3d0   : > { %v6264_v14 = vmax.f32 %v6146_v55, 0.0  ;;  %v4748_v3 = vpop.permute.xlu1 %4747 }
 0x3d1   : > { %4824 = vst.msk [vmem:[#allocation7 + $0x98] sm:$0xf] %vm2096_vm7, %v4748_v3  ;;  %v4746_v56 = vpop.permute.xlu0 %4745  ;;  %v17995_v3 = vpack.c.bf16 %v5375_v21, %v5375_v21 }
 0x3d2   : > { %6296 = vst.msk [vmem:[#allocation4 + $0x39] sm:$0xff] %vm786_vm0, %v6264_v14  ;;  %5019 = vrot.lane.b32.xlu1 %v17750_v37, %s15699_s30  ;;  %5017 = vrot.lane.b32.xlu0 %v17757_v7, %s15699_s30  ;;  %v17993_v14 = vpack.c.bf16 %v5376_v34, %v5376_v34 }
 0x3d3   : > { %4823 = vst.msk [vmem:[#allocation7 + $0x90] sm:$0xf] %vm2096_vm7, %v4746_v56 }
 0x3d4   : > { %v5004_v32 = vpop.permute.xlu1 %5003 }
 0x3d5   : > { %5080 = vst.msk [vmem:[#allocation7 + $0x98] sm:$0xf] %vm2353_vm8, %v5004_v32  ;;  %v5002_v49 = vpop.permute.xlu0 %5001  ;;  %v6329_v42 = vld [vmem:[#allocation4 + $0x30] sm:$0xff] }
 0x3d6   : > { %5079 = vst.msk [vmem:[#allocation7 + $0x90] sm:$0xf] %vm2353_vm8, %v5002_v49  ;;  %5275 = vrot.lane.b32.xlu1 %v14368_v62, %s15700_s4  ;;  %5273 = vrot.lane.b32.xlu0 %v14367_v12, %s15700_s4  ;;  %v14441_v55 = vpack.c.bf16 %v6329_v42, %v6329_v42 }
 0x3d8   : > { %v5260_v36 = vpop.permute.xlu1 %5259  ;;  %6489 = vst.msk [vmem:[#allocation7 + $0x20] sm:$0xf] %vm1068_vm3, %v14441_v55 }
 0x3d9   : > { %5336 = vst.msk [vmem:[#allocation7 + $0x98] sm:$0xf] %vm2611_vm9, %v5260_v36  ;;  %v5258_v56 = vpop.permute.xlu0 %5257  ;;  %v7544_v38 = vld [vmem:[#allocation4 + $0x3a] sm:$0xff]  ;;  %v7543_v32 = vld [vmem:[#allocation4 + $0x32] sm:$0xff] }
 0x3da   : > { %5335 = vst.msk [vmem:[#allocation7 + $0x90] sm:$0xf] %vm2611_vm9, %v5258_v56  ;;  %5531 = vrot.lane.b32.xlu1 %v17993_v14, %s15701_s26  ;;  %5529 = vrot.lane.b32.xlu0 %v17995_v3, %s15701_s26  ;;  %v18004_v9 = vpack.c.bf16 %v7544_v38, %v7544_v38  ;;  %v6330_v49 = vld [vmem:[#allocation4 + $0x38] sm:$0xff]  ;;  %v18006_v34 = vpack.c.bf16 %v7543_v32, %v7543_v32 }
 0x3db   : > { %v14442_v21 = vpack.c.bf16 %v6330_v49, %v6330_v49 }
 0x3dc   : > { %v5516_v42 = vpop.permute.xlu1 %5515  ;;  %8470 = vst.msk [vmem:[#allocation7 + $0xc] sm:$0xf] %vm1068_vm3, %v18004_v9  ;;  %8469 = vst.msk [vmem:[#allocation7 + $0x4] sm:$0xf] %vm1068_vm3, %v18006_v34 }
 0x3dd   : > { %5592 = vst.msk [vmem:[#allocation7 + $0x98] sm:$0xf] %vm2868_vm10, %v5516_v42  ;;  %v5514_v55 = vpop.permute.xlu0 %5513 }
 0x3de   : > { %6490 = vst.msk [vmem:[#allocation7 + $0x28] sm:$0xf] %vm1068_vm3, %v14442_v21  ;;  %3999 = vrot.lane.b32.xlu1 %v17942_v20, %s15696_s24  ;;  %3997 = vrot.lane.b32.xlu0 %v17944_v2, %s15696_s24  ;;  %v15253_v2 = vld [vmem:[#allocation7 + $0x94] ss:$8 sps:$4 sm:$0xff]  }
 0x3df   : > { %5591 = vst.msk [vmem:[#allocation7 + $0x90] sm:$0xf] %vm2868_vm10, %v5514_v55  ;;  %13190 = vmatprep.mubr.msk.bf16.mxu1 %vm786_vm0, %v15253_v2  ;;  %v5121_v2 = vld [vmem:[#allocation4 + $0x180] sm:$0xff] }
 0x3e0   : > { %v3984_v36 = vpop.permute.xlu1 %3983 }
 0x3e1   : > { %4058 = vst.msk [vmem:[#allocation7 + $0xa8] sm:$0xf] %vm1325_vm4, %v3984_v36  ;;  %v3982_v56 = vpop.permute.xlu0 %3981 }
 0x3e2   : > { %4057 = vst.msk [vmem:[#allocation7 + $0xa0] sm:$0xf] %vm1325_vm4, %v3982_v56  ;;  %4255 = vrot.lane.b32.xlu1 %v17750_v37, %s15695_s5  ;;  %4253 = vrot.lane.b32.xlu0 %v17757_v7, %s15695_s5 }
 0x3e4   : > { %v4240_v38 = vpop.permute.xlu1 %4239  ;;  %v5816_v32 = vld [vmem:[#allocation7 + $0x98] sm:$0xff] }
 0x3e5   : > { %4314 = vst.msk [vmem:[#allocation7 + $0xa8] sm:$0xf] %vm1582_vm5, %v4240_v38  ;;  %v4238_v20 = vpop.permute.xlu0 %4237  ;;  %v6150_v49 = vpop.f32.mrf.mxu1 }
 0x3e6   : > { %v5815_v21 = vld [vmem:[#allocation7 + $0x90] sm:$0xff]  ;;  %4313 = vst.msk [vmem:[#allocation7 + $0xa0] sm:$0xf] %vm1582_vm5, %v4238_v20  ;;  %v6151_v42 = vadd.f32 %v17911_v51, %v6150_v49  ;;  %4511 = vrot.lane.b32.xlu1 %v14368_v62, %s15697_s0  ;;  %4509 = vrot.lane.b32.xlu0 %v14367_v12, %s15697_s0 }
 0x3e7   : > { %v13158_v37 = vcombine.low %v5815_v21, %v5816_v32  ;;  %v6152_v55 = vpop.f32.mrf.mxu1  ;;  %v5122_v21 = vld [vmem:[#allocation4 + $0x188] sm:$0xff] }
 0x3e8   : > { %v6265_v7 = vmax.f32 %v6151_v42, 0.0  ;;  %v4496_v36 = vpop.permute.xlu1 %4495  ;;  %v14369_v55 = vpack.c.bf16 %v5121_v2, %v5121_v2 }
 0x3e9   : > { %6205 = vmatmul.mubr.bf16.gmra.mxu1 %v13158_v37  ;;  %4570 = vst.msk [vmem:[#allocation7 + $0xa8] sm:$0xf] %vm1839_vm6, %v4496_v36  ;;  %v4494_v56 = vpop.permute.xlu0 %4493  ;;  %v6153_v38 = vpop.f32.mrf.mxu1  ;;  %v14370_v37 = vpack.c.bf16 %v5122_v21, %v5122_v21  ;;  %v5378_v36 = vld [vmem:[#allocation4 + $0x189] sm:$0xff] }
 0x3ea   : > { %6297 = vst.msk [vmem:[#allocation4 + $0x49] sm:$0xff] %vm786_vm0, %v6265_v7  ;;  %v6154_v20 = vadd.f32 %v17911_v51, %v6153_v38  ;;  %4767 = vrot.lane.b32.xlu1 %v17993_v14, %s15698_s1  ;;  %4765 = vrot.lane.b32.xlu0 %v17995_v3, %s15698_s1 }
 0x3eb   : > { %4569 = vst.msk [vmem:[#allocation7 + $0xa0] sm:$0xf] %vm1839_vm6, %v4494_v56  ;;  %v6155_v62 = vpop.f32.mrf.mxu1  ;;  %v5377_v56 = vld [vmem:[#allocation4 + $0x181] sm:$0xff] }
 0x3ec   : > { %v6266_v12 = vmax.f32 %v6154_v20, 0.0  ;;  %v4752_v32 = vpop.permute.xlu1 %4751 }
 0x3ed   : > { %4826 = vst.msk [vmem:[#allocation7 + $0xa8] sm:$0xf] %vm2096_vm7, %v4752_v32  ;;  %v4750_v49 = vpop.permute.xlu0 %4749  ;;  %v14401_v32 = vpack.c.bf16 %v5377_v56, %v5377_v56 }
 0x3ee   : > { %6298 = vst.msk [vmem:[#allocation4 + $0x51] sm:$0xff] %vm786_vm0, %v6266_v12  ;;  %5023 = vrot.lane.b32.xlu1 %v17817_v24, %s15699_s30  ;;  %5021 = vrot.lane.b32.xlu0 %v17824_v46, %s15699_s30  ;;  %v14402_v12 = vpack.c.bf16 %v5378_v36, %v5378_v36 }
 0x3ef   : > { %4825 = vst.msk [vmem:[#allocation7 + $0xa0] sm:$0xf] %vm2096_vm7, %v4750_v49 }
 0x3f0   : > { %v5008_v42 = vpop.permute.xlu1 %5007 }
 0x3f1   : > { %5082 = vst.msk [vmem:[#allocation7 + $0xa8] sm:$0xf] %vm2353_vm8, %v5008_v42  ;;  %v5006_v7 = vpop.permute.xlu0 %5005  ;;  %v6331_v38 = vld [vmem:[#allocation4 + $0x48] sm:$0xff] }
 0x3f2   : > { %5081 = vst.msk [vmem:[#allocation7 + $0xa0] sm:$0xf] %vm2353_vm8, %v5006_v7  ;;  %5279 = vrot.lane.b32.xlu1 %v14370_v37, %s15700_s4  ;;  %5277 = vrot.lane.b32.xlu0 %v14369_v55, %s15700_s4  ;;  %v14443_v20 = vpack.c.bf16 %v6331_v38, %v6331_v38 }
 0x3f4   : > { %v5264_v62 = vpop.permute.xlu1 %5263  ;;  %6491 = vst.msk [vmem:[#allocation7 + $0x30] sm:$0xf] %vm1068_vm3, %v14443_v20 }
 0x3f5   : > { %5338 = vst.msk [vmem:[#allocation7 + $0xa8] sm:$0xf] %vm2611_vm9, %v5264_v62  ;;  %v5262_v49 = vpop.permute.xlu0 %5261  ;;  %v7546_v21 = vld [vmem:[#allocation4 + $0x52] sm:$0xff]  ;;  %v7545_v42 = vld [vmem:[#allocation4 + $0x4a] sm:$0xff] }
 0x3f6   : > { %5337 = vst.msk [vmem:[#allocation7 + $0xa0] sm:$0xf] %vm2611_vm9, %v5262_v49  ;;  %5535 = vrot.lane.b32.xlu1 %v14402_v12, %s15701_s26  ;;  %5533 = vrot.lane.b32.xlu0 %v14401_v32, %s15701_s26  ;;  %v18055_v2 = vpack.c.bf16 %v7546_v21, %v7546_v21  ;;  %v6332_v7 = vld [vmem:[#allocation4 + $0x50] sm:$0xff]  ;;  %v18057_v38 = vpack.c.bf16 %v7545_v42, %v7545_v42 }
 0x3f7   : > { %v14444_v36 = vpack.c.bf16 %v6332_v7, %v6332_v7 }
 0x3f8   : > { %v5520_v56 = vpop.permute.xlu1 %5519  ;;  %8472 = vst.msk [vmem:[#allocation7 + $0x1c] sm:$0xf] %vm1068_vm3, %v18055_v2  ;;  %8471 = vst.msk [vmem:[#allocation7 + $0x14] sm:$0xf] %vm1068_vm3, %v18057_v38 }
 0x3f9   : > { %5594 = vst.msk [vmem:[#allocation7 + $0xa8] sm:$0xf] %vm2868_vm10, %v5520_v56  ;;  %v5518_v20 = vpop.permute.xlu0 %5517 }
 0x3fa   : > { %6492 = vst.msk [vmem:[#allocation7 + $0x38] sm:$0xf] %vm1068_vm3, %v14444_v36  ;;  %4003 = vrot.lane.b32.xlu1 %v17993_v14, %s15696_s24  ;;  %4001 = vrot.lane.b32.xlu0 %v17995_v3, %s15696_s24  ;;  %v15255_v3 = vld [vmem:[#allocation7 + $0xa4] ss:$8 sps:$4 sm:$0xff]  }
 0x3fb   : > { %5593 = vst.msk [vmem:[#allocation7 + $0xa0] sm:$0xf] %vm2868_vm10, %v5518_v20  ;;  %13191 = vmatprep.mubr.msk.bf16.mxu1 %vm786_vm0, %v15255_v3 }
 0x3fc   : > { %v3988_v62 = vpop.permute.xlu1 %3987 }
 0x3fd   : > { %4060 = vst.msk [vmem:[#allocation7 + $0xb8] sm:$0xf] %vm1325_vm4, %v3988_v62  ;;  %v3986_v49 = vpop.permute.xlu0 %3985 }
 0x3fe   : > { %4059 = vst.msk [vmem:[#allocation7 + $0xb0] sm:$0xf] %vm1325_vm4, %v3986_v49  ;;  %4259 = vrot.lane.b32.xlu1 %v17817_v24, %s15695_s5  ;;  %4257 = vrot.lane.b32.xlu0 %v17824_v46, %s15695_s5 }
 0x400   : > { %v4244_v21 = vpop.permute.xlu1 %4243  ;;  %v5818_v42 = vld [vmem:[#allocation7 + $0xa8] sm:$0xff] }
 0x401   : > { %4316 = vst.msk [vmem:[#allocation7 + $0xb8] sm:$0xf] %vm1582_vm5, %v4244_v21  ;;  %v4242_v14 = vpop.permute.xlu0 %4241  ;;  %v6158_v7 = vpop.f32.mrf.mxu1 }
 0x402   : > { %v5817_v36 = vld [vmem:[#allocation7 + $0xa0] sm:$0xff]  ;;  %4315 = vst.msk [vmem:[#allocation7 + $0xb0] sm:$0xf] %vm1582_vm5, %v4242_v14  ;;  %v6159_v56 = vadd.f32 %v17911_v51, %v6158_v7  ;;  %4515 = vrot.lane.b32.xlu1 %v14370_v37, %s15697_s0  ;;  %4513 = vrot.lane.b32.xlu0 %v14369_v55, %s15697_s0  ;;  %v5124_v55 = vld [vmem:[#allocation4 + $0x1a0] sm:$0xff] }
 0x403   : > { %v13160_v24 = vcombine.low %v5817_v36, %v5818_v42  ;;  %v6160_v20 = vpop.f32.mrf.mxu1  ;;  %v5123_v42 = vld [vmem:[#allocation4 + $0x198] sm:$0xff] }
 0x404   : > { %v6267_v46 = vmax.f32 %v6159_v56, 0.0  ;;  %v4500_v62 = vpop.permute.xlu1 %4499  ;;  %v15265_v56 = vld [vmem:[#allocation13 + $0x38] sm:$0xff]  }
 0x405   : > { %6213 = vmatmul.mubr.bf16.gmra.mxu1 %v13160_v24  ;;  %4572 = vst.msk [vmem:[#allocation7 + $0xb8] sm:$0xf] %vm1839_vm6, %v4500_v62  ;;  %v4498_v49 = vpop.permute.xlu0 %4497  ;;  %v6161_v21 = vpop.f32.mrf.mxu1  ;;  %v5380_v24 = vld [vmem:[#allocation4 + $0x1a1] sm:$0xff]  ;;  %v5379_v20 = vld [vmem:[#allocation4 + $0x199] sm:$0xff]  ;;  %8805 = vmatpush1.bf16.msra.mxu0 %v15265_v56 }
 0x406   : > { %6299 = vst.msk [vmem:[#allocation4 + $0x61] sm:$0xff] %vm786_vm0, %v6267_v46  ;;  %v6162_v14 = vadd.f32 %v17911_v51, %v6161_v21  ;;  %4771 = vrot.lane.b32.xlu1 %v14402_v12, %s15698_s1  ;;  %4769 = vrot.lane.b32.xlu0 %v14401_v32, %s15698_s1  ;;  %v14372_v12 = vpack.c.bf16 %v5124_v55, %v5124_v55 }
 0x407   : > { %4571 = vst.msk [vmem:[#allocation7 + $0xb0] sm:$0xf] %vm1839_vm6, %v4498_v49  ;;  %v6163_v37 = vpop.f32.mrf.mxu1  ;;  %v14371_v32 = vpack.c.bf16 %v5123_v42, %v5123_v42  ;;  %8806 = vmatprep.subr.bf16.mxu0 %v20035_v1  ;;  %v15266_v49 = vld [vmem:[#allocation13 + $0x30] sm:$0xff]  }
 0x408   : > { %v6268_v7 = vmax.f32 %v6162_v14, 0.0  ;;  %v4756_v36 = vpop.permute.xlu1 %4755  ;;  %v6518_v14 = vld [vmem:[#allocation4 + $0x9] sm:$0xff]  ;;  %v6517_v37 = vld [vmem:[#allocation4 + $0x1] sm:$0xff] }
 0x409   : > { %4828 = vst.msk [vmem:[#allocation7 + $0xb8] sm:$0xf] %vm2096_vm7, %v4756_v36  ;;  %v4754_v3 = vpop.permute.xlu0 %4753  ;;  %8807 = vmatpush1.bf16.msra.mxu0 %v15266_v49  ;;  %v14469_v56 = vpack.c.bf16 %v6517_v37, %v6517_v37 }
 0x40a   : > { %6300 = vst.msk [vmem:[#allocation4 + $0x69] sm:$0xff] %vm786_vm0, %v6268_v7  ;;  %5027 = vrot.lane.b32.xlu1 %v17883_v16, %s15699_s30  ;;  %5025 = vrot.lane.b32.xlu0 %v17885_v41, %s15699_s30  ;;  %v14404_v16 = vpack.c.bf16 %v5380_v24, %v5380_v24  ;;  %v14403_v41 = vpack.c.bf16 %v5379_v20, %v5379_v20  ;;  %v15269_v24 = vld [vmem:[#allocation13 + $0x28] sm:$0xff]  }
 0x40b   : > { %4827 = vst.msk [vmem:[#allocation7 + $0xb0] sm:$0xf] %vm2096_vm7, %v4754_v3  ;;  %8808 = vmatprep.subr.bf16.mxu0 %v20035_v1  ;;  %v14470_v3 = vpack.c.bf16 %v6518_v14, %v6518_v14 }
 0x40c   : > { %v5012_v46 = vpop.permute.xlu1 %5011 }
 0x40d   : > { %5084 = vst.msk [vmem:[#allocation7 + $0xb8] sm:$0xf] %vm2353_vm8, %v5012_v46  ;;  %v5010_v62 = vpop.permute.xlu0 %5009  ;;  %v6333_v21 = vld [vmem:[#allocation4 + $0x60] sm:$0xff]  ;;  %v6774_v46 = vld [vmem:[#allocation4 + $0xa] sm:$0xff]  ;;  %8809 = vmatpush1.bf16.msra.mxu0 %v15269_v24 }
 0x40e   : > { %5083 = vst.msk [vmem:[#allocation7 + $0xb0] sm:$0xf] %vm2353_vm8, %v5010_v62  ;;  %5283 = vrot.lane.b32.xlu1 %v14372_v12, %s15700_s4  ;;  %5281 = vrot.lane.b32.xlu0 %v14371_v32, %s15700_s4  ;;  %v14445_v55 = vpack.c.bf16 %v6333_v21, %v6333_v21  ;;  %v6773_v62 = vld [vmem:[#allocation4 + $0x2] sm:$0xff]  ;;  %v14502_v14 = vpack.c.bf16 %v6774_v46, %v6774_v46 }
 0x40f   : > { %8810 = vmatprep.subr.bf16.mxu0 %v20035_v1  ;;  %v14501_v37 = vpack.c.bf16 %v6773_v62, %v6773_v62 }
 0x410   : > { %v5268_v42 = vpop.permute.xlu1 %5267  ;;  %6493 = vst.msk [vmem:[#allocation7 + $0x40] sm:$0xf] %vm1068_vm3, %v14445_v55 }
 0x411   : > { %5340 = vst.msk [vmem:[#allocation7 + $0xb8] sm:$0xf] %vm2611_vm9, %v5268_v42  ;;  %v5266_v7 = vpop.permute.xlu0 %5265  ;;  %v7548_v36 = vld [vmem:[#allocation4 + $0x6a] sm:$0xff]  ;;  %v7547_v32 = vld [vmem:[#allocation4 + $0x62] sm:$0xff] }
 0x412   : > { %5339 = vst.msk [vmem:[#allocation7 + $0xb0] sm:$0xf] %vm2611_vm9, %v5266_v7  ;;  %5539 = vrot.lane.b32.xlu1 %v14404_v16, %s15701_s26  ;;  %5537 = vrot.lane.b32.xlu0 %v14403_v41, %s15701_s26  ;;  %v18106_v12 = vpack.c.bf16 %v7548_v36, %v7548_v36  ;;  %v6334_v20 = vld [vmem:[#allocation4 + $0x68] sm:$0xff]  ;;  %v18108_v49 = vpack.c.bf16 %v7547_v32, %v7547_v32  ;;  %v15271_v36 = vld [vmem:[#allocation13 + $0x18] sm:$0xff]  }
 0x413   : > { %v14446_v21 = vpack.c.bf16 %v6334_v20, %v6334_v20  ;;  %v15270_v41 = vld [vmem:[#allocation13 + $0x20] sm:$0xff]   ;;  %v7285_v20 = vld [vmem:[#allocation4 + $0x19] sm:$0xff] }
 0x414   : > { %v5524_v42 = vpop.permute.xlu1 %5523  ;;  %8474 = vst.msk [vmem:[#allocation7 + $0x2c] sm:$0xf] %vm1068_vm3, %v18106_v12  ;;  %8473 = vst.msk [vmem:[#allocation7 + $0x24] sm:$0xf] %vm1068_vm3, %v18108_v49  ;;  %8811 = vmatpush1.bf16.msra.mxu0 %v15270_v41 }
 0x415   : > { %5596 = vst.msk [vmem:[#allocation7 + $0xb8] sm:$0xf] %vm2868_vm10, %v5524_v42  ;;  %v5522_v16 = vpop.permute.xlu0 %5521  ;;  %8812 = vmatprep.subr.bf16.mxu0 %v20035_v1  ;;  %v15257_v42 = vld [vmem:[#allocation7 + $0xb4] ss:$8 sps:$4 sm:$0xff]  }
 0x416   : > { %6494 = vst.msk [vmem:[#allocation7 + $0x48] sm:$0xf] %vm1068_vm3, %v14446_v21  ;;  %6647 = vrot.lane.b32.xlu1 %v14470_v3, %s15696_s24  ;;  %6645 = vrot.lane.b32.xlu0 %v14469_v56, %s15696_s24  ;;  %v7286_v56 = vld [vmem:[#allocation4 + $0x21] sm:$0xff] }
 0x417   : > { %5595 = vst.msk [vmem:[#allocation7 + $0xb0] sm:$0xf] %vm2868_vm10, %v5522_v16  ;;  %v15272_v16 = vld [vmem:[#allocation13 + $0x10] sm:$0xff]   ;;  %13192 = vmatprep.mubr.msk.bf16.mxu1 %vm786_vm0, %v15257_v42 }
 0x418   : > { %v3992_v55 = vpop.permute.xlu1 %3991  ;;  %8813 = vmatpush1.bf16.msra.mxu0 %v15271_v36  ;;  %v18134_v36 = vpack.c.bf16 %v7286_v56, %v7286_v56 }
 0x419   : > { %4062 = vst.msk [vmem:[#allocation7 + $0xc8] sm:$0xf] %vm1325_vm4, %v3992_v55  ;;  %v3990_v7 = vpop.permute.xlu0 %3989  ;;  %8814 = vmatprep.subr.bf16.mxu0 %v20035_v1 }
 0x41a   : > { %4061 = vst.msk [vmem:[#allocation7 + $0xc0] sm:$0xf] %vm1325_vm4, %v3990_v7  ;;  %6903 = vrot.lane.b32.xlu1 %v14502_v14, %s15695_s5  ;;  %6901 = vrot.lane.b32.xlu0 %v14501_v37, %s15695_s5 }
 0x41c   : > { %v4248_v32 = vpop.permute.xlu1 %4247  ;;  %v6166_v3 = vpop.f32.mrf.mxu1  ;;  %v5820_v24 = vld [vmem:[#allocation7 + $0xb8] sm:$0xff]  ;;  %8815 = vmatpush1.bf16.msra.mxu0 %v15272_v16 }
 0x41d   : > { %4318 = vst.msk [vmem:[#allocation7 + $0xc8] sm:$0xf] %vm1582_vm5, %v4248_v32  ;;  %v4246_v46 = vpop.permute.xlu0 %4245  ;;  %v6167_v62 = vadd.f32 %v17911_v51, %v6166_v3  ;;  %v18136_v32 = vpack.c.bf16 %v7285_v20, %v7285_v20  ;;  %v7542_v3 = vld [vmem:[#allocation4 + $0x22] sm:$0xff]  ;;  %8816 = vmatprep.subr.bf16.mxu0 %v20035_v1 }
 0x41e   : > { %v5819_v21 = vld [vmem:[#allocation7 + $0xb0] sm:$0xff]  ;;  %4317 = vst.msk [vmem:[#allocation7 + $0xc0] sm:$0xf] %vm1582_vm5, %v4246_v46  ;;  %7159 = vrot.lane.b32.xlu1 %v17947_v4, %s15697_s0  ;;  %7157 = vrot.lane.b32.xlu0 %v17935_v22, %s15697_s0  ;;  %v6168_v41 = vpop.f32.mrf.mxu1  ;;  %v15273_v46 = vld [vmem:[#allocation13 + $0x8] sm:$0xff]  }
 0x41f   : > { %v13162_v14 = vcombine.low %v5819_v21, %v5820_v24  ;;  %v6269_v37 = vmax.f32 %v6167_v62, 0.0  ;;  %v7541_v24 = vld [vmem:[#allocation4 + $0x1a] sm:$0xff]  ;;  %v14598_v21 = vpack.c.bf16 %v7542_v3, %v7542_v3 }
 0x420   : > { %v4504_v55 = vpop.permute.xlu1 %4503  ;;  %v6169_v7 = vpop.f32.mrf.mxu1  ;;  %v14597_v42 = vpack.c.bf16 %v7541_v24, %v7541_v24  ;;  %8817 = vmatpush1.bf16.msra.mxu0 %v15273_v46  ;;  %v7798_v41 = vld [vmem:[#allocation4 + $0x38] sm:$0xff] }
 0x421   : > { %6221 = vmatmul.mubr.bf16.gmra.mxu1 %v13162_v14  ;;  %6301 = vst.msk [vmem:[#allocation4 + $0x79] sm:$0xff] %vm786_vm0, %v6269_v37  ;;  %v4502_v4 = vpop.permute.xlu0 %4501  ;;  %v6170_v22 = vadd.f32 %v17911_v51, %v6169_v7  ;;  %v7797_v14 = vld [vmem:[#allocation4 + $0x30] sm:$0xff]  ;;  %8818 = vmatprep.subr.bf16.mxu0 %v20035_v1  ;;  %v15274_v37 = vld [vmem:[#allocation13] sm:$0xff]   ;;  %v14630_v7 = vpack.c.bf16 %v7798_v41, %v7798_v41  ;;  %v8054_v24 = vld [vmem:[#allocation4 + $0x39] sm:$0xff] }
 0x422   : > { %4574 = vst.msk [vmem:[#allocation7 + $0xc8] sm:$0xf] %vm1839_vm6, %v4504_v55  ;;  %4573 = vst.msk [vmem:[#allocation7 + $0xc0] sm:$0xf] %vm1839_vm6, %v4502_v4  ;;  %7415 = vrot.lane.b32.xlu1 %v18134_v36, %s15698_s1  ;;  %7413 = vrot.lane.b32.xlu0 %v18136_v32, %s15698_s1  ;;  %v6171_v56 = vpop.f32.mrf.mxu1  ;;  %v14629_v4 = vpack.c.bf16 %v7797_v14, %v7797_v14  ;;  %v8053_v46 = vld [vmem:[#allocation4 + $0x31] sm:$0xff] }
 0x423   : > { %v6270_v20 = vmax.f32 %v6170_v22, 0.0  ;;  %v15275_v56 = vld [vmem:[#allocation13 + $0x40] sm:$0xff]   ;;  %v18161_v41 = vpack.c.bf16 %v8053_v46, %v8053_v46 }
 0x424   : > { %v4760_v62 = vpop.permute.xlu1 %4759  ;;  %8819 = vmatpush1.bf16.msra.mxu0 %v15274_v37 }
 0x425   : > { %6302 = vst.msk [vmem:[#allocation4 + $0x81] sm:$0xff] %vm786_vm0, %v6270_v20  ;;  %v4758_v16 = vpop.permute.xlu0 %4757  ;;  %8834 = vmatprep.subr.bf16.mxu0 %v20035_v1 }
 0x426   : > { %4830 = vst.msk [vmem:[#allocation7 + $0xc8] sm:$0xf] %vm2096_vm7, %v4760_v62  ;;  %4829 = vst.msk [vmem:[#allocation7 + $0xc0] sm:$0xf] %vm2096_vm7, %v4758_v16  ;;  %7671 = vrot.lane.b32.xlu1 %v14598_v21, %s15699_s30  ;;  %7669 = vrot.lane.b32.xlu0 %v14597_v42, %s15699_s30  ;;  %v18159_v16 = vpack.c.bf16 %v8054_v24, %v8054_v24 }
 0x428   : > { %v5016_v55 = vpop.permute.xlu1 %5015  ;;  %v6335_v22 = vld [vmem:[#allocation4 + $0x78] sm:$0xff]  ;;  %8835 = vmatpush2.bf16.msra.mxu0 %v15275_v56 }
 0x429   : > { %5086 = vst.msk [vmem:[#allocation7 + $0xc8] sm:$0xf] %vm2353_vm8, %v5016_v55  ;;  %v5014_v3 = vpop.permute.xlu0 %5013  ;;  %v14447_v20 = vpack.c.bf16 %v6335_v22, %v6335_v22 }
 0x42a   : > { %5085 = vst.msk [vmem:[#allocation7 + $0xc0] sm:$0xf] %vm2353_vm8, %v5014_v3  ;;  %7927 = vrot.lane.b32.xlu1 %v14630_v7, %s15700_s4  ;;  %7925 = vrot.lane.b32.xlu0 %v14629_v4, %s15700_s4 }
 0x42b   : > { %6495 = vst.msk [vmem:[#allocation7 + $0x50] sm:$0xf] %vm1068_vm3, %v14447_v20 }
 0x42c   : > { %v5272_v62 = vpop.permute.xlu1 %5271  ;;  %v7550_v14 = vld [vmem:[#allocation4 + $0x82] sm:$0xff]  ;;  %v7549_v22 = vld [vmem:[#allocation4 + $0x7a] sm:$0xff] }
 0x42d   : > { %5342 = vst.msk [vmem:[#allocation7 + $0xc8] sm:$0xf] %vm2611_vm9, %v5272_v62  ;;  %v5270_v37 = vpop.permute.xlu0 %5269  ;;  %v18164_v55 = vpack.c.bf16 %v7550_v14, %v7550_v14  ;;  %v6336_v3 = vld [vmem:[#allocation4 + $0x80] sm:$0xff]  ;;  %v18171_v24 = vpack.c.bf16 %v7549_v22, %v7549_v22 }
 0x42e   : > { %5341 = vst.msk [vmem:[#allocation7 + $0xc0] sm:$0xf] %vm2611_vm9, %v5270_v37  ;;  %8183 = vrot.lane.b32.xlu1 %v18159_v16, %s15701_s26  ;;  %8181 = vrot.lane.b32.xlu0 %v18161_v41, %s15701_s26  ;;  %v14448_v46 = vpack.c.bf16 %v6336_v3, %v6336_v3 }
 0x42f   : > { %8476 = vst.msk [vmem:[#allocation7 + $0x3c] sm:$0xf] %vm1068_vm3, %v18164_v55  ;;  %8475 = vst.msk [vmem:[#allocation7 + $0x34] sm:$0xf] %vm1068_vm3, %v18171_v24 }
 0x430   : > { %v5528_v56 = vpop.permute.xlu1 %5527  ;;  %6496 = vst.msk [vmem:[#allocation7 + $0x58] sm:$0xf] %vm1068_vm3, %v14448_v46 }
 0x431   : > { %5598 = vst.msk [vmem:[#allocation7 + $0xc8] sm:$0xf] %vm2868_vm10, %v5528_v56  ;;  %v5526_v20 = vpop.permute.xlu0 %5525 }
 0x432   : > { %5597 = vst.msk [vmem:[#allocation7 + $0xc0] sm:$0xf] %vm2868_vm10, %v5526_v20  ;;  %6651 = vrot.lane.b32.xlu1 %v18134_v36, %s15696_s24  ;;  %6649 = vrot.lane.b32.xlu0 %v18136_v32, %s15696_s24  ;;  %v15259_v32 = vld [vmem:[#allocation7 + $0xc4] ss:$8 sps:$4 sm:$0xff]  }
 0x433   : > { %13193 = vmatprep.mubr.msk.bf16.mxu1 %vm786_vm0, %v15259_v32 }
 0x434   : > { %v3996_v62 = vpop.permute.xlu1 %3995 }
 0x435   : > { %4064 = vst.msk [vmem:[#allocation7 + $0xd8] sm:$0xf] %vm1325_vm4, %v3996_v62  ;;  %v3994_v14 = vpop.permute.xlu0 %3993 }
 0x436   : > { %4063 = vst.msk [vmem:[#allocation7 + $0xd0] sm:$0xf] %vm1325_vm4, %v3994_v14  ;;  %6907 = vrot.lane.b32.xlu1 %v14598_v21, %s15695_s5  ;;  %6905 = vrot.lane.b32.xlu0 %v14597_v42, %s15695_s5 }
 0x438   : > { %v4252_v37 = vpop.permute.xlu1 %4251  ;;  %v6174_v22 = vpop.f32.mrf.mxu1  ;;  %v5822_v3 = vld [vmem:[#allocation7 + $0xc8] sm:$0xff] }
 0x439   : > { %4320 = vst.msk [vmem:[#allocation7 + $0xd8] sm:$0xf] %vm1582_vm5, %v4252_v37  ;;  %v4250_v46 = vpop.permute.xlu0 %4249  ;;  %v6175_v36 = vadd.f32 %v17911_v51, %v6174_v22  ;;  %v5821_v56 = vld [vmem:[#allocation7 + $0xc0] sm:$0xff] }
 0x43a   : > { %4319 = vst.msk [vmem:[#allocation7 + $0xd0] sm:$0xf] %vm1582_vm5, %v4250_v46  ;;  %v6176_v20 = vpop.f32.mrf.mxu1  ;;  %7163 = vrot.lane.b32.xlu1 %v14630_v7, %s15697_s0  ;;  %7161 = vrot.lane.b32.xlu0 %v14629_v4, %s15697_s0  ;;  %v13164_v21 = vcombine.low %v5821_v56, %v5822_v3  ;;  %v7799_v56 = vld [vmem:[#allocation4 + $0x48] sm:$0xff] }
 0x43b   : > { %v6271_v62 = vmax.f32 %v6175_v36, 0.0  ;;  %v7800_v36 = vld [vmem:[#allocation4 + $0x50] sm:$0xff] }
 0x43c   : > { %v4508_v42 = vpop.permute.xlu1 %4507  ;;  %v6177_v14 = vpop.f32.mrf.mxu1  ;;  %6229 = vmatmul.mubr.bf16.gmra.mxu1 %v13164_v21  ;;  %v14632_v20 = vpack.c.bf16 %v7800_v36, %v7800_v36  ;;  %v14631_v21 = vpack.c.bf16 %v7799_v56, %v7799_v56 }
 0x43d   : > { %6303 = vst.msk [vmem:[#allocation4 + $0x91] sm:$0xff] %vm786_vm0, %v6271_v62  ;;  %v4506_v37 = vpop.permute.xlu0 %4505  ;;  %v6178_v22 = vadd.f32 %v17911_v51, %v6177_v14  ;;  %v8056_v14 = vld [vmem:[#allocation4 + $0x51] sm:$0xff] }
 0x43e   : > { %4576 = vst.msk [vmem:[#allocation7 + $0xd8] sm:$0xf] %vm1839_vm6, %v4508_v42  ;;  %4575 = vst.msk [vmem:[#allocation7 + $0xd0] sm:$0xf] %vm1839_vm6, %v4506_v37  ;;  %v6179_v46 = vpop.f32.mrf.mxu1  ;;  %7419 = vrot.lane.b32.xlu1 %v18159_v16, %s15698_s1  ;;  %7417 = vrot.lane.b32.xlu0 %v18161_v41, %s15698_s1  ;;  %v8055_v37 = vld [vmem:[#allocation4 + $0x49] sm:$0xff] }
 0x43f   : > { %v6272_v7 = vmax.f32 %v6178_v22, 0.0 }
 0x440   : > { %v4764_v4 = vpop.permute.xlu1 %4763 }
 0x441   : > { %6304 = vst.msk [vmem:[#allocation4 + $0x99] sm:$0xff] %vm786_vm0, %v6272_v7  ;;  %v4762_v3 = vpop.permute.xlu0 %4761  ;;  %v18214_v7 = vpack.c.bf16 %v8056_v14, %v8056_v14 }
 0x442   : > { %4832 = vst.msk [vmem:[#allocation7 + $0xd8] sm:$0xf] %vm2096_vm7, %v4764_v4  ;;  %4831 = vst.msk [vmem:[#allocation7 + $0xd0] sm:$0xf] %vm2096_vm7, %v4762_v3  ;;  %7675 = vrot.lane.b32.xlu1 %v18004_v9, %s15699_s30  ;;  %7673 = vrot.lane.b32.xlu0 %v18006_v34, %s15699_s30  ;;  %v18216_v4 = vpack.c.bf16 %v8055_v37, %v8055_v37 }
 0x444   : > { %v5020_v32 = vpop.permute.xlu1 %5019  ;;  %v6337_v62 = vld [vmem:[#allocation4 + $0x90] sm:$0xff] }
 0x445   : > { %5088 = vst.msk [vmem:[#allocation7 + $0xd8] sm:$0xf] %vm2353_vm8, %v5020_v32  ;;  %v5018_v42 = vpop.permute.xlu0 %5017  ;;  %v14449_v22 = vpack.c.bf16 %v6337_v62, %v6337_v62 }
 0x446   : > { %5087 = vst.msk [vmem:[#allocation7 + $0xd0] sm:$0xf] %vm2353_vm8, %v5018_v42  ;;  %7931 = vrot.lane.b32.xlu1 %v14632_v20, %s15700_s4  ;;  %7929 = vrot.lane.b32.xlu0 %v14631_v21, %s15700_s4 }
 0x447   : > { %6497 = vst.msk [vmem:[#allocation7 + $0x60] sm:$0xf] %vm1068_vm3, %v14449_v22 }
 0x448   : > { %v5276_v46 = vpop.permute.xlu1 %5275  ;;  %v7552_v3 = vld [vmem:[#allocation4 + $0x9a] sm:$0xff]  ;;  %v7551_v32 = vld [vmem:[#allocation4 + $0x92] sm:$0xff] }
 0x449   : > { %5344 = vst.msk [vmem:[#allocation7 + $0xd8] sm:$0xf] %vm2611_vm9, %v5276_v46  ;;  %v5274_v36 = vpop.permute.xlu0 %5273  ;;  %v18219_v56 = vpack.c.bf16 %v7552_v3, %v7552_v3  ;;  %v6338_v62 = vld [vmem:[#allocation4 + $0x98] sm:$0xff]  ;;  %v18226_v42 = vpack.c.bf16 %v7551_v32, %v7551_v32 }
 0x44a   : > { %5343 = vst.msk [vmem:[#allocation7 + $0xd0] sm:$0xf] %vm2611_vm9, %v5274_v36  ;;  %8187 = vrot.lane.b32.xlu1 %v18214_v7, %s15701_s26  ;;  %8185 = vrot.lane.b32.xlu0 %v18216_v4, %s15701_s26  ;;  %v14450_v14 = vpack.c.bf16 %v6338_v62, %v6338_v62 }
 0x44b   : > { %8478 = vst.msk [vmem:[#allocation7 + $0x4c] sm:$0xf] %vm1068_vm3, %v18219_v56  ;;  %8477 = vst.msk [vmem:[#allocation7 + $0x44] sm:$0xf] %vm1068_vm3, %v18226_v42 }
 0x44c   : > { %v5532_v37 = vpop.permute.xlu1 %5531  ;;  %6498 = vst.msk [vmem:[#allocation7 + $0x68] sm:$0xf] %vm1068_vm3, %v14450_v14 }
 0x44d   : > { %5600 = vst.msk [vmem:[#allocation7 + $0xd8] sm:$0xf] %vm2868_vm10, %v5532_v37  ;;  %v5530_v22 = vpop.permute.xlu0 %5529  ;;  %v15261_v37 = vld [vmem:[#allocation7 + $0xd4] ss:$8 sps:$4 sm:$0xff]  }
 0x44e   : > { %5599 = vst.msk [vmem:[#allocation7 + $0xd0] sm:$0xf] %vm2868_vm10, %v5530_v22  ;;  %6655 = vrot.lane.b32.xlu1 %v18159_v16, %s15696_s24  ;;  %6653 = vrot.lane.b32.xlu0 %v18161_v41, %s15696_s24 }
 0x44f   : > { %13194 = vmatprep.mubr.msk.bf16.mxu1 %vm786_vm0, %v15261_v37 }
 0x450   : > { %v4000_v46 = vpop.permute.xlu1 %3999 }
 0x451   : > { %4066 = vst.msk [vmem:[#allocation7 + $0xe8] sm:$0xf] %vm1325_vm4, %v4000_v46  ;;  %v3998_v3 = vpop.permute.xlu0 %3997 }
 0x452   : > { %4065 = vst.msk [vmem:[#allocation7 + $0xe0] sm:$0xf] %vm1325_vm4, %v3998_v3  ;;  %6911 = vrot.lane.b32.xlu1 %v18004_v9, %s15695_s5  ;;  %6909 = vrot.lane.b32.xlu0 %v18006_v34, %s15695_s5 }
 0x454   : > { %v4256_v36 = vpop.permute.xlu1 %4255  ;;  %v6182_v32 = vpop.f32.mrf.mxu1  ;;  %v5824_v62 = vld [vmem:[#allocation7 + $0xd8] sm:$0xff] }
 0x455   : > { %4322 = vst.msk [vmem:[#allocation7 + $0xe8] sm:$0xf] %vm1582_vm5, %v4256_v36  ;;  %v4254_v16 = vpop.permute.xlu0 %4253  ;;  %v6183_v41 = vadd.f32 %v17911_v51, %v6182_v32  ;;  %v5823_v14 = vld [vmem:[#allocation7 + $0xd0] sm:$0xff]  ;;  %v18256_v36 = vld [vmem:[%s20075_s21] ss:$0 sm:$0xff] }
 0x456   : > { %4321 = vst.msk [vmem:[#allocation7 + $0xe0] sm:$0xf] %vm1582_vm5, %v4254_v16  ;;  %v6184_v22 = vpop.f32.mrf.mxu1  ;;  %7167 = vrot.lane.b32.xlu1 %v14632_v20, %s15697_s0  ;;  %7165 = vrot.lane.b32.xlu0 %v14631_v21, %s15697_s0  ;;  %v13166_v9 = vcombine.low %v5823_v14, %v5824_v62  ;;  %v7801_v14 = vld [vmem:[#allocation4 + $0x60] sm:$0xff] }
 0x457   : > { %v6273_v46 = vmax.f32 %v6183_v41, 0.0  ;;  %v7802_v41 = vld [vmem:[#allocation4 + $0x68] sm:$0xff] }
 0x458   : > { %v4512_v34 = vpop.permute.xlu1 %4511  ;;  %v6185_v3 = vpop.f32.mrf.mxu1  ;;  %6237 = vmatmul.mubr.bf16.gmra.mxu1 %v13166_v9  ;;  %v14634_v22 = vpack.c.bf16 %v7802_v41, %v7802_v41  ;;  %v14633_v9 = vpack.c.bf16 %v7801_v14, %v7801_v14 }
 0x459   : > { %6305 = vst.msk [vmem:[#allocation4 + $0xa9] sm:$0xff] %vm786_vm0, %v6273_v46  ;;  %v4510_v51 = vpop.permute.xlu0 %4509  ;;  %v6186_v20 = vadd.f32 %v18256_v36, %v6185_v3  ;;  %v8058_v3 = vld [vmem:[#allocation4 + $0x69] sm:$0xff] }
 0x45a   : > { %4578 = vst.msk [vmem:[#allocation7 + $0xe8] sm:$0xf] %vm1839_vm6, %v4512_v34  ;;  %4577 = vst.msk [vmem:[#allocation7 + $0xe0] sm:$0xf] %vm1839_vm6, %v4510_v51  ;;  %v6187_v21 = vpop.f32.mrf.mxu1  ;;  %7423 = vrot.lane.b32.xlu1 %v18214_v7, %s15698_s1  ;;  %7421 = vrot.lane.b32.xlu0 %v18216_v4, %s15698_s1  ;;  %v8057_v51 = vld [vmem:[#allocation4 + $0x61] sm:$0xff] }
 0x45b   : > { %v6274_v32 = vmax.f32 %v6186_v20, 0.0 }
 0x45c   : > { %v4768_v62 = vpop.permute.xlu1 %4767 }
 0x45d   : > { %6306 = vst.msk [vmem:[#allocation4 + $0xb1] sm:$0xff] %vm786_vm0, %v6274_v32  ;;  %v4766_v16 = vpop.permute.xlu0 %4765  ;;  %v18276_v32 = vpack.c.bf16 %v8058_v3, %v8058_v3 }
 0x45e   : > { %4834 = vst.msk [vmem:[#allocation7 + $0xe8] sm:$0xf] %vm2096_vm7, %v4768_v62  ;;  %4833 = vst.msk [vmem:[#allocation7 + $0xe0] sm:$0xf] %vm2096_vm7, %v4766_v16  ;;  %7679 = vrot.lane.b32.xlu1 %v18055_v2, %s15699_s30  ;;  %7677 = vrot.lane.b32.xlu0 %v18057_v38, %s15699_s30  ;;  %v18278_v62 = vpack.c.bf16 %v8057_v51, %v8057_v51 }
 0x460   : > { %v5024_v37 = vpop.permute.xlu1 %5023  ;;  %v6339_v46 = vld [vmem:[#allocation4 + $0xa8] sm:$0xff] }
 0x461   : > { %5090 = vst.msk [vmem:[#allocation7 + $0xe8] sm:$0xf] %vm2353_vm8, %v5024_v37  ;;  %v5022_v34 = vpop.permute.xlu0 %5021  ;;  %v14451_v20 = vpack.c.bf16 %v6339_v46, %v6339_v46 }
 0x462   : > { %5089 = vst.msk [vmem:[#allocation7 + $0xe0] sm:$0xf] %vm2353_vm8, %v5022_v34  ;;  %7935 = vrot.lane.b32.xlu1 %v14634_v22, %s15700_s4  ;;  %7933 = vrot.lane.b32.xlu0 %v14633_v9, %s15700_s4 }
 0x463   : > { %6499 = vst.msk [vmem:[#allocation7 + $0x70] sm:$0xf] %vm1068_vm3, %v14451_v20 }
 0x464   : > { %v5280_v21 = vpop.permute.xlu1 %5279  ;;  %v7554_v16 = vld [vmem:[#allocation4 + $0xb2] sm:$0xff]  ;;  %v7553_v37 = vld [vmem:[#allocation4 + $0xaa] sm:$0xff] }
 0x465   : > { %5346 = vst.msk [vmem:[#allocation7 + $0xe8] sm:$0xf] %vm2611_vm9, %v5280_v21  ;;  %v5278_v41 = vpop.permute.xlu0 %5277  ;;  %v18281_v14 = vpack.c.bf16 %v7554_v16, %v7554_v16  ;;  %v6340_v46 = vld [vmem:[#allocation4 + $0xb0] sm:$0xff]  ;;  %v18288_v34 = vpack.c.bf16 %v7553_v37, %v7553_v37 }
 0x466   : > { %5345 = vst.msk [vmem:[#allocation7 + $0xe0] sm:$0xf] %vm2611_vm9, %v5278_v41  ;;  %8191 = vrot.lane.b32.xlu1 %v18276_v32, %s15701_s26  ;;  %8189 = vrot.lane.b32.xlu0 %v18278_v62, %s15701_s26  ;;  %v14452_v3 = vpack.c.bf16 %v6340_v46, %v6340_v46 }
 0x467   : > { %8480 = vst.msk [vmem:[#allocation7 + $0x5c] sm:$0xf] %vm1068_vm3, %v18281_v14  ;;  %8479 = vst.msk [vmem:[#allocation7 + $0x54] sm:$0xf] %vm1068_vm3, %v18288_v34 }
 0x468   : > { %v5536_v51 = vpop.permute.xlu1 %5535  ;;  %6500 = vst.msk [vmem:[#allocation7 + $0x78] sm:$0xf] %vm1068_vm3, %v14452_v3 }
 0x469   : > { %5602 = vst.msk [vmem:[#allocation7 + $0xe8] sm:$0xf] %vm2868_vm10, %v5536_v51  ;;  %v5534_v20 = vpop.permute.xlu0 %5533  ;;  %v15263_v51 = vld [vmem:[#allocation7 + $0xe4] ss:$8 sps:$4 sm:$0xff]  }
 0x46a   : > { %5601 = vst.msk [vmem:[#allocation7 + $0xe0] sm:$0xf] %vm2868_vm10, %v5534_v20  ;;  %6659 = vrot.lane.b32.xlu1 %v18214_v7, %s15696_s24  ;;  %6657 = vrot.lane.b32.xlu0 %v18216_v4, %s15696_s24 }
 0x46b   : > { %13195 = vmatprep.mubr.msk.bf16.mxu1 %vm786_vm0, %v15263_v51 }
 0x46c   : > { %v4004_v21 = vpop.permute.xlu1 %4003 }
 0x46d   : > { %4068 = vst.msk [vmem:[#allocation7 + $0xf8] sm:$0xf] %vm1325_vm4, %v4004_v21  ;;  %v4002_v16 = vpop.permute.xlu0 %4001 }
 0x46e   : > { %4067 = vst.msk [vmem:[#allocation7 + $0xf0] sm:$0xf] %vm1325_vm4, %v4002_v16  ;;  %6915 = vrot.lane.b32.xlu1 %v18055_v2, %s15695_s5  ;;  %6913 = vrot.lane.b32.xlu0 %v18057_v38, %s15695_s5 }
 0x470   : > { %v4260_v41 = vpop.permute.xlu1 %4259  ;;  %v6190_v37 = vpop.f32.mrf.mxu1  ;;  %v5826_v46 = vld [vmem:[#allocation7 + $0xe8] sm:$0xff] }
 0x471   : > { %4324 = vst.msk [vmem:[#allocation7 + $0xf8] sm:$0xf] %vm1582_vm5, %v4260_v41  ;;  %v4258_v7 = vpop.permute.xlu0 %4257  ;;  %v6191_v4 = vadd.f32 %v18256_v36, %v6190_v37  ;;  %v5825_v3 = vld [vmem:[#allocation7 + $0xe0] sm:$0xff] }
 0x472   : > { %4323 = vst.msk [vmem:[#allocation7 + $0xf0] sm:$0xf] %vm1582_vm5, %v4258_v7  ;;  %v6192_v20 = vpop.f32.mrf.mxu1  ;;  %7171 = vrot.lane.b32.xlu1 %v14634_v22, %s15697_s0  ;;  %7169 = vrot.lane.b32.xlu0 %v14633_v9, %s15697_s0  ;;  %v13168_v2 = vcombine.low %v5825_v3, %v5826_v46  ;;  %v7803_v3 = vld [vmem:[#allocation4 + $0x78] sm:$0xff] }
 0x473   : > { %v6275_v21 = vmax.f32 %v6191_v4, 0.0  ;;  %v7804_v4 = vld [vmem:[#allocation4 + $0x80] sm:$0xff] }
 0x474   : > { %v4516_v38 = vpop.permute.xlu1 %4515  ;;  %v6193_v16 = vpop.f32.mrf.mxu1  ;;  %6245 = vmatmul.mubr.bf16.gmra.mxu1 %v13168_v2  ;;  %v14636_v20 = vpack.c.bf16 %v7804_v4, %v7804_v4  ;;  %v14635_v2 = vpack.c.bf16 %v7803_v3, %v7803_v3 }
 0x475   : > { %6307 = vst.msk [vmem:[#allocation4 + $0xc1] sm:$0xff] %vm786_vm0, %v6275_v21  ;;  %v4514_v41 = vpop.permute.xlu0 %4513  ;;  %v6194_v37 = vadd.f32 %v18256_v36, %v6193_v16  ;;  %v8060_v16 = vld [vmem:[#allocation4 + $0x81] sm:$0xff] }
 0x476   : > { %4580 = vst.msk [vmem:[#allocation7 + $0xf8] sm:$0xf] %vm1839_vm6, %v4516_v38  ;;  %4579 = vst.msk [vmem:[#allocation7 + $0xf0] sm:$0xf] %vm1839_vm6, %v4514_v41  ;;  %v6195_v7 = vpop.f32.mrf.mxu1  ;;  %7427 = vrot.lane.b32.xlu1 %v18276_v32, %s15698_s1  ;;  %7425 = vrot.lane.b32.xlu0 %v18278_v62, %s15698_s1  ;;  %v8059_v41 = vld [vmem:[#allocation4 + $0x79] sm:$0xff] }
 0x477   : > { %v6276_v22 = vmax.f32 %v6194_v37, 0.0 }
 0x478   : > { %v4772_v9 = vpop.permute.xlu1 %4771 }
 0x479   : > { %6308 = vst.msk [vmem:[#allocation4 + $0xc9] sm:$0xff] %vm786_vm0, %v6276_v22  ;;  %v4770_v46 = vpop.permute.xlu0 %4769  ;;  %v18333_v22 = vpack.c.bf16 %v8060_v16, %v8060_v16 }
 0x47a   : > { %4836 = vst.msk [vmem:[#allocation7 + $0xf8] sm:$0xf] %vm2096_vm7, %v4772_v9  ;;  %4835 = vst.msk [vmem:[#allocation7 + $0xf0] sm:$0xf] %vm2096_vm7, %v4770_v46  ;;  %7683 = vrot.lane.b32.xlu1 %v18106_v12, %s15699_s30  ;;  %7681 = vrot.lane.b32.xlu0 %v18108_v49, %s15699_s30  ;;  %v18335_v9 = vpack.c.bf16 %v8059_v41, %v8059_v41 }
 0x47c   : > { %v5028_v51 = vpop.permute.xlu1 %5027  ;;  %v6341_v21 = vld [vmem:[#allocation4 + $0xc0] sm:$0xff] }
 0x47d   : > { %5092 = vst.msk [vmem:[#allocation7 + $0xf8] sm:$0xf] %vm2353_vm8, %v5028_v51  ;;  %v5026_v38 = vpop.permute.xlu0 %5025  ;;  %v14453_v37 = vpack.c.bf16 %v6341_v21, %v6341_v21 }
 0x47e   : > { %5091 = vst.msk [vmem:[#allocation7 + $0xf0] sm:$0xf] %vm2353_vm8, %v5026_v38  ;;  %7939 = vrot.lane.b32.xlu1 %v14636_v20, %s15700_s4  ;;  %7937 = vrot.lane.b32.xlu0 %v14635_v2, %s15700_s4 }
 0x47f   : > { %6501 = vst.msk [vmem:[#allocation7 + $0x80] sm:$0xf] %vm1068_vm3, %v14453_v37 }
 0x480   : > { %v5284_v7 = vpop.permute.xlu1 %5283  ;;  %v7556_v46 = vld [vmem:[#allocation4 + $0xca] sm:$0xff]  ;;  %v7555_v51 = vld [vmem:[#allocation4 + $0xc2] sm:$0xff] }
 0x481   : > { %5348 = vst.msk [vmem:[#allocation7 + $0xf8] sm:$0xf] %vm2611_vm9, %v5284_v7  ;;  %v5282_v4 = vpop.permute.xlu0 %5281  ;;  %v18338_v3 = vpack.c.bf16 %v7556_v46, %v7556_v46  ;;  %v6342_v21 = vld [vmem:[#allocation4 + $0xc8] sm:$0xff]  ;;  %v18345_v38 = vpack.c.bf16 %v7555_v51, %v7555_v51 }
 0x482   : > { %5347 = vst.msk [vmem:[#allocation7 + $0xf0] sm:$0xf] %vm2611_vm9, %v5282_v4  ;;  %8195 = vrot.lane.b32.xlu1 %v18333_v22, %s15701_s26  ;;  %8193 = vrot.lane.b32.xlu0 %v18335_v9, %s15701_s26  ;;  %v14454_v16 = vpack.c.bf16 %v6342_v21, %v6342_v21 }
 0x483   : > { %8482 = vst.msk [vmem:[#allocation7 + $0x6c] sm:$0xf] %vm1068_vm3, %v18338_v3  ;;  %8481 = vst.msk [vmem:[#allocation7 + $0x64] sm:$0xf] %vm1068_vm3, %v18345_v38 }
 0x484   : > { %v5540_v41 = vpop.permute.xlu1 %5539  ;;  %6502 = vst.msk [vmem:[#allocation7 + $0x88] sm:$0xf] %vm1068_vm3, %v14454_v16 }
 0x485   : > { %5604 = vst.msk [vmem:[#allocation7 + $0xf8] sm:$0xf] %vm2868_vm10, %v5540_v41  ;;  %v5538_v37 = vpop.permute.xlu0 %5537  ;;  %v15267_v41 = vld [vmem:[#allocation7 + $0xf4] ss:$8 sps:$4 sm:$0xff]  }
 0x486   : > { %5603 = vst.msk [vmem:[#allocation7 + $0xf0] sm:$0xf] %vm2868_vm10, %v5538_v37  ;;  %6663 = vrot.lane.b32.xlu1 %v18276_v32, %s15696_s24  ;;  %6661 = vrot.lane.b32.xlu0 %v18278_v62, %s15696_s24 }
 0x487   : > { %13196 = vmatprep.mubr.msk.bf16.mxu1 %vm786_vm0, %v15267_v41 }
 0x488   : > { %v6648_v7 = vpop.permute.xlu1 %6647 }
 0x489   : > { %6742 = vst.msk [vmem:[#allocation7 + $0x8] sm:$0xf] %vm1325_vm4, %v6648_v7  ;;  %v6646_v46 = vpop.permute.xlu0 %6645 }
 0x48a   : > { %6741 = vst.msk [vmem:[#allocation7] sm:$0xf] %vm1325_vm4, %v6646_v46  ;;  %6919 = vrot.lane.b32.xlu1 %v18106_v12, %s15695_s5  ;;  %6917 = vrot.lane.b32.xlu0 %v18108_v49, %s15695_s5  ;;  %v15286_v59 = vld [vmem:[#allocation7 + $0x64] ss:$8 sps:$4 sm:$0xff]  }
 0x48c   : > { %v6904_v4 = vpop.permute.xlu1 %6903  ;;  %v6198_v51 = vpop.f32.mrf.mxu1  ;;  %v5828_v21 = vld [vmem:[#allocation7 + $0xf8] sm:$0xff] }
 0x48d   : > { %6998 = vst.msk [vmem:[#allocation7 + $0x8] sm:$0xf] %vm1582_vm5, %v6904_v4  ;;  %v6902_v32 = vpop.permute.xlu0 %6901  ;;  %v6199_v62 = vadd.f32 %v18256_v36, %v6198_v51  ;;  %v5827_v16 = vld [vmem:[#allocation7 + $0xf0] sm:$0xff] }
 0x48e   : > { %6997 = vst.msk [vmem:[#allocation7] sm:$0xf] %vm1582_vm5, %v6902_v32  ;;  %v6200_v37 = vpop.f32.mrf.mxu1  ;;  %7175 = vrot.lane.b32.xlu1 %v14636_v20, %s15697_s0  ;;  %7173 = vrot.lane.b32.xlu0 %v14635_v2, %s15697_s0  ;;  %v13170_v12 = vcombine.low %v5827_v16, %v5828_v21  ;;  %v7805_v16 = vld [vmem:[#allocation4 + $0x90] sm:$0xff] }
 0x48f   : > { %v6277_v7 = vmax.f32 %v6199_v62, 0.0  ;;  %v7806_v62 = vld [vmem:[#allocation4 + $0x98] sm:$0xff] }
 0x490   : > { %v7160_v49 = vpop.permute.xlu1 %7159  ;;  %v6201_v46 = vpop.f32.mrf.mxu1  ;;  %6253 = vmatmul.mubr.bf16.gmra.mxu1 %v13170_v12  ;;  %v14638_v37 = vpack.c.bf16 %v7806_v62, %v7806_v62  ;;  %v14637_v12 = vpack.c.bf16 %v7805_v16, %v7805_v16 }
 0x491   : > { %6309 = vst.msk [vmem:[#allocation4 + $0xd9] sm:$0xff] %vm786_vm0, %v6277_v7  ;;  %v7158_v4 = vpop.permute.xlu0 %7157  ;;  %v6202_v51 = vadd.f32 %v18256_v36, %v6201_v46  ;;  %v8062_v46 = vld [vmem:[#allocation4 + $0x99] sm:$0xff] }
 0x492   : > { %7254 = vst.msk [vmem:[#allocation7 + $0x8] sm:$0xf] %vm1839_vm6, %v7160_v49  ;;  %7253 = vst.msk [vmem:[#allocation7] sm:$0xf] %vm1839_vm6, %v7158_v4  ;;  %v6203_v32 = vpop.f32.mrf.mxu1  ;;  %7431 = vrot.lane.b32.xlu1 %v18333_v22, %s15698_s1  ;;  %7429 = vrot.lane.b32.xlu0 %v18335_v9, %s15698_s1  ;;  %v8061_v4 = vld [vmem:[#allocation4 + $0x91] sm:$0xff] }
 0x493   : > { %v6278_v20 = vmax.f32 %v6202_v51, 0.0 }
 0x494   : > { %v7416_v2 = vpop.permute.xlu1 %7415 }
 0x495   : > { %6310 = vst.msk [vmem:[#allocation4 + $0xe1] sm:$0xff] %vm786_vm0, %v6278_v20  ;;  %v7414_v21 = vpop.permute.xlu0 %7413  ;;  %v18390_v20 = vpack.c.bf16 %v8062_v46, %v8062_v46 }
 0x496   : > { %7510 = vst.msk [vmem:[#allocation7 + $0x8] sm:$0xf] %vm2096_vm7, %v7416_v2  ;;  %7509 = vst.msk [vmem:[#allocation7] sm:$0xf] %vm2096_vm7, %v7414_v21  ;;  %7687 = vrot.lane.b32.xlu1 %v18164_v55, %s15699_s30  ;;  %7685 = vrot.lane.b32.xlu0 %v18171_v24, %s15699_s30  ;;  %v18392_v2 = vpack.c.bf16 %v8061_v4, %v8061_v4 }
 0x498   : > { %v7672_v41 = vpop.permute.xlu1 %7671  ;;  %v6343_v7 = vld [vmem:[#allocation4 + $0xd8] sm:$0xff] }
 0x499   : > { %7766 = vst.msk [vmem:[#allocation7 + $0x8] sm:$0xf] %vm2353_vm8, %v7672_v41  ;;  %v7670_v49 = vpop.permute.xlu0 %7669  ;;  %v14455_v51 = vpack.c.bf16 %v6343_v7, %v6343_v7 }
 0x49a   : > { %7765 = vst.msk [vmem:[#allocation7] sm:$0xf] %vm2353_vm8, %v7670_v49  ;;  %7943 = vrot.lane.b32.xlu1 %v14638_v37, %s15700_s4  ;;  %7941 = vrot.lane.b32.xlu0 %v14637_v12, %s15700_s4 }
 0x49b   : > { %6503 = vst.msk [vmem:[#allocation7 + $0x90] sm:$0xf] %vm1068_vm3, %v14455_v51 }
 0x49c   : > { %v7928_v32 = vpop.permute.xlu1 %7927  ;;  %v7558_v21 = vld [vmem:[#allocation4 + $0xe2] sm:$0xff]  ;;  %v7557_v41 = vld [vmem:[#allocation4 + $0xda] sm:$0xff] }
 0x49d   : > { %8022 = vst.msk [vmem:[#allocation7 + $0x8] sm:$0xf] %vm2611_vm9, %v7928_v32  ;;  %v7926_v62 = vpop.permute.xlu0 %7925  ;;  %v18395_v16 = vpack.c.bf16 %v7558_v21, %v7558_v21  ;;  %v6344_v7 = vld [vmem:[#allocation4 + $0xe0] sm:$0xff]  ;;  %v18402_v49 = vpack.c.bf16 %v7557_v41, %v7557_v41 }
 0x49e   : > { %8021 = vst.msk [vmem:[#allocation7] sm:$0xf] %vm2611_vm9, %v7926_v62  ;;  %8199 = vrot.lane.b32.xlu1 %v18390_v20, %s15701_s26  ;;  %8197 = vrot.lane.b32.xlu0 %v18392_v2, %s15701_s26  ;;  %v14456_v46 = vpack.c.bf16 %v6344_v7, %v6344_v7  ;;  %v9061_v32 = vld [vmem:[#allocation4] ss:$2 sm:$0xff] }
 0x49f   : > { %8484 = vst.msk [vmem:[#allocation7 + $0x7c] sm:$0xf] %vm1068_vm3, %v18395_v16  ;;  %8483 = vst.msk [vmem:[#allocation7 + $0x74] sm:$0xf] %vm1068_vm3, %v18402_v49  ;;  %v14725_v41 = vpack.c.bf16 %v9061_v32, %v9061_v32 }
 0x4a0   : > { %v8184_v4 = vpop.permute.xlu1 %8183  ;;  %6504 = vst.msk [vmem:[#allocation7 + $0x98] sm:$0xf] %vm1068_vm3, %v14456_v46 }
 0x4a1   : > { %8278 = vst.msk [vmem:[#allocation7 + $0x8] sm:$0xf] %vm2868_vm10, %v8184_v4  ;;  %v8182_v51 = vpop.permute.xlu0 %8181 }
 0x4a2   : > { %8277 = vst.msk [vmem:[#allocation7] sm:$0xf] %vm2868_vm10, %v8182_v51  ;;  %6667 = vrot.lane.b32.xlu1 %v18333_v22, %s15696_s24  ;;  %6665 = vrot.lane.b32.xlu0 %v18335_v9, %s15696_s24 }
 0x4a4   : > { %v6652_v21 = vpop.permute.xlu1 %6651 }
 0x4a5   : > { %6744 = vst.msk [vmem:[#allocation7 + $0x18] sm:$0xf] %vm1325_vm4, %v6652_v21  ;;  %v6650_v62 = vpop.permute.xlu0 %6649 }
 0x4a6   : > { %6743 = vst.msk [vmem:[#allocation7 + $0x10] sm:$0xf] %vm1325_vm4, %v6650_v62  ;;  %6923 = vrot.lane.b32.xlu1 %v18164_v55, %s15695_s5  ;;  %6921 = vrot.lane.b32.xlu0 %v18171_v24, %s15695_s5 }
 0x4a8   : > { %v6908_v46 = vpop.permute.xlu1 %6907  ;;  %v8502_v22 = vld [vmem:[#allocation7 + $0x8] sm:$0xff] }
 0x4a9   : > { %v6206_v7 = vpop.f32.mrf.mxu1  ;;  %v8501_v4 = vld [vmem:[#allocation7] sm:$0xff]  ;;  %7000 = vst.msk [vmem:[#allocation7 + $0x18] sm:$0xf] %vm1582_vm5, %v6908_v46  ;;  %v6906_v51 = vpop.permute.xlu0 %6905 }
 0x4aa   : > { %v6207_v9 = vadd.f32 %v18256_v36, %v6206_v7  ;;  %9108 = vst.msk [vmem:[#allocation7] sm:$0xf] %vm1068_vm3, %v14725_v41  ;;  %7179 = vrot.lane.b32.xlu1 %v14638_v37, %s15697_s0  ;;  %7177 = vrot.lane.b32.xlu0 %v14637_v12, %s15697_s0  ;;  %v13487_v55 = vcombine.high %v8501_v4, %v8502_v22 }
 0x4ab   : > { %6999 = vst.msk [vmem:[#allocation7 + $0x10] sm:$0xf] %vm1582_vm5, %v6906_v51  ;;  %v6208_v32 = vpop.f32.mrf.mxu1  ;;  %v13486_v24 = vcombine.low %v8501_v4, %v8502_v22  ;;  %v7808_v4 = vld [vmem:[#allocation4 + $0xb0] sm:$0xff] }
 0x4ac   : > { %v6279_v21 = vmax.f32 %v6207_v9, 0.0  ;;  %13527 = vmatprep.mubr.msk.bf16.mxu0 %vm786_vm0, %v13487_v55  ;;  %v7164_v1 = vpop.permute.xlu1 %7163  ;;  %v7807_v9 = vld [vmem:[#allocation4 + $0xa8] sm:$0xff]  ;;  %v14640_v51 = vpack.c.bf16 %v7808_v4, %v7808_v4 }
 0x4ad   : > { %v6209_v62 = vpop.f32.mrf.mxu1  ;;  %8837 = vmatmul.mubr.bf16.vlgmr.msra.gmra.mxu0 %v13486_v24  ;;  %7256 = vst.msk [vmem:[#allocation7 + $0x18] sm:$0xf] %vm1839_vm6, %v7164_v1  ;;  %v7162_v41 = vpop.permute.xlu0 %7161  ;;  %v14639_v32 = vpack.c.bf16 %v7807_v9, %v7807_v9 }
 0x4ae   : > { %6311 = vst.msk [vmem:[#allocation4 + $0xf1] sm:$0xff] %vm786_vm0, %v6279_v21  ;;  %v6210_v7 = vadd.f32 %v18256_v36, %v6209_v62  ;;  %7435 = vrot.lane.b32.xlu1 %v18390_v20, %s15698_s1  ;;  %7433 = vrot.lane.b32.xlu0 %v18392_v2, %s15698_s1  ;;  %v8064_v21 = vld [vmem:[#allocation4 + $0xb1] sm:$0xff]  ;;  %v8063_v62 = vld [vmem:[#allocation4 + $0xa9] sm:$0xff] }
 0x4af   : > { %7255 = vst.msk [vmem:[#allocation7 + $0x10] sm:$0xf] %vm1839_vm6, %v7162_v41  ;;  %v6211_v37 = vpop.f32.mrf.mxu1 }
 0x4b0   : > { %v6280_v12 = vmax.f32 %v6210_v7, 0.0  ;;  %v7420_v46 = vpop.permute.xlu1 %7419  ;;  %v18448_v37 = vpack.c.bf16 %v8064_v21, %v8064_v21 }
 0x4b1   : > { %7512 = vst.msk [vmem:[#allocation7 + $0x18] sm:$0xf] %vm2096_vm7, %v7420_v46  ;;  %v7418_v22 = vpop.permute.xlu0 %7417 }
 0x4b2   : > { %6312 = vst.msk [vmem:[#allocation4 + $0xf9] sm:$0xff] %vm786_vm0, %v6280_v12  ;;  %7691 = vrot.lane.b32.xlu1 %v18219_v56, %s15699_s30  ;;  %7689 = vrot.lane.b32.xlu0 %v18226_v42, %s15699_s30  ;;  %v18450_v12 = vpack.c.bf16 %v8063_v62, %v8063_v62 }
 0x4b3   : > { %7511 = vst.msk [vmem:[#allocation7 + $0x10] sm:$0xf] %vm2096_vm7, %v7418_v22 }
 0x4b4   : > { %v7676_v1 = vpop.permute.xlu1 %7675 }
 0x4b5   : > { %v6345_v55 = vld [vmem:[#allocation4 + $0xf0] sm:$0xff]  ;;  %7768 = vst.msk [vmem:[#allocation7 + $0x18] sm:$0xf] %vm2353_vm8, %v7676_v1  ;;  %v7674_v24 = vpop.permute.xlu0 %7673 }
 0x4b6   : > { %v14457_v7 = vpack.c.bf16 %v6345_v55, %v6345_v55  ;;  %7767 = vst.msk [vmem:[#allocation7 + $0x10] sm:$0xf] %vm2353_vm8, %v7674_v24  ;;  %7947 = vrot.lane.b32.xlu1 %v14640_v51, %s15700_s4  ;;  %7945 = vrot.lane.b32.xlu0 %v14639_v32, %s15700_s4 }
 0x4b8   : > { %6505 = vst.msk [vmem:[#allocation7 + $0xa0] sm:$0xf] %vm1068_vm3, %v14457_v7  ;;  %v7932_v41 = vpop.permute.xlu1 %7931 }
 0x4b9   : > { %v7560_v46 = vld [vmem:[#allocation4 + $0xfa] sm:$0xff]  ;;  %8024 = vst.msk [vmem:[#allocation7 + $0x18] sm:$0xf] %vm2611_vm9, %v7932_v41  ;;  %v7930_v22 = vpop.permute.xlu0 %7929  ;;  %v7559_v9 = vld [vmem:[#allocation4 + $0xf2] sm:$0xff] }
 0x4ba   : > { %v18453_v4 = vpack.c.bf16 %v7560_v46, %v7560_v46  ;;  %v6346_v1 = vld [vmem:[#allocation4 + $0xf8] sm:$0xff]  ;;  %8023 = vst.msk [vmem:[#allocation7 + $0x10] sm:$0xf] %vm2611_vm9, %v7930_v22  ;;  %8203 = vrot.lane.b32.xlu1 %v18448_v37, %s15701_s26  ;;  %8201 = vrot.lane.b32.xlu0 %v18450_v12, %s15701_s26  ;;  %v18460_v55 = vpack.c.bf16 %v7559_v9, %v7559_v9 }
 0x4bb   : > { %v14458_v24 = vpack.c.bf16 %v6346_v1, %v6346_v1 }
 0x4bc   : > { %8486 = vst.msk [vmem:[#allocation7 + $0x8c] sm:$0xf] %vm1068_vm3, %v18453_v4  ;;  %v8188_v21 = vpop.permute.xlu1 %8187  ;;  %8485 = vst.msk [vmem:[#allocation7 + $0x84] sm:$0xf] %vm1068_vm3, %v18460_v55 }
 0x4bd   : > { %6506 = vst.msk [vmem:[#allocation7 + $0xa8] sm:$0xf] %vm1068_vm3, %v14458_v24  ;;  %v8186_v62 = vpop.permute.xlu0 %8185  ;;  %v15276_v24 = vld [vmem:[#allocation7 + $0x14] ss:$8 sps:$4 sm:$0xff]  }
 0x4be   : > { %8280 = vst.msk [vmem:[#allocation7 + $0x18] sm:$0xf] %vm2868_vm10, %v8188_v21  ;;  %8279 = vst.msk [vmem:[#allocation7 + $0x10] sm:$0xf] %vm2868_vm10, %v8186_v62  ;;  %6671 = vrot.lane.b32.xlu1 %v18390_v20, %s15696_s24  ;;  %6669 = vrot.lane.b32.xlu0 %v18392_v2, %s15696_s24 }
 0x4bf   : > { %13528 = vmatprep.mubr.msk.bf16.mxu0 %vm786_vm0, %v15276_v24 }
 0x4c0   : > { %v6656_v7 = vpop.permute.xlu1 %6655 }
 0x4c1   : > { %6746 = vst.msk [vmem:[#allocation7 + $0x28] sm:$0xf] %vm1325_vm4, %v6656_v7  ;;  %v6654_v41 = vpop.permute.xlu0 %6653 }
 0x4c2   : > { %6745 = vst.msk [vmem:[#allocation7 + $0x20] sm:$0xf] %vm1325_vm4, %v6654_v41  ;;  %6927 = vrot.lane.b32.xlu1 %v18219_v56, %s15695_s5  ;;  %6925 = vrot.lane.b32.xlu0 %v18226_v42, %s15695_s5 }
 0x4c4   : > { %v6912_v22 = vpop.permute.xlu1 %6911 }
 0x4c5   : > { %v6214_v46 = vpop.f32.mrf.mxu1  ;;  %v8504_v9 = vld [vmem:[#allocation7 + $0x18] sm:$0xff]  ;;  %7002 = vst.msk [vmem:[#allocation7 + $0x28] sm:$0xf] %vm1582_vm5, %v6912_v22  ;;  %v6910_v2 = vpop.permute.xlu0 %6909  ;;  %v8503_v1 = vld [vmem:[#allocation7 + $0x10] sm:$0xff] }
 0x4c6   : > { %v6215_v20 = vadd.f32 %v18256_v36, %v6214_v46  ;;  %7001 = vst.msk [vmem:[#allocation7 + $0x20] sm:$0xf] %vm1582_vm5, %v6910_v2  ;;  %7183 = vrot.lane.b32.xlu1 %v14640_v51, %s15697_s0  ;;  %7181 = vrot.lane.b32.xlu0 %v14639_v32, %s15697_s0  ;;  %v13488_v56 = vcombine.low %v8503_v1, %v8504_v9  ;;  %v7809_v2 = vld [vmem:[#allocation4 + $0xc0] sm:$0xff] }
 0x4c7   : > { %v6216_v21 = vpop.f32.mrf.mxu1 }
 0x4c8   : > { %v6281_v62 = vmax.f32 %v6215_v20, 0.0  ;;  %v7168_v7 = vpop.permute.xlu1 %7167  ;;  %8845 = vmatmul.mubr.bf16.gmra.mxu0 %v13488_v56  ;;  %v7810_v20 = vld [vmem:[#allocation4 + $0xc8] sm:$0xff]  ;;  %v14641_v21 = vpack.c.bf16 %v7809_v2, %v7809_v2 }
 0x4c9   : > { %v6217_v42 = vpop.f32.mrf.mxu1  ;;  %7258 = vst.msk [vmem:[#allocation7 + $0x28] sm:$0xf] %vm1839_vm6, %v7168_v7  ;;  %v7166_v46 = vpop.permute.xlu0 %7165  ;;  %v14642_v24 = vpack.c.bf16 %v7810_v20, %v7810_v20  ;;  %v8065_v7 = vld [vmem:[#allocation4 + $0xc1] sm:$0xff] }
 0x4ca   : > { %6313 = vst.msk [vmem:[#allocation4 + $0x109] sm:$0xff] %vm786_vm0, %v6281_v62  ;;  %v6218_v41 = vadd.f32 %v18256_v36, %v6217_v42  ;;  %7439 = vrot.lane.b32.xlu1 %v18448_v37, %s15698_s1  ;;  %7437 = vrot.lane.b32.xlu0 %v18450_v12, %s15698_s1  ;;  %v8066_v42 = vld [vmem:[#allocation4 + $0xc9] sm:$0xff] }
 0x4cb   : > { %7257 = vst.msk [vmem:[#allocation7 + $0x20] sm:$0xf] %vm1839_vm6, %v7166_v46  ;;  %v6219_v22 = vpop.f32.mrf.mxu1 }
 0x4cc   : > { %v6282_v51 = vmax.f32 %v6218_v41, 0.0  ;;  %v7424_v32 = vpop.permute.xlu1 %7423  ;;  %v18505_v22 = vpack.c.bf16 %v8066_v42, %v8066_v42 }
 0x4cd   : > { %7514 = vst.msk [vmem:[#allocation7 + $0x28] sm:$0xf] %vm2096_vm7, %v7424_v32  ;;  %v7422_v9 = vpop.permute.xlu0 %7421 }
 0x4ce   : > { %6314 = vst.msk [vmem:[#allocation4 + $0x111] sm:$0xff] %vm786_vm0, %v6282_v51  ;;  %7695 = vrot.lane.b32.xlu1 %v18281_v14, %s15699_s30  ;;  %7693 = vrot.lane.b32.xlu0 %v18288_v34, %s15699_s30  ;;  %v18507_v51 = vpack.c.bf16 %v8065_v7, %v8065_v7 }
 0x4cf   : > { %7513 = vst.msk [vmem:[#allocation7 + $0x20] sm:$0xf] %vm2096_vm7, %v7422_v9 }
 0x4d0   : > { %v7680_v1 = vpop.permute.xlu1 %7679 }
 0x4d1   : > { %v6347_v56 = vld [vmem:[#allocation4 + $0x108] sm:$0xff]  ;;  %7770 = vst.msk [vmem:[#allocation7 + $0x28] sm:$0xf] %vm2353_vm8, %v7680_v1  ;;  %v7678_v62 = vpop.permute.xlu0 %7677 }
 0x4d2   : > { %v14459_v41 = vpack.c.bf16 %v6347_v56, %v6347_v56  ;;  %7769 = vst.msk [vmem:[#allocation7 + $0x20] sm:$0xf] %vm2353_vm8, %v7678_v62  ;;  %7951 = vrot.lane.b32.xlu1 %v14642_v24, %s15700_s4  ;;  %7949 = vrot.lane.b32.xlu0 %v14641_v21, %s15700_s4 }
 0x4d4   : > { %6507 = vst.msk [vmem:[#allocation7 + $0xb0] sm:$0xf] %vm1068_vm3, %v14459_v41  ;;  %v7936_v46 = vpop.permute.xlu1 %7935 }
 0x4d5   : > { %v7562_v32 = vld [vmem:[#allocation4 + $0x112] sm:$0xff]  ;;  %8026 = vst.msk [vmem:[#allocation7 + $0x28] sm:$0xf] %vm2611_vm9, %v7936_v46  ;;  %v7934_v9 = vpop.permute.xlu0 %7933  ;;  %v7561_v2 = vld [vmem:[#allocation4 + $0x10a] sm:$0xff] }
 0x4d6   : > { %v18510_v20 = vpack.c.bf16 %v7562_v32, %v7562_v32  ;;  %v6348_v1 = vld [vmem:[#allocation4 + $0x110] sm:$0xff]  ;;  %8025 = vst.msk [vmem:[#allocation7 + $0x20] sm:$0xf] %vm2611_vm9, %v7934_v9  ;;  %8207 = vrot.lane.b32.xlu1 %v18505_v22, %s15701_s26  ;;  %8205 = vrot.lane.b32.xlu0 %v18507_v51, %s15701_s26  ;;  %v18517_v56 = vpack.c.bf16 %v7561_v2, %v7561_v2 }
 0x4d7   : > { %v14460_v62 = vpack.c.bf16 %v6348_v1, %v6348_v1 }
 0x4d8   : > { %8488 = vst.msk [vmem:[#allocation7 + $0x9c] sm:$0xf] %vm1068_vm3, %v18510_v20  ;;  %v8192_v42 = vpop.permute.xlu1 %8191  ;;  %8487 = vst.msk [vmem:[#allocation7 + $0x94] sm:$0xf] %vm1068_vm3, %v18517_v56 }
 0x4d9   : > { %6508 = vst.msk [vmem:[#allocation7 + $0xb8] sm:$0xf] %vm1068_vm3, %v14460_v62  ;;  %v8190_v7 = vpop.permute.xlu0 %8189  ;;  %v15278_v62 = vld [vmem:[#allocation7 + $0x24] ss:$8 sps:$4 sm:$0xff]  }
 0x4da   : > { %8282 = vst.msk [vmem:[#allocation7 + $0x28] sm:$0xf] %vm2868_vm10, %v8192_v42  ;;  %8281 = vst.msk [vmem:[#allocation7 + $0x20] sm:$0xf] %vm2868_vm10, %v8190_v7  ;;  %6675 = vrot.lane.b32.xlu1 %v18448_v37, %s15696_s24  ;;  %6673 = vrot.lane.b32.xlu0 %v18450_v12, %s15696_s24 }
 0x4db   : > { %13529 = vmatprep.mubr.msk.bf16.mxu0 %vm786_vm0, %v15278_v62 }
 0x4dc   : > { %v6660_v41 = vpop.permute.xlu1 %6659 }
 0x4dd   : > { %6748 = vst.msk [vmem:[#allocation7 + $0x38] sm:$0xf] %vm1325_vm4, %v6660_v41  ;;  %v6658_v46 = vpop.permute.xlu0 %6657 }
 0x4de   : > { %6747 = vst.msk [vmem:[#allocation7 + $0x30] sm:$0xf] %vm1325_vm4, %v6658_v46  ;;  %6931 = vrot.lane.b32.xlu1 %v18281_v14, %s15695_s5  ;;  %6929 = vrot.lane.b32.xlu0 %v18288_v34, %s15695_s5 }
 0x4e0   : > { %v6916_v9 = vpop.permute.xlu1 %6915 }
 0x4e1   : > { %v6222_v32 = vpop.f32.mrf.mxu1  ;;  %v8506_v2 = vld [vmem:[#allocation7 + $0x28] sm:$0xff]  ;;  %7004 = vst.msk [vmem:[#allocation7 + $0x38] sm:$0xf] %vm1582_vm5, %v6916_v9  ;;  %v6914_v12 = vpop.permute.xlu0 %6913  ;;  %v8505_v1 = vld [vmem:[#allocation7 + $0x20] sm:$0xff] }
 0x4e2   : > { %v6223_v37 = vadd.f32 %v18256_v36, %v6222_v32  ;;  %7003 = vst.msk [vmem:[#allocation7 + $0x30] sm:$0xf] %vm1582_vm5, %v6914_v12  ;;  %7187 = vrot.lane.b32.xlu1 %v14642_v24, %s15697_s0  ;;  %7185 = vrot.lane.b32.xlu0 %v14641_v21, %s15697_s0  ;;  %v13490_v14 = vcombine.low %v8505_v1, %v8506_v2  ;;  %v7811_v12 = vld [vmem:[#allocation4 + $0xd8] sm:$0xff] }
 0x4e3   : > { %v6224_v42 = vpop.f32.mrf.mxu1 }
 0x4e4   : > { %v6283_v7 = vmax.f32 %v6223_v37, 0.0  ;;  %v7172_v41 = vpop.permute.xlu1 %7171  ;;  %8853 = vmatmul.mubr.bf16.gmra.mxu0 %v13490_v14  ;;  %v7812_v37 = vld [vmem:[#allocation4 + $0xe0] sm:$0xff]  ;;  %v14643_v42 = vpack.c.bf16 %v7811_v12, %v7811_v12 }
 0x4e5   : > { %v6225_v34 = vpop.f32.mrf.mxu1  ;;  %7260 = vst.msk [vmem:[#allocation7 + $0x38] sm:$0xf] %vm1839_vm6, %v7172_v41  ;;  %v7170_v32 = vpop.permute.xlu0 %7169  ;;  %v14644_v62 = vpack.c.bf16 %v7812_v37, %v7812_v37  ;;  %v8067_v41 = vld [vmem:[#allocation4 + $0xd9] sm:$0xff] }
 0x4e6   : > { %6315 = vst.msk [vmem:[#allocation4 + $0x121] sm:$0xff] %vm786_vm0, %v6283_v7  ;;  %v6226_v46 = vadd.f32 %v18256_v36, %v6225_v34  ;;  %7443 = vrot.lane.b32.xlu1 %v18505_v22, %s15698_s1  ;;  %7441 = vrot.lane.b32.xlu0 %v18507_v51, %s15698_s1  ;;  %v8068_v34 = vld [vmem:[#allocation4 + $0xe1] sm:$0xff] }
 0x4e7   : > { %7259 = vst.msk [vmem:[#allocation7 + $0x30] sm:$0xf] %vm1839_vm6, %v7170_v32  ;;  %v6227_v9 = vpop.f32.mrf.mxu1 }
 0x4e8   : > { %v6284_v24 = vmax.f32 %v6226_v46, 0.0  ;;  %v7428_v21 = vpop.permute.xlu1 %7427  ;;  %v18562_v9 = vpack.c.bf16 %v8068_v34, %v8068_v34 }
 0x4e9   : > { %7516 = vst.msk [vmem:[#allocation7 + $0x38] sm:$0xf] %vm2096_vm7, %v7428_v21  ;;  %v7426_v2 = vpop.permute.xlu0 %7425 }
 0x4ea   : > { %6316 = vst.msk [vmem:[#allocation4 + $0x129] sm:$0xff] %vm786_vm0, %v6284_v24  ;;  %7699 = vrot.lane.b32.xlu1 %v18338_v3, %s15699_s30  ;;  %7697 = vrot.lane.b32.xlu0 %v18345_v38, %s15699_s30  ;;  %v18564_v24 = vpack.c.bf16 %v8067_v41, %v8067_v41 }
 0x4eb   : > { %7515 = vst.msk [vmem:[#allocation7 + $0x30] sm:$0xf] %vm2096_vm7, %v7426_v2 }
 0x4ec   : > { %v7684_v1 = vpop.permute.xlu1 %7683 }
 0x4ed   : > { %v6349_v14 = vld [vmem:[#allocation4 + $0x120] sm:$0xff]  ;;  %7772 = vst.msk [vmem:[#allocation7 + $0x38] sm:$0xf] %vm2353_vm8, %v7684_v1  ;;  %v7682_v7 = vpop.permute.xlu0 %7681 }
 0x4ee   : > { %v14461_v46 = vpack.c.bf16 %v6349_v14, %v6349_v14  ;;  %7771 = vst.msk [vmem:[#allocation7 + $0x30] sm:$0xf] %vm2353_vm8, %v7682_v7  ;;  %7955 = vrot.lane.b32.xlu1 %v14644_v62, %s15700_s4  ;;  %7953 = vrot.lane.b32.xlu0 %v14643_v42, %s15700_s4 }
 0x4f0   : > { %6509 = vst.msk [vmem:[#allocation7 + $0xc0] sm:$0xf] %vm1068_vm3, %v14461_v46  ;;  %v7940_v32 = vpop.permute.xlu1 %7939 }
 0x4f1   : > { %v7564_v21 = vld [vmem:[#allocation4 + $0x12a] sm:$0xff]  ;;  %8028 = vst.msk [vmem:[#allocation7 + $0x38] sm:$0xf] %vm2611_vm9, %v7940_v32  ;;  %v7938_v2 = vpop.permute.xlu0 %7937  ;;  %v7563_v12 = vld [vmem:[#allocation4 + $0x122] sm:$0xff] }
 0x4f2   : > { %v18567_v37 = vpack.c.bf16 %v7564_v21, %v7564_v21  ;;  %v6350_v1 = vld [vmem:[#allocation4 + $0x128] sm:$0xff]  ;;  %8027 = vst.msk [vmem:[#allocation7 + $0x30] sm:$0xf] %vm2611_vm9, %v7938_v2  ;;  %8211 = vrot.lane.b32.xlu1 %v18562_v9, %s15701_s26  ;;  %8209 = vrot.lane.b32.xlu0 %v18564_v24, %s15701_s26  ;;  %v18574_v14 = vpack.c.bf16 %v7563_v12, %v7563_v12 }
 0x4f3   : > { %v14462_v7 = vpack.c.bf16 %v6350_v1, %v6350_v1 }
 0x4f4   : > { %8490 = vst.msk [vmem:[#allocation7 + $0xac] sm:$0xf] %vm1068_vm3, %v18567_v37  ;;  %v8196_v34 = vpop.permute.xlu1 %8195  ;;  %8489 = vst.msk [vmem:[#allocation7 + $0xa4] sm:$0xf] %vm1068_vm3, %v18574_v14 }
 0x4f5   : > { %6510 = vst.msk [vmem:[#allocation7 + $0xc8] sm:$0xf] %vm1068_vm3, %v14462_v7  ;;  %v8194_v41 = vpop.permute.xlu0 %8193  ;;  %v15280_v7 = vld [vmem:[#allocation7 + $0x34] ss:$8 sps:$4 sm:$0xff]  }
 0x4f6   : > { %8284 = vst.msk [vmem:[#allocation7 + $0x38] sm:$0xf] %vm2868_vm10, %v8196_v34  ;;  %8283 = vst.msk [vmem:[#allocation7 + $0x30] sm:$0xf] %vm2868_vm10, %v8194_v41  ;;  %6679 = vrot.lane.b32.xlu1 %v18505_v22, %s15696_s24  ;;  %6677 = vrot.lane.b32.xlu0 %v18507_v51, %s15696_s24 }
 0x4f7   : > { %13530 = vmatprep.mubr.msk.bf16.mxu0 %vm786_vm0, %v15280_v7 }
 0x4f8   : > { %v6664_v46 = vpop.permute.xlu1 %6663 }
 0x4f9   : > { %6750 = vst.msk [vmem:[#allocation7 + $0x48] sm:$0xf] %vm1325_vm4, %v6664_v46  ;;  %v6662_v32 = vpop.permute.xlu0 %6661 }
 0x4fa   : > { %6749 = vst.msk [vmem:[#allocation7 + $0x40] sm:$0xf] %vm1325_vm4, %v6662_v32  ;;  %6935 = vrot.lane.b32.xlu1 %v18338_v3, %s15695_s5  ;;  %6933 = vrot.lane.b32.xlu0 %v18345_v38, %s15695_s5 }
 0x4fc   : > { %v6230_v21 = vpop.f32.mrf.mxu1  ;;  %v6920_v2 = vpop.permute.xlu1 %6919 }
 0x4fd   : > { %v8508_v12 = vld [vmem:[#allocation7 + $0x38] sm:$0xff]  ;;  %v6231_v22 = vadd.f32 %v18256_v36, %v6230_v21  ;;  %7006 = vst.msk [vmem:[#allocation7 + $0x48] sm:$0xf] %vm1582_vm5, %v6920_v2  ;;  %v6918_v51 = vpop.permute.xlu0 %6917  ;;  %v8507_v1 = vld [vmem:[#allocation7 + $0x30] sm:$0xff] }
 0x4fe   : > { %7005 = vst.msk [vmem:[#allocation7 + $0x40] sm:$0xf] %vm1582_vm5, %v6918_v51  ;;  %v6232_v34 = vpop.f32.mrf.mxu1  ;;  %7191 = vrot.lane.b32.xlu1 %v14644_v62, %s15697_s0  ;;  %7189 = vrot.lane.b32.xlu0 %v14643_v42, %s15697_s0  ;;  %v13492_v3 = vcombine.low %v8507_v1, %v8508_v12 }
 0x4ff   : > { %v6285_v41 = vmax.f32 %v6231_v22, 0.0  ;;  %v7813_v22 = vld [vmem:[#allocation4 + $0xf0] sm:$0xff] }
 0x500   : > { %v6233_v38 = vpop.f32.mrf.mxu1  ;;  %v7176_v46 = vpop.permute.xlu1 %7175  ;;  %8861 = vmatmul.mubr.bf16.gmra.mxu0 %v13492_v3  ;;  %v14645_v7 = vpack.c.bf16 %v7813_v22, %v7813_v22 }
 0x501   : > { %6317 = vst.msk [vmem:[#allocation4 + $0x139] sm:$0xff] %vm786_vm0, %v6285_v41  ;;  %v6234_v32 = vadd.f32 %v18256_v36, %v6233_v38  ;;  %v7174_v21 = vpop.permute.xlu0 %7173  ;;  %v7814_v36 = vld [vmem:[#allocation4 + $0xf8] sm:$0xff] }
 0x502   : > { %7262 = vst.msk [vmem:[#allocation7 + $0x48] sm:$0xf] %vm1839_vm6, %v7176_v46  ;;  %7261 = vst.msk [vmem:[#allocation7 + $0x40] sm:$0xf] %vm1839_vm6, %v7174_v21  ;;  %v6235_v2 = vpop.f32.mrf.mxu1  ;;  %7447 = vrot.lane.b32.xlu1 %v18562_v9, %s15698_s1  ;;  %7445 = vrot.lane.b32.xlu0 %v18564_v24, %s15698_s1  ;;  %v14646_v1 = vpack.c.bf16 %v7814_v36, %v7814_v36  ;;  %v8070_v41 = vld [vmem:[#allocation4 + $0xf9] sm:$0xff]  ;;  %v8069_v38 = vld [vmem:[#allocation4 + $0xf1] sm:$0xff] }
 0x503   : > { %v6286_v62 = vmax.f32 %v6234_v32, 0.0  ;;  %v18619_v21 = vpack.c.bf16 %v8070_v41, %v8070_v41  ;;  %v18621_v2 = vpack.c.bf16 %v8069_v38, %v8069_v38 }
 0x504   : > { %v7432_v42 = vpop.permute.xlu1 %7431 }
 0x505   : > { %6318 = vst.msk [vmem:[#allocation4 + $0x141] sm:$0xff] %vm786_vm0, %v6286_v62  ;;  %v7430_v12 = vpop.permute.xlu0 %7429 }
 0x506   : > { %7518 = vst.msk [vmem:[#allocation7 + $0x48] sm:$0xf] %vm2096_vm7, %v7432_v42  ;;  %7517 = vst.msk [vmem:[#allocation7 + $0x40] sm:$0xf] %vm2096_vm7, %v7430_v12  ;;  %7703 = vrot.lane.b32.xlu1 %v18395_v16, %s15699_s30  ;;  %7701 = vrot.lane.b32.xlu0 %v18402_v49, %s15699_s30 }
 0x508   : > { %v7688_v51 = vpop.permute.xlu1 %7687  ;;  %v6351_v34 = vld [vmem:[#allocation4 + $0x138] sm:$0xff] }
 0x509   : > { %7774 = vst.msk [vmem:[#allocation7 + $0x48] sm:$0xf] %vm2353_vm8, %v7688_v51  ;;  %v7686_v3 = vpop.permute.xlu0 %7685  ;;  %v14463_v46 = vpack.c.bf16 %v6351_v34, %v6351_v34 }
 0x50a   : > { %7773 = vst.msk [vmem:[#allocation7 + $0x40] sm:$0xf] %vm2353_vm8, %v7686_v3  ;;  %7959 = vrot.lane.b32.xlu1 %v14646_v1, %s15700_s4  ;;  %7957 = vrot.lane.b32.xlu0 %v14645_v7, %s15700_s4 }
 0x50b   : > { %6511 = vst.msk [vmem:[#allocation7 + $0xd0] sm:$0xf] %vm1068_vm3, %v14463_v46 }
 0x50c   : > { %v7944_v32 = vpop.permute.xlu1 %7943  ;;  %v7566_v62 = vld [vmem:[#allocation4 + $0x142] sm:$0xff]  ;;  %v7565_v36 = vld [vmem:[#allocation4 + $0x13a] sm:$0xff] }
 0x50d   : > { %8030 = vst.msk [vmem:[#allocation7 + $0x48] sm:$0xf] %vm2611_vm9, %v7944_v32  ;;  %v7942_v42 = vpop.permute.xlu0 %7941  ;;  %v18624_v12 = vpack.c.bf16 %v7566_v62, %v7566_v62  ;;  %v6352_v22 = vld [vmem:[#allocation4 + $0x140] sm:$0xff]  ;;  %v18631_v51 = vpack.c.bf16 %v7565_v36, %v7565_v36 }
 0x50e   : > { %8029 = vst.msk [vmem:[#allocation7 + $0x40] sm:$0xf] %vm2611_vm9, %v7942_v42  ;;  %8215 = vrot.lane.b32.xlu1 %v18619_v21, %s15701_s26  ;;  %8213 = vrot.lane.b32.xlu0 %v18621_v2, %s15701_s26  ;;  %v14464_v34 = vpack.c.bf16 %v6352_v22, %v6352_v22 }
 0x50f   : > { %8492 = vst.msk [vmem:[#allocation7 + $0xbc] sm:$0xf] %vm1068_vm3, %v18624_v12  ;;  %8491 = vst.msk [vmem:[#allocation7 + $0xb4] sm:$0xf] %vm1068_vm3, %v18631_v51 }
 0x510   : > { %v8200_v3 = vpop.permute.xlu1 %8199  ;;  %6512 = vst.msk [vmem:[#allocation7 + $0xd8] sm:$0xf] %vm1068_vm3, %v14464_v34  ;;  %v15282_v34 = vld [vmem:[#allocation7 + $0x44] ss:$8 sps:$4 sm:$0xff]  }
 0x511   : > { %8286 = vst.msk [vmem:[#allocation7 + $0x48] sm:$0xf] %vm2868_vm10, %v8200_v3  ;;  %v8198_v41 = vpop.permute.xlu0 %8197  ;;  %13531 = vmatprep.mubr.msk.bf16.mxu0 %vm786_vm0, %v15282_v34 }
 0x512   : > { %8285 = vst.msk [vmem:[#allocation7 + $0x40] sm:$0xf] %vm2868_vm10, %v8198_v41  ;;  %6683 = vrot.lane.b32.xlu1 %v18562_v9, %s15696_s24  ;;  %6681 = vrot.lane.b32.xlu0 %v18564_v24, %s15696_s24  ;;  %v18653_v9 = vld [vmem:[%s20075_s21] ss:$0 sm:$0xff] }
 0x514   : > { %v6668_v38 = vpop.permute.xlu1 %6667 }
 0x515   : > { %6752 = vst.msk [vmem:[#allocation7 + $0x58] sm:$0xf] %vm1325_vm4, %v6668_v38  ;;  %v6666_v46 = vpop.permute.xlu0 %6665 }
 0x516   : > { %6751 = vst.msk [vmem:[#allocation7 + $0x50] sm:$0xf] %vm1325_vm4, %v6666_v46  ;;  %6939 = vrot.lane.b32.xlu1 %v18395_v16, %s15695_s5  ;;  %6937 = vrot.lane.b32.xlu0 %v18402_v49, %s15695_s5 }
 0x518   : > { %v6238_v32 = vpop.f32.mrf.mxu1  ;;  %v6924_v62 = vpop.permute.xlu1 %6923  ;;  %v8510_v42 = vld [vmem:[#allocation7 + $0x48] sm:$0xff] }
 0x519   : > { %v6239_v24 = vadd.f32 %v18653_v9, %v6238_v32  ;;  %7008 = vst.msk [vmem:[#allocation7 + $0x58] sm:$0xf] %vm1582_vm5, %v6924_v62  ;;  %v6922_v36 = vpop.permute.xlu0 %6921  ;;  %v8509_v22 = vld [vmem:[#allocation7 + $0x40] sm:$0xff] }
 0x51a   : > { %7007 = vst.msk [vmem:[#allocation7 + $0x50] sm:$0xf] %vm1582_vm5, %v6922_v36  ;;  %v6240_v16 = vpop.f32.mrf.mxu1  ;;  %7195 = vrot.lane.b32.xlu1 %v14646_v1, %s15697_s0  ;;  %7193 = vrot.lane.b32.xlu0 %v14645_v7, %s15697_s0  ;;  %v13494_v49 = vcombine.low %v8509_v22, %v8510_v42  ;;  %v7815_v36 = vld [vmem:[#allocation4 + $0x108] sm:$0xff] }
 0x51b   : > { %v6287_v3 = vmax.f32 %v6239_v24, 0.0  ;;  %v7816_v24 = vld [vmem:[#allocation4 + $0x110] sm:$0xff]  ;;  %v14647_v16 = vpack.c.bf16 %v7815_v36, %v7815_v36 }
 0x51c   : > { %v6241_v41 = vpop.f32.mrf.mxu1  ;;  %v7180_v38 = vpop.permute.xlu1 %7179  ;;  %8869 = vmatmul.mubr.bf16.gmra.mxu0 %v13494_v49  ;;  %v14648_v34 = vpack.c.bf16 %v7816_v24, %v7816_v24 }
 0x51d   : > { %6319 = vst.msk [vmem:[#allocation4 + $0x151] sm:$0xff] %vm786_vm0, %v6287_v3  ;;  %v6242_v46 = vadd.f32 %v18653_v9, %v6241_v41  ;;  %v7178_v32 = vpop.permute.xlu0 %7177  ;;  %v8072_v41 = vld [vmem:[#allocation4 + $0x111] sm:$0xff] }
 0x51e   : > { %7264 = vst.msk [vmem:[#allocation7 + $0x58] sm:$0xf] %vm1839_vm6, %v7180_v38  ;;  %7263 = vst.msk [vmem:[#allocation7 + $0x50] sm:$0xf] %vm1839_vm6, %v7178_v32  ;;  %v6243_v62 = vpop.f32.mrf.mxu1  ;;  %7451 = vrot.lane.b32.xlu1 %v18619_v21, %s15698_s1  ;;  %7449 = vrot.lane.b32.xlu0 %v18621_v2, %s15698_s1  ;;  %v8071_v38 = vld [vmem:[#allocation4 + $0x109] sm:$0xff] }
 0x51f   : > { %v6288_v1 = vmax.f32 %v6242_v46, 0.0  ;;  %v18684_v62 = vpack.c.bf16 %v8072_v41, %v8072_v41 }
 0x520   : > { %v7436_v7 = vpop.permute.xlu1 %7435 }
 0x521   : > { %6320 = vst.msk [vmem:[#allocation4 + $0x159] sm:$0xff] %vm786_vm0, %v6288_v1  ;;  %v7434_v42 = vpop.permute.xlu0 %7433  ;;  %v18686_v1 = vpack.c.bf16 %v8071_v38, %v8071_v38 }
 0x522   : > { %7520 = vst.msk [vmem:[#allocation7 + $0x58] sm:$0xf] %vm2096_vm7, %v7436_v7  ;;  %7519 = vst.msk [vmem:[#allocation7 + $0x50] sm:$0xf] %vm2096_vm7, %v7434_v42  ;;  %7707 = vrot.lane.b32.xlu1 %v18453_v4, %s15699_s30  ;;  %7705 = vrot.lane.b32.xlu0 %v18460_v55, %s15699_s30 }
 0x524   : > { %v7692_v22 = vpop.permute.xlu1 %7691  ;;  %v7821_v49 = vld [vmem:[#allocation4 + $0x150] sm:$0xff] }
 0x525   : > { %7776 = vst.msk [vmem:[#allocation7 + $0x58] sm:$0xf] %vm2353_vm8, %v7692_v22  ;;  %v7690_v3 = vpop.permute.xlu0 %7689  ;;  %v18677_v46 = vpack.c.bf16 %v7821_v49, %v7821_v49 }
 0x526   : > { %7775 = vst.msk [vmem:[#allocation7 + $0x50] sm:$0xf] %vm2353_vm8, %v7690_v3  ;;  %7963 = vrot.lane.b32.xlu1 %v14648_v34, %s15700_s4  ;;  %7961 = vrot.lane.b32.xlu0 %v14647_v16, %s15700_s4 }
 0x527   : > { %6513 = vst.msk [vmem:[#allocation7 + $0xe0] sm:$0xf] %vm1068_vm3, %v18677_v46 }
 0x528   : > { %v7948_v32 = vpop.permute.xlu1 %7947  ;;  %v7822_v7 = vld [vmem:[#allocation4 + $0x158] sm:$0xff] }
 0x529   : > { %v7568_v42 = vld [vmem:[#allocation4 + $0x15a] sm:$0xff]  ;;  %8032 = vst.msk [vmem:[#allocation7 + $0x58] sm:$0xf] %vm2611_vm9, %v7948_v32  ;;  %v7946_v24 = vpop.permute.xlu0 %7945  ;;  %v18689_v36 = vpack.c.bf16 %v7822_v7, %v7822_v7  ;;  %v7567_v49 = vld [vmem:[#allocation4 + $0x152] sm:$0xff] }
 0x52a   : > { %v18691_v22 = vpack.c.bf16 %v7568_v42, %v7568_v42  ;;  %8031 = vst.msk [vmem:[#allocation7 + $0x50] sm:$0xf] %vm2611_vm9, %v7946_v24  ;;  %8219 = vrot.lane.b32.xlu1 %v18684_v62, %s15701_s26  ;;  %8217 = vrot.lane.b32.xlu0 %v18686_v1, %s15701_s26  ;;  %v18698_v3 = vpack.c.bf16 %v7567_v49, %v7567_v49 }
 0x52b   : > { %6514 = vst.msk [vmem:[#allocation7 + $0xe8] sm:$0xf] %vm1068_vm3, %v18689_v36 }
 0x52c   : > { %8494 = vst.msk [vmem:[#allocation7 + $0xcc] sm:$0xf] %vm1068_vm3, %v18691_v22  ;;  %v8204_v41 = vpop.permute.xlu1 %8203  ;;  %8493 = vst.msk [vmem:[#allocation7 + $0xc4] sm:$0xf] %vm1068_vm3, %v18698_v3 }
 0x52d   : > { %8288 = vst.msk [vmem:[#allocation7 + $0x58] sm:$0xf] %vm2868_vm10, %v8204_v41  ;;  %v8202_v38 = vpop.permute.xlu0 %8201 }
 0x52e   : > { %8287 = vst.msk [vmem:[#allocation7 + $0x50] sm:$0xf] %vm2868_vm10, %v8202_v38  ;;  %6687 = vrot.lane.b32.xlu1 %v18619_v21, %s15696_s24  ;;  %6685 = vrot.lane.b32.xlu0 %v18621_v2, %s15696_s24  ;;  %v15284_v38 = vld [vmem:[#allocation7 + $0x54] ss:$8 sps:$4 sm:$0xff]  }
 0x52f   : > { %13532 = vmatprep.mubr.msk.bf16.mxu0 %vm786_vm0, %v15284_v38 }
 0x530   : > { %v6672_v32 = vpop.permute.xlu1 %6671 }
 0x531   : > { %6754 = vst.msk [vmem:[#allocation7 + $0x68] sm:$0xf] %vm1325_vm4, %v6672_v32  ;;  %v6670_v7 = vpop.permute.xlu0 %6669 }
 0x532   : > { %6753 = vst.msk [vmem:[#allocation7 + $0x60] sm:$0xf] %vm1325_vm4, %v6670_v7  ;;  %6943 = vrot.lane.b32.xlu1 %v18453_v4, %s15695_s5  ;;  %6941 = vrot.lane.b32.xlu0 %v18460_v55, %s15695_s5 }
 0x534   : > { %v6246_v42 = vpop.f32.mrf.mxu1  ;;  %v6928_v24 = vpop.permute.xlu1 %6927  ;;  %v8512_v49 = vld [vmem:[#allocation7 + $0x58] sm:$0xff] }
 0x535   : > { %v6247_v21 = vadd.f32 %v18653_v9, %v6246_v42  ;;  %7010 = vst.msk [vmem:[#allocation7 + $0x68] sm:$0xf] %vm1582_vm5, %v6928_v24  ;;  %v6926_v2 = vpop.permute.xlu0 %6925  ;;  %v8511_v41 = vld [vmem:[#allocation7 + $0x50] sm:$0xff] }
 0x536   : > { %7009 = vst.msk [vmem:[#allocation7 + $0x60] sm:$0xf] %vm1582_vm5, %v6926_v2  ;;  %v6248_v32 = vpop.f32.mrf.mxu1  ;;  %7199 = vrot.lane.b32.xlu1 %v14648_v34, %s15697_s0  ;;  %7197 = vrot.lane.b32.xlu0 %v14647_v16, %s15697_s0  ;;  %v13496_v4 = vcombine.low %v8511_v41, %v8512_v49  ;;  %v7817_v41 = vld [vmem:[#allocation4 + $0x120] sm:$0xff] }
 0x537   : > { %v6289_v7 = vmax.f32 %v6247_v21, 0.0  ;;  %v7818_v21 = vld [vmem:[#allocation4 + $0x128] sm:$0xff]  ;;  %v14649_v32 = vpack.c.bf16 %v7817_v41, %v7817_v41 }
 0x538   : > { %v6249_v55 = vpop.f32.mrf.mxu1  ;;  %v7184_v35 = vpop.permute.xlu1 %7183  ;;  %8877 = vmatmul.mubr.bf16.gmra.mxu0 %v13496_v4  ;;  %v14650_v38 = vpack.c.bf16 %v7818_v21, %v7818_v21 }
 0x539   : > { %6321 = vst.msk [vmem:[#allocation4 + $0x169] sm:$0xff] %vm786_vm0, %v6289_v7  ;;  %v6250_v42 = vadd.f32 %v18653_v9, %v6249_v55  ;;  %v7182_v24 = vpop.permute.xlu0 %7181  ;;  %v8074_v55 = vld [vmem:[#allocation4 + $0x129] sm:$0xff]  ;;  %13533 = vmatprep.mubr.msk.bf16.mxu0 %vm786_vm0, %v15286_v59 }
 0x53a   : > { %7266 = vst.msk [vmem:[#allocation7 + $0x68] sm:$0xf] %vm1839_vm6, %v7184_v35  ;;  %7265 = vst.msk [vmem:[#allocation7 + $0x60] sm:$0xf] %vm1839_vm6, %v7182_v24  ;;  %v6251_v2 = vpop.f32.mrf.mxu1  ;;  %7455 = vrot.lane.b32.xlu1 %v18684_v62, %s15698_s1  ;;  %7453 = vrot.lane.b32.xlu0 %v18686_v1, %s15698_s1 }
 0x53b   : > { %v6290_v34 = vmax.f32 %v6250_v42, 0.0  ;;  %v8073_v42 = vld [vmem:[#allocation4 + $0x121] sm:$0xff] }
 0x53c   : > { %v7440_v16 = vpop.permute.xlu1 %7439 }
 0x53d   : > { %6322 = vst.msk [vmem:[#allocation4 + $0x171] sm:$0xff] %vm786_vm0, %v6290_v34  ;;  %v7438_v49 = vpop.permute.xlu0 %7437  ;;  %v18747_v34 = vpack.c.bf16 %v8074_v55, %v8074_v55 }
 0x53e   : > { %7522 = vst.msk [vmem:[#allocation7 + $0x68] sm:$0xf] %vm2096_vm7, %v7440_v16  ;;  %7521 = vst.msk [vmem:[#allocation7 + $0x60] sm:$0xf] %vm2096_vm7, %v7438_v49  ;;  %7711 = vrot.lane.b32.xlu1 %v18510_v20, %s15699_s30  ;;  %7709 = vrot.lane.b32.xlu0 %v18517_v56, %s15699_s30  ;;  %v18749_v16 = vpack.c.bf16 %v8073_v42, %v8073_v42 }
 0x540   : > { %v7696_v35 = vpop.permute.xlu1 %7695  ;;  %v7823_v4 = vld [vmem:[#allocation4 + $0x168] sm:$0xff] }
 0x541   : > { %7778 = vst.msk [vmem:[#allocation7 + $0x68] sm:$0xf] %vm2353_vm8, %v7696_v35  ;;  %v7694_v7 = vpop.permute.xlu0 %7693  ;;  %v18740_v24 = vpack.c.bf16 %v7823_v4, %v7823_v4 }
 0x542   : > { %7777 = vst.msk [vmem:[#allocation7 + $0x60] sm:$0xf] %vm2353_vm8, %v7694_v7  ;;  %7967 = vrot.lane.b32.xlu1 %v14650_v38, %s15700_s4  ;;  %7965 = vrot.lane.b32.xlu0 %v14649_v32, %s15700_s4 }
 0x543   : > { %6515 = vst.msk [vmem:[#allocation7 + $0xf0] sm:$0xf] %vm1068_vm3, %v18740_v24 }
 0x544   : > { %v7952_v2 = vpop.permute.xlu1 %7951  ;;  %v7824_v49 = vld [vmem:[#allocation4 + $0x170] sm:$0xff] }
 0x545   : > { %v7570_v21 = vld [vmem:[#allocation4 + $0x172] sm:$0xff]  ;;  %8034 = vst.msk [vmem:[#allocation7 + $0x68] sm:$0xf] %vm2611_vm9, %v7952_v2  ;;  %v7950_v41 = vpop.permute.xlu0 %7949  ;;  %v18752_v35 = vpack.c.bf16 %v7824_v49, %v7824_v49  ;;  %v7569_v7 = vld [vmem:[#allocation4 + $0x16a] sm:$0xff] }
 0x546   : > { %v18754_v4 = vpack.c.bf16 %v7570_v21, %v7570_v21  ;;  %8033 = vst.msk [vmem:[#allocation7 + $0x60] sm:$0xf] %vm2611_vm9, %v7950_v41  ;;  %8223 = vrot.lane.b32.xlu1 %v18747_v34, %s15701_s26  ;;  %8221 = vrot.lane.b32.xlu0 %v18749_v16, %s15701_s26  ;;  %v18761_v55 = vpack.c.bf16 %v7569_v7, %v7569_v7 }
 0x547   : > { %6516 = vst.msk [vmem:[#allocation7 + $0xf8] sm:$0xf] %vm1068_vm3, %v18752_v35 }
 0x548   : > { %8496 = vst.msk [vmem:[#allocation7 + $0xdc] sm:$0xf] %vm1068_vm3, %v18754_v4  ;;  %v8208_v42 = vpop.permute.xlu1 %8207  ;;  %8495 = vst.msk [vmem:[#allocation7 + $0xd4] sm:$0xf] %vm1068_vm3, %v18761_v55 }
 0x549   : > { %8290 = vst.msk [vmem:[#allocation7 + $0x68] sm:$0xf] %vm2868_vm10, %v8208_v42  ;;  %v8206_v2 = vpop.permute.xlu0 %8205 }
 0x54a   : > { %8289 = vst.msk [vmem:[#allocation7 + $0x60] sm:$0xf] %vm2868_vm10, %v8206_v2  ;;  %6691 = vrot.lane.b32.xlu1 %v18684_v62, %s15696_s24  ;;  %6689 = vrot.lane.b32.xlu0 %v18686_v1, %s15696_s24 }
 0x54c   : > { %v6676_v49 = vpop.permute.xlu1 %6675 }
 0x54d   : > { %6756 = vst.msk [vmem:[#allocation7 + $0x78] sm:$0xf] %vm1325_vm4, %v6676_v49  ;;  %v6674_v21 = vpop.permute.xlu0 %6673 }
 0x54e   : > { %6755 = vst.msk [vmem:[#allocation7 + $0x70] sm:$0xf] %vm1325_vm4, %v6674_v21  ;;  %6947 = vrot.lane.b32.xlu1 %v18510_v20, %s15695_s5  ;;  %6945 = vrot.lane.b32.xlu0 %v18517_v56, %s15695_s5 }
 0x550   : > { %v6254_v41 = vpop.f32.mrf.mxu1  ;;  %v6932_v7 = vpop.permute.xlu1 %6931  ;;  %v8514_v42 = vld [vmem:[#allocation7 + $0x68] sm:$0xff] }
 0x551   : > { %v6255_v62 = vadd.f32 %v18653_v9, %v6254_v41  ;;  %7012 = vst.msk [vmem:[#allocation7 + $0x78] sm:$0xf] %vm1582_vm5, %v6932_v7  ;;  %v6930_v1 = vpop.permute.xlu0 %6929  ;;  %v8513_v2 = vld [vmem:[#allocation7 + $0x60] sm:$0xff] }
 0x552   : > { %7011 = vst.msk [vmem:[#allocation7 + $0x70] sm:$0xf] %vm1582_vm5, %v6930_v1  ;;  %v6256_v49 = vpop.f32.mrf.mxu1  ;;  %7203 = vrot.lane.b32.xlu1 %v14650_v38, %s15697_s0  ;;  %7201 = vrot.lane.b32.xlu0 %v14649_v32, %s15697_s0  ;;  %v13498_v20 = vcombine.low %v8513_v2, %v8514_v42  ;;  %v7819_v42 = vld [vmem:[#allocation4 + $0x138] sm:$0xff] }
 0x553   : > { %v6291_v21 = vmax.f32 %v6255_v62, 0.0  ;;  %v14651_v2 = vpack.c.bf16 %v7819_v42, %v7819_v42 }
 0x554   : > { %v6257_v56 = vpop.f32.mrf.mxu1  ;;  %v7188_v6 = vpop.permute.xlu1 %7187  ;;  %8885 = vmatmul.mubr.bf16.gmra.mxu0 %v13498_v20  ;;  %v8076_v20 = vld [vmem:[#allocation4 + $0x141] sm:$0xff] }
 0x555   : > { %6323 = vst.msk [vmem:[#allocation4 + $0x181] sm:$0xff] %vm786_vm0, %v6291_v21  ;;  %v6258_v41 = vadd.f32 %v18653_v9, %v6257_v56  ;;  %v7186_v7 = vpop.permute.xlu0 %7185  ;;  %v7820_v9 = vld [vmem:[#allocation4 + $0x140] sm:$0xff] }
 0x556   : > { %7268 = vst.msk [vmem:[#allocation7 + $0x78] sm:$0xf] %vm1839_vm6, %v7188_v6  ;;  %7267 = vst.msk [vmem:[#allocation7 + $0x70] sm:$0xf] %vm1839_vm6, %v7186_v7  ;;  %v6259_v1 = vpop.f32.mrf.mxu1  ;;  %7459 = vrot.lane.b32.xlu1 %v18747_v34, %s15698_s1  ;;  %7457 = vrot.lane.b32.xlu0 %v18749_v16, %s15698_s1  ;;  %v14652_v62 = vpack.c.bf16 %v7820_v9, %v7820_v9  ;;  %v8075_v21 = vld [vmem:[#allocation4 + $0x139] sm:$0xff] }
 0x557   : > { %v6292_v59 = vmax.f32 %v6258_v41, 0.0  ;;  %v18806_v41 = vpack.c.bf16 %v8076_v20, %v8076_v20  ;;  %v18808_v7 = vpack.c.bf16 %v8075_v21, %v8075_v21  ;;  %v18839_v21 = vld [vmem:[%s20076_s6] ss:$0 sm:$0xff] }
 0x558   : > { %v7444_v38 = vpop.permute.xlu1 %7443 }
 0x559   : > { %6324 = vst.msk [vmem:[#allocation4 + $0x189] sm:$0xff] %vm786_vm0, %v6292_v59  ;;  %v7442_v32 = vpop.permute.xlu0 %7441 }
 0x55a   : > { %7524 = vst.msk [vmem:[#allocation7 + $0x78] sm:$0xf] %vm2096_vm7, %v7444_v38  ;;  %7523 = vst.msk [vmem:[#allocation7 + $0x70] sm:$0xf] %vm2096_vm7, %v7442_v32  ;;  %7715 = vrot.lane.b32.xlu1 %v18567_v37, %s15699_s30  ;;  %7713 = vrot.lane.b32.xlu0 %v18574_v14, %s15699_s30 }
 0x55c   : > { %v7700_v6 = vpop.permute.xlu1 %7699 }
 0x55d   : > { %7780 = vst.msk [vmem:[#allocation7 + $0x78] sm:$0xf] %vm2353_vm8, %v7700_v6  ;;  %v7698_v49 = vpop.permute.xlu0 %7697 }
 0x55e   : > { %7779 = vst.msk [vmem:[#allocation7 + $0x70] sm:$0xf] %vm2353_vm8, %v7698_v49  ;;  %7971 = vrot.lane.b32.xlu1 %v14652_v62, %s15700_s4  ;;  %7969 = vrot.lane.b32.xlu0 %v14651_v2, %s15700_s4 }
 0x560   : > { %v7956_v56 = vpop.permute.xlu1 %7955  ;;  %v7572_v1 = vld [vmem:[#allocation4 + $0x18a] sm:$0xff]  ;;  %v7571_v32 = vld [vmem:[#allocation4 + $0x182] sm:$0xff] }
 0x561   : > { %8036 = vst.msk [vmem:[#allocation7 + $0x78] sm:$0xf] %vm2611_vm9, %v7956_v56  ;;  %v7954_v59 = vpop.permute.xlu0 %7953  ;;  %v18811_v38 = vpack.c.bf16 %v7572_v1, %v7572_v1  ;;  %v18818_v9 = vpack.c.bf16 %v7571_v32, %v7571_v32  ;;  %v15288_v32 = vld [vmem:[#allocation7 + $0x74] ss:$8 sps:$4 sm:$0xff]  }
 0x562   : > { %8035 = vst.msk [vmem:[#allocation7 + $0x70] sm:$0xf] %vm2611_vm9, %v7954_v59  ;;  %8227 = vrot.lane.b32.xlu1 %v18806_v41, %s15701_s26  ;;  %8225 = vrot.lane.b32.xlu0 %v18808_v7, %s15701_s26 }
 0x563   : > { %8498 = vst.msk [vmem:[#allocation7 + $0xec] sm:$0xf] %vm1068_vm3, %v18811_v38  ;;  %8497 = vst.msk [vmem:[#allocation7 + $0xe4] sm:$0xf] %vm1068_vm3, %v18818_v9  ;;  %13534 = vmatprep.mubr.msk.bf16.mxu0 %vm786_vm0, %v15288_v32  ;;  %v8077_v32 = vld [vmem:[#allocation4 + $0x151] sm:$0xff] }
 0x564   : > { %v8212_v42 = vpop.permute.xlu1 %8211 }
 0x565   : > { %8292 = vst.msk [vmem:[#allocation7 + $0x78] sm:$0xf] %vm2868_vm10, %v8212_v42  ;;  %v8210_v6 = vpop.permute.xlu0 %8209 }
 0x566   : > { %8291 = vst.msk [vmem:[#allocation7 + $0x70] sm:$0xf] %vm2868_vm10, %v8210_v6  ;;  %6695 = vrot.lane.b32.xlu1 %v18747_v34, %s15696_s24  ;;  %6693 = vrot.lane.b32.xlu0 %v18749_v16, %s15696_s24 }
 0x568   : > { %v6680_v49 = vpop.permute.xlu1 %6679 }
 0x569   : > { %6758 = vst.msk [vmem:[#allocation7 + $0x88] sm:$0xf] %vm1325_vm4, %v6680_v49  ;;  %v6678_v20 = vpop.permute.xlu0 %6677 }
 0x56a   : > { %6757 = vst.msk [vmem:[#allocation7 + $0x80] sm:$0xf] %vm1325_vm4, %v6678_v20  ;;  %6951 = vrot.lane.b32.xlu1 %v18567_v37, %s15695_s5  ;;  %6949 = vrot.lane.b32.xlu0 %v18574_v14, %s15695_s5 }
 0x56c   : > { %v6936_v34 = vpop.permute.xlu1 %6935  ;;  %v8516_v56 = vld [vmem:[#allocation7 + $0x78] sm:$0xff] }
 0x56d   : > { %v8838_v16 = vpop.f32.mrf.mxu0  ;;  %7014 = vst.msk [vmem:[#allocation7 + $0x88] sm:$0xf] %vm1582_vm5, %v6936_v34  ;;  %v6934_v1 = vpop.permute.xlu0 %6933  ;;  %v8515_v59 = vld [vmem:[#allocation7 + $0x70] sm:$0xff] }
 0x56e   : > { %v8839_v42 = vadd.f32 %v18839_v21, %v8838_v16  ;;  %7013 = vst.msk [vmem:[#allocation7 + $0x80] sm:$0xf] %vm1582_vm5, %v6934_v1  ;;  %7207 = vrot.lane.b32.xlu1 %v14652_v62, %s15697_s0  ;;  %7205 = vrot.lane.b32.xlu0 %v14651_v2, %s15697_s0  ;;  %v13500_v37 = vcombine.low %v8515_v59, %v8516_v56 }
 0x56f   : > { %v8840_v14 = vpop.f32.mrf.mxu0 }
 0x570   : > { %v8965_v6 = vadd.f32 %v8839_v42, %v3557_v5  ;;  %v7192_v49 = vpop.permute.xlu1 %7191  ;;  %8893 = vmatmul.mubr.bf16.gmra.mxu0 %v13500_v37  ;;  %v18874_v14 = vpack.c.bf16 %v8077_v32, %v8077_v32 }
 0x571   : > { %v8841_v20 = vpop.f32.mrf.mxu0  ;;  %7270 = vst.msk [vmem:[#allocation7 + $0x88] sm:$0xf] %vm1839_vm6, %v7192_v49  ;;  %v7190_v34 = vpop.permute.xlu0 %7189 }
 0x572   : > { %v8997_v16 = vmax.f32 %v8965_v6, 0.0  ;;  %v8842_v1 = vadd.f32 %v18839_v21, %v8841_v20  ;;  %7269 = vst.msk [vmem:[#allocation7 + $0x80] sm:$0xf] %vm1839_vm6, %v7190_v34  ;;  %7463 = vrot.lane.b32.xlu1 %v18806_v41, %s15698_s1  ;;  %7461 = vrot.lane.b32.xlu0 %v18808_v7, %s15698_s1 }
 0x573   : > { %v8843_v62 = vpop.f32.mrf.mxu0 }
 0x574   : > { %9029 = vst.msk [vmem:[#allocation4 + $0x19] sm:$0xff] %vm786_vm0, %v8997_v16  ;;  %v8966_v47 = vadd.f32 %v8842_v1, %v3558_v53  ;;  %v7448_v5 = vpop.permute.xlu1 %7447  ;;  %v8078_v53 = vld [vmem:[#allocation4 + $0x159] sm:$0xff] }
 0x575   : > { %7526 = vst.msk [vmem:[#allocation7 + $0x88] sm:$0xf] %vm2096_vm7, %v7448_v5  ;;  %v7446_v2 = vpop.permute.xlu0 %7445  ;;  %v18872_v37 = vpack.c.bf16 %v8078_v53, %v8078_v53 }
 0x576   : > { %v8998_v56 = vmax.f32 %v8966_v47, 0.0  ;;  %7525 = vst.msk [vmem:[#allocation7 + $0x80] sm:$0xf] %vm2096_vm7, %v7446_v2  ;;  %7719 = vrot.lane.b32.xlu1 %v18624_v12, %s15699_s30  ;;  %7717 = vrot.lane.b32.xlu0 %v18631_v51, %s15699_s30  ;;  %v15290_v2 = vld [vmem:[#allocation7 + $0x84] ss:$8 sps:$4 sm:$0xff]  }
 0x577   : > { %13535 = vmatprep.mubr.msk.bf16.mxu0 %vm786_vm0, %v15290_v2 }
 0x578   : > { %9030 = vst.msk [vmem:[#allocation4 + $0x21] sm:$0xff] %vm786_vm0, %v8998_v56  ;;  %v7704_v59 = vpop.permute.xlu1 %7703 }
 0x579   : > { %7782 = vst.msk [vmem:[#allocation7 + $0x88] sm:$0xf] %vm2353_vm8, %v7704_v59  ;;  %v7702_v40 = vpop.permute.xlu0 %7701 }
 0x57a   : > { %7781 = vst.msk [vmem:[#allocation7 + $0x80] sm:$0xf] %vm2353_vm8, %v7702_v40  ;;  %7975 = vrot.lane.b32.xlu1 %v18689_v36, %s15700_s4  ;;  %7973 = vrot.lane.b32.xlu0 %v18677_v46, %s15700_s4 }
 0x57c   : > { %v7960_v42 = vpop.permute.xlu1 %7959 }
 0x57d   : > { %8038 = vst.msk [vmem:[#allocation7 + $0x88] sm:$0xf] %vm2611_vm9, %v7960_v42  ;;  %v7958_v6 = vpop.permute.xlu0 %7957 }
 0x57e   : > { %8037 = vst.msk [vmem:[#allocation7 + $0x80] sm:$0xf] %vm2611_vm9, %v7958_v6  ;;  %8231 = vrot.lane.b32.xlu1 %v18872_v37, %s15701_s26  ;;  %8229 = vrot.lane.b32.xlu0 %v18874_v14, %s15701_s26 }
 0x580   : > { %v8216_v49 = vpop.permute.xlu1 %8215 }
 0x581   : > { %8294 = vst.msk [vmem:[#allocation7 + $0x88] sm:$0xf] %vm2868_vm10, %v8216_v49  ;;  %v8214_v20 = vpop.permute.xlu0 %8213 }
 0x582   : > { %8293 = vst.msk [vmem:[#allocation7 + $0x80] sm:$0xf] %vm2868_vm10, %v8214_v20  ;;  %6699 = vrot.lane.b32.xlu1 %v18806_v41, %s15696_s24  ;;  %6697 = vrot.lane.b32.xlu0 %v18808_v7, %s15696_s24 }
 0x584   : > { %v6684_v34 = vpop.permute.xlu1 %6683 }
 0x585   : > { %6760 = vst.msk [vmem:[#allocation7 + $0x98] sm:$0xf] %vm1325_vm4, %v6684_v34  ;;  %v6682_v16 = vpop.permute.xlu0 %6681  ;;  %v8080_v34 = vld [vmem:[#allocation4 + $0x171] sm:$0xff] }
 0x586   : > { %6759 = vst.msk [vmem:[#allocation7 + $0x90] sm:$0xf] %vm1325_vm4, %v6682_v16  ;;  %6955 = vrot.lane.b32.xlu1 %v18624_v12, %s15695_s5  ;;  %6953 = vrot.lane.b32.xlu0 %v18631_v51, %s15695_s5  ;;  %v8079_v16 = vld [vmem:[#allocation4 + $0x169] sm:$0xff] }
 0x588   : > { %v6940_v1 = vpop.permute.xlu1 %6939  ;;  %v8846_v62 = vpop.f32.mrf.mxu0  ;;  %v8518_v47 = vld [vmem:[#allocation7 + $0x88] sm:$0xff] }
 0x589   : > { %7016 = vst.msk [vmem:[#allocation7 + $0x98] sm:$0xf] %vm1582_vm5, %v6940_v1  ;;  %v8847_v41 = vadd.f32 %v18839_v21, %v8846_v62  ;;  %v6938_v7 = vpop.permute.xlu0 %6937  ;;  %v8517_v5 = vld [vmem:[#allocation7 + $0x80] sm:$0xff]  ;;  %v18927_v62 = vpack.c.bf16 %v8080_v34, %v8080_v34 }
 0x58a   : > { %7015 = vst.msk [vmem:[#allocation7 + $0x90] sm:$0xf] %vm1582_vm5, %v6938_v7  ;;  %7211 = vrot.lane.b32.xlu1 %v18689_v36, %s15697_s0  ;;  %v8848_v56 = vpop.f32.mrf.mxu0  ;;  %7209 = vrot.lane.b32.xlu0 %v18677_v46, %s15697_s0  ;;  %v13502_v12 = vcombine.low %v8517_v5, %v8518_v47  ;;  %v18929_v47 = vpack.c.bf16 %v8079_v16, %v8079_v16 }
 0x58b   : > { %v8967_v51 = vadd.f32 %v8847_v41, %v3559_v19 }
 0x58c   : > { %v7196_v59 = vpop.permute.xlu1 %7195  ;;  %v8849_v40 = vpop.f32.mrf.mxu0  ;;  %8901 = vmatmul.mubr.bf16.gmra.mxu0 %v13502_v12 }
 0x58d   : > { %v8999_v53 = vmax.f32 %v8967_v51, 0.0  ;;  %7272 = vst.msk [vmem:[#allocation7 + $0x98] sm:$0xf] %vm1839_vm6, %v7196_v59  ;;  %v8850_v32 = vadd.f32 %v18839_v21, %v8849_v40  ;;  %v7194_v42 = vpop.permute.xlu0 %7193 }
 0x58e   : > { %7271 = vst.msk [vmem:[#allocation7 + $0x90] sm:$0xf] %vm1839_vm6, %v7194_v42  ;;  %7467 = vrot.lane.b32.xlu1 %v18872_v37, %s15698_s1  ;;  %v8851_v46 = vpop.f32.mrf.mxu0  ;;  %7465 = vrot.lane.b32.xlu0 %v18874_v14, %s15698_s1 }
 0x58f   : > { %9031 = vst.msk [vmem:[#allocation4 + $0x31] sm:$0xff] %vm786_vm0, %v8999_v53  ;;  %v8968_v19 = vadd.f32 %v8850_v32, %v20077_v28  ;;  %v15292_v28 = vld [vmem:[#allocation7 + $0x94] ss:$8 sps:$4 sm:$0xff]  }
 0x590   : > { %v7452_v36 = vpop.permute.xlu1 %7451  ;;  %13536 = vmatprep.mubr.msk.bf16.mxu0 %vm786_vm0, %v15292_v28 }
 0x591   : > { %v9000_v6 = vmax.f32 %v8968_v19, 0.0  ;;  %7528 = vst.msk [vmem:[#allocation7 + $0x98] sm:$0xf] %vm2096_vm7, %v7452_v36  ;;  %v7450_v49 = vpop.permute.xlu0 %7449  ;;  %v20078_v19 = vmax.f32 %v16964_v13, 0.0 }
 0x592   : > { %7527 = vst.msk [vmem:[#allocation7 + $0x90] sm:$0xf] %vm2096_vm7, %v7450_v49  ;;  %7723 = vrot.lane.b32.xlu1 %v18691_v22, %s15699_s30  ;;  %7721 = vrot.lane.b32.xlu0 %v18698_v3, %s15699_s30 }
 0x593   : > { %9032 = vst.msk [vmem:[#allocation4 + $0x39] sm:$0xff] %vm786_vm0, %v9000_v6 }
 0x594   : > { %v7708_v20 = vpop.permute.xlu1 %7707 }
 0x595   : > { %7784 = vst.msk [vmem:[#allocation7 + $0x98] sm:$0xf] %vm2353_vm8, %v7708_v20  ;;  %v7706_v43 = vpop.permute.xlu0 %7705 }
 0x596   : > { %7783 = vst.msk [vmem:[#allocation7 + $0x90] sm:$0xf] %vm2353_vm8, %v7706_v43  ;;  %7979 = vrot.lane.b32.xlu1 %v18752_v35, %s15700_s4  ;;  %7977 = vrot.lane.b32.xlu0 %v18740_v24, %s15700_s4 }
 0x598   : > { %v7964_v1 = vpop.permute.xlu1 %7963 }
 0x599   : > { %8040 = vst.msk [vmem:[#allocation7 + $0x98] sm:$0xf] %vm2611_vm9, %v7964_v1  ;;  %v7962_v41 = vpop.permute.xlu0 %7961 }
 0x59a   : > { %8039 = vst.msk [vmem:[#allocation7 + $0x90] sm:$0xf] %vm2611_vm9, %v7962_v41  ;;  %8235 = vrot.lane.b32.xlu1 %v18927_v62, %s15701_s26  ;;  %8233 = vrot.lane.b32.xlu0 %v18929_v47, %s15701_s26  ;;  %v9063_v7 = vld [vmem:[#allocation4 + $0x30] ss:$2 sm:$0xff] }
 0x59b   : > { %v9619_v5 = vld [vmem:[#allocation4 + $0x32] ss:$2 sm:$0xff]  ;;  %v14726_v56 = vpack.c.bf16 %v9063_v7, %v9063_v7  ;;  %v7826_v7 = vld [vmem:[#allocation4 + $0x188] sm:$0xff] }
 0x59c   : > { %v8220_v2 = vpop.permute.xlu1 %8219  ;;  %v14789_v12 = vpack.c.bf16 %v9619_v5, %v9619_v5  ;;  %v7825_v5 = vld [vmem:[#allocation4 + $0x180] sm:$0xff] }
 0x59d   : > { %8296 = vst.msk [vmem:[#allocation7 + $0x98] sm:$0xf] %vm2868_vm10, %v8220_v2  ;;  %v8218_v51 = vpop.permute.xlu0 %8217 }
 0x59e   : > { %8295 = vst.msk [vmem:[#allocation7 + $0x90] sm:$0xf] %vm2868_vm10, %v8218_v51  ;;  %6703 = vrot.lane.b32.xlu1 %v18872_v37, %s15696_s24  ;;  %6701 = vrot.lane.b32.xlu0 %v18874_v14, %s15696_s24  ;;  %v8082_v51 = vld [vmem:[#allocation4 + $0x189] sm:$0xff] }
 0x59f   : > { %9109 = vst.msk [vmem:[#allocation7 + $0x8] sm:$0xf] %vm1068_vm3, %v14726_v56  ;;  %9666 = vst.msk [vmem:[#allocation7 + $0x4] sm:$0xf] %vm1068_vm3, %v14789_v12  ;;  %v14657_v56 = vpack.c.bf16 %v7825_v5, %v7825_v5  ;;  %v20081_v5 = vmax.f32 %v17039_v29, 0.0 }
 0x5a0   : > { %v6688_v59 = vpop.permute.xlu1 %6687 }
 0x5a1   : > { %6762 = vst.msk [vmem:[#allocation7 + $0xa8] sm:$0xf] %vm1325_vm4, %v6688_v59  ;;  %v6686_v40 = vpop.permute.xlu0 %6685  ;;  %v8081_v59 = vld [vmem:[#allocation4 + $0x181] sm:$0xff] }
 0x5a2   : > { %6761 = vst.msk [vmem:[#allocation7 + $0xa0] sm:$0xf] %vm1325_vm4, %v6686_v40  ;;  %6959 = vrot.lane.b32.xlu1 %v18691_v22, %s15695_s5  ;;  %6957 = vrot.lane.b32.xlu0 %v18698_v3, %s15695_s5 }
 0x5a4   : > { %v6944_v37 = vpop.permute.xlu1 %6943  ;;  %v8854_v53 = vpop.f32.mrf.mxu0  ;;  %v8520_v32 = vld [vmem:[#allocation7 + $0x98] sm:$0xff] }
 0x5a5   : > { %7018 = vst.msk [vmem:[#allocation7 + $0xa8] sm:$0xf] %vm1582_vm5, %v6944_v37  ;;  %v6942_v14 = vpop.permute.xlu0 %6941  ;;  %v8855_v42 = vadd.f32 %v18839_v21, %v8854_v53  ;;  %v8519_v46 = vld [vmem:[#allocation7 + $0x90] sm:$0xff]  ;;  %v14690_v37 = vpack.c.bf16 %v8082_v51, %v8082_v51  ;;  %v14689_v53 = vpack.c.bf16 %v8081_v59, %v8081_v59 }
 0x5a6   : > { %7017 = vst.msk [vmem:[#allocation7 + $0xa0] sm:$0xf] %vm1582_vm5, %v6942_v14  ;;  %7215 = vrot.lane.b32.xlu1 %v18752_v35, %s15697_s0  ;;  %7213 = vrot.lane.b32.xlu0 %v18740_v24, %s15697_s0  ;;  %v8856_v22 = vpop.f32.mrf.mxu0  ;;  %v13504_v3 = vcombine.low %v8519_v46, %v8520_v32  ;;  %v20079_v24 = vmax.f32 %v16977_v30, 0.0  ;;  %v14658_v30 = vpack.c.bf16 %v7826_v7, %v7826_v7  ;;  %v15304_v51 = vld [vmem:[#allocation14 + $0x38] sm:$0xff]  }
 0x5a7   : > { %v8969_v36 = vadd.f32 %v8855_v42, %v20078_v19  ;;  %9810 = vmatpush1.bf16.msra.mxu1 %v15304_v51 }
 0x5a8   : > { %v7200_v6 = vpop.permute.xlu1 %7199  ;;  %v8857_v49 = vpop.f32.mrf.mxu0  ;;  %8909 = vmatmul.mubr.bf16.gmra.mxu0 %v13504_v3 }
 0x5a9   : > { %v9001_v20 = vmax.f32 %v8969_v36, 0.0  ;;  %7274 = vst.msk [vmem:[#allocation7 + $0xa8] sm:$0xf] %vm1839_vm6, %v7200_v6  ;;  %v7198_v43 = vpop.permute.xlu0 %7197  ;;  %v8858_v34 = vadd.f32 %v18839_v21, %v8857_v49  ;;  %v15294_v6 = vld [vmem:[#allocation7 + $0xa4] ss:$8 sps:$4 sm:$0xff]  }
 0x5aa   : > { %7273 = vst.msk [vmem:[#allocation7 + $0xa0] sm:$0xf] %vm1839_vm6, %v7198_v43  ;;  %7471 = vrot.lane.b32.xlu1 %v18927_v62, %s15698_s1  ;;  %7469 = vrot.lane.b32.xlu0 %v18929_v47, %s15698_s1  ;;  %v8859_v13 = vpop.f32.mrf.mxu0 }
 0x5ab   : > { %9033 = vst.msk [vmem:[#allocation4 + $0x49] sm:$0xff] %vm786_vm0, %v9001_v20  ;;  %v8970_v35 = vadd.f32 %v8858_v34, %v20079_v24  ;;  %13537 = vmatprep.mubr.msk.bf16.mxu0 %vm786_vm0, %v15294_v6  ;;  %v8339_v13 = vld [vmem:[#allocation4 + $0x19a] sm:$0xff]  ;;  %v8340_v24 = vld [vmem:[#allocation4 + $0x1a2] sm:$0xff] }
 0x5ac   : > { %v7456_v16 = vpop.permute.xlu1 %7455  ;;  %v14724_v7 = vpack.c.bf16 %v8340_v24, %v8340_v24  ;;  %v9189_v6 = vld [vmem:[#allocation4 + $0x2] ss:$2 sm:$0xff] }
 0x5ad   : > { %v9002_v1 = vmax.f32 %v8970_v35, 0.0  ;;  %7530 = vst.msk [vmem:[#allocation7 + $0xa8] sm:$0xf] %vm2096_vm7, %v7456_v16  ;;  %v7454_v41 = vpop.permute.xlu0 %7453 }
 0x5ae   : > { %7529 = vst.msk [vmem:[#allocation7 + $0xa0] sm:$0xf] %vm2096_vm7, %v7454_v41  ;;  %7727 = vrot.lane.b32.xlu1 %v18754_v4, %s15699_s30  ;;  %7725 = vrot.lane.b32.xlu0 %v18761_v55, %s15699_s30  ;;  %v14723_v41 = vpack.c.bf16 %v8339_v13, %v8339_v13 }
 0x5af   : > { %9034 = vst.msk [vmem:[#allocation4 + $0x51] sm:$0xff] %vm786_vm0, %v9002_v1 }
 0x5b0   : > { %v7712_v2 = vpop.permute.xlu1 %7711  ;;  %8499 = vst.msk [vmem:[#allocation7 + $0xf4] sm:$0xf] %vm1068_vm3, %v14723_v41  ;;  %8500 = vst.msk [vmem:[#allocation7 + $0xfc] sm:$0xf] %vm1068_vm3, %v14724_v7  ;;  %v15310_v7 = vld [vmem:[#allocation14 + $0x18] sm:$0xff]  }
 0x5b1   : > { %7786 = vst.msk [vmem:[#allocation7 + $0xa8] sm:$0xf] %vm2353_vm8, %v7712_v2  ;;  %v7710_v12 = vpop.permute.xlu0 %7709 }
 0x5b2   : > { %7785 = vst.msk [vmem:[#allocation7 + $0xa0] sm:$0xf] %vm2353_vm8, %v7710_v12  ;;  %7983 = vrot.lane.b32.xlu1 %v14658_v30, %s15700_s4  ;;  %7981 = vrot.lane.b32.xlu0 %v14657_v56, %s15700_s4 }
 0x5b4   : > { %v7968_v40 = vpop.permute.xlu1 %7967 }
 0x5b5   : > { %8042 = vst.msk [vmem:[#allocation7 + $0xa8] sm:$0xf] %vm2611_vm9, %v7968_v40  ;;  %v7966_v32 = vpop.permute.xlu0 %7965 }
 0x5b6   : > { %8041 = vst.msk [vmem:[#allocation7 + $0xa0] sm:$0xf] %vm2611_vm9, %v7966_v32  ;;  %8239 = vrot.lane.b32.xlu1 %v14690_v37, %s15701_s26  ;;  %8237 = vrot.lane.b32.xlu0 %v14689_v53, %s15701_s26  ;;  %v8083_v32 = vld [vmem:[#allocation4 + $0x199] sm:$0xff] }
 0x5b8   : > { %v8224_v14 = vpop.permute.xlu1 %8223 }
 0x5b9   : > { %8298 = vst.msk [vmem:[#allocation7 + $0xa8] sm:$0xf] %vm2868_vm10, %v8224_v14  ;;  %v8222_v42 = vpop.permute.xlu0 %8221 }
 0x5ba   : > { %8297 = vst.msk [vmem:[#allocation7 + $0xa0] sm:$0xf] %vm2868_vm10, %v8222_v42  ;;  %6707 = vrot.lane.b32.xlu1 %v18927_v62, %s15696_s24  ;;  %6705 = vrot.lane.b32.xlu0 %v18929_v47, %s15696_s24  ;;  %v20082_v42 = vmov 0  }
 0x5bb   : > { %9811 = vmatprep.subr.bf16.mxu1 %v20082_v42 }
 0x5bc   : > { %v6692_v46 = vpop.permute.xlu1 %6691 }
 0x5bd   : > { %6764 = vst.msk [vmem:[#allocation7 + $0xb8] sm:$0xf] %vm1325_vm4, %v6692_v46  ;;  %v6690_v28 = vpop.permute.xlu0 %6689  ;;  %v15305_v46 = vld [vmem:[#allocation14 + $0x30] sm:$0xff]  }
 0x5be   : > { %6763 = vst.msk [vmem:[#allocation7 + $0xb0] sm:$0xf] %vm1325_vm4, %v6690_v28  ;;  %6963 = vrot.lane.b32.xlu1 %v18754_v4, %s15695_s5  ;;  %6961 = vrot.lane.b32.xlu0 %v18761_v55, %s15695_s5  ;;  %v20080_v55 = vmax.f32 %v17027_v27, 0.0 }
 0x5bf   : > { %9812 = vmatpush1.bf16.msra.mxu1 %v15305_v46  ;;  %v9334_v46 = vld [vmem:[#allocation4 + $0x49] ss:$2 sm:$0xff] }
 0x5c0   : > { %v6948_v22 = vpop.permute.xlu1 %6947  ;;  %v8862_v3 = vpop.f32.mrf.mxu0  ;;  %v8522_v19 = vld [vmem:[#allocation7 + $0xa8] sm:$0xff]  ;;  %9813 = vmatprep.subr.bf16.mxu1 %v20082_v42 }
 0x5c1   : > { %7020 = vst.msk [vmem:[#allocation7 + $0xb8] sm:$0xf] %vm1582_vm5, %v6948_v22  ;;  %v6946_v62 = vpop.permute.xlu0 %6945  ;;  %v8863_v47 = vadd.f32 %v18839_v21, %v8862_v3  ;;  %v8521_v36 = vld [vmem:[#allocation7 + $0xa0] sm:$0xff]  ;;  %v9117_v22 = vld [vmem:[#allocation4 + $0x1] ss:$2 sm:$0xff] }
 0x5c2   : > { %7019 = vst.msk [vmem:[#allocation7 + $0xb0] sm:$0xf] %vm1582_vm5, %v6946_v62  ;;  %7219 = vrot.lane.b32.xlu1 %v14658_v30, %s15697_s0  ;;  %7217 = vrot.lane.b32.xlu0 %v14657_v56, %s15697_s0  ;;  %v8864_v4 = vpop.f32.mrf.mxu0  ;;  %v13506_v49 = vcombine.low %v8521_v36, %v8522_v19  ;;  %v7828_v30 = vld [vmem:[#allocation4 + $0x1a0] sm:$0xff]  ;;  %v7827_v56 = vld [vmem:[#allocation4 + $0x198] sm:$0xff]  ;;  %v14733_v36 = vpack.c.bf16 %v9117_v22, %v9117_v22 }
 0x5c3   : > { %v8971_v20 = vadd.f32 %v8863_v47, %v20080_v55  ;;  %v14660_v29 = vpack.c.bf16 %v7828_v30, %v7828_v30  ;;  %v15308_v19 = vld [vmem:[#allocation14 + $0x28] sm:$0xff]  }
 0x5c4   : > { %v7204_v43 = vpop.permute.xlu1 %7203  ;;  %v8865_v34 = vpop.f32.mrf.mxu0  ;;  %8917 = vmatmul.mubr.bf16.gmra.mxu0 %v13506_v49  ;;  %v9119_v47 = vld [vmem:[#allocation4 + $0x31] ss:$2 sm:$0xff]  ;;  %9814 = vmatpush1.bf16.msra.mxu1 %v15308_v19 }
 0x5c5   : > { %v9003_v35 = vmax.f32 %v8971_v20, 0.0  ;;  %7276 = vst.msk [vmem:[#allocation7 + $0xb8] sm:$0xf] %vm1839_vm6, %v7204_v43  ;;  %v7202_v16 = vpop.permute.xlu0 %7201  ;;  %v8866_v1 = vadd.f32 %v18839_v21, %v8865_v34  ;;  %v14734_v20 = vpack.c.bf16 %v9119_v47, %v9119_v47  ;;  %9815 = vmatprep.subr.bf16.mxu1 %v20082_v42  ;;  %v15309_v43 = vld [vmem:[#allocation14 + $0x20] sm:$0xff]   ;;  %v14758_v47 = vpack.c.bf16 %v9334_v46, %v9334_v46 }
 0x5c6   : > { %7275 = vst.msk [vmem:[#allocation7 + $0xb0] sm:$0xf] %vm1839_vm6, %v7202_v16  ;;  %7475 = vrot.lane.b32.xlu1 %v14690_v37, %s15698_s1  ;;  %7473 = vrot.lane.b32.xlu0 %v14689_v53, %s15698_s1  ;;  %v8867_v27 = vpop.f32.mrf.mxu0  ;;  %v14659_v37 = vpack.c.bf16 %v7827_v56, %v7827_v56  ;;  %v8084_v53 = vld [vmem:[#allocation4 + $0x1a1] sm:$0xff]  ;;  %v14741_v16 = vpack.c.bf16 %v9189_v6, %v9189_v6 }
 0x5c7   : > { %9035 = vst.msk [vmem:[#allocation4 + $0x61] sm:$0xff] %vm786_vm0, %v9003_v35  ;;  %v8972_v2 = vadd.f32 %v8866_v1, %v20081_v5  ;;  %v9191_v35 = vld [vmem:[#allocation4 + $0x32] ss:$2 sm:$0xff] }
 0x5c8   : > { %v7460_v12 = vpop.permute.xlu1 %7459  ;;  %9816 = vmatpush1.bf16.msra.mxu1 %v15309_v43  ;;  %v14742_v41 = vpack.c.bf16 %v9191_v35, %v9191_v35  ;;  %v9260_v5 = vld [vmem:[#allocation4 + $0x18] ss:$2 sm:$0xff]  ;;  %v20084_v43 = vmax.f32 %v17106_v23, 0.0 }
 0x5c9   : > { %v9004_v59 = vmax.f32 %v8972_v2, 0.0  ;;  %7532 = vst.msk [vmem:[#allocation7 + $0xb8] sm:$0xf] %vm2096_vm7, %v7460_v12  ;;  %v7458_v40 = vpop.permute.xlu0 %7457  ;;  %9817 = vmatprep.subr.bf16.mxu1 %v20082_v42  ;;  %v9262_v2 = vld [vmem:[#allocation4 + $0x48] ss:$2 sm:$0xff]  ;;  %v14749_v12 = vpack.c.bf16 %v9260_v5, %v9260_v5 }
 0x5ca   : > { %7531 = vst.msk [vmem:[#allocation7 + $0xb0] sm:$0xf] %vm2096_vm7, %v7458_v40  ;;  %7731 = vrot.lane.b32.xlu1 %v18811_v38, %s15699_s30  ;;  %7729 = vrot.lane.b32.xlu0 %v18818_v9, %s15699_s30  ;;  %v14692_v38 = vpack.c.bf16 %v8084_v53, %v8084_v53  ;;  %v14691_v9 = vpack.c.bf16 %v8083_v32, %v8083_v32  ;;  %v9332_v40 = vld [vmem:[#allocation4 + $0x19] ss:$2 sm:$0xff] }
 0x5cb   : > { %9036 = vst.msk [vmem:[#allocation4 + $0x69] sm:$0xff] %vm786_vm0, %v9004_v59  ;;  %v14750_v51 = vpack.c.bf16 %v9262_v2, %v9262_v2 }
 0x5cc   : > { %v7716_v14 = vpop.permute.xlu1 %7715  ;;  %9818 = vmatpush1.bf16.msra.mxu1 %v15310_v7  ;;  %v9475_v7 = vld [vmem:[#allocation4 + $0x30] ss:$2 sm:$0xff] }
 0x5cd   : > { %7788 = vst.msk [vmem:[#allocation7 + $0xb8] sm:$0xf] %vm2353_vm8, %v7716_v14  ;;  %v7714_v28 = vpop.permute.xlu0 %7713  ;;  %9819 = vmatprep.subr.bf16.mxu1 %v20082_v42  ;;  %v15296_v14 = vld [vmem:[#allocation7 + $0xb4] ss:$8 sps:$4 sm:$0xff]   ;;  %v14773_v5 = vpack.c.bf16 %v9475_v7, %v9475_v7 }
 0x5ce   : > { %7787 = vst.msk [vmem:[#allocation7 + $0xb0] sm:$0xf] %vm2353_vm8, %v7714_v28  ;;  %7987 = vrot.lane.b32.xlu1 %v14660_v29, %s15700_s4  ;;  %7985 = vrot.lane.b32.xlu0 %v14659_v37, %s15700_s4  ;;  %v15311_v29 = vld [vmem:[#allocation14 + $0x10] sm:$0xff]  }
 0x5cf   : > { %13538 = vmatprep.mubr.msk.bf16.mxu0 %vm786_vm0, %v15296_v14 }
 0x5d0   : > { %v7972_v3 = vpop.permute.xlu1 %7971  ;;  %9820 = vmatpush1.bf16.msra.mxu1 %v15311_v29 }
 0x5d1   : > { %8044 = vst.msk [vmem:[#allocation7 + $0xb8] sm:$0xf] %vm2611_vm9, %v7972_v3  ;;  %v7970_v62 = vpop.permute.xlu0 %7969  ;;  %9821 = vmatprep.subr.bf16.mxu1 %v20082_v42 }
 0x5d2   : > { %8043 = vst.msk [vmem:[#allocation7 + $0xb0] sm:$0xf] %vm2611_vm9, %v7970_v62  ;;  %8243 = vrot.lane.b32.xlu1 %v14692_v38, %s15701_s26  ;;  %8241 = vrot.lane.b32.xlu0 %v14691_v9, %s15701_s26  ;;  %v9065_v4 = vld [vmem:[#allocation4 + $0x60] ss:$2 sm:$0xff]  ;;  %v20083_v9 = vmax.f32 %v17087_v10, 0.0  ;;  %v14757_v62 = vpack.c.bf16 %v9332_v40, %v9332_v40 }
 0x5d3   : > { %v9621_v49 = vld [vmem:[#allocation4 + $0x62] ss:$2 sm:$0xff]  ;;  %v14727_v34 = vpack.c.bf16 %v9065_v4, %v9065_v4 }
 0x5d4   : > { %v8228_v55 = vpop.permute.xlu1 %8227  ;;  %v14790_v13 = vpack.c.bf16 %v9621_v49, %v9621_v49  ;;  %v9406_v10 = vld [vmem:[#allocation4 + $0x4a] ss:$2 sm:$0xff] }
 0x5d5   : > { %8300 = vst.msk [vmem:[#allocation7 + $0xb8] sm:$0xf] %vm2868_vm10, %v8228_v55  ;;  %v8226_v24 = vpop.permute.xlu0 %8225  ;;  %v9404_v55 = vld [vmem:[#allocation4 + $0x1a] ss:$2 sm:$0xff]  ;;  %v14766_v35 = vpack.c.bf16 %v9406_v10, %v9406_v10 }
 0x5d6   : > { %8299 = vst.msk [vmem:[#allocation7 + $0xb0] sm:$0xf] %vm2868_vm10, %v8226_v24  ;;  %9156 = vrot.lane.b32.xlu0 %v14733_v36, %s15696_s24  ;;  %9158 = vrot.lane.b32.xlu1 %v14734_v20, %s15696_s24  ;;  %v15312_v36 = vld [vmem:[#allocation14 + $0x8] sm:$0xff]   ;;  %v14765_v24 = vpack.c.bf16 %v9404_v55, %v9404_v55  ;;  %v9193_v46 = vld [vmem:[#allocation4 + $0x62] ss:$2 sm:$0xff] }
 0x5d7   : > { %9110 = vst.msk [vmem:[#allocation7 + $0x10] sm:$0xf] %vm1068_vm3, %v14727_v34  ;;  %9667 = vst.msk [vmem:[#allocation7 + $0xc] sm:$0xf] %vm1068_vm3, %v14790_v13  ;;  %9822 = vmatpush1.bf16.msra.mxu1 %v15312_v36 }
 0x5d8   : > { %v6696_v1 = vpop.permute.xlu1 %6695  ;;  %9823 = vmatprep.subr.bf16.mxu1 %v20082_v42 }
 0x5d9   : > { %6766 = vst.msk [vmem:[#allocation7 + $0xc8] sm:$0xf] %vm1325_vm4, %v6696_v1  ;;  %v6694_v27 = vpop.permute.xlu0 %6693 }
 0x5da   : > { %6765 = vst.msk [vmem:[#allocation7 + $0xc0] sm:$0xf] %vm1325_vm4, %v6694_v27  ;;  %9228 = vrot.lane.b32.xlu0 %v14741_v16, %s15695_s5  ;;  %9230 = vrot.lane.b32.xlu1 %v14742_v41, %s15695_s5  ;;  %v15313_v16 = vld [vmem:[#allocation14] sm:$0xff]   ;;  %v9477_v27 = vld [vmem:[#allocation4 + $0x60] ss:$2 sm:$0xff] }
 0x5db   : > { %9824 = vmatpush1.bf16.msra.mxu1 %v15313_v16  ;;  %v14774_v2 = vpack.c.bf16 %v9477_v27, %v9477_v27 }
 0x5dc   : > { %v6952_v30 = vpop.permute.xlu1 %6951  ;;  %v8870_v56 = vpop.f32.mrf.mxu0  ;;  %v8524_v59 = vld [vmem:[#allocation7 + $0xb8] sm:$0xff]  ;;  %9839 = vmatprep.subr.bf16.mxu1 %v20082_v42  ;;  %v9121_v42 = vld [vmem:[#allocation4 + $0x61] ss:$2 sm:$0xff] }
 0x5dd   : > { %7022 = vst.msk [vmem:[#allocation7 + $0xc8] sm:$0xf] %vm1582_vm5, %v6952_v30  ;;  %v6950_v37 = vpop.permute.xlu0 %6949  ;;  %v8871_v53 = vadd.f32 %v18839_v21, %v8870_v56  ;;  %v8523_v32 = vld [vmem:[#allocation7 + $0xb0] sm:$0xff]  ;;  %v15314_v30 = vld [vmem:[#allocation14 + $0x40] sm:$0xff]  }
 0x5de   : > { %7021 = vst.msk [vmem:[#allocation7 + $0xc0] sm:$0xf] %vm1582_vm5, %v6950_v37  ;;  %9299 = vrot.lane.b32.xlu0 %v14749_v12, %s15697_s0  ;;  %v8872_v28 = vpop.f32.mrf.mxu0  ;;  %9301 = vrot.lane.b32.xlu1 %v14750_v51, %s15697_s0  ;;  %v13508_v38 = vcombine.low %v8523_v32, %v8524_v59  ;;  %v9547_v12 = vld [vmem:[#allocation4 + $0x31] ss:$2 sm:$0xff]  ;;  %v9549_v51 = vld [vmem:[#allocation4 + $0x61] ss:$2 sm:$0xff]  ;;  %v14735_v32 = vpack.c.bf16 %v9121_v42, %v9121_v42 }
 0x5df   : > { %v8973_v22 = vadd.f32 %v8871_v53, %v20083_v9  ;;  %9840 = vmatpush2.bf16.msra.mxu1 %v15314_v30  ;;  %v14781_v40 = vpack.c.bf16 %v9547_v12, %v9547_v12  ;;  %v14782_v29 = vpack.c.bf16 %v9549_v51, %v9549_v51 }
 0x5e0   : > { %v7208_v3 = vpop.permute.xlu1 %7207  ;;  %v8873_v19 = vpop.f32.mrf.mxu0  ;;  %8925 = vmatmul.mubr.bf16.gmra.mxu0 %v13508_v38  ;;  %v14743_v38 = vpack.c.bf16 %v9193_v46, %v9193_v46 }
 0x5e1   : > { %v9005_v6 = vmax.f32 %v8973_v22, 0.0  ;;  %7278 = vst.msk [vmem:[#allocation7 + $0xc8] sm:$0xf] %vm1839_vm6, %v7208_v3  ;;  %v7206_v4 = vpop.permute.xlu0 %7205  ;;  %v8874_v49 = vadd.f32 %v18839_v21, %v8873_v19 }
 0x5e2   : > { %7277 = vst.msk [vmem:[#allocation7 + $0xc0] sm:$0xf] %vm1839_vm6, %v7206_v4  ;;  %9371 = vrot.lane.b32.xlu0 %v14757_v62, %s15698_s1  ;;  %v8875_v20 = vpop.f32.mrf.mxu0  ;;  %9373 = vrot.lane.b32.xlu1 %v14758_v47, %s15698_s1 }
 0x5e3   : > { %9037 = vst.msk [vmem:[#allocation4 + $0x79] sm:$0xff] %vm786_vm0, %v9005_v6  ;;  %v8974_v34 = vadd.f32 %v8874_v49, %v20084_v43  ;;  %v15298_v49 = vld [vmem:[#allocation7 + $0xc4] ss:$8 sps:$4 sm:$0xff]   ;;  %v20085_v43 = vmax.f32 %v17160_v33, 0.0  ;;  %v20086_v33 = vmax.f32 %v17172_v31, 0.0 }
 0x5e4   : > { %v7464_v13 = vpop.permute.xlu1 %7463  ;;  %13539 = vmatprep.mubr.msk.bf16.mxu0 %vm786_vm0, %v15298_v49 }
 0x5e5   : > { %v9006_v1 = vmax.f32 %v8974_v34, 0.0  ;;  %7534 = vst.msk [vmem:[#allocation7 + $0xc8] sm:$0xf] %vm2096_vm7, %v7464_v13  ;;  %v7462_v41 = vpop.permute.xlu0 %7461 }
 0x5e6   : > { %7533 = vst.msk [vmem:[#allocation7 + $0xc0] sm:$0xf] %vm2096_vm7, %v7462_v41  ;;  %9443 = vrot.lane.b32.xlu0 %v14765_v24, %s15699_s30  ;;  %9445 = vrot.lane.b32.xlu1 %v14766_v35, %s15699_s30 }
 0x5e7   : > { %9038 = vst.msk [vmem:[#allocation4 + $0x81] sm:$0xff] %vm786_vm0, %v9006_v1 }
 0x5e8   : > { %v7720_v23 = vpop.permute.xlu1 %7719 }
 0x5e9   : > { %7790 = vst.msk [vmem:[#allocation7 + $0xc8] sm:$0xf] %vm2353_vm8, %v7720_v23  ;;  %v7718_v56 = vpop.permute.xlu0 %7717 }
 0x5ea   : > { %7789 = vst.msk [vmem:[#allocation7 + $0xc0] sm:$0xf] %vm2353_vm8, %v7718_v56  ;;  %9514 = vrot.lane.b32.xlu0 %v14773_v5, %s15700_s4  ;;  %9516 = vrot.lane.b32.xlu1 %v14774_v2, %s15700_s4 }
 0x5ec   : > { %v7976_v59 = vpop.permute.xlu1 %7975 }
 0x5ed   : > { %8046 = vst.msk [vmem:[#allocation7 + $0xc8] sm:$0xf] %vm2611_vm9, %v7976_v59  ;;  %v7974_v37 = vpop.permute.xlu0 %7973 }
 0x5ee   : > { %8045 = vst.msk [vmem:[#allocation7 + $0xc0] sm:$0xf] %vm2611_vm9, %v7974_v37  ;;  %9586 = vrot.lane.b32.xlu0 %v14781_v40, %s15701_s26  ;;  %9588 = vrot.lane.b32.xlu1 %v14782_v29, %s15701_s26  ;;  %v9264_v22 = vld [vmem:[#allocation4 + $0x78] ss:$2 sm:$0xff]  ;;  %v9336_v55 = vld [vmem:[#allocation4 + $0x79] ss:$2 sm:$0xff] }
 0x5ef   : > { %v14751_v62 = vpack.c.bf16 %v9264_v22, %v9264_v22  ;;  %v14759_v35 = vpack.c.bf16 %v9336_v55, %v9336_v55  ;;  %v9408_v7 = vld [vmem:[#allocation4 + $0x7a] ss:$2 sm:$0xff] }
 0x5f0   : > { %v8232_v53 = vpop.permute.xlu1 %8231  ;;  %v14767_v2 = vpack.c.bf16 %v9408_v7, %v9408_v7 }
 0x5f1   : > { %8302 = vst.msk [vmem:[#allocation7 + $0xc8] sm:$0xf] %vm2868_vm10, %v8232_v53  ;;  %v8230_v14 = vpop.permute.xlu0 %8229 }
 0x5f2   : > { %8301 = vst.msk [vmem:[#allocation7 + $0xc0] sm:$0xf] %vm2868_vm10, %v8230_v14  ;;  %9160 = vrot.lane.b32.xlu0 %v14735_v32, %s15696_s24 }
 0x5f4   : > { %v6700_v28 = vpop.permute.xlu1 %6699 }
 0x5f5   : > { %6768 = vst.msk [vmem:[#allocation7 + $0xd8] sm:$0xf] %vm1325_vm4, %v6700_v28  ;;  %v6698_v9 = vpop.permute.xlu0 %6697 }
 0x5f6   : > { %6767 = vst.msk [vmem:[#allocation7 + $0xd0] sm:$0xf] %vm1325_vm4, %v6698_v9  ;;  %9232 = vrot.lane.b32.xlu0 %v14743_v38, %s15695_s5 }
 0x5f8   : > { %v6956_v3 = vpop.permute.xlu1 %6955  ;;  %v8878_v19 = vpop.f32.mrf.mxu0  ;;  %v8526_v47 = vld [vmem:[#allocation7 + $0xc8] sm:$0xff] }
 0x5f9   : > { %7024 = vst.msk [vmem:[#allocation7 + $0xd8] sm:$0xf] %vm1582_vm5, %v6956_v3  ;;  %v6954_v36 = vpop.permute.xlu0 %6953  ;;  %v8879_v6 = vadd.f32 %v18839_v21, %v8878_v19  ;;  %v8525_v4 = vld [vmem:[#allocation7 + $0xc0] sm:$0xff] }
 0x5fa   : > { %7023 = vst.msk [vmem:[#allocation7 + $0xd0] sm:$0xf] %vm1582_vm5, %v6954_v36  ;;  %v8880_v10 = vpop.f32.mrf.mxu0  ;;  %9303 = vrot.lane.b32.xlu0 %v14751_v62, %s15697_s0  ;;  %v13510_v20 = vcombine.low %v8525_v4, %v8526_v47 }
 0x5fb   : > { %v8975_v34 = vadd.f32 %v8879_v6, %v20085_v43 }
 0x5fc   : > { %v7212_v13 = vpop.permute.xlu1 %7211  ;;  %v8881_v24 = vpop.f32.mrf.mxu0  ;;  %8933 = vmatmul.mubr.bf16.gmra.mxu0 %v13510_v20  ;;  %v15300_v20 = vld [vmem:[#allocation7 + $0xd4] ss:$8 sps:$4 sm:$0xff]  }
 0x5fd   : > { %v9007_v16 = vmax.f32 %v8975_v34, 0.0  ;;  %7280 = vst.msk [vmem:[#allocation7 + $0xd8] sm:$0xf] %vm1839_vm6, %v7212_v13  ;;  %v7210_v1 = vpop.permute.xlu0 %7209  ;;  %v8882_v41 = vadd.f32 %v18839_v21, %v8881_v24  ;;  %v20087_v13 = vmax.f32 %v17232_v52, 0.0  ;;  %13540 = vmatprep.mubr.msk.bf16.mxu0 %vm786_vm0, %v15300_v20 }
 0x5fe   : > { %7279 = vst.msk [vmem:[#allocation7 + $0xd0] sm:$0xf] %vm1839_vm6, %v7210_v1  ;;  %v8883_v27 = vpop.f32.mrf.mxu0  ;;  %9375 = vrot.lane.b32.xlu0 %v14759_v35, %s15698_s1 }
 0x5ff   : > { %9039 = vst.msk [vmem:[#allocation4 + $0x91] sm:$0xff] %vm786_vm0, %v9007_v16  ;;  %v8976_v23 = vadd.f32 %v8882_v41, %v20086_v33  ;;  %v20088_v33 = vmax.f32 %v17244_v54, 0.0 }
 0x600   : > { %v7468_v5 = vpop.permute.xlu1 %7467 }
 0x601   : > { %v9008_v30 = vmax.f32 %v8976_v23, 0.0  ;;  %7536 = vst.msk [vmem:[#allocation7 + $0xd8] sm:$0xf] %vm2096_vm7, %v7468_v5  ;;  %v7466_v56 = vpop.permute.xlu0 %7465 }
 0x602   : > { %7535 = vst.msk [vmem:[#allocation7 + $0xd0] sm:$0xf] %vm2096_vm7, %v7466_v56  ;;  %9447 = vrot.lane.b32.xlu0 %v14767_v2, %s15699_s30 }
 0x603   : > { %9040 = vst.msk [vmem:[#allocation4 + $0x99] sm:$0xff] %vm786_vm0, %v9008_v30 }
 0x604   : > { %v7724_v12 = vpop.permute.xlu1 %7723 }
 0x605   : > { %7792 = vst.msk [vmem:[#allocation7 + $0xd8] sm:$0xf] %vm2353_vm8, %v7724_v12  ;;  %v7722_v51 = vpop.permute.xlu0 %7721 }
 0x606   : > { %7791 = vst.msk [vmem:[#allocation7 + $0xd0] sm:$0xf] %vm2353_vm8, %v7722_v51 }
 0x608   : > { %v7980_v31 = vpop.permute.xlu1 %7979 }
 0x609   : > { %8048 = vst.msk [vmem:[#allocation7 + $0xd8] sm:$0xf] %vm2611_vm9, %v7980_v31  ;;  %v7978_v59 = vpop.permute.xlu0 %7977 }
 0x60a   : > { %8047 = vst.msk [vmem:[#allocation7 + $0xd0] sm:$0xf] %vm2611_vm9, %v7978_v59  ;;  %v9479_v40 = vld [vmem:[#allocation4 + $0x90] ss:$2 sm:$0xff]  ;;  %v9123_v29 = vld [vmem:[#allocation4 + $0x91] ss:$2 sm:$0xff] }
 0x60b   : > { %v14775_v37 = vpack.c.bf16 %v9479_v40, %v9479_v40  ;;  %v14736_v42 = vpack.c.bf16 %v9123_v29, %v9123_v29  ;;  %v9067_v53 = vld [vmem:[#allocation4 + $0x90] ss:$2 sm:$0xff]  ;;  %v9551_v46 = vld [vmem:[#allocation4 + $0x91] ss:$2 sm:$0xff] }
 0x60c   : > { %v9623_v32 = vld [vmem:[#allocation4 + $0x92] ss:$2 sm:$0xff]  ;;  %v8236_v14 = vpop.permute.xlu1 %8235  ;;  %v14728_v38 = vpack.c.bf16 %v9067_v53, %v9067_v53  ;;  %v14783_v3 = vpack.c.bf16 %v9551_v46, %v9551_v46 }
 0x60d   : > { %v9195_v28 = vld [vmem:[#allocation4 + $0x92] ss:$2 sm:$0xff]  ;;  %v14791_v9 = vpack.c.bf16 %v9623_v32, %v9623_v32  ;;  %8304 = vst.msk [vmem:[#allocation7 + $0xd8] sm:$0xf] %vm2868_vm10, %v8236_v14  ;;  %v8234_v22 = vpop.permute.xlu0 %8233  ;;  %9518 = vrot.lane.b32.xlu0 %v14775_v37, %s15700_s4  ;;  %9162 = vrot.lane.b32.xlu1 %v14736_v42, %s15696_s24 }
 0x60e   : > { %8303 = vst.msk [vmem:[#allocation7 + $0xd0] sm:$0xf] %vm2868_vm10, %v8234_v22  ;;  %v14744_v19 = vpack.c.bf16 %v9195_v28, %v9195_v28 }
 0x60f   : > { %9111 = vst.msk [vmem:[#allocation7 + $0x18] sm:$0xf] %vm1068_vm3, %v14728_v38  ;;  %9668 = vst.msk [vmem:[#allocation7 + $0x14] sm:$0xf] %vm1068_vm3, %v14791_v9  ;;  %v19145_v9 = vld [vmem:[%s20076_s6] ss:$0 sm:$0xff] }
 0x610   : > { %v6704_v62 = vpop.permute.xlu1 %6703 }
 0x611   : > { %6770 = vst.msk [vmem:[#allocation7 + $0xe8] sm:$0xf] %vm1325_vm4, %v6704_v62  ;;  %v6702_v47 = vpop.permute.xlu0 %6701  ;;  %9590 = vrot.lane.b32.xlu0 %v14783_v3, %s15701_s26  ;;  %9234 = vrot.lane.b32.xlu1 %v14744_v19, %s15695_s5  ;;  %v15302_v19 = vld [vmem:[#allocation7 + $0xe4] ss:$8 sps:$4 sm:$0xff]  }
 0x612   : > { %6769 = vst.msk [vmem:[#allocation7 + $0xe0] sm:$0xf] %vm1325_vm4, %v6702_v47 }
 0x614   : > { %v6960_v36 = vpop.permute.xlu1 %6959  ;;  %v8886_v6 = vpop.f32.mrf.mxu0  ;;  %v8528_v4 = vld [vmem:[#allocation7 + $0xd8] sm:$0xff] }
 0x615   : > { %7026 = vst.msk [vmem:[#allocation7 + $0xe8] sm:$0xf] %vm1582_vm5, %v6960_v36  ;;  %v6958_v49 = vpop.permute.xlu0 %6957  ;;  %v8887_v55 = vadd.f32 %v18839_v21, %v8886_v6  ;;  %v8527_v10 = vld [vmem:[#allocation7 + $0xd0] sm:$0xff]  ;;  %v20089_v36 = vmax.f32 %v17299_v45, 0.0 }
 0x616   : > { %7025 = vst.msk [vmem:[#allocation7 + $0xe0] sm:$0xf] %vm1582_vm5, %v6958_v49  ;;  %v8888_v43 = vpop.f32.mrf.mxu0  ;;  %v13512_v34 = vcombine.low %v8527_v10, %v8528_v4 }
 0x617   : > { %v8977_v24 = vadd.f32 %v8887_v55, %v20087_v13 }
 0x618   : > { %v7216_v35 = vpop.permute.xlu1 %7215  ;;  %v8889_v16 = vpop.f32.mrf.mxu0  ;;  %8941 = vmatmul.mubr.bf16.gmra.mxu0 %v13512_v34  ;;  %v20090_v34 = vmax.f32 %v17311_v57, 0.0 }
 0x619   : > { %v9009_v1 = vmax.f32 %v8977_v24, 0.0  ;;  %7282 = vst.msk [vmem:[#allocation7 + $0xe8] sm:$0xf] %vm1839_vm6, %v7216_v35  ;;  %v7214_v41 = vpop.permute.xlu0 %7213  ;;  %v8890_v7 = vadd.f32 %v18839_v21, %v8889_v16  ;;  %13541 = vmatprep.mubr.msk.bf16.mxu0 %vm786_vm0, %v15302_v19 }
 0x61a   : > { %7281 = vst.msk [vmem:[#allocation7 + $0xe0] sm:$0xf] %vm1839_vm6, %v7214_v41  ;;  %v8891_v27 = vpop.f32.mrf.mxu0 }
 0x61b   : > { %9041 = vst.msk [vmem:[#allocation4 + $0xa9] sm:$0xff] %vm786_vm0, %v9009_v1  ;;  %v8978_v52 = vadd.f32 %v8890_v7, %v20088_v33 }
 0x61c   : > { %v7472_v23 = vpop.permute.xlu1 %7471 }
 0x61d   : > { %v9010_v5 = vmax.f32 %v8978_v52, 0.0  ;;  %7538 = vst.msk [vmem:[#allocation7 + $0xe8] sm:$0xf] %vm2096_vm7, %v7472_v23  ;;  %v7470_v2 = vpop.permute.xlu0 %7469 }
 0x61e   : > { %7537 = vst.msk [vmem:[#allocation7 + $0xe0] sm:$0xf] %vm2096_vm7, %v7470_v2 }
 0x61f   : > { %9042 = vst.msk [vmem:[#allocation4 + $0xb1] sm:$0xff] %vm786_vm0, %v9010_v5 }
 0x620   : > { %v7728_v30 = vpop.permute.xlu1 %7727 }
 0x621   : > { %7794 = vst.msk [vmem:[#allocation7 + $0xe8] sm:$0xf] %vm2353_vm8, %v7728_v30  ;;  %v7726_v21 = vpop.permute.xlu0 %7725 }
 0x622   : > { %7793 = vst.msk [vmem:[#allocation7 + $0xe0] sm:$0xf] %vm2353_vm8, %v7726_v21 }
 0x624   : > { %v7984_v56 = vpop.permute.xlu1 %7983 }
 0x625   : > { %8050 = vst.msk [vmem:[#allocation7 + $0xe8] sm:$0xf] %vm2611_vm9, %v7984_v56  ;;  %v7982_v54 = vpop.permute.xlu0 %7981 }
 0x626   : > { %8049 = vst.msk [vmem:[#allocation7 + $0xe0] sm:$0xf] %vm2611_vm9, %v7982_v54  ;;  %v9266_v12 = vld [vmem:[#allocation4 + $0xa8] ss:$2 sm:$0xff]  ;;  %v9338_v59 = vld [vmem:[#allocation4 + $0xa9] ss:$2 sm:$0xff] }
 0x627   : > { %v14752_v51 = vpack.c.bf16 %v9266_v12, %v9266_v12  ;;  %v14760_v29 = vpack.c.bf16 %v9338_v59, %v9338_v59  ;;  %v9410_v42 = vld [vmem:[#allocation4 + $0xaa] ss:$2 sm:$0xff] }
 0x628   : > { %v8240_v31 = vpop.permute.xlu1 %8239  ;;  %v14768_v32 = vpack.c.bf16 %v9410_v42, %v9410_v42 }
 0x629   : > { %8306 = vst.msk [vmem:[#allocation7 + $0xe8] sm:$0xf] %vm2868_vm10, %v8240_v31  ;;  %v8238_v40 = vpop.permute.xlu0 %8237  ;;  %9305 = vrot.lane.b32.xlu1 %v14752_v51, %s15697_s0 }
 0x62a   : > { %8305 = vst.msk [vmem:[#allocation7 + $0xe0] sm:$0xf] %vm2868_vm10, %v8238_v40 }
 0x62c   : > { %v6708_v37 = vpop.permute.xlu1 %6707 }
 0x62d   : > { %6772 = vst.msk [vmem:[#allocation7 + $0xf8] sm:$0xf] %vm1325_vm4, %v6708_v37  ;;  %v6706_v53 = vpop.permute.xlu0 %6705  ;;  %9377 = vrot.lane.b32.xlu1 %v14760_v29, %s15698_s1 }
 0x62e   : > { %6771 = vst.msk [vmem:[#allocation7 + $0xf0] sm:$0xf] %vm1325_vm4, %v6706_v53 }
 0x630   : > { %v6964_v14 = vpop.permute.xlu1 %6963  ;;  %v8894_v46 = vpop.f32.mrf.mxu0  ;;  %v8530_v28 = vld [vmem:[#allocation7 + $0xe8] sm:$0xff] }
 0x631   : > { %7028 = vst.msk [vmem:[#allocation7 + $0xf8] sm:$0xf] %vm1582_vm5, %v6964_v14  ;;  %v6962_v38 = vpop.permute.xlu0 %6961  ;;  %v8895_v22 = vadd.f32 %v19145_v9, %v8894_v46  ;;  %9449 = vrot.lane.b32.xlu1 %v14768_v32, %s15699_s30  ;;  %v8529_v3 = vld [vmem:[#allocation7 + $0xe0] sm:$0xff]  ;;  %v15306_v46 = vld [vmem:[#allocation7 + $0xf4] ss:$8 sps:$4 sm:$0xff]  }
 0x632   : > { %7027 = vst.msk [vmem:[#allocation7 + $0xf0] sm:$0xf] %vm1582_vm5, %v6962_v38  ;;  %v8896_v62 = vpop.f32.mrf.mxu0  ;;  %v13514_v47 = vcombine.low %v8529_v3, %v8530_v28 }
 0x633   : > { %v8979_v6 = vadd.f32 %v8895_v22, %v20089_v36  ;;  %v20091_v22 = vmax.f32 %v17370_v48, 0.0 }
 0x634   : > { %v7220_v4 = vpop.permute.xlu1 %7219  ;;  %v8897_v49 = vpop.f32.mrf.mxu0  ;;  %8949 = vmatmul.mubr.bf16.gmra.mxu0 %v13514_v47 }
 0x635   : > { %v9011_v55 = vmax.f32 %v8979_v6, 0.0  ;;  %7284 = vst.msk [vmem:[#allocation7 + $0xf8] sm:$0xf] %vm1839_vm6, %v7220_v4  ;;  %v7218_v10 = vpop.permute.xlu0 %7217  ;;  %v8898_v20 = vadd.f32 %v19145_v9, %v8897_v49  ;;  %13542 = vmatprep.mubr.msk.bf16.mxu0 %vm786_vm0, %v15306_v46  ;;  %v20092_v49 = vmax.f32 %v17382_v44, 0.0 }
 0x636   : > { %7283 = vst.msk [vmem:[#allocation7 + $0xf0] sm:$0xf] %vm1839_vm6, %v7218_v10  ;;  %v8899_v43 = vpop.f32.mrf.mxu0 }
 0x637   : > { %9043 = vst.msk [vmem:[#allocation4 + $0xc1] sm:$0xff] %vm786_vm0, %v9011_v55  ;;  %v8980_v45 = vadd.f32 %v8898_v20, %v20090_v34 }
 0x638   : > { %v7476_v13 = vpop.permute.xlu1 %7475 }
 0x639   : > { %v9012_v24 = vmax.f32 %v8980_v45, 0.0  ;;  %7540 = vst.msk [vmem:[#allocation7 + $0xf8] sm:$0xf] %vm2096_vm7, %v7476_v13  ;;  %v7474_v35 = vpop.permute.xlu0 %7473 }
 0x63a   : > { %7539 = vst.msk [vmem:[#allocation7 + $0xf0] sm:$0xf] %vm2096_vm7, %v7474_v35 }
 0x63b   : > { %9044 = vst.msk [vmem:[#allocation4 + $0xc9] sm:$0xff] %vm786_vm0, %v9012_v24 }
 0x63c   : > { %v7732_v16 = vpop.permute.xlu1 %7731 }
 0x63d   : > { %7796 = vst.msk [vmem:[#allocation7 + $0xf8] sm:$0xf] %vm2353_vm8, %v7732_v16  ;;  %v7730_v1 = vpop.permute.xlu0 %7729 }
 0x63e   : > { %7795 = vst.msk [vmem:[#allocation7 + $0xf0] sm:$0xf] %vm2353_vm8, %v7730_v1 }
 0x640   : > { %v7988_v41 = vpop.permute.xlu1 %7987 }
 0x641   : > { %8052 = vst.msk [vmem:[#allocation7 + $0xf8] sm:$0xf] %vm2611_vm9, %v7988_v41  ;;  %v7986_v57 = vpop.permute.xlu0 %7985 }
 0x642   : > { %8051 = vst.msk [vmem:[#allocation7 + $0xf0] sm:$0xf] %vm2611_vm9, %v7986_v57  ;;  %v9125_v7 = vld [vmem:[#allocation4 + $0xc1] ss:$2 sm:$0xff]  ;;  %v9481_v27 = vld [vmem:[#allocation4 + $0xc0] ss:$2 sm:$0xff] }
 0x643   : > { %v14737_v33 = vpack.c.bf16 %v9125_v7, %v9125_v7  ;;  %v14776_v52 = vpack.c.bf16 %v9481_v27, %v9481_v27  ;;  %v9069_v23 = vld [vmem:[#allocation4 + $0xc0] ss:$2 sm:$0xff]  ;;  %v9553_v21 = vld [vmem:[#allocation4 + $0xc1] ss:$2 sm:$0xff] }
 0x644   : > { %v9625_v5 = vld [vmem:[#allocation4 + $0xc2] ss:$2 sm:$0xff]  ;;  %v8244_v2 = vpop.permute.xlu1 %8243  ;;  %v14729_v56 = vpack.c.bf16 %v9069_v23, %v9069_v23  ;;  %v14784_v31 = vpack.c.bf16 %v9553_v21, %v9553_v21  ;;  %v20093_v21 = vmax.f32 %v17437_v11, 0.0 }
 0x645   : > { %v9197_v30 = vld [vmem:[#allocation4 + $0xc2] ss:$2 sm:$0xff]  ;;  %v14792_v54 = vpack.c.bf16 %v9625_v5, %v9625_v5  ;;  %8308 = vst.msk [vmem:[#allocation7 + $0xf8] sm:$0xf] %vm2868_vm10, %v8244_v2  ;;  %v8242_v12 = vpop.permute.xlu0 %8241  ;;  %9164 = vrot.lane.b32.xlu0 %v14737_v33, %s15696_s24  ;;  %9520 = vrot.lane.b32.xlu1 %v14776_v52, %s15700_s4 }
 0x646   : > { %8307 = vst.msk [vmem:[#allocation7 + $0xf0] sm:$0xf] %vm2868_vm10, %v8242_v12  ;;  %v14745_v51 = vpack.c.bf16 %v9197_v30, %v9197_v30  ;;  %v15317_v2 = vld [vmem:[#allocation7 + $0x4] ss:$8 sps:$4 sm:$0xff]  }
 0x647   : > { %9112 = vst.msk [vmem:[#allocation7 + $0x20] sm:$0xf] %vm1068_vm3, %v14729_v56  ;;  %9669 = vst.msk [vmem:[#allocation7 + $0x1c] sm:$0xf] %vm1068_vm3, %v14792_v54  ;;  %13633 = vmatprep.mubr.msk.bf16.mxu1 %vm786_vm0, %v15317_v2 }
 0x648   : > { %v9159_v59 = vpop.permute.xlu1 %9158 }
 0x649   : > { %v9157_v40 = vpop.permute.xlu0 %9156  ;;  %9181 = vst.msk [vmem:[#allocation7 + $0x8] sm:$0xf] %vm1325_vm4, %v9159_v59  ;;  %9236 = vrot.lane.b32.xlu0 %v14745_v51, %s15695_s5  ;;  %9592 = vrot.lane.b32.xlu1 %v14784_v31, %s15701_s26 }
 0x64a   : > { %9180 = vst.msk [vmem:[#allocation7] sm:$0xf] %vm1325_vm4, %v9157_v40  ;;  %v20094_v40 = vmax.f32 %v17449_v60, 0.0 }
 0x64c   : > { %v9231_v29 = vpop.permute.xlu1 %9230  ;;  %v8902_v37 = vpop.f32.mrf.mxu0  ;;  %v8532_v42 = vld [vmem:[#allocation7 + $0xf8] sm:$0xff] }
 0x64d   : > { %v9229_v53 = vpop.permute.xlu0 %9228  ;;  %9253 = vst.msk [vmem:[#allocation7 + $0x8] sm:$0xf] %vm1582_vm5, %v9231_v29  ;;  %v8903_v32 = vadd.f32 %v19145_v9, %v8902_v37  ;;  %v8531_v14 = vld [vmem:[#allocation7 + $0xf0] sm:$0xff] }
 0x64e   : > { %9252 = vst.msk [vmem:[#allocation7] sm:$0xf] %vm1582_vm5, %v9229_v53  ;;  %v8904_v28 = vpop.f32.mrf.mxu0  ;;  %v13516_v38 = vcombine.low %v8531_v14, %v8532_v42 }
 0x64f   : > { %v8981_v3 = vadd.f32 %v8903_v32, %v20091_v22 }
 0x650   : > { %v8905_v19 = vpop.f32.mrf.mxu0  ;;  %8957 = vmatmul.mubr.bf16.gmra.mxu0 %v13516_v38  ;;  %v9302_v62 = vpop.permute.xlu1 %9301 }
 0x651   : > { %v9013_v47 = vmax.f32 %v8981_v3, 0.0  ;;  %v9300_v36 = vpop.permute.xlu0 %9299  ;;  %v8906_v6 = vadd.f32 %v19145_v9, %v8905_v19  ;;  %9324 = vst.msk [vmem:[#allocation7 + $0x8] sm:$0xf] %vm1839_vm6, %v9302_v62 }
 0x652   : > { %9323 = vst.msk [vmem:[#allocation7] sm:$0xf] %vm1839_vm6, %v9300_v36  ;;  %v8907_v4 = vpop.f32.mrf.mxu0 }
 0x653   : > { %9045 = vst.msk [vmem:[#allocation4 + $0xd9] sm:$0xff] %vm786_vm0, %v9013_v47  ;;  %v8982_v48 = vadd.f32 %v8906_v6, %v20092_v49 }
 0x654   : > { %v9374_v55 = vpop.permute.xlu1 %9373 }
 0x655   : > { %v9014_v10 = vmax.f32 %v8982_v48, 0.0  ;;  %v9372_v20 = vpop.permute.xlu0 %9371  ;;  %9396 = vst.msk [vmem:[#allocation7 + $0x8] sm:$0xf] %vm2096_vm7, %v9374_v55 }
 0x656   : > { %9395 = vst.msk [vmem:[#allocation7] sm:$0xf] %vm2096_vm7, %v9372_v20  ;;  %v20095_v20 = vmax.f32 %v17504_v39, 0.0 }
 0x657   : > { %9046 = vst.msk [vmem:[#allocation4 + $0xe1] sm:$0xff] %vm786_vm0, %v9014_v10 }
 0x658   : > { %v9446_v43 = vpop.permute.xlu1 %9445 }
 0x659   : > { %v9444_v34 = vpop.permute.xlu0 %9443  ;;  %9468 = vst.msk [vmem:[#allocation7 + $0x8] sm:$0xf] %vm2353_vm8, %v9446_v43 }
 0x65a   : > { %9467 = vst.msk [vmem:[#allocation7] sm:$0xf] %vm2353_vm8, %v9444_v34 }
 0x65c   : > { %v9517_v45 = vpop.permute.xlu1 %9516 }
 0x65d   : > { %v9515_v13 = vpop.permute.xlu0 %9514  ;;  %9539 = vst.msk [vmem:[#allocation7 + $0x8] sm:$0xf] %vm2611_vm9, %v9517_v45 }
 0x65e   : > { %9538 = vst.msk [vmem:[#allocation7] sm:$0xf] %vm2611_vm9, %v9515_v13  ;;  %v9268_v44 = vld [vmem:[#allocation4 + $0xd8] ss:$2 sm:$0xff]  ;;  %v9340_v16 = vld [vmem:[#allocation4 + $0xd9] ss:$2 sm:$0xff] }
 0x65f   : > { %v14753_v24 = vpack.c.bf16 %v9268_v44, %v9268_v44  ;;  %v14761_v41 = vpack.c.bf16 %v9340_v16, %v9340_v16  ;;  %v9412_v57 = vld [vmem:[#allocation4 + $0xda] ss:$2 sm:$0xff] }
 0x660   : > { %v9589_v35 = vpop.permute.xlu1 %9588  ;;  %v14769_v27 = vpack.c.bf16 %v9412_v57, %v9412_v57 }
 0x661   : > { %v9587_v1 = vpop.permute.xlu0 %9586  ;;  %9611 = vst.msk [vmem:[#allocation7 + $0x8] sm:$0xf] %vm2868_vm10, %v9589_v35  ;;  %9307 = vrot.lane.b32.xlu0 %v14753_v24, %s15697_s0  ;;  %v20096_v24 = vmax.f32 %v17516_v50, 0.0 }
 0x662   : > { %9610 = vst.msk [vmem:[#allocation7] sm:$0xf] %vm2868_vm10, %v9587_v1 }
 0x665   : > { %v9161_v7 = vpop.permute.xlu0 %9160  ;;  %9379 = vrot.lane.b32.xlu0 %v14761_v41, %s15698_s1 }
 0x666   : > { %9182 = vst.msk [vmem:[#allocation7 + $0x10] sm:$0xf] %vm1325_vm4, %v9161_v7 }
 0x668   : > { %v8910_v33 = vpop.f32.mrf.mxu0 }
 0x669   : > { %v8911_v52 = vadd.f32 %v19145_v9, %v8910_v33  ;;  %v9233_v23 = vpop.permute.xlu0 %9232  ;;  %9451 = vrot.lane.b32.xlu0 %v14769_v27, %s15699_s30  ;;  %v19202_v5 = vld [vmem:[#allocation7] ss:$8 sps:$4 sm:$0xff]  }
 0x66a   : > { %9254 = vst.msk [vmem:[#allocation7 + $0x10] sm:$0xf] %vm1582_vm5, %v9233_v23  ;;  %v8912_v30 = vpop.f32.mrf.mxu0  ;;  %9842 = vmatmul.mubr.bf16.vlgmr.msra.gmra.mxu1 %v19202_v5 }
 0x66b   : > { %v8983_v56 = vadd.f32 %v8911_v52, %v20093_v21  ;;  %v20097_v30 = vmax.f32 %v17571_v0, 0.0 }
 0x66c   : > { %v8913_v54 = vpop.f32.mrf.mxu0 }
 0x66d   : > { %v9015_v12 = vmax.f32 %v8983_v56, 0.0  ;;  %v8914_v51 = vadd.f32 %v19145_v9, %v8913_v54  ;;  %v9304_v31 = vpop.permute.xlu0 %9303 }
 0x66e   : > { %9325 = vst.msk [vmem:[#allocation7 + $0x10] sm:$0xf] %vm1839_vm6, %v9304_v31  ;;  %v8915_v59 = vpop.f32.mrf.mxu0 }
 0x66f   : > { %9047 = vst.msk [vmem:[#allocation4 + $0xf1] sm:$0xff] %vm786_vm0, %v9015_v12  ;;  %v8984_v29 = vadd.f32 %v8914_v51, %v20094_v40  ;;  %v20098_v59 = vmax.f32 %v17583_v63, 0.0 }
 0x671   : > { %v9016_v37 = vmax.f32 %v8984_v29, 0.0  ;;  %v9376_v11 = vpop.permute.xlu0 %9375 }
 0x672   : > { %9397 = vst.msk [vmem:[#allocation7 + $0x10] sm:$0xf] %vm2096_vm7, %v9376_v11 }
 0x673   : > { %9048 = vst.msk [vmem:[#allocation4 + $0xf9] sm:$0xff] %vm786_vm0, %v9016_v37  ;;  %v20099_v37 = vmov 0.0  }
 0x674   : > { %759 = vst.msk [vmem:[#allocation3] sm:$0xff] %vm758_vm11, %v20099_v37  ;;  %763 = vst.msk [vmem:[#allocation3 + $0x90] sm:$0xff] %vm758_vm11, %v20099_v37 }
 0x675   : > { %v9448_v42 = vpop.permute.xlu0 %9447  ;;  %761 = vst.msk [vmem:[#allocation3 + $0x8] sm:$0x3] %vm760_vm12, %v20099_v37  ;;  %764 = vst.msk [vmem:[#allocation3 + $0x98] sm:$0x3] %vm760_vm12, %v20099_v37 }
 0x676   : > { %9469 = vst.msk [vmem:[#allocation7 + $0x10] sm:$0xf] %vm2353_vm8, %v9448_v42 }
 0x677   : > { %778 = vst.msk [vmem:[#allocation3 + $0x29] sm:$0x1] %vm765_vm13, %v20099_v37  ;;  %766 = vst.msk [vmem:[#allocation3] sm:$0x1] %vm765_vm13, %v20099_v37 }
 0x678   : > { %767 = vst.msk [vmem:[#allocation3 + $0x10] sm:$0x1] %vm765_vm13, %v20099_v37  ;;  %768 = vst.msk [vmem:[#allocation3 + $0x20] sm:$0x1] %vm765_vm13, %v20099_v37 }
 0x679   : > { %769 = vst.msk [vmem:[#allocation3 + $0x30] sm:$0x1] %vm765_vm13, %v20099_v37  ;;  %770 = vst.msk [vmem:[#allocation3 + $0x40] sm:$0x1] %vm765_vm13, %v20099_v37 }
 0x67a   : > { %v9483_v53 = vld [vmem:[#allocation4 + $0xf0] ss:$2 sm:$0xff]  ;;  %v9127_v32 = vld [vmem:[#allocation4 + $0xf1] ss:$2 sm:$0xff]  ;;  %771 = vst.msk [vmem:[#allocation3 + $0x50] sm:$0x1] %vm765_vm13, %v20099_v37 }
 0x67b   : > { %v14777_v14 = vpack.c.bf16 %v9483_v53, %v9483_v53  ;;  %v14738_v46 = vpack.c.bf16 %v9127_v32, %v9127_v32  ;;  %v9071_v28 = vld [vmem:[#allocation4 + $0xf0] ss:$2 sm:$0xff]  ;;  %v9555_v22 = vld [vmem:[#allocation4 + $0xf1] ss:$2 sm:$0xff]  ;;  %772 = vst.msk [vmem:[#allocation3 + $0x60] sm:$0x1] %vm765_vm13, %v20099_v37 }
 0x67c   : > { %v9627_v38 = vld [vmem:[#allocation4 + $0xf2] ss:$2 sm:$0xff]  ;;  %v14730_v19 = vpack.c.bf16 %v9071_v28, %v9071_v28  ;;  %v14785_v36 = vpack.c.bf16 %v9555_v22, %v9555_v22  ;;  %773 = vst.msk [vmem:[#allocation3 + $0x70] sm:$0x1] %vm765_vm13, %v20099_v37  ;;  %774 = vst.msk [vmem:[#allocation3 + $0x80] sm:$0x1] %vm765_vm13, %v20099_v37 }
 0x67d   : > { %v9199_v3 = vld [vmem:[#allocation4 + $0xf2] ss:$2 sm:$0xff]  ;;  %v14793_v60 = vpack.c.bf16 %v9627_v38, %v9627_v38  ;;  %9522 = vrot.lane.b32.xlu0 %v14777_v14, %s15700_s4  ;;  %9166 = vrot.lane.b32.xlu1 %v14738_v46, %s15696_s24  ;;  %775 = vst.msk [vmem:[#allocation3 + $0x90] sm:$0x1] %vm765_vm13, %v20099_v37  ;;  %777 = vst.msk [vmem:[#allocation3 + $0x19] sm:$0x1] %vm765_vm13, %v20099_v37 }
 0x67e   : > { %9113 = vst.msk [vmem:[#allocation7 + $0x28] sm:$0xf] %vm1068_vm3, %v14730_v19  ;;  %v14746_v6 = vpack.c.bf16 %v9199_v3, %v9199_v3 }
 0x67f   : > { %9670 = vst.msk [vmem:[#allocation7 + $0x24] sm:$0xf] %vm1068_vm3, %v14793_v60  ;;  %v9519_v62 = vpop.permute.xlu0 %9518  ;;  %v9163_v47 = vpop.permute.xlu1 %9162 }
 0x680   : > { %9540 = vst.msk [vmem:[#allocation7 + $0x10] sm:$0xf] %vm2611_vm9, %v9519_v62 }
 0x681   : > { %9183 = vst.msk [vmem:[#allocation7 + $0x18] sm:$0xf] %vm1325_vm4, %v9163_v47  ;;  %9594 = vrot.lane.b32.xlu0 %v14785_v36, %s15701_s26  ;;  %9238 = vrot.lane.b32.xlu1 %v14746_v6, %s15695_s5 }
 0x682   : > { %779 = vst.msk [vmem:[#allocation3 + $0x39] sm:$0x1] %vm765_vm13, %v20099_v37  ;;  %780 = vst.msk [vmem:[#allocation3 + $0x49] sm:$0x1] %vm765_vm13, %v20099_v37 }
 0x683   : > { %v9591_v4 = vpop.permute.xlu0 %9590  ;;  %v9235_v49 = vpop.permute.xlu1 %9234  ;;  %781 = vst.msk [vmem:[#allocation3 + $0x59] sm:$0x1] %vm765_vm13, %v20099_v37  ;;  %782 = vst.msk [vmem:[#allocation3 + $0x69] sm:$0x1] %vm765_vm13, %v20099_v37 }
 0x684   : > { %9612 = vst.msk [vmem:[#allocation7 + $0x10] sm:$0xf] %vm2868_vm10, %v9591_v4  ;;  %v8918_v48 = vpop.f32.mrf.mxu0 }
 0x685   : > { %9255 = vst.msk [vmem:[#allocation7 + $0x18] sm:$0xf] %vm1582_vm5, %v9235_v49  ;;  %v8919_v55 = vadd.f32 %v19145_v9, %v8918_v48  ;;  %v20100_v49 = vmax.f32 %v17638_v17, 0.0 }
 0x686   : > { %v8920_v10 = vpop.f32.mrf.mxu0  ;;  %783 = vst.msk [vmem:[#allocation3 + $0x79] sm:$0x1] %vm765_vm13, %v20099_v37  ;;  %784 = vst.msk [vmem:[#allocation3 + $0x89] sm:$0x1] %vm765_vm13, %v20099_v37 }
 0x687   : > { %v8985_v43 = vadd.f32 %v8919_v55, %v20095_v20  ;;  %776 = vst.msk [vmem:[#allocation3 + $0x9] sm:$0x1] %vm765_vm13, %v20099_v37  ;;  %785 = vst.msk [vmem:[#allocation3 + $0x99] sm:$0x1] %vm765_vm13, %v20099_v37 }
 0x688   : > { %v8921_v34 = vpop.f32.mrf.mxu0 }
 0x689   : > { %v9017_v45 = vmax.f32 %v8985_v43, 0.0  ;;  %v8922_v13 = vadd.f32 %v19145_v9, %v8921_v34  ;;  %v20101_v34 = vmax.f32 %v17650_v26, 0.0 }
 0x68a   : > { %v8923_v44 = vpop.f32.mrf.mxu0 }
 0x68b   : > { %9049 = vst.msk [vmem:[#allocation4 + $0x109] sm:$0xff] %vm786_vm0, %v9017_v45  ;;  %v8986_v35 = vadd.f32 %v8922_v13, %v20096_v24  ;;  %v15318_v13 = vld [vmem:[#allocation7 + $0x14] ss:$8 sps:$4 sm:$0xff]  }
 0x68c   : > { %13634 = vmatprep.mubr.msk.bf16.mxu1 %vm786_vm0, %v15318_v13 }
 0x68d   : > { %v9018_v16 = vmax.f32 %v8986_v35, 0.0 }
 0x68f   : > { %9050 = vst.msk [vmem:[#allocation4 + $0x111] sm:$0xff] %vm786_vm0, %v9018_v16 }
 0x696   : > { %v9270_v1 = vld [vmem:[#allocation4 + $0x108] ss:$2 sm:$0xff]  ;;  %v9342_v57 = vld [vmem:[#allocation4 + $0x109] ss:$2 sm:$0xff] }
 0x697   : > { %v14754_v41 = vpack.c.bf16 %v9270_v1, %v9270_v1  ;;  %v14762_v7 = vpack.c.bf16 %v9342_v57, %v9342_v57  ;;  %v9414_v27 = vld [vmem:[#allocation4 + $0x10a] ss:$2 sm:$0xff] }
 0x698   : > { %v14770_v52 = vpack.c.bf16 %v9414_v27, %v9414_v27 }
 0x699   : > { %9309 = vrot.lane.b32.xlu1 %v14754_v41, %s15697_s0 }
 0x69b   : > { %v9306_v39 = vpop.permute.xlu1 %9305 }
 0x69c   : > { %9326 = vst.msk [vmem:[#allocation7 + $0x18] sm:$0xf] %vm1839_vm6, %v9306_v39 }
 0x69d   : > { %9381 = vrot.lane.b32.xlu1 %v14762_v7, %s15698_s1 }
 0x69f   : > { %v9378_v33 = vpop.permute.xlu1 %9377 }
 0x6a0   : > { %9398 = vst.msk [vmem:[#allocation7 + $0x18] sm:$0xf] %vm2096_vm7, %v9378_v33  ;;  %v8926_v50 = vpop.f32.mrf.mxu0 }
 0x6a1   : > { %v8927_v23 = vadd.f32 %v19145_v9, %v8926_v50  ;;  %9453 = vrot.lane.b32.xlu1 %v14770_v52, %s15699_s30  ;;  %v20102_v52 = vmax.f32 %v17710_v18, 0.0 }
 0x6a2   : > { %v8928_v2 = vpop.f32.mrf.mxu0 }
 0x6a3   : > { %v8987_v21 = vadd.f32 %v8927_v23, %v20097_v30  ;;  %v9450_v56 = vpop.permute.xlu1 %9449 }
 0x6a4   : > { %9470 = vst.msk [vmem:[#allocation7 + $0x18] sm:$0xf] %vm2353_vm8, %v9450_v56  ;;  %v8929_v54 = vpop.f32.mrf.mxu0 }
 0x6a5   : > { %v9019_v12 = vmax.f32 %v8987_v21, 0.0  ;;  %v8930_v51 = vadd.f32 %v19145_v9, %v8929_v54  ;;  %v20103_v54 = vmax.f32 %v17722_v25, 0.0 }
 0x6a6   : > { %v8931_v31 = vpop.f32.mrf.mxu0 }
 0x6a7   : > { %9051 = vst.msk [vmem:[#allocation4 + $0x121] sm:$0xff] %vm786_vm0, %v9019_v12  ;;  %v8988_v40 = vadd.f32 %v8930_v51, %v20098_v59 }
 0x6a9   : > { %v9020_v29 = vmax.f32 %v8988_v40, 0.0 }
 0x6ab   : > { %9052 = vst.msk [vmem:[#allocation4 + $0x129] sm:$0xff] %vm786_vm0, %v9020_v29 }
 0x6b2   : > { %v9129_v0 = vld [vmem:[#allocation4 + $0x121] ss:$2 sm:$0xff]  ;;  %v9485_v11 = vld [vmem:[#allocation4 + $0x120] ss:$2 sm:$0xff] }
 0x6b3   : > { %v14739_v63 = vpack.c.bf16 %v9129_v0, %v9129_v0  ;;  %v14778_v42 = vpack.c.bf16 %v9485_v11, %v9485_v11  ;;  %v9073_v53 = vld [vmem:[#allocation4 + $0x120] ss:$2 sm:$0xff]  ;;  %v9557_v46 = vld [vmem:[#allocation4 + $0x121] ss:$2 sm:$0xff] }
 0x6b4   : > { %v9629_v32 = vld [vmem:[#allocation4 + $0x122] ss:$2 sm:$0xff]  ;;  %v14731_v28 = vpack.c.bf16 %v9073_v53, %v9073_v53  ;;  %v14786_v60 = vpack.c.bf16 %v9557_v46, %v9557_v46 }
 0x6b5   : > { %v9201_v14 = vld [vmem:[#allocation4 + $0x122] ss:$2 sm:$0xff]  ;;  %v14794_v38 = vpack.c.bf16 %v9629_v32, %v9629_v32  ;;  %9168 = vrot.lane.b32.xlu0 %v14739_v63, %s15696_s24  ;;  %9524 = vrot.lane.b32.xlu1 %v14778_v42, %s15700_s4 }
 0x6b6   : > { %9114 = vst.msk [vmem:[#allocation7 + $0x30] sm:$0xf] %vm1068_vm3, %v14731_v28  ;;  %v14747_v19 = vpack.c.bf16 %v9201_v14, %v9201_v14  ;;  %v10040_v28 = vld [vmem:[#allocation3 + $0x1] sm:$0xff] }
 0x6b7   : > { %9671 = vst.msk [vmem:[#allocation7 + $0x2c] sm:$0xf] %vm1068_vm3, %v14794_v38  ;;  %v9165_v22 = vpop.permute.xlu0 %9164  ;;  %v9521_v3 = vpop.permute.xlu1 %9520 }
 0x6b8   : > { %9184 = vst.msk [vmem:[#allocation7 + $0x20] sm:$0xf] %vm1325_vm4, %v9165_v22 }
 0x6b9   : > { %9541 = vst.msk [vmem:[#allocation7 + $0x18] sm:$0xf] %vm2611_vm9, %v9521_v3  ;;  %9240 = vrot.lane.b32.xlu0 %v14747_v19, %s15695_s5  ;;  %9596 = vrot.lane.b32.xlu1 %v14786_v60, %s15701_s26  ;;  %v14805_v60 = vpack.c.bf16 %v10040_v28, %v10040_v28 }
 0x6bb   : > { %v9237_v62 = vpop.permute.xlu0 %9236  ;;  %v9593_v47 = vpop.permute.xlu1 %9592 }
 0x6bc   : > { %9256 = vst.msk [vmem:[#allocation7 + $0x20] sm:$0xf] %vm1582_vm5, %v9237_v62  ;;  %v8934_v36 = vpop.f32.mrf.mxu0 }
 0x6bd   : > { %9613 = vst.msk [vmem:[#allocation7 + $0x18] sm:$0xf] %vm2868_vm10, %v9593_v47  ;;  %v8935_v6 = vadd.f32 %v19145_v9, %v8934_v36  ;;  %v20104_v47 = vmax.f32 %v17777_v58, 0.0 }
 0x6be   : > { %v8936_v4 = vpop.f32.mrf.mxu0 }
 0x6bf   : > { %v8989_v48 = vadd.f32 %v8935_v6, %v20100_v49 }
 0x6c0   : > { %v8937_v55 = vpop.f32.mrf.mxu0 }
 0x6c1   : > { %v9021_v10 = vmax.f32 %v8989_v48, 0.0  ;;  %v8938_v20 = vadd.f32 %v19145_v9, %v8937_v55  ;;  %v20105_v55 = vmax.f32 %v17789_v15, 0.0 }
 0x6c2   : > { %v8939_v43 = vpop.f32.mrf.mxu0 }
 0x6c3   : > { %9053 = vst.msk [vmem:[#allocation4 + $0x139] sm:$0xff] %vm786_vm0, %v9021_v10  ;;  %v8990_v45 = vadd.f32 %v8938_v20, %v20101_v34 }
 0x6c4   : > { %v19312_v44 = vld [vmem:[#allocation7 + $0x10] ss:$8 sps:$4 sm:$0xff]  }
 0x6c5   : > { %v9022_v24 = vmax.f32 %v8990_v45, 0.0  ;;  %9850 = vmatmul.mubr.bf16.gmra.mxu1 %v19312_v44 }
 0x6c7   : > { %9054 = vst.msk [vmem:[#allocation4 + $0x141] sm:$0xff] %vm786_vm0, %v9022_v24 }
 0x6ce   : > { %v9272_v17 = vld [vmem:[#allocation4 + $0x138] ss:$2 sm:$0xff]  ;;  %v9344_v16 = vld [vmem:[#allocation4 + $0x139] ss:$2 sm:$0xff] }
 0x6cf   : > { %v14755_v35 = vpack.c.bf16 %v9272_v17, %v9272_v17  ;;  %v14763_v41 = vpack.c.bf16 %v9344_v16, %v9344_v16  ;;  %v9416_v26 = vld [vmem:[#allocation4 + $0x13a] ss:$2 sm:$0xff] }
 0x6d0   : > { %v14771_v39 = vpack.c.bf16 %v9416_v26, %v9416_v26 }
 0x6d1   : > { %9311 = vrot.lane.b32.xlu0 %v14755_v35, %s15697_s0 }
 0x6d3   : > { %v9308_v1 = vpop.permute.xlu0 %9307 }
 0x6d4   : > { %9327 = vst.msk [vmem:[#allocation7 + $0x20] sm:$0xf] %vm1839_vm6, %v9308_v1  ;;  %v20106_v1 = vmax.f32 %v17844_v61, 0.0 }
 0x6d5   : > { %9383 = vrot.lane.b32.xlu0 %v14763_v41, %s15698_s1 }
 0x6d7   : > { %v9380_v57 = vpop.permute.xlu0 %9379 }
 0x6d8   : > { %9399 = vst.msk [vmem:[#allocation7 + $0x20] sm:$0xf] %vm2096_vm7, %v9380_v57  ;;  %v8942_v7 = vpop.f32.mrf.mxu0 }
 0x6d9   : > { %v8943_v27 = vadd.f32 %v19145_v9, %v8942_v7  ;;  %9455 = vrot.lane.b32.xlu0 %v14771_v39, %s15699_s30 }
 0x6da   : > { %v8944_v33 = vpop.f32.mrf.mxu0 }
 0x6db   : > { %v8991_v50 = vadd.f32 %v8943_v27, %v20102_v52  ;;  %v9452_v23 = vpop.permute.xlu0 %9451  ;;  %v20107_v33 = vmax.f32 %v17856_v8, 0.0 }
 0x6dc   : > { %9471 = vst.msk [vmem:[#allocation7 + $0x20] sm:$0xf] %vm2353_vm8, %v9452_v23  ;;  %v8945_v2 = vpop.f32.mrf.mxu0 }
 0x6dd   : > { %v9023_v30 = vmax.f32 %v8991_v50, 0.0  ;;  %v8946_v21 = vadd.f32 %v19145_v9, %v8945_v2 }
 0x6de   : > { %v8947_v56 = vpop.f32.mrf.mxu0 }
 0x6df   : > { %9055 = vst.msk [vmem:[#allocation4 + $0x151] sm:$0xff] %vm786_vm0, %v9023_v30  ;;  %v8992_v12 = vadd.f32 %v8946_v21, %v20103_v54 }
 0x6e1   : > { %v9024_v51 = vmax.f32 %v8992_v12, 0.0  ;;  %v9991_v12 = vld [vmem:[#allocation3] sm:$0xff] }
 0x6e2   : > { %v14797_v8 = vpack.c.bf16 %v9991_v12, %v9991_v12 }
 0x6e3   : > { %9056 = vst.msk [vmem:[#allocation4 + $0x159] sm:$0xff] %vm786_vm0, %v9024_v51  ;;  %v15327_v51 = vld [vmem:[%s19984_s11] sm:$0xff]  }
 0x6e4   : > { %10032 = vst.msk [vmem:[#allocation6] sm:$0xf] %vm10031_vm14, %v14797_v8  ;;  %15042 = vmatprep.subr.bf16.mxu1 %v15327_v51 }
 0x6e5   : > { %15043 = vmatpush3.bf16.msra.mxu1 %v15327_v51 }
 0x6ea   : > { %v9487_v31 = vld [vmem:[#allocation4 + $0x150] ss:$2 sm:$0xff]  ;;  %v9131_v59 = vld [vmem:[#allocation4 + $0x151] ss:$2 sm:$0xff] }
 0x6eb   : > { %v14779_v18 = vpack.c.bf16 %v9487_v31, %v9487_v31  ;;  %v14740_v40 = vpack.c.bf16 %v9131_v59, %v9131_v59  ;;  %v9075_v29 = vld [vmem:[#allocation4 + $0x150] ss:$2 sm:$0xff]  ;;  %v9559_v11 = vld [vmem:[#allocation4 + $0x151] ss:$2 sm:$0xff] }
 0x6ec   : > { %v9631_v0 = vld [vmem:[#allocation4 + $0x152] ss:$2 sm:$0xff]  ;;  %v14732_v42 = vpack.c.bf16 %v9075_v29, %v9075_v29  ;;  %v14787_v14 = vpack.c.bf16 %v9559_v11, %v9559_v11  ;;  %v19377_v31 = vld [vmem:[%s19981_s8] ss:$0 sm:$0xff] }
 0x6ed   : > { %v9203_v63 = vld [vmem:[#allocation4 + $0x152] ss:$2 sm:$0xff]  ;;  %v14795_v53 = vpack.c.bf16 %v9631_v0, %v9631_v0  ;;  %9526 = vrot.lane.b32.xlu0 %v14779_v18, %s15700_s4  ;;  %9170 = vrot.lane.b32.xlu1 %v14740_v40, %s15696_s24  ;;  %s12304_s24 = sshll.u32 %s734_s28, 4  ;;  %s12305_s24 = int_to_ptr.vmem [resolvable:$true] %s12304_s24 }
 0x6ee   : > { %9115 = vst.msk [vmem:[#allocation7 + $0x38] sm:$0xf] %vm1068_vm3, %v14732_v42  ;;  %v14748_v46 = vpack.c.bf16 %v9203_v63, %v9203_v63  ;;  %p15612_p7 = scmp.lt.s32.totalorder %s12305_s24, %s15610_s27 }
 0x6ef   : > { %9672 = vst.msk [vmem:[#allocation7 + $0x34] sm:$0xf] %vm1068_vm3, %v14795_v53  ;;  %v9523_v25 = vpop.permute.xlu0 %9522  ;;  %v9167_v32 = vpop.permute.xlu1 %9166 }
 0x6f0   : > { %9542 = vst.msk [vmem:[#allocation7 + $0x20] sm:$0xf] %vm2611_vm9, %v9523_v25 }
 0x6f1   : > { %9185 = vst.msk [vmem:[#allocation7 + $0x28] sm:$0xf] %vm1325_vm4, %v9167_v32  ;;  %9598 = vrot.lane.b32.xlu0 %v14787_v14, %s15701_s26  ;;  %9242 = vrot.lane.b32.xlu1 %v14748_v46, %s15695_s5  ;;  %v15321_v32 = vld [vmem:[#allocation7 + $0x24] ss:$8 sps:$4 sm:$0xff]  }
 0x6f2   : > { %13635 = vmatprep.mubr.msk.bf16.mxu1 %vm786_vm0, %v15321_v32  ;;  %v10105_v46 = vld [vmem:[#allocation3 + $0x2] sm:$0xff]  ;;  %v15333_v32 = vld [vmem:[%s19982_s9 + $0x28] sm:$0xff]  }
 0x6f3   : > { %v9595_v38 = vpop.permute.xlu0 %9594  ;;  %v9239_v22 = vpop.permute.xlu1 %9238 }
 0x6f4   : > { %9614 = vst.msk [vmem:[#allocation7 + $0x20] sm:$0xf] %vm2868_vm10, %v9595_v38  ;;  %v8950_v3 = vpop.f32.mrf.mxu0 }
 0x6f5   : > { %9257 = vst.msk [vmem:[#allocation7 + $0x28] sm:$0xf] %vm1582_vm5, %v9239_v22  ;;  %v8951_v19 = vadd.f32 %v19145_v9, %v8950_v3  ;;  %9883 = vrot.lane.b32.xlu0 %v19202_v5, %s15698_s1 }
 0x6f6   : > { %v8952_v62 = vpop.f32.mrf.mxu0 }
 0x6f7   : > { %v8993_v36 = vadd.f32 %v8951_v19, %v20104_v47 }
 0x6f8   : > { %v8953_v6 = vpop.f32.mrf.mxu0 }
 0x6f9   : > { %v9025_v4 = vmax.f32 %v8993_v36, 0.0  ;;  %v8954_v49 = vadd.f32 %v19145_v9, %v8953_v6  ;;  %10072 = vrot.lane.b32.xlu0 %v14805_v60, %s15695_s5  ;;  %v14813_v60 = vpack.c.bf16 %v10105_v46, %v10105_v46 }
 0x6fa   : > { %v8955_v48 = vpop.f32.mrf.mxu0 }
 0x6fb   : > { %9057 = vst.msk [vmem:[#allocation4 + $0x169] sm:$0xff] %vm786_vm0, %v9025_v4  ;;  %v8994_v10 = vadd.f32 %v8954_v49, %v20105_v55 }
 0x6fd   : > { %v9026_v20 = vmax.f32 %v8994_v10, 0.0 }
 0x6ff   : > { %9058 = vst.msk [vmem:[#allocation4 + $0x171] sm:$0xff] %vm786_vm0, %v9026_v20 }
 0x706   : > { %v9274_v5 = vld [vmem:[#allocation4 + $0x168] ss:$2 sm:$0xff]  ;;  %v9346_v34 = vld [vmem:[#allocation4 + $0x169] ss:$2 sm:$0xff] }
 0x707   : > { %v14756_v43 = vpack.c.bf16 %v9274_v5, %v9274_v5  ;;  %v14764_v45 = vpack.c.bf16 %v9346_v34, %v9346_v34  ;;  %v9418_v13 = vld [vmem:[#allocation4 + $0x16a] ss:$2 sm:$0xff] }
 0x708   : > { %v14772_v17 = vpack.c.bf16 %v9418_v13, %v9418_v13 }
 0x709   : > { %9313 = vrot.lane.b32.xlu1 %v14756_v43, %s15697_s0 }
 0x70b   : > { %v9310_v58 = vpop.permute.xlu1 %9309 }
 0x70c   : > { %9328 = vst.msk [vmem:[#allocation7 + $0x28] sm:$0xf] %vm1839_vm6, %v9310_v58 }
 0x70d   : > { %9385 = vrot.lane.b32.xlu1 %v14764_v45, %s15698_s1 }
 0x70f   : > { %v9382_v24 = vpop.permute.xlu1 %9381 }
 0x710   : > { %9400 = vst.msk [vmem:[#allocation7 + $0x28] sm:$0xf] %vm2096_vm7, %v9382_v24  ;;  %v8958_v15 = vpop.f32.mrf.mxu0 }
 0x711   : > { %v8959_v35 = vadd.f32 %v19145_v9, %v8958_v15  ;;  %9457 = vrot.lane.b32.xlu1 %v14772_v17, %s15699_s30  ;;  %v15328_v17 = vld [vmem:[%s19982_s9 + $0x78] sm:$0xff]   ;;  %s20109_s30 = sld [smem:[#allocation40_spill]] }
 0x712   : > { %v8960_v16 = vpop.f32.mrf.mxu0  ;;  %14910 = vmatprep.subr.bf16.mxu1 %v15328_v17 }
 0x713   : > { %v8995_v41 = vadd.f32 %v8959_v35, %v20106_v1  ;;  %v9454_v26 = vpop.permute.xlu1 %9453 }
 0x714   : > { %9472 = vst.msk [vmem:[#allocation7 + $0x28] sm:$0xf] %vm2353_vm8, %v9454_v26  ;;  %v8961_v57 = vpop.f32.mrf.mxu0 }
 0x715   : > { %v9027_v39 = vmax.f32 %v8995_v41, 0.0  ;;  %v8962_v7 = vadd.f32 %v19145_v9, %v8961_v57 }
 0x716   : > { %v8963_v27 = vpop.f32.mrf.mxu0 }
 0x717   : > { %9059 = vst.msk [vmem:[#allocation4 + $0x181] sm:$0xff] %vm786_vm0, %v9027_v39  ;;  %v8996_v52 = vadd.f32 %v8962_v7, %v20107_v33 }
 0x719   : > { %v9028_v50 = vmax.f32 %v8996_v52, 0.0 }
 0x71b   : > { %9060 = vst.msk [vmem:[#allocation4 + $0x189] sm:$0xff] %vm786_vm0, %v9028_v50 }
 0x722   : > { %v9489_v23 = vld [vmem:[#allocation4 + $0x180] ss:$2 sm:$0xff]  ;;  %v9561_v21 = vld [vmem:[#allocation4 + $0x181] ss:$2 sm:$0xff] }
 0x723   : > { %v9633_v2 = vld [vmem:[#allocation4 + $0x182] ss:$2 sm:$0xff]  ;;  %v14780_v61 = vpack.c.bf16 %v9489_v23, %v9489_v23  ;;  %v14788_v54 = vpack.c.bf16 %v9561_v21, %v9561_v21 }
 0x724   : > { %v14796_v30 = vpack.c.bf16 %v9633_v2, %v9633_v2 }
 0x725   : > { %9528 = vrot.lane.b32.xlu1 %v14780_v61, %s15700_s4 }
 0x726   : > { %9673 = vst.msk [vmem:[#allocation7 + $0x3c] sm:$0xf] %vm1068_vm3, %v14796_v30  ;;  %vm741_vm3 = vcmask 521216  }
 0x727   : > { %v9169_v56 = vpop.permute.xlu0 %9168  ;;  %v9525_v9 = vpop.permute.xlu1 %9524  ;;  %742 = vst.msk [vmem:[#allocation2] sm:$0x3f] %vm741_vm3, %v20099_v37  ;;  %744 = vst.msk [vmem:[#allocation2 + $0x28] sm:$0x3f] %vm741_vm3, %v20099_v37 }
 0x728   : > { %9186 = vst.msk [vmem:[#allocation7 + $0x30] sm:$0xf] %vm1325_vm4, %v9169_v56 }
 0x729   : > { %9543 = vst.msk [vmem:[#allocation7 + $0x28] sm:$0xf] %vm2611_vm9, %v9525_v9  ;;  %9600 = vrot.lane.b32.xlu1 %v14788_v54, %s15701_s26  ;;  %s15605_s26 = scalar_lea.vmem %s12305_s24, 16 }
 0x72a   : > { %v9843_v40 = vpop.f32.mrf.mxu1  ;;  %p15606_p4 = scmp.ne.s32.totalorder %s12305_s24, %s15605_s26 }
 0x72b   : > { %v9241_v59 = vpop.permute.xlu0 %9240  ;;  %v9597_v18 = vpop.permute.xlu1 %9596  ;;  %v9844_v29 = vadd.f32 %v19377_v31, %v9843_v40  ;;  %v15329_v40 = vld [vmem:[%s19982_s9 + $0x38] sm:$0xff]  }
 0x72c   : > { %9258 = vst.msk [vmem:[#allocation7 + $0x30] sm:$0xf] %vm1582_vm5, %v9241_v59  ;;  %v9845_v0 = vpop.f32.mrf.mxu1  ;;  %p15607_p9 = pnand %p15606_p4, %p15852_p5 }
 0x72d   : > { %9615 = vst.msk [vmem:[#allocation7 + $0x28] sm:$0xf] %vm2868_vm10, %v9597_v18  ;;  %9885 = vrot.lane.b32.xlu1 %v19312_v44, %s15698_s1  ;;  %v9974_v11 = vmax.f32 %v9844_v29, 0.0  ;;  %v15324_v51 = vld [vmem:[#allocation7 + $0x34] ss:$8 sps:$4 sm:$0xff]   ;;  %v15330_v29 = vld [vmem:[%s19982_s9 + $0x70] sm:$0xff]  }
 0x72e   : > { %v9846_v63 = vpop.f32.mrf.mxu1  ;;  %p15608_p8 = pneg %p15607_p9 }
 0x72f   : > { %9983 = vst.msk [vmem:[#allocation3 + $0x11] sm:$0xff] %vm758_vm11, %v9974_v11  ;;  %v9847_v42 = vadd.f32 %v19377_v31, %v9846_v63  ;;  %v15331_v63 = vld [vmem:[%s19982_s9 + $0x30] sm:$0xff]  }
 0x730   : > { %v9848_v53 = vpop.f32.mrf.mxu1 }
 0x731   : > { %v9975_v25 = vmax.f32 %v9847_v42, 0.0  ;;  %v15332_v42 = vld [vmem:[%s19982_s9 + $0x68] sm:$0xff]  }
 0x733   : > { %9984 = vst.msk [vmem:[#allocation3 + $0x21] sm:$0xff] %vm758_vm11, %v9975_v25 }
 0x734   : > { %v15323_v14 = vld [vmem:[#allocation7 + $0x20] ss:$8 sps:$4 sm:$0xff]  }
 0x735   : > { %9858 = vmatmul.mubr.bf16.gmra.mxu1 %v15323_v14 }
 0x736   : > { %v10041_v28 = vld [vmem:[#allocation3 + $0x11] sm:$0xff]  ;;  %13636 = vmatprep.mubr.msk.bf16.mxu1 %vm786_vm0, %v15324_v51 }
 0x737   : > { %v10283_v38 = vld [vmem:[#allocation3 + $0x12] sm:$0xff]  ;;  %v14806_v22 = vpack.c.bf16 %v10041_v28, %v10041_v28 }
 0x738   : > { %v10170_v44 = vld [vmem:[#allocation3 + $0x10] sm:$0xff]  ;;  %v14837_v3 = vpack.c.bf16 %v10283_v38, %v10283_v38 }
 0x739   : > { %v14821_v19 = vpack.c.bf16 %v10170_v44, %v10170_v44  ;;  %10074 = vrot.lane.b32.xlu1 %v14806_v22, %s15695_s5  ;;  %10275 = vst.msk [vmem:[#allocation6 + $0x4] sm:$0xf] %vm10031_vm14, %v14806_v22  ;;  %v15335_v38 = vld [vmem:[%s19982_s9 + $0x20] sm:$0xff]   ;;  %v15336_v44 = vld [vmem:[%s19982_s9 + $0x58] sm:$0xff]  }
 0x73a   : > { %10315 = vrot.lane.b32.xlu0 %v14837_v3, %s15695_s5  ;;  %v10476_v62 = vld [vmem:[#allocation3 + $0x22] sm:$0xff] }
 0x73b   : > { %10033 = vst.msk [vmem:[#allocation6 + $0xc] sm:$0xf] %vm10031_vm14, %v14821_v19  ;;  %v10348_v47 = vld [vmem:[#allocation3 + $0x20] sm:$0xff]  ;;  %v19393_v6 = vpack.c.bf16 %v10476_v62, %v10476_v62 }
 0x73c   : > { %v10412_v36 = vld [vmem:[#allocation3 + $0x21] sm:$0xff]  ;;  %v19395_v4 = vpack.c.bf16 %v10348_v47, %v10348_v47  ;;  %v15340_v47 = vld [vmem:[%s19982_s9 + $0x48] sm:$0xff]  }
 0x73d   : > { %v14853_v49 = vpack.c.bf16 %v10412_v36, %v10412_v36  ;;  %10317 = vrot.lane.b32.xlu1 %v19393_v6, %s15695_s5  ;;  %10516 = vst.msk [vmem:[#allocation6 + $0x8] sm:$0xf] %vm10031_vm14, %v19393_v6  ;;  %v15339_v62 = vld [vmem:[%s19982_s9 + $0x10] sm:$0xff]  }
 0x73e   : > { %10137 = vrot.lane.b32.xlu0 %v14813_v60, %s15698_s1  ;;  %10034 = vst.msk [vmem:[#allocation6 + $0x18] sm:$0xf] %vm10031_vm14, %v19395_v4 }
 0x73f   : > { %10276 = vst.msk [vmem:[#allocation6 + $0x10] sm:$0xf] %vm10031_vm14, %v14853_v49 }
 0x741   : > { %10139 = vrot.lane.b32.xlu1 %v14837_v3, %s15698_s1  ;;  %v15337_v3 = vld [vmem:[%s19982_s9 + $0x18] sm:$0xff]  }
 0x742   : > { %10380 = vrot.lane.b32.xlu0 %v19395_v4, %s15698_s1 }
 0x743   : > { %v9312_v48 = vpop.permute.xlu0 %9311 }
 0x744   : > { %9329 = vst.msk [vmem:[#allocation7 + $0x30] sm:$0xf] %vm1839_vm6, %v9312_v48  ;;  %v15345_v48 = vld [vmem:[%s19982_s9] sm:$0xff]  }
 0x746   : > { %10202 = vrot.lane.b32.xlu0 %v14821_v19, %s15700_s4  ;;  %v15338_v19 = vld [vmem:[%s19982_s9 + $0x50] sm:$0xff]  }
 0x747   : > { %v9384_v55 = vpop.permute.xlu0 %9383 }
 0x748   : > { %9401 = vst.msk [vmem:[#allocation7 + $0x30] sm:$0xf] %vm2096_vm7, %v9384_v55 }
 0x74a   : > { %10444 = vrot.lane.b32.xlu0 %v14853_v49, %s15700_s4 }
 0x74b   : > { %v9456_v10 = vpop.permute.xlu0 %9455 }
 0x74c   : > { %9473 = vst.msk [vmem:[#allocation7 + $0x30] sm:$0xf] %vm2353_vm8, %v9456_v10 }
 0x74e   : > { %9887 = vrot.lane.b32.xlu0 %v15323_v14, %s15698_s1  ;;  %v15334_v14 = vld [vmem:[%s19982_s9 + $0x60] sm:$0xff]  }
 0x752   : > { %10076 = vrot.lane.b32.xlu0 %v14853_v49, %s15695_s5 }
 0x75f   : > { %v9527_v20 = vpop.permute.xlu0 %9526  ;;  %v9171_v5 = vpop.permute.xlu1 %9170 }
 0x760   : > { %9544 = vst.msk [vmem:[#allocation7 + $0x30] sm:$0xf] %vm2611_vm9, %v9527_v20  ;;  %v10483_v20 = vld [vmem:[#allocation3 + $0x92] sm:$0xff] }
 0x761   : > { %9187 = vst.msk [vmem:[#allocation7 + $0x38] sm:$0xf] %vm1325_vm4, %v9171_v5  ;;  %vm745_vm4 = vcmask 516096  }
 0x762   : > { %747 = vst.msk [vmem:[#allocation2 + $0x8] sm:$0x1] %vm745_vm4, %v20099_v37  ;;  %748 = vst.msk [vmem:[#allocation2 + $0x10] sm:$0x1] %vm745_vm4, %v20099_v37 }
 0x763   : > { %v9599_v43 = vpop.permute.xlu0 %9598  ;;  %v9243_v34 = vpop.permute.xlu1 %9242  ;;  %746 = vst.msk [vmem:[#allocation2] sm:$0x1] %vm745_vm4, %v20099_v37  ;;  %749 = vst.msk [vmem:[#allocation2 + $0x18] sm:$0x1] %vm745_vm4, %v20099_v37 }
 0x764   : > { %9616 = vst.msk [vmem:[#allocation7 + $0x30] sm:$0xf] %vm2868_vm10, %v9599_v43  ;;  %v14868_v43 = vpack.c.bf16 %v10483_v20, %v10483_v20 }
 0x765   : > { %9259 = vst.msk [vmem:[#allocation7 + $0x38] sm:$0xf] %vm1582_vm5, %v9243_v34  ;;  %vm11503_vm5 = vcmask 519168  }
 0x766   : > { %10523 = vst.msk [vmem:[#allocation6 + $0x5c] sm:$0xf] %vm10031_vm14, %v14868_v43 }
 0x767   : > { %v9884_v58 = vpop.permute.xlu0 %9883  ;;  %750 = vst.msk [vmem:[#allocation2 + $0x20] sm:$0x1] %vm745_vm4, %v20099_v37  ;;  %751 = vst.msk [vmem:[#allocation2 + $0x28] sm:$0x1] %vm745_vm4, %v20099_v37 }
 0x768   : > { %752 = vst.msk [vmem:[#allocation2 + $0x5] sm:$0x1] %vm745_vm4, %v20099_v37  ;;  %753 = vst.msk [vmem:[#allocation2 + $0xd] sm:$0x1] %vm745_vm4, %v20099_v37 }
 0x769   : > { %754 = vst.msk [vmem:[#allocation2 + $0x15] sm:$0x1] %vm745_vm4, %v20099_v37  ;;  %755 = vst.msk [vmem:[#allocation2 + $0x1d] sm:$0x1] %vm745_vm4, %v20099_v37 }
 0x76a   : > { %756 = vst.msk [vmem:[#allocation2 + $0x25] sm:$0x1] %vm745_vm4, %v20099_v37  ;;  %757 = vst.msk [vmem:[#allocation2 + $0x2d] sm:$0x1] %vm745_vm4, %v20099_v37 }
 0x76b   : > { %v10073_v45 = vpop.permute.xlu0 %10072 }
 0x76c   : > { %10097 = vst.msk [vmem:[#allocation6] sm:$0xf] %vm10096_vm15, %v10073_v45 }
 0x77b   : > { %v9314_v13 = vpop.permute.xlu1 %9313 }
 0x77c   : > { %9330 = vst.msk [vmem:[#allocation7 + $0x38] sm:$0xf] %vm1839_vm6, %v9314_v13  ;;  %vm11554_vm6 = vcmask 1043968  }
 0x77f   : > { %v9386_v24 = vpop.permute.xlu1 %9385 }
 0x780   : > { %9402 = vst.msk [vmem:[#allocation7 + $0x38] sm:$0xf] %vm2096_vm7, %v9386_v24  ;;  %vm12050_vm7 = vcmask 523264  }
 0x783   : > { %v9458_v15 = vpop.permute.xlu1 %9457 }
 0x784   : > { %9474 = vst.msk [vmem:[#allocation7 + $0x38] sm:$0xf] %vm2353_vm8, %v9458_v15  ;;  %vm12289_vm8 = vcmask 73728  }
 0x785   : > { %v9851_v35 = vpop.f32.mrf.mxu1 }
 0x786   : > { %v9852_v16 = vadd.f32 %v19377_v31, %v9851_v35 }
 0x787   : > { %v9853_v1 = vpop.f32.mrf.mxu1 }
 0x788   : > { %v9976_v41 = vmax.f32 %v9852_v16, 0.0 }
 0x789   : > { %v9854_v26 = vpop.f32.mrf.mxu1 }
 0x78a   : > { %9985 = vst.msk [vmem:[#allocation3 + $0x31] sm:$0xff] %vm758_vm11, %v9976_v41  ;;  %v9855_v57 = vadd.f32 %v19377_v31, %v9854_v26 }
 0x78b   : > { %v9856_v39 = vpop.f32.mrf.mxu1 }
 0x78c   : > { %v9977_v7 = vmax.f32 %v9855_v57, 0.0 }
 0x78e   : > { %9986 = vst.msk [vmem:[#allocation3 + $0x41] sm:$0xff] %vm758_vm11, %v9977_v7 }
 0x791   : > { %v10477_v27 = vld [vmem:[#allocation3 + $0x32] sm:$0xff] }
 0x792   : > { %v10349_v33 = vld [vmem:[#allocation3 + $0x30] sm:$0xff]  ;;  %v14862_v50 = vpack.c.bf16 %v10477_v27, %v10477_v27 }
 0x793   : > { %v10413_v52 = vld [vmem:[#allocation3 + $0x31] sm:$0xff]  ;;  %v14846_v23 = vpack.c.bf16 %v10349_v33, %v10349_v33 }
 0x794   : > { %v14854_v2 = vpack.c.bf16 %v10413_v52, %v10413_v52  ;;  %10517 = vst.msk [vmem:[#allocation6 + $0x14] sm:$0xf] %vm10031_vm14, %v14862_v50  ;;  %10319 = vrot.lane.b32.xlu0 %v14862_v50, %s15695_s5 }
 0x795   : > { %10382 = vrot.lane.b32.xlu1 %v14846_v23, %s15698_s1  ;;  %10035 = vst.msk [vmem:[#allocation6 + $0x24] sm:$0xf] %vm10031_vm14, %v14846_v23  ;;  %v10478_v61 = vld [vmem:[#allocation3 + $0x42] sm:$0xff] }
 0x796   : > { %10277 = vst.msk [vmem:[#allocation6 + $0x1c] sm:$0xf] %vm10031_vm14, %v14854_v2  ;;  %v10350_v30 = vld [vmem:[#allocation3 + $0x40] sm:$0xff]  ;;  %v19435_v56 = vpack.c.bf16 %v10478_v61, %v10478_v61 }
 0x797   : > { %v10414_v21 = vld [vmem:[#allocation3 + $0x41] sm:$0xff]  ;;  %v9529_v9 = vpop.permute.xlu1 %9528  ;;  %v19437_v54 = vpack.c.bf16 %v10350_v30, %v10350_v30 }
 0x798   : > { %v14855_v12 = vpack.c.bf16 %v10414_v21, %v10414_v21  ;;  %9545 = vst.msk [vmem:[#allocation7 + $0x38] sm:$0xf] %vm2611_vm9, %v9529_v9  ;;  %10141 = vrot.lane.b32.xlu0 %v19393_v6, %s15698_s1  ;;  %v15341_v6 = vld [vmem:[%s19982_s9 + $0x8] sm:$0xff]  }
 0x799   : > { %10518 = vst.msk [vmem:[#allocation6 + $0x20] sm:$0xf] %vm10031_vm14, %v19435_v56  ;;  %10204 = vrot.lane.b32.xlu1 %v19395_v4, %s15700_s4  ;;  %10036 = vst.msk [vmem:[#allocation6 + $0x30] sm:$0xf] %vm10031_vm14, %v19437_v54  ;;  %v15344_v4 = vld [vmem:[%s19982_s9 + $0x40] sm:$0xff]  }
 0x79a   : > { %10278 = vst.msk [vmem:[#allocation6 + $0x28] sm:$0xf] %vm10031_vm14, %v14855_v12 }
 0x79b   : > { %v9601_v8 = vpop.permute.xlu1 %9600 }
 0x79c   : > { %9617 = vst.msk [vmem:[#allocation7 + $0x38] sm:$0xf] %vm2868_vm10, %v9601_v8  ;;  %10384 = vrot.lane.b32.xlu0 %v19437_v54, %s15698_s1 }
 0x79d   : > { %10446 = vrot.lane.b32.xlu1 %v14854_v2, %s15700_s4 }
 0x79f   : > { %v9886_v18 = vpop.permute.xlu1 %9885 }
 0x7a0   : > { %10206 = vrot.lane.b32.xlu0 %v14846_v23, %s15700_s4 }
 0x7a3   : > { %v15326_v59 = vld [vmem:[#allocation7 + $0x30] ss:$8 sps:$4 sm:$0xff]  }
 0x7a4   : > { %9889 = vrot.lane.b32.xlu1 %v15326_v59, %s15698_s1  ;;  %10448 = vrot.lane.b32.xlu0 %v14855_v12, %s15700_s4 }
 0x7a5   : > { %9866 = vmatmul.mubr.bf16.gmra.mxu1 %v15326_v59 }
 0x7a6   : > { %15044 = vmatprep.mubr.msk.bf16.mxu1 %vm786_vm0, %v9884_v58 }
 0x7a8   : > { %10078 = vrot.lane.b32.xlu1 %v14854_v2, %s15695_s5  ;;  %10080 = vrot.lane.b32.xlu0 %v14855_v12, %s15695_s5 }
 0x7ab   : > { %v10075_v0 = vpop.permute.xlu1 %10074 }
 0x7ac   : > { %v10316_v11 = vpop.permute.xlu0 %10315  ;;  %10321 = vrot.lane.b32.xlu1 %v19435_v56, %s15695_s5  ;;  %10098 = vst.msk [vmem:[#allocation6 + $0xc] sm:$0xf] %vm10096_vm15, %v10075_v0 }
 0x7ad   : > { %10339 = vst.msk [vmem:[#allocation6 + $0x4] sm:$0xf] %vm10096_vm15, %v10316_v11  ;;  %15045 = vmatmul.mubr.msk.bf16.vlgmr.msra.gmra.mxu1 %vm786_vm0, %v9886_v18 }
 0x7ae   : > { %14911 = vmatpush3.bf16.msra.mxu1 %v15329_v40 }
 0x7af   : > { %14912 = vmatprep.subr.bf16.mxu1 %v15330_v29  ;;  %v10318_v53 = vpop.permute.xlu1 %10317 }
 0x7b0   : > { %v10138_v25 = vpop.permute.xlu0 %10137  ;;  %10143 = vrot.lane.b32.xlu1 %v14862_v50, %s15698_s1  ;;  %10340 = vst.msk [vmem:[#allocation6 + $0x10] sm:$0xf] %vm10096_vm15, %v10318_v53 }
 0x7b1   : > { %10162 = vst.msk [vmem:[#allocation6] sm:$0xf] %vm10161_vm1, %v10138_v25 }
 0x7b2   : > { %14913 = vmatpush3.bf16.msra.mxu1 %v15331_v63 }
 0x7b3   : > { %14914 = vmatprep.subr.bf16.mxu1 %v15332_v42  ;;  %v10140_v46 = vpop.permute.xlu1 %10139 }
 0x7b4   : > { %v10381_v28 = vpop.permute.xlu0 %10380  ;;  %10163 = vst.msk [vmem:[#allocation6 + $0xc] sm:$0xf] %vm10161_vm1, %v10140_v46 }
 0x7b5   : > { %10404 = vst.msk [vmem:[#allocation6 + $0x4] sm:$0xf] %vm10161_vm1, %v10381_v28 }
 0x7b6   : > { %14915 = vmatpush3.bf16.msra.mxu1 %v15333_v32 }
 0x7b7   : > { %14916 = vmatprep.subr.bf16.mxu1 %v15334_v14 }
 0x7b8   : > { %v10203_v22 = vpop.permute.xlu0 %10202 }
 0x7b9   : > { %10227 = vst.msk [vmem:[#allocation6] sm:$0xf] %vm10226_vm2, %v10203_v22 }
 0x7ba   : > { %14917 = vmatpush3.bf16.msra.mxu1 %v15335_v38 }
 0x7bb   : > { %14918 = vmatprep.subr.bf16.mxu1 %v15336_v44 }
 0x7bc   : > { %v10445_v60 = vpop.permute.xlu0 %10444 }
 0x7bd   : > { %10468 = vst.msk [vmem:[#allocation6 + $0x4] sm:$0xf] %vm10226_vm2, %v10445_v60 }
 0x7be   : > { %14919 = vmatpush3.bf16.msra.mxu1 %v15337_v3 }
 0x7bf   : > { %14920 = vmatprep.subr.bf16.mxu1 %v15338_v19 }
 0x7c0   : > { %v9888_v36 = vpop.permute.xlu0 %9887 }
 0x7c1   : > { %15048 = vmatprep.mubr.msk.bf16.mxu1 %vm786_vm0, %v9888_v36 }
 0x7c2   : > { %14921 = vmatpush3.bf16.msra.mxu1 %v15339_v62 }
 0x7c3   : > { %14922 = vmatprep.subr.bf16.mxu1 %v15340_v47 }
 0x7c4   : > { %v10077_v49 = vpop.permute.xlu0 %10076  ;;  %v10524_v59 = vld [vmem:[#allocation6] sm:$0xff] }
 0x7c5   : > { %10099 = vst.msk [vmem:[#allocation6 + $0x18] sm:$0xf] %vm10096_vm15, %v10077_v49 }
 0x7c6   : > { %14923 = vmatpush3.bf16.msra.mxu1 %v15341_v6 }
 0x7c7   : > { %14924 = vmatprep.subr.bf16.mxu1 %v15344_v4  ;;  %v15350_v4 = vld [vmem:[%s19982_s9 + $0x88] sm:$0xff]  }
 0x7ca   : > { %14925 = vmatpush3.bf16.msra.mxu1 %v15345_v48 }
 0x7cb   : > { %15052 = vmatprep.subr.bf16.mxu1 %v15350_v4 }
 0x7f5   : > { %v9859_v55 = vpop.f32.mrf.mxu1 }
 0x7f6   : > { %v9860_v10 = vadd.f32 %v19377_v31, %v9859_v55 }
 0x7f7   : > { %v9861_v5 = vpop.f32.mrf.mxu1 }
 0x7f8   : > { %v9978_v34 = vmax.f32 %v9860_v10, 0.0 }
 0x7f9   : > { %v9862_v58 = vpop.f32.mrf.mxu1 }
 0x7fa   : > { %9987 = vst.msk [vmem:[#allocation3 + $0x51] sm:$0xff] %vm758_vm11, %v9978_v34  ;;  %v9863_v45 = vadd.f32 %v19377_v31, %v9862_v58  ;;  %v10355_v34 = vld [vmem:[#allocation3 + $0x90] sm:$0xff] }
 0x7fb   : > { %v9864_v13 = vpop.f32.mrf.mxu1 }
 0x7fc   : > { %v9979_v24 = vmax.f32 %v9863_v45, 0.0 }
 0x7fe   : > { %9988 = vst.msk [vmem:[#allocation3 + $0x61] sm:$0xff] %vm758_vm11, %v9979_v24 }
 0x801   : > { %v10479_v17 = vld [vmem:[#allocation3 + $0x52] sm:$0xff] }
 0x802   : > { %v10351_v15 = vld [vmem:[#allocation3 + $0x50] sm:$0xff]  ;;  %v14864_v16 = vpack.c.bf16 %v10479_v17, %v10479_v17 }
 0x803   : > { %v10415_v35 = vld [vmem:[#allocation3 + $0x51] sm:$0xff]  ;;  %v14848_v1 = vpack.c.bf16 %v10351_v15, %v10351_v15 }
 0x804   : > { %v14856_v41 = vpack.c.bf16 %v10415_v35, %v10415_v35  ;;  %10519 = vst.msk [vmem:[#allocation6 + $0x2c] sm:$0xf] %vm10031_vm14, %v14864_v16  ;;  %10323 = vrot.lane.b32.xlu0 %v14864_v16, %s15695_s5  ;;  %v15351_v35 = vld [vmem:[%s19982_s9 + $0x80] sm:$0xff]  }
 0x805   : > { %10386 = vrot.lane.b32.xlu1 %v14848_v1, %s15698_s1  ;;  %10037 = vst.msk [vmem:[#allocation6 + $0x3c] sm:$0xf] %vm10031_vm14, %v14848_v1  ;;  %v10480_v26 = vld [vmem:[#allocation3 + $0x62] sm:$0xff] }
 0x806   : > { %10279 = vst.msk [vmem:[#allocation6 + $0x34] sm:$0xf] %vm10031_vm14, %v14856_v41  ;;  %v10352_v57 = vld [vmem:[#allocation3 + $0x60] sm:$0xff]  ;;  %v19529_v7 = vpack.c.bf16 %v10480_v26, %v10480_v26  ;;  %v10320_v33 = vpop.permute.xlu0 %10319  ;;  %v10419_v26 = vld [vmem:[#allocation3 + $0x91] sm:$0xff] }
 0x807   : > { %v10416_v39 = vld [vmem:[#allocation3 + $0x61] sm:$0xff]  ;;  %v10383_v27 = vpop.permute.xlu1 %10382  ;;  %v19531_v52 = vpack.c.bf16 %v10352_v57, %v10352_v57  ;;  %10341 = vst.msk [vmem:[#allocation6 + $0x1c] sm:$0xf] %vm10096_vm15, %v10320_v33  ;;  %v14860_v57 = vpack.c.bf16 %v10419_v26, %v10419_v26 }
 0x808   : > { %v14857_v50 = vpack.c.bf16 %v10416_v39, %v10416_v39  ;;  %10405 = vst.msk [vmem:[#allocation6 + $0x10] sm:$0xf] %vm10161_vm1, %v10383_v27  ;;  %10145 = vrot.lane.b32.xlu0 %v19435_v56, %s15698_s1 }
 0x809   : > { %10520 = vst.msk [vmem:[#allocation6 + $0x38] sm:$0xf] %vm10031_vm14, %v19529_v7  ;;  %10208 = vrot.lane.b32.xlu1 %v19437_v54, %s15700_s4  ;;  %10038 = vst.msk [vmem:[#allocation6 + $0x48] sm:$0xf] %vm10031_vm14, %v19531_v52 }
 0x80a   : > { %10280 = vst.msk [vmem:[#allocation6 + $0x40] sm:$0xf] %vm10031_vm14, %v14857_v50  ;;  %v10142_v2 = vpop.permute.xlu0 %10141 }
 0x80b   : > { %v10205_v23 = vpop.permute.xlu1 %10204  ;;  %10164 = vst.msk [vmem:[#allocation6 + $0x18] sm:$0xf] %vm10161_vm1, %v10142_v2 }
 0x80c   : > { %10228 = vst.msk [vmem:[#allocation6 + $0xc] sm:$0xf] %vm10226_vm2, %v10205_v23  ;;  %10388 = vrot.lane.b32.xlu0 %v19531_v52, %s15698_s1 }
 0x80d   : > { %10450 = vrot.lane.b32.xlu1 %v14856_v41, %s15700_s4 }
 0x80e   : > { %v10385_v30 = vpop.permute.xlu0 %10384 }
 0x80f   : > { %v10447_v61 = vpop.permute.xlu1 %10446  ;;  %10406 = vst.msk [vmem:[#allocation6 + $0x1c] sm:$0xf] %vm10161_vm1, %v10385_v30 }
 0x810   : > { %10469 = vst.msk [vmem:[#allocation6 + $0x10] sm:$0xf] %vm10226_vm2, %v10447_v61  ;;  %10210 = vrot.lane.b32.xlu0 %v14848_v1, %s15700_s4 }
 0x811   : > { %10082 = vrot.lane.b32.xlu1 %v14856_v41, %s15695_s5 }
 0x812   : > { %v10207_v21 = vpop.permute.xlu0 %10206 }
 0x813   : > { %10229 = vst.msk [vmem:[#allocation6 + $0x18] sm:$0xf] %vm10226_vm2, %v10207_v21 }
 0x814   : > { %10452 = vrot.lane.b32.xlu0 %v14857_v50, %s15700_s4 }
 0x815   : > { %10325 = vrot.lane.b32.xlu1 %v19529_v7, %s15695_s5 }
 0x816   : > { %v9890_v56 = vpop.permute.xlu1 %9889  ;;  %v10449_v54 = vpop.permute.xlu0 %10448 }
 0x817   : > { %v15342_v9 = vld [vmem:[#allocation6 + $0x4] ss:$12 sps:$4 sm:$0xff]   ;;  %15049 = vmatmul.mubr.msk.bf16.gmra.mxu1 %vm786_vm0, %v9890_v56  ;;  %10470 = vst.msk [vmem:[#allocation6 + $0x1c] sm:$0xf] %vm10226_vm2, %v10449_v54  ;;  %vm15702_vm0 = vmmov 0  }
 0x818   : > { %10084 = vrot.lane.b32.xlu0 %v14857_v50, %s15695_s5  ;;  %10795 = vmatprep.mubr.bf16.mxu1 %v15342_v9  ;;  %v10526_v12 = vld [vmem:[#allocation6 + $0xc] sm:$0xff] }
 0x819   : > { %10147 = vrot.lane.b32.xlu1 %v14864_v16, %s15698_s1  ;;  %v13716_v18 = vcombine.low %v10524_v59, %v10526_v12  ;;  %v14852_v16 = vpack.c.bf16 %v10355_v34, %v10355_v34 }
 0x81a   : > { %v10079_v8 = vpop.permute.xlu1 %10078  ;;  %v10081_v51 = vpop.permute.xlu0 %10080 }
 0x81b   : > { %10100 = vst.msk [vmem:[#allocation6 + $0x24] sm:$0xf] %vm10096_vm15, %v10079_v8  ;;  %10101 = vst.msk [vmem:[#allocation6 + $0x30] sm:$0xf] %vm10096_vm15, %v10081_v51 }
 0x81e   : > { %v10322_v40 = vpop.permute.xlu1 %10321  ;;  %v10528_v13 = vld [vmem:[#allocation6 + $0x18] sm:$0xff] }
 0x81f   : > { %10342 = vst.msk [vmem:[#allocation6 + $0x28] sm:$0xf] %vm10096_vm15, %v10322_v40  ;;  %10796 = vmatmul.mubr.bf16.vlgmr.msra.gmra.mxu1 %v13716_v18 }
 0x820   : > { %15053 = vmatpush3.bf16.msra.mxu1 %v15350_v4  ;;  %v15373_v4 = vld [vmem:[%s19986_s13 + $0x10] sm:$0xff]  }
 0x821   : > { %15054 = vmatprep.subr.bf16.mxu1 %v15351_v35 }
 0x822   : > { %v10144_v29 = vpop.permute.xlu1 %10143 }
 0x823   : > { %10165 = vst.msk [vmem:[#allocation6 + $0x24] sm:$0xf] %vm10161_vm1, %v10144_v29  ;;  %v15355_v29 = vld [vmem:[#allocation6 + $0x8] ss:$12 sps:$4 sm:$0xff]  }
 0x824   : > { %15055 = vmatpush3.bf16.msra.mxu1 %v15351_v35 }
 0x825   : > { %15064 = vmatprep.subr.bf16.mxu1 %v20099_v37 }
 0x865   : > { %v9867_v0 = vpop.f32.mrf.mxu1 }
 0x866   : > { %v9868_v11 = vadd.f32 %v19377_v31, %v9867_v0  ;;  %v15356_v0 = vld [vmem:[#allocation6 + $0x20] ss:$12 sps:$4 sm:$0xff]  }
 0x867   : > { %v9869_v63 = vpop.f32.mrf.mxu1 }
 0x868   : > { %v9980_v42 = vmax.f32 %v9868_v11, 0.0 }
 0x869   : > { %v9870_v53 = vpop.f32.mrf.mxu1 }
 0x86a   : > { %9989 = vst.msk [vmem:[#allocation3 + $0x71] sm:$0xff] %vm758_vm11, %v9980_v42  ;;  %v9871_v25 = vadd.f32 %v19377_v31, %v9870_v53  ;;  %v15359_v42 = vld [vmem:[%s19986_s13 + $0x88] sm:$0xff]   ;;  %v15360_v53 = vld [vmem:[%s19986_s13 + $0x80] sm:$0xff]  }
 0x86b   : > { %v9872_v32 = vpop.f32.mrf.mxu1 }
 0x86c   : > { %v9981_v14 = vmax.f32 %v9871_v25, 0.0  ;;  %v15362_v25 = vld [vmem:[%s19986_s13 + $0x78] sm:$0xff]  }
 0x86d   : > { %v15363_v32 = vld [vmem:[%s19986_s13 + $0x38] sm:$0xff]   ;;  %14956 = vmatprep.subr.bf16.mxu0 %v15362_v25 }
 0x86e   : > { %9990 = vst.msk [vmem:[#allocation3 + $0x81] sm:$0xff] %vm758_vm11, %v9981_v14  ;;  %v15046_v14 = vpop.f32.mrf.mxu1  ;;  %14957 = vmatpush3.bf16.msra.mxu0 %v15363_v32 }
 0x871   : > { %v10481_v46 = vld [vmem:[#allocation3 + $0x72] sm:$0xff] }
 0x872   : > { %v10353_v28 = vld [vmem:[#allocation3 + $0x70] sm:$0xff]  ;;  %v14866_v44 = vpack.c.bf16 %v10481_v46, %v10481_v46  ;;  %v15364_v46 = vld [vmem:[%s19986_s13 + $0x70] sm:$0xff]  }
 0x873   : > { %v10417_v38 = vld [vmem:[#allocation3 + $0x71] sm:$0xff]  ;;  %v14850_v22 = vpack.c.bf16 %v10353_v28, %v10353_v28  ;;  %v15365_v28 = vld [vmem:[%s19986_s13 + $0x30] sm:$0xff]   ;;  %14958 = vmatprep.subr.bf16.mxu0 %v15364_v46 }
 0x874   : > { %v14858_v3 = vpack.c.bf16 %v10417_v38, %v10417_v38  ;;  %10521 = vst.msk [vmem:[#allocation6 + $0x44] sm:$0xf] %vm10031_vm14, %v14866_v44  ;;  %10327 = vrot.lane.b32.xlu0 %v14866_v44, %s15695_s5  ;;  %v15366_v38 = vld [vmem:[%s19986_s13 + $0x68] sm:$0xff]   ;;  %14959 = vmatpush3.bf16.msra.mxu0 %v15365_v28 }
 0x875   : > { %10390 = vrot.lane.b32.xlu1 %v14850_v22, %s15698_s1  ;;  %10039 = vst.msk [vmem:[#allocation6 + $0x54] sm:$0xf] %vm10031_vm14, %v14850_v22  ;;  %v10482_v31 = vld [vmem:[#allocation3 + $0x82] sm:$0xff]  ;;  %14960 = vmatprep.subr.bf16.mxu0 %v15366_v38 }
 0x876   : > { %10281 = vst.msk [vmem:[#allocation6 + $0x4c] sm:$0xf] %vm10031_vm14, %v14858_v3  ;;  %v10418_v19 = vld [vmem:[#allocation3 + $0x81] sm:$0xff]  ;;  %v14867_v60 = vpack.c.bf16 %v10482_v31, %v10482_v31  ;;  %v10324_v47 = vpop.permute.xlu0 %10323 }
 0x877   : > { %v10387_v62 = vpop.permute.xlu1 %10386  ;;  %v14859_v36 = vpack.c.bf16 %v10418_v19, %v10418_v19  ;;  %10343 = vst.msk [vmem:[#allocation6 + $0x34] sm:$0xf] %vm10096_vm15, %v10324_v47  ;;  %v10354_v6 = vld [vmem:[#allocation3 + $0x80] sm:$0xff]  ;;  %v15369_v19 = vld [vmem:[%s19986_s13 + $0x20] sm:$0xff]   ;;  %v15371_v47 = vld [vmem:[%s19986_s13 + $0x18] sm:$0xff]  }
 0x878   : > { %10407 = vst.msk [vmem:[#allocation6 + $0x28] sm:$0xf] %vm10161_vm1, %v10387_v62  ;;  %10149 = vrot.lane.b32.xlu0 %v19529_v7, %s15698_s1  ;;  %v14851_v55 = vpack.c.bf16 %v10354_v6, %v10354_v6 }
 0x879   : > { %10522 = vst.msk [vmem:[#allocation6 + $0x50] sm:$0xf] %vm10031_vm14, %v14867_v60  ;;  %10212 = vrot.lane.b32.xlu1 %v19531_v52, %s15700_s4  ;;  %10282 = vst.msk [vmem:[#allocation6 + $0x58] sm:$0xf] %vm10031_vm14, %v14859_v36 }
 0x87a   : > { %v10146_v48 = vpop.permute.xlu0 %10145 }
 0x87b   : > { %v10209_v49 = vpop.permute.xlu1 %10208  ;;  %10166 = vst.msk [vmem:[#allocation6 + $0x30] sm:$0xf] %vm10161_vm1, %v10146_v48  ;;  %v15357_v11 = vld [vmem:[#allocation6 + $0x38] ss:$12 sps:$4 sm:$0xff]  }
 0x87c   : > { %10230 = vst.msk [vmem:[#allocation6 + $0x24] sm:$0xf] %vm10226_vm2, %v10209_v49  ;;  %10392 = vrot.lane.b32.xlu0 %v14851_v55, %s15698_s1 }
 0x87d   : > { %10454 = vrot.lane.b32.xlu1 %v14858_v3, %s15700_s4 }
 0x87e   : > { %v10389_v20 = vpop.permute.xlu0 %10388 }
 0x87f   : > { %v10451_v10 = vpop.permute.xlu1 %10450  ;;  %10408 = vst.msk [vmem:[#allocation6 + $0x34] sm:$0xf] %vm10161_vm1, %v10389_v20 }
 0x880   : > { %10471 = vst.msk [vmem:[#allocation6 + $0x28] sm:$0xf] %vm10226_vm2, %v10451_v10  ;;  %10214 = vrot.lane.b32.xlu0 %v14850_v22, %s15700_s4  ;;  %v15358_v63 = vld [vmem:[#allocation6 + $0x50] ss:$12 sps:$4 sm:$0xff]   ;;  %v15367_v22 = vld [vmem:[%s19986_s13 + $0x28] sm:$0xff]  }
 0x881   : > { %10086 = vrot.lane.b32.xlu1 %v14858_v3, %s15695_s5  ;;  %v15368_v3 = vld [vmem:[%s19986_s13 + $0x60] sm:$0xff]   ;;  %14961 = vmatpush3.bf16.msra.mxu0 %v15367_v22 }
 0x882   : > { %v10211_v43 = vpop.permute.xlu0 %10210  ;;  %14962 = vmatprep.subr.bf16.mxu0 %v15368_v3 }
 0x883   : > { %v10083_v5 = vpop.permute.xlu1 %10082  ;;  %10231 = vst.msk [vmem:[#allocation6 + $0x30] sm:$0xf] %vm10226_vm2, %v10211_v43 }
 0x884   : > { %10102 = vst.msk [vmem:[#allocation6 + $0x3c] sm:$0xf] %vm10096_vm15, %v10083_v5  ;;  %10456 = vrot.lane.b32.xlu0 %v14859_v36, %s15700_s4  ;;  %v15372_v36 = vld [vmem:[%s19986_s13 + $0x50] sm:$0xff]  }
 0x885   : > { %10329 = vrot.lane.b32.xlu1 %v14867_v60, %s15695_s5  ;;  %v15370_v60 = vld [vmem:[%s19986_s13 + $0x58] sm:$0xff]   ;;  %14963 = vmatpush3.bf16.msra.mxu0 %v15369_v19 }
 0x886   : > { %v10453_v45 = vpop.permute.xlu0 %10452  ;;  %14964 = vmatprep.subr.bf16.mxu0 %v15370_v60 }
 0x887   : > { %v10326_v58 = vpop.permute.xlu1 %10325  ;;  %v10530_v24 = vld [vmem:[#allocation6 + $0x24] sm:$0xff]  ;;  %10472 = vst.msk [vmem:[#allocation6 + $0x34] sm:$0xf] %vm10226_vm2, %v10453_v45 }
 0x888   : > { %v15346_v17 = vld [vmem:[#allocation6 + $0x1c] ss:$12 sps:$4 sm:$0xff]   ;;  %10344 = vst.msk [vmem:[#allocation6 + $0x40] sm:$0xf] %vm10096_vm15, %v10326_v58  ;;  %v13719_v15 = vcombine.low %v10528_v13, %v10530_v24 }
 0x889   : > { %10151 = vrot.lane.b32.xlu1 %v14866_v44, %s15698_s1  ;;  %10803 = vmatprep.mubr.bf16.mxu1 %v15346_v17  ;;  %v9943_v44 = vpop.f32.mrf.mxu1 }
 0x88a   : > { %10804 = vmatmul.mubr.bf16.gmra.mxu1 %v13719_v15  ;;  %v10085_v41 = vpop.permute.xlu0 %10084  ;;  %14965 = vmatpush3.bf16.msra.mxu0 %v15371_v47 }
 0x88b   : > { %v10148_v1 = vpop.permute.xlu1 %10147  ;;  %10103 = vst.msk [vmem:[#allocation6 + $0x48] sm:$0xf] %vm10096_vm15, %v10085_v41  ;;  %v15047_v31 = vpop.f32.mrf.mxu1  ;;  %14966 = vmatprep.subr.bf16.mxu0 %v15372_v36 }
 0x88c   : > { %10167 = vst.msk [vmem:[#allocation6 + $0x3c] sm:$0xf] %vm10161_vm1, %v10148_v1 }
 0x88d   : > { %10394 = vrot.lane.b32.xlu1 %v14852_v16, %s15698_s1  ;;  %v9946_v62 = vpop.f32.mrf.mxu1 }
 0x88e   : > { %v10532_v21 = vld [vmem:[#allocation6 + $0x30] sm:$0xff]  ;;  %14967 = vmatpush3.bf16.msra.mxu0 %v15373_v4 }
 0x891   : > { %10216 = vrot.lane.b32.xlu1 %v14851_v55, %s15700_s4 }
 0x895   : > { %10458 = vrot.lane.b32.xlu1 %v14860_v57, %s15700_s4 }
 0x8d7   : > { %v15050_v6 = vpop.f32.mrf.mxu1 }
 0x8d9   : > { %v9959_v49 = vpop.f32.mrf.mxu1 }
 0x8db   : > { %v19673_v48 = vpop.f32.mrf.mxu1 }
 0x8dd   : > { %v19675_v55 = vpop.f32.mrf.mxu1 }
 0x8df   : > { %v14926_v10 = vpop.f32.mrf.mxu1 }
 0x8e1   : > { %v14927_v20 = vpop.f32.mrf.mxu1 }
 0x8e2   : > { %v14928_v57 = vadd.f32 %v14927_v20, %v14926_v10  ;;  %v15375_v20 = vld [vmem:[%s19986_s13 + $0x8] sm:$0xff]  }
 0x8e3   : > { %v14929_v5 = vpop.f32.mrf.mxu1 }
 0x8e5   : > { %v14930_v43 = vpop.f32.mrf.mxu1 }
 0x8e6   : > { %v10328_v7 = vpop.permute.xlu0 %10327 }
 0x8e7   : > { %v10391_v39 = vpop.permute.xlu1 %10390  ;;  %10345 = vst.msk [vmem:[#allocation6 + $0x4c] sm:$0xf] %vm10096_vm15, %v10328_v7 }
 0x8e8   : > { %10409 = vst.msk [vmem:[#allocation6 + $0x40] sm:$0xf] %vm10161_vm1, %v10391_v39  ;;  %v13637_v39 = vld [vmem:[%s19985_s12] ss:$0 sm:$0xff] }
 0x8e9   : > { %v9968_v28 = vadd.f32 %v15050_v6, %v13637_v39  ;;  %v9960_v60 = vadd.f32 %v13637_v39, %v9959_v49  ;;  %v15374_v6 = vld [vmem:[%s19986_s13 + $0x48] sm:$0xff]  }
 0x8ea   : > { %v10150_v33 = vpop.permute.xlu0 %10149  ;;  %14968 = vmatprep.subr.bf16.mxu0 %v15374_v6 }
 0x8eb   : > { %v10213_v27 = vpop.permute.xlu1 %10212  ;;  %10168 = vst.msk [vmem:[#allocation6 + $0x48] sm:$0xf] %vm10161_vm1, %v10150_v33  ;;  %14969 = vmatpush3.bf16.msra.mxu0 %v15375_v20 }
 0x8ec   : > { %10232 = vst.msk [vmem:[#allocation6 + $0x3c] sm:$0xf] %vm10226_vm2, %v10213_v27  ;;  %v13715_v27 = vld [vmem:[%s19983_s10] ss:$0 sm:$0xff] }
 0x8ee   : > { %v10393_v50 = vpop.permute.xlu0 %10392 }
 0x8ef   : > { %v10455_v52 = vpop.permute.xlu1 %10454  ;;  %10410 = vst.msk [vmem:[#allocation6 + $0x4c] sm:$0xf] %vm10161_vm1, %v10393_v50 }
 0x8f0   : > { %10473 = vst.msk [vmem:[#allocation6 + $0x40] sm:$0xf] %vm10226_vm2, %v10455_v52 }
 0x8f2   : > { %v10215_v2 = vpop.permute.xlu0 %10214 }
 0x8f3   : > { %v10087_v23 = vpop.permute.xlu1 %10086  ;;  %10233 = vst.msk [vmem:[#allocation6 + $0x48] sm:$0xf] %vm10226_vm2, %v10215_v2  ;;  %v14931_v2 = vadd.f32 %v14930_v43, %v14929_v5  ;;  %v9971_v5 = vadd.f32 %v19673_v48, %v13637_v39 }
 0x8f4   : > { %10104 = vst.msk [vmem:[#allocation6 + $0x54] sm:$0xf] %vm10096_vm15, %v10087_v23  ;;  %v9952_v23 = vadd.f32 %v15046_v14, %v13637_v39 }
 0x8f6   : > { %v10457_v30 = vpop.permute.xlu0 %10456 }
 0x8f7   : > { %v10330_v61 = vpop.permute.xlu1 %10329  ;;  %v10534_v56 = vld [vmem:[#allocation6 + $0x3c] sm:$0xff]  ;;  %10474 = vst.msk [vmem:[#allocation6 + $0x4c] sm:$0xf] %vm10226_vm2, %v10457_v30  ;;  %v10798_v30 = vadd.f32 %v14928_v57, %v13715_v27 }
 0x8f8   : > { %v15348_v9 = vld [vmem:[#allocation6 + $0x34] ss:$12 sps:$4 sm:$0xff]   ;;  %10346 = vst.msk [vmem:[#allocation6 + $0x58] sm:$0xf] %vm10096_vm15, %v10330_v61  ;;  %v13722_v54 = vcombine.low %v10532_v21, %v10534_v56 }
 0x8f9   : > { %10811 = vmatprep.mubr.bf16.mxu1 %v15348_v9  ;;  %v9944_v9 = vadd.f32 %v13637_v39, %v9943_v44 }
 0x8fa   : > { %10812 = vmatmul.mubr.bf16.gmra.mxu1 %v13722_v54 }
 0x8fb   : > { %v10152_v12 = vpop.permute.xlu1 %10151 }
 0x8fc   : > { %10169 = vst.msk [vmem:[#allocation6 + $0x54] sm:$0xf] %vm10161_vm1, %v10152_v12 }
 0x8ff   : > { %v10395_v8 = vpop.permute.xlu1 %10394 }
 0x900   : > { %10411 = vst.msk [vmem:[#allocation6 + $0x58] sm:$0xf] %vm10161_vm1, %v10395_v8 }
 0x903   : > { %v10217_v51 = vpop.permute.xlu1 %10216 }
 0x904   : > { %10234 = vst.msk [vmem:[#allocation6 + $0x54] sm:$0xf] %vm10226_vm2, %v10217_v51  ;;  %v9955_v51 = vadd.f32 %v15047_v31, %v13637_v39 }
 0x907   : > { %v10459_v59 = vpop.permute.xlu1 %10458 }
 0x908   : > { %10475 = vst.msk [vmem:[#allocation6 + $0x58] sm:$0xf] %vm10226_vm2, %v10459_v59 }
 0x90b   : > { %v15354_v40 = vld [vmem:[#allocation6 + $0x48] ss:$12 sps:$4 sm:$0xff]  }
 0x90f   : > { %v15352_v18 = vld [vmem:[#allocation6 + $0x4c] ss:$12 sps:$4 sm:$0xff]  }
 0x910   : > { %10819 = vmatprep.mubr.bf16.mxu1 %v15352_v18 }
 0x911   : > { %10820 = vmatmul.mubr.bf16.gmra.mxu1 %v15354_v40 }
 0x912   : > { %15056 = vmatprep.mubr.msk.bf16.mxu1 %vm758_vm11, %v15355_v29 }
 0x919   : > { %15057 = vmatmul.mubr.msk.bf16.vlgmr.msra.gmra.mxu1 %vm758_vm11, %v15356_v0 }
 0x91a   : > { %15060 = vmatprep.mubr.msk.bf16.mxu1 %vm758_vm11, %v15357_v11  ;;  %15065 = vmatpush3.bf16.msra.mxu1 %v15359_v42  ;;  %v10801_v11 = vadd.f32 %v14931_v2, %v13715_v27 }
 0x91b   : > { %15066 = vmatprep.subr.bf16.mxu1 %v20099_v37 }
 0x91e   : > { %15067 = vmatpush3.bf16.msra.mxu1 %v15360_v53 }
 0x91f   : > { %15072 = vmatprep.subr.bf16.mxu1 %v20099_v37 }
 0x921   : > { %15061 = vmatmul.mubr.msk.bf16.gmra.mxu1 %vm758_vm11, %v15358_v63  ;;  %v9947_v63 = vadd.f32 %v13637_v39, %v9946_v62 }
 0x922   : > { %15068 = vmatprep.mubr.msk.bf16.mxu1 %vm15702_vm0, %v20099_v37 }
 0x94a   : > { %v14932_v34 = vpop.f32.mrf.mxu1 }
 0x94c   : > { %v14933_v58 = vpop.f32.mrf.mxu1 }
 0x94d   : > { %v14934_v41 = vadd.f32 %v14933_v58, %v14932_v34 }
 0x94e   : > { %v14935_v45 = vpop.f32.mrf.mxu1 }
 0x94f   : > { %v10806_v52 = vadd.f32 %v14934_v41, %v13715_v27 }
 0x950   : > { %v14936_v13 = vpop.f32.mrf.mxu1 }
 0x951   : > { %v14937_v33 = vadd.f32 %v14936_v13, %v14935_v45 }
 0x953   : > { %v10809_v8 = vadd.f32 %v14937_v33, %v13715_v27 }
 0x9ba   : > { %v14938_v24 = vpop.f32.mrf.mxu1 }
 0x9bc   : > { %v14939_v17 = vpop.f32.mrf.mxu1 }
 0x9bd   : > { %v14940_v59 = vadd.f32 %v14939_v17, %v14938_v24  ;;  %v9963_v17 = vadd.f32 %v13637_v39, %v19675_v55 }
 0x9be   : > { %v14941_v15 = vpop.f32.mrf.mxu1 }
 0x9bf   : > { %v10814_v44 = vadd.f32 %v14940_v59, %v13715_v27 }
 0x9c0   : > { %v14942_v35 = vpop.f32.mrf.mxu1 }
 0x9c1   : > { %v14943_v22 = vadd.f32 %v14942_v35, %v14941_v15 }
 0x9c3   : > { %v10817_v45 = vadd.f32 %v14943_v22, %v13715_v27 }
 0x9d1   : > { %v14944_v16 = vpop.f32.mrf.mxu1 }
 0x9d3   : > { %v14945_v1 = vpop.f32.mrf.mxu1 }
 0x9d4   : > { %v14946_v21 = vadd.f32 %v14945_v1, %v14944_v16 }
 0x9d5   : > { %v14947_v26 = vpop.f32.mrf.mxu1 }
 0x9d6   : > { %v10822_v53 = vadd.f32 %v14946_v21, %v13715_v27 }
 0x9d7   : > { %v14948_v7 = vpop.f32.mrf.mxu1 }
 0x9d8   : > { %v14949_v25 = vadd.f32 %v14948_v7, %v14947_v26 }
 0x9d9   : > { %v15058_v50 = vpop.f32.mrf.mxu1 }
 0x9da   : > { %v10871_v61 = vadd.f32 %v15058_v50, %v10806_v52  ;;  %v10825_v10 = vadd.f32 %v14949_v25, %v13715_v27 }
 0x9db   : > { %v10862_v56 = vpop.f32.mrf.mxu1 }
 0x9dc   : > { %v10895_v54 = vadd.f32 %v10871_v61, %v9952_v23  ;;  %v10863_v12 = vadd.f32 %v10862_v56, %v10798_v30  ;;  %v10943_v23 = vld [vmem:[#allocation3 + $0x1] ss:$2 sm:$0xf]  ;;  %v10973_v30 = vld [vmem:[#allocation3 + $0x2] ss:$2 sm:$0xf] }
 0x9dd   : > { %v15059_v18 = vpop.f32.mrf.mxu1 }
 0x9de   : > { %v10903_v40 = vmax.f32 %v10895_v54, 0.0  ;;  %v10893_v29 = vadd.f32 %v10863_v12, %v9944_v9  ;;  %v10874_v0 = vadd.f32 %v15059_v18, %v10809_v8 }
 0x9df   : > { %v10865_v42 = vpop.f32.mrf.mxu1 }
 0x9e0   : > { %10911 = vst.msk [vmem:[#allocation3 + $0x31] sm:$0xff] %vm758_vm11, %v10903_v40  ;;  %v10901_v32 = vmax.f32 %v10893_v29, 0.0  ;;  %v10896_v14 = vadd.f32 %v10874_v0, %v9955_v51  ;;  %v10866_v46 = vadd.f32 %v10865_v42, %v10801_v11  ;;  %v10917_v11 = vld [vmem:[#allocation3] ss:$2 sm:$0xf] }
 0x9e1   : > { %v15062_v38 = vpop.f32.mrf.mxu1 }
 0x9e2   : > { %10909 = vst.msk [vmem:[#allocation3 + $0x11] sm:$0xff] %vm758_vm11, %v10901_v32  ;;  %v10904_v3 = vmax.f32 %v10896_v14, 0.0  ;;  %v10894_v31 = vadd.f32 %v10866_v46, %v9947_v63  ;;  %v10887_v19 = vadd.f32 %v15062_v38, %v10822_v53 }
 0x9e3   : > { %v10878_v47 = vpop.f32.mrf.mxu1 }
 0x9e4   : > { %10912 = vst.msk [vmem:[#allocation3 + $0x41] sm:$0xff] %vm758_vm11, %v10904_v3  ;;  %v10902_v62 = vmax.f32 %v10894_v31, 0.0  ;;  %v10899_v36 = vadd.f32 %v10887_v19, %v9968_v28  ;;  %v10879_v4 = vadd.f32 %v10878_v47, %v10814_v44 }
 0x9e5   : > { %v15063_v43 = vpop.f32.mrf.mxu1 }
 0x9e6   : > { %10910 = vst.msk [vmem:[#allocation3 + $0x21] sm:$0xff] %vm758_vm11, %v10902_v62  ;;  %v10907_v49 = vmax.f32 %v10899_v36, 0.0  ;;  %v10897_v34 = vadd.f32 %v10879_v4, %v9960_v60  ;;  %v10890_v58 = vadd.f32 %v15063_v43, %v10825_v10 }
 0x9e7   : > { %v10881_v13 = vpop.f32.mrf.mxu1  ;;  %v11060_v24 = vld [vmem:[#allocation3 + $0x32] ss:$2 sm:$0xf]  ;;  %v11034_v1 = vld [vmem:[#allocation3 + $0x31] ss:$2 sm:$0xf] }
 0x9e8   : > { %10915 = vst.msk [vmem:[#allocation3 + $0x71] sm:$0xff] %vm758_vm11, %v10907_v49  ;;  %v10905_v15 = vmax.f32 %v10897_v34, 0.0  ;;  %v10900_v35 = vadd.f32 %v10890_v58, %v9971_v5  ;;  %v10882_v16 = vadd.f32 %v10881_v13, %v10817_v45  ;;  %v11004_v33 = vld [vmem:[#allocation3 + $0x30] ss:$2 sm:$0xf] }
 0x9e9   : > { %v11058_v48 = vld [vmem:[#allocation3 + $0x12] ss:$2 sm:$0xf]  ;;  %v11032_v27 = vld [vmem:[#allocation3 + $0x11] ss:$2 sm:$0xf] }
 0x9ea   : > { %v11002_v41 = vld [vmem:[#allocation3 + $0x10] ss:$2 sm:$0xf]  ;;  %10913 = vst.msk [vmem:[#allocation3 + $0x51] sm:$0xff] %vm758_vm11, %v10905_v15  ;;  %v10908_v26 = vmax.f32 %v10900_v35, 0.0  ;;  %v10898_v57 = vadd.f32 %v10882_v16, %v9963_v17  ;;  %v11069_v7 = vcombine.low %v11058_v48, %v11060_v24  ;;  %v11043_v52 = vcombine.low %v11032_v27, %v11034_v1 }
 0x9eb   : > { %v11013_v39 = vcombine.low %v11002_v41, %v11004_v33  ;;  %v11149_v18 = vld [vmem:[#allocation3 + $0x42] ss:$2 sm:$0xf]  ;;  %v10947_v46 = vld [vmem:[#allocation3 + $0x41] ss:$2 sm:$0xf] }
 0x9ec   : > { %10916 = vst.msk [vmem:[#allocation3 + $0x81] sm:$0xff] %vm758_vm11, %v10908_v26  ;;  %v10906_v50 = vmax.f32 %v10898_v57, 0.0  ;;  %v14879_v55 = vpack.c.bf16 %v11069_v7, %v11069_v7  ;;  %v14877_v61 = vpack.c.bf16 %v11043_v52, %v11043_v52  ;;  %v11089_v38 = vld [vmem:[#allocation3 + $0x40] ss:$2 sm:$0xf]  ;;  %v15376_v45 = vld [vmem:[%s19986_s13 + $0x40] sm:$0xff]  }
 0x9ed   : > { %v10945_v2 = vld [vmem:[#allocation3 + $0x21] ss:$2 sm:$0xf]  ;;  %v10975_v21 = vld [vmem:[#allocation3 + $0x22] ss:$2 sm:$0xf]  ;;  %v14875_v56 = vpack.c.bf16 %v11013_v39, %v11013_v39  ;;  %14970 = vmatprep.subr.bf16.mxu0 %v15376_v45 }
 0x9ee   : > { %10914 = vst.msk [vmem:[#allocation3 + $0x61] sm:$0xff] %vm758_vm11, %v10906_v50  ;;  %11079 = vrot.lane.b32.xlu0 %v14879_v55, %s15695_s5  ;;  %v10954_v54 = vcombine.low %v10943_v23, %v10945_v2  ;;  %v11147_v12 = vld [vmem:[#allocation3 + $0x22] ss:$2 sm:$0xf]  ;;  %v10984_v25 = vcombine.low %v10973_v30, %v10975_v21  ;;  %v15377_v13 = vld [vmem:[%s19986_s13] sm:$0xff]   ;;  %v15378_v50 = vld [vmem:[%s19990_s17 + $0x8] sm:$0xff]  }
 0x9ef   : > { %11055 = vst.msk [vmem:[#allocation6 + $0x4] sm:$0xf] %vm10031_vm14, %v14877_v61  ;;  %v11064_v9 = vld [vmem:[#allocation3 + $0x72] ss:$2 sm:$0xf]  ;;  %v11158_v0 = vcombine.low %v11147_v12, %v11149_v18  ;;  %14971 = vmatpush3.bf16.msra.mxu0 %v15377_v13 }
 0x9f0   : > { %v11008_v40 = vld [vmem:[#allocation3 + $0x70] ss:$2 sm:$0xf]  ;;  %v11087_v29 = vld [vmem:[#allocation3 + $0x20] ss:$2 sm:$0xf]  ;;  %v14871_v42 = vpack.c.bf16 %v10954_v54, %v10954_v54  ;;  %v14873_v10 = vpack.c.bf16 %v10984_v25, %v10984_v25 }
 0x9f1   : > { %v11062_v8 = vld [vmem:[#allocation3 + $0x52] ss:$2 sm:$0xf]  ;;  %v11038_v32 = vld [vmem:[#allocation3 + $0x71] ss:$2 sm:$0xf]  ;;  %v14885_v44 = vpack.c.bf16 %v11158_v0, %v11158_v0  ;;  %v11098_v19 = vcombine.low %v11087_v29, %v11089_v38 }
 0x9f2   : > { %v11006_v51 = vld [vmem:[#allocation3 + $0x50] ss:$2 sm:$0xf]  ;;  %11023 = vrot.lane.b32.xlu0 %v14875_v56, %s15700_s4  ;;  %v11070_v59 = vcombine.low %v11062_v8, %v11064_v9  ;;  %v11036_v14 = vld [vmem:[#allocation3 + $0x51] ss:$2 sm:$0xf] }
 0x9f3   : > { %v11014_v53 = vcombine.low %v11006_v51, %v11008_v40  ;;  %v11044_v22 = vcombine.low %v11036_v14, %v11038_v32  ;;  %v11153_v31 = vld [vmem:[#allocation3 + $0x82] ss:$2 sm:$0xf]  ;;  %v11117_v60 = vld [vmem:[#allocation3 + $0x21] ss:$2 sm:$0xf]  ;;  %v14881_v1 = vpack.c.bf16 %v11098_v19, %v11098_v19 }
 0x9f4   : > { %v14880_v63 = vpack.c.bf16 %v11070_v59, %v11070_v59  ;;  %11170 = vst.msk [vmem:[#allocation6 + $0x8] sm:$0xf] %vm10031_vm14, %v14885_v44  ;;  %v10919_v36 = vld [vmem:[#allocation3 + $0x20] ss:$2 sm:$0xf]  ;;  %v15379_v61 = vld [vmem:[%s19990_s17] sm:$0xff]  }
 0x9f5   : > { %v10949_v28 = vld [vmem:[#allocation3 + $0x61] ss:$2 sm:$0xf]  ;;  %v11151_v3 = vld [vmem:[#allocation3 + $0x62] ss:$2 sm:$0xf]  ;;  %v14878_v62 = vpack.c.bf16 %v11044_v22, %v11044_v22  ;;  %v14876_v4 = vpack.c.bf16 %v11014_v53, %v11014_v53  ;;  %v10928_v20 = vcombine.low %v10917_v11, %v10919_v36 }
 0x9f6   : > { %11081 = vrot.lane.b32.xlu1 %v14880_v63, %s15695_s5  ;;  %10964 = vrot.lane.b32.xlu0 %v14871_v42, %s15695_s5  ;;  %v11159_v47 = vcombine.low %v11151_v3, %v11153_v31  ;;  %v10955_v6 = vcombine.low %v10947_v46, %v10949_v28  ;;  %v10923_v5 = vld [vmem:[#allocation3 + $0x60] ss:$2 sm:$0xf]  ;;  %v11119_v15 = vld [vmem:[#allocation3 + $0x41] ss:$2 sm:$0xf] }
 0x9f7   : > { %v10921_v43 = vld [vmem:[#allocation3 + $0x40] ss:$2 sm:$0xf]  ;;  %11056 = vst.msk [vmem:[#allocation6 + $0x10] sm:$0xf] %vm10031_vm14, %v14878_v62  ;;  %v14869_v24 = vpack.c.bf16 %v10928_v20, %v10928_v20  ;;  %v11128_v41 = vcombine.low %v11117_v60, %v11119_v15  ;;  %v15391_v14 = vld [vmem:[%s19988_s15 + $0x78] sm:$0xff]  }
 0x9f8   : > { %v10979_v49 = vld [vmem:[#allocation3 + $0x62] ss:$2 sm:$0xf]  ;;  %v14886_v34 = vpack.c.bf16 %v11159_v47, %v11159_v47  ;;  %v10929_v58 = vcombine.low %v10921_v43, %v10923_v5  ;;  %v14872_v16 = vpack.c.bf16 %v10955_v6, %v10955_v6  ;;  %v11121_v52 = vld [vmem:[#allocation3 + $0x61] ss:$2 sm:$0xf] }
 0x9f9   : > { %v10977_v17 = vld [vmem:[#allocation3 + $0x42] ss:$2 sm:$0xf]  ;;  %10940 = vst.msk [vmem:[#allocation6] sm:$0xf] %vm10031_vm14, %v14869_v24  ;;  %v14883_v27 = vpack.c.bf16 %v11128_v41, %v11128_v41  ;;  %v15395_v31 = vld [vmem:[%s19988_s15 + $0x68] sm:$0xff]  }
 0x9fa   : > { %11025 = vrot.lane.b32.xlu1 %v14876_v4, %s15700_s4  ;;  %10994 = vrot.lane.b32.xlu0 %v14873_v10, %s15698_s1  ;;  %11171 = vst.msk [vmem:[#allocation6 + $0x14] sm:$0xf] %vm10031_vm14, %v14886_v34  ;;  %v14870_v35 = vpack.c.bf16 %v10929_v58, %v10929_v58  ;;  %v10985_v48 = vcombine.low %v10977_v17, %v10979_v49  ;;  %v11091_v26 = vld [vmem:[#allocation3 + $0x60] ss:$2 sm:$0xf]  ;;  %v15392_v46 = vld [vmem:[%s19988_s15 + $0x38] sm:$0xff]  }
 0x9fb   : > { %v11093_v57 = vld [vmem:[#allocation3 + $0x80] ss:$2 sm:$0xf]  ;;  %v11123_v39 = vld [vmem:[#allocation3 + $0x81] ss:$2 sm:$0xf] }
 0x9fc   : > { %10941 = vst.msk [vmem:[#allocation6 + $0xc] sm:$0xf] %vm10031_vm14, %v14870_v35  ;;  %v14874_v7 = vpack.c.bf16 %v10985_v48, %v10985_v48  ;;  %v11099_v33 = vcombine.low %v11091_v26, %v11093_v57  ;;  %v11129_v2 = vcombine.low %v11121_v52, %v11123_v39  ;;  %v15393_v28 = vld [vmem:[%s19988_s15 + $0x70] sm:$0xff]   ;;  %v15397_v38 = vld [vmem:[%s19988_s15 + $0xf8] sm:$0xff]   ;;  %v15396_v19 = vld [vmem:[%s19988_s15 + $0x28] sm:$0xff]  }
 0x9fd   : > { %v15398_v44 = vld [vmem:[%s19988_s15 + $0xb8] sm:$0xff]   ;;  %v15394_v22 = vld [vmem:[%s19988_s15 + $0x30] sm:$0xff]   ;;  %15006 = vmatprep.subr.bf16.mxu0 %v15397_v38  ;;  %v15399_v60 = vld [vmem:[%s19988_s15 + $0x60] sm:$0xff]  }
 0x9fe   : > { %10966 = vrot.lane.b32.xlu1 %v14872_v16, %s15695_s5  ;;  %11108 = vrot.lane.b32.xlu0 %v14881_v1, %s15698_s1  ;;  %v14882_v23 = vpack.c.bf16 %v11099_v33, %v11099_v33  ;;  %v14884_v30 = vpack.c.bf16 %v11129_v2, %v11129_v2  ;;  %v15401_v3 = vld [vmem:[%s19988_s15 + $0xf0] sm:$0xff]   ;;  %v15400_v47 = vld [vmem:[%s19988_s15 + $0x20] sm:$0xff]  }
 0x9ff   : > { %v13768_v10 = vld [vmem:[%s19987_s14] ss:$0 sm:$0xff]  ;;  %v15403_v15 = vld [vmem:[%s19988_s15 + $0xb0] sm:$0xff]   ;;  %v15404_v35 = vld [vmem:[%s19988_s15 + $0x58] sm:$0xff]  }
 0xa00   : > { %v15405_v16 = vld [vmem:[%s19988_s15 + $0x18] sm:$0xff]   ;;  %v15406_v1 = vld [vmem:[%s19988_s15 + $0xe8] sm:$0xff]   ;;  %v15412_v33 = vld [vmem:[%s19988_s15 + $0xe0] sm:$0xff]  }
 0xa01   : > { %v15361_v55 = vld [vmem:[#allocation6 + $0x8] ss:$12 sps:$4 sm:$0xff]   ;;  %v15409_v57 = vld [vmem:[%s19988_s15 + $0xa8] sm:$0xff]  }
 0xa02   : > { %10996 = vrot.lane.b32.xlu1 %v14874_v7, %s15698_s1  ;;  %11138 = vrot.lane.b32.xlu0 %v14883_v27, %s15700_s4  ;;  %v15410_v7 = vld [vmem:[%s19988_s15 + $0x50] sm:$0xff]   ;;  %v15417_v39 = vld [vmem:[%s19988_s15 + $0x8] sm:$0xff]  }
 0xa03   : > { %15069 = vmatmul.mubr.msk.bf16.vlgmr.msra.gmra.mxu1 %vm758_vm11, %v15361_v55  ;;  %v15411_v27 = vld [vmem:[%s19988_s15 + $0x10] sm:$0xff]   ;;  %v15416_v55 = vld [vmem:[%s19988_s15 + $0x48] sm:$0xff]  }
 0xa04   : > { %15073 = vmatpush3.bf16.msra.mxu1 %v15378_v50  ;;  %15076 = vmatprep.mubr.msk.bf16.mxu1 %vm15702_vm0, %v20099_v37  ;;  %v15415_v50 = vld [vmem:[%s19988_s15 + $0xa0] sm:$0xff]  }
 0xa05   : > { %15074 = vmatprep.subr.bf16.mxu1 %v20099_v37 }
 0xa06   : > { %11110 = vrot.lane.b32.xlu1 %v14882_v23, %s15698_s1 }
 0xa08   : > { %15075 = vmatpush3.bf16.msra.mxu1 %v15379_v61 }
 0xa09   : > { %14984 = vmatprep.subr.bf16.mxu1 %v15391_v14 }
 0xa0a   : > { %11140 = vrot.lane.b32.xlu1 %v14884_v30, %s15700_s4  ;;  %s19938_s4 = scalar_lea.hbm %s20109_s30, %s13857_s23 }
 0xa60   : > { %v11080_v21 = vpop.permute.xlu0 %11079 }
 0xa61   : > { %11085 = vst.msk [vmem:[#allocation6 + $0x4] sm:$0xf] %vm10096_vm15, %v11080_v21 }
 0xa64   : > { %v11024_v56 = vpop.permute.xlu0 %11023 }
 0xa68   : > { %v11082_v9 = vpop.permute.xlu1 %11081  ;;  %v10965_v54 = vpop.permute.xlu0 %10964 }
 0xa69   : > { %11086 = vst.msk [vmem:[#allocation6 + $0x10] sm:$0xf] %vm10096_vm15, %v11082_v9  ;;  %10970 = vst.msk [vmem:[#allocation6] sm:$0xf] %vm10096_vm15, %v10965_v54 }
 0xa6c   : > { %v11026_v12 = vpop.permute.xlu1 %11025  ;;  %v10995_v8 = vpop.permute.xlu0 %10994 }
 0xa6d   : > { %11000 = vst.msk [vmem:[#allocation6] sm:$0xf] %vm10161_vm1, %v10995_v8 }
 0xa6e   : > { %11029 = vst.msk [vmem:[#allocation6] sm:$0xf] %vm10226_vm2, %v11024_v56 }
 0xa70   : > { %v10967_v51 = vpop.permute.xlu1 %10966  ;;  %v11109_v59 = vpop.permute.xlu0 %11108 }
 0xa71   : > { %10971 = vst.msk [vmem:[#allocation6 + $0xc] sm:$0xf] %vm10096_vm15, %v10967_v51 }
 0xa72   : > { %11114 = vst.msk [vmem:[#allocation6 + $0x4] sm:$0xf] %vm10161_vm1, %v11109_v59 }
 0xa74   : > { %v10997_v18 = vpop.permute.xlu1 %10996  ;;  %v11139_v40 = vpop.permute.xlu0 %11138 }
 0xa75   : > { %11001 = vst.msk [vmem:[#allocation6 + $0xc] sm:$0xf] %vm10161_vm1, %v10997_v18 }
 0xa76   : > { %11144 = vst.msk [vmem:[#allocation6 + $0x4] sm:$0xf] %vm10226_vm2, %v11139_v40  ;;  %11030 = vst.msk [vmem:[#allocation6 + $0xc] sm:$0xf] %vm10226_vm2, %v11026_v12 }
 0xa78   : > { %v11111_v29 = vpop.permute.xlu1 %11110 }
 0xa79   : > { %11115 = vst.msk [vmem:[#allocation6 + $0x10] sm:$0xf] %vm10161_vm1, %v11111_v29 }
 0xa7c   : > { %v11141_v0 = vpop.permute.xlu1 %11140 }
 0xa7d   : > { %11145 = vst.msk [vmem:[#allocation6 + $0x10] sm:$0xf] %vm10226_vm2, %v11141_v0  ;;  %v15380_v11 = vld [vmem:[#allocation6] ss:$12 sps:$4 sm:$0xff]  }
 0xa84   : > { %v15382_v63 = vld [vmem:[#allocation6 + $0x4] ss:$12 sps:$4 sm:$0xff]  }
 0xa85   : > { %11377 = vmatprep.mubr.bf16.mxu0 %v15382_v63  ;;  %15077 = vmatmul.mubr.msk.bf16.vlgmr.msra.gmra.mxu1 %vm758_vm11, %v15382_v63 }
 0xa86   : > { %11378 = vmatmul.mubr.bf16.vlgmr.msra.gmra.mxu0 %v15380_v11  ;;  %14985 = vmatpush3.bf16.msra.mxu1 %v15392_v46 }
 0xa87   : > { %14986 = vmatprep.subr.bf16.mxu1 %v15393_v28  ;;  %15007 = vmatpush3.bf16.msra.mxu0 %v15398_v44 }
 0xa88   : > { %15008 = vmatprep.subr.bf16.mxu0 %v15401_v3 }
 0xa8a   : > { %14987 = vmatpush3.bf16.msra.mxu1 %v15394_v22 }
 0xa8b   : > { %14988 = vmatprep.subr.bf16.mxu1 %v15395_v31  ;;  %15009 = vmatpush3.bf16.msra.mxu0 %v15403_v15  ;;  %v15421_v31 = vld [vmem:[%s19988_s15 + $0x98] sm:$0xff]  }
 0xa8c   : > { %15010 = vmatprep.subr.bf16.mxu0 %v15406_v1 }
 0xa8e   : > { %14989 = vmatpush3.bf16.msra.mxu1 %v15396_v19  ;;  %v15422_v19 = vld [vmem:[%s19988_s15 + $0x40] sm:$0xff]  }
 0xa8f   : > { %14990 = vmatprep.subr.bf16.mxu1 %v15399_v60  ;;  %15011 = vmatpush3.bf16.msra.mxu0 %v15409_v57  ;;  %v15423_v60 = vld [vmem:[%s19988_s15] sm:$0xff]   ;;  %v15431_v57 = vld [vmem:[%s19988_s15 + $0x118] sm:$0xff]  }
 0xa90   : > { %15012 = vmatprep.subr.bf16.mxu0 %v15412_v33 }
 0xa92   : > { %14991 = vmatpush3.bf16.msra.mxu1 %v15400_v47 }
 0xa93   : > { %14992 = vmatprep.subr.bf16.mxu1 %v15404_v35  ;;  %15013 = vmatpush3.bf16.msra.mxu0 %v15415_v50  ;;  %v15439_v50 = vld [vmem:[%s19988_s15 + $0x108] sm:$0xff]  }
 0xa96   : > { %14993 = vmatpush3.bf16.msra.mxu1 %v15405_v16 }
 0xa97   : > { %14994 = vmatprep.subr.bf16.mxu1 %v15410_v7 }
 0xa9a   : > { %14995 = vmatpush3.bf16.msra.mxu1 %v15411_v27 }
 0xa9b   : > { %14996 = vmatprep.subr.bf16.mxu1 %v15416_v55 }
 0xa9e   : > { %14997 = vmatpush3.bf16.msra.mxu1 %v15417_v39 }
 0xa9f   : > { %14998 = vmatprep.subr.bf16.mxu1 %v15422_v19 }
 0xaa2   : > { %14999 = vmatpush3.bf16.msra.mxu1 %v15423_v60 }
 0xaa3   : > { %15080 = vmatprep.subr.bf16.mxu1 %v20099_v37 }
 0xac3   : > { %v11420_v42 = vpop.f32.mrf.mxu1 }
 0xac5   : > { %v15070_v53 = vpop.f32.mrf.mxu1 }
 0xac7   : > { %v11423_v25 = vpop.f32.mrf.mxu1 }
 0xac9   : > { %v15071_v32 = vpop.f32.mrf.mxu1 }
 0xb45   : > { %v19793_v62 = vpop.f32.mrf.mxu1 }
 0xb46   : > { %v14972_v36 = vpop.f32.mrf.mxu0 }
 0xb47   : > { %v15078_v4 = vpop.f32.mrf.mxu1 }
 0xb48   : > { %v14973_v6 = vpop.f32.mrf.mxu0 }
 0xb49   : > { %v14974_v20 = vadd.f32 %v14973_v6, %v14972_v36  ;;  %v19798_v5 = vpop.f32.mrf.mxu1  ;;  %v15424_v36 = vld [vmem:[%s19988_s15 + $0xd0] sm:$0xff]  }
 0xb4a   : > { %v14975_v43 = vpop.f32.mrf.mxu0  ;;  %v15426_v6 = vld [vmem:[%s19988_s15 + $0x90] sm:$0xff]  }
 0xb4b   : > { %v11380_v49 = vadd.f32 %v14974_v20, %v13768_v10  ;;  %v15079_v34 = vpop.f32.mrf.mxu1 }
 0xb4c   : > { %v14976_v58 = vpop.f32.mrf.mxu0 }
 0xb4d   : > { %v11421_v45 = vadd.f32 %v11420_v42, %v11380_v49  ;;  %v14977_v13 = vadd.f32 %v14976_v58, %v14975_v43  ;;  %v15430_v43 = vld [vmem:[%s19988_s15 + $0xc8] sm:$0xff]  }
 0xb4e   : > { %v15432_v58 = vld [vmem:[%s19988_s15 + $0x88] sm:$0xff]  }
 0xb4f   : > { %v11494_v24 = vmax.f32 %v11421_v45, 0.0  ;;  %v11383_v17 = vadd.f32 %v14977_v13, %v13768_v10  ;;  %v15433_v45 = vld [vmem:[%s19988_s15 + $0xc0] sm:$0xff]  }
 0xb51   : > { %v11498_v48 = vcombine.high %v11494_v24, %v11494_v24  ;;  %11504 = vst.msk [vmem:[#allocation2 + $0x9] sm:$0xf] %vm11503_vm5, %v11494_v24  ;;  %v11424_v41 = vadd.f32 %v11423_v25, %v11383_v17  ;;  %v15418_v25 = vld [vmem:[%s19988_s15 + $0xd8] sm:$0xff]   ;;  %v15435_v17 = vld [vmem:[%s19988_s15 + $0x80] sm:$0xff]  }
 0xb52   : > { %15014 = vmatprep.subr.bf16.mxu0 %v15418_v25 }
 0xb53   : > { %11505 = vst.msk [vmem:[#allocation2 + $0x11] sm:$0xf] %vm11503_vm5, %v11498_v48  ;;  %v11495_v26 = vmax.f32 %v11424_v41, 0.0  ;;  %15015 = vmatpush3.bf16.msra.mxu0 %v15421_v31 }
 0xb54   : > { %15016 = vmatprep.subr.bf16.mxu0 %v15424_v36 }
 0xb55   : > { %v11499_v52 = vcombine.high %v11495_v26, %v11495_v26  ;;  %11506 = vst.msk [vmem:[#allocation2 + $0x19] sm:$0xf] %vm11503_vm5, %v11495_v26 }
 0xb57   : > { %11507 = vst.msk [vmem:[#allocation2 + $0x21] sm:$0xf] %vm11503_vm5, %v11499_v52  ;;  %15017 = vmatpush3.bf16.msra.mxu0 %v15426_v6  ;;  %v15434_v52 = vld [vmem:[%s19988_s15 + $0x110] sm:$0xff]  }
 0xb58   : > { %v15383_v23 = vld [vmem:[#allocation2 + $0x1] ss:$8 sps:$4 sm:$0xff]   ;;  %15018 = vmatprep.subr.bf16.mxu0 %v15430_v43 }
 0xb59   : > { %v15402_v2 = vld [vmem:[#allocation2] ss:$8 sps:$4 sm:$0xff]   ;;  %v14889_v61 = vpack.c.bf16 %v15383_v23, %v15383_v23 }
 0xb5a   : > { %v15385_v30 = vld [vmem:[#allocation2 + $0x8] ss:$8 sps:$4 sm:$0xff]   ;;  %v14887_v21 = vpack.c.bf16 %v15402_v2, %v15402_v2  ;;  %v15440_v23 = vld [vmem:[%s19988_s15 + $0x100] sm:$0xff]  }
 0xb5b   : > { %11548 = vrot.lane.b32.xlu0 %v14889_v61, %s15698_s1  ;;  %v15387_v9 = vld [vmem:[#allocation2 + $0xa] ss:$8 sps:$4 sm:$0xff]   ;;  %v14893_v12 = vpack.c.bf16 %v15385_v30, %v15385_v30  ;;  %15019 = vmatpush3.bf16.msra.mxu0 %v15432_v58  ;;  %v12214_v61 = vld [vmem:[#allocation16 + $0x38] sm:$0xff]  ;;  %v12213_v30 = vld [vmem:[#allocation16 + $0x30] sm:$0xff] }
 0xb5c   : > { %v15384_v56 = vld [vmem:[#allocation2 + $0x11] ss:$8 sps:$4 sm:$0xff]   ;;  %11528 = vst.msk [vmem:[#allocation5] sm:$0xf] %vm11503_vm5, %v14887_v21  ;;  %v15408_v40 = vld [vmem:[#allocation2 + $0x2] ss:$8 sps:$4 sm:$0xff]   ;;  %v14897_v0 = vpack.c.bf16 %v15387_v9, %v15387_v9  ;;  %15020 = vmatprep.subr.bf16.mxu0 %v15433_v45 }
 0xb5d   : > { %v14890_v54 = vpack.c.bf16 %v15384_v56, %v15384_v56  ;;  %v15389_v59 = vld [vmem:[#allocation2 + $0x11] ss:$8 sps:$4 sm:$0xff]   ;;  %v14891_v42 = vpack.c.bf16 %v15408_v40, %v15408_v40  ;;  %v12211_v56 = vld [vmem:[#allocation16 + $0x20] sm:$0xff]  ;;  %v12210_v9 = vld [vmem:[#allocation16 + $0x18] sm:$0xff] }
 0xb5e   : > { %v15386_v8 = vld [vmem:[#allocation2 + $0x18] ss:$8 sps:$4 sm:$0xff]   ;;  %v15414_v53 = vld [vmem:[#allocation2 + $0x9] ss:$8 sps:$4 sm:$0xff]   ;;  %v14901_v22 = vpack.c.bf16 %v15389_v59, %v15389_v59 }
 0xb5f   : > { %11550 = vrot.lane.b32.xlu1 %v14890_v54, %s15698_s1  ;;  %11597 = vrot.lane.b32.xlu0 %v14893_v12, %s15698_s1  ;;  %v15388_v51 = vld [vmem:[#allocation2 + $0x1a] ss:$8 sps:$4 sm:$0xff]   ;;  %v14894_v29 = vpack.c.bf16 %v15386_v8, %v15386_v8  ;;  %11577 = vst.msk [vmem:[#allocation5 + $0x4] sm:$0xf] %vm11503_vm5, %v14891_v42  ;;  %v14895_v28 = vpack.c.bf16 %v15414_v53, %v15414_v53  ;;  %v12212_v21 = vld [vmem:[#allocation16 + $0x28] sm:$0xff]  ;;  %v12207_v8 = vld [vmem:[#allocation16] sm:$0xff] }
 0xb60   : > { %v15407_v18 = vld [vmem:[#allocation2 + $0x10] ss:$8 sps:$4 sm:$0xff]   ;;  %v15390_v32 = vld [vmem:[#allocation2 + $0x21] ss:$8 sps:$4 sm:$0xff]   ;;  %v14898_v44 = vpack.c.bf16 %v15388_v51, %v15388_v51  ;;  %15021 = vmatpush3.bf16.msra.mxu0 %v15435_v17 }
 0xb61   : > { %v14888_v11 = vpack.c.bf16 %v15407_v18, %v15407_v18  ;;  %v15413_v63 = vld [vmem:[#allocation2 + $0x12] ss:$8 sps:$4 sm:$0xff]   ;;  %11625 = vst.msk [vmem:[#allocation5 + $0x8] sm:$0xf] %vm11503_vm5, %v14895_v28  ;;  %v15425_v4 = vld [vmem:[#allocation2 + $0x20] ss:$8 sps:$4 sm:$0xff]   ;;  %v14902_v20 = vpack.c.bf16 %v15390_v32, %v15390_v32  ;;  %15092 = vmatprep.subr.mxu0 %v20099_v37 }
 0xb62   : > { %v14892_v14 = vpack.c.bf16 %v15413_v63, %v15413_v63  ;;  %v15419_v46 = vld [vmem:[#allocation2 + $0x19] ss:$8 sps:$4 sm:$0xff]   ;;  %v14900_v10 = vpack.c.bf16 %v15425_v4, %v15425_v4  ;;  %v12208_v12 = vld [vmem:[#allocation16 + $0x8] sm:$0xff] }
 0xb63   : > { %11599 = vrot.lane.b32.xlu1 %v14894_v29, %s15698_s1  ;;  %11645 = vrot.lane.b32.xlu0 %v14897_v0, %s15698_s1  ;;  %11529 = vst.msk [vmem:[#allocation5 + $0x14] sm:$0xf] %vm11503_vm5, %v14888_v11  ;;  %v15420_v38 = vld [vmem:[#allocation2 + $0x10] ss:$8 sps:$4 sm:$0xff]   ;;  %v14896_v3 = vpack.c.bf16 %v15419_v46, %v15419_v46  ;;  %v15442_v34 = vld [vmem:[#allocation2 + $0x22] ss:$8 sps:$4 sm:$0xff]  }
 0xb64   : > { %11578 = vst.msk [vmem:[#allocation5 + $0x18] sm:$0xf] %vm11503_vm5, %v14892_v14  ;;  %v14899_v47 = vpack.c.bf16 %v15420_v38, %v15420_v38  ;;  %11675 = vst.msk [vmem:[#allocation5 + $0x20] sm:$0xf] %vm11503_vm5, %v14900_v10  ;;  %v15441_v49 = vld [vmem:[#allocation2 + $0x12] ss:$8 sps:$4 sm:$0xff]   ;;  %v14904_v24 = vpack.c.bf16 %v15442_v34, %v15442_v34 }
 0xb65   : > { %11626 = vst.msk [vmem:[#allocation5 + $0x1c] sm:$0xf] %vm11503_vm5, %v14896_v3  ;;  %v14903_v13 = vpack.c.bf16 %v15441_v49, %v15441_v49  ;;  %v12209_v54 = vld [vmem:[#allocation16 + $0x10] sm:$0xff]  ;;  %v13813_v29 = vld [vmem:[%s19989_s16] ss:$0 sm:$0xff] }
 0xb66   : > { %11674 = vst.msk [vmem:[#allocation5 + $0xc] sm:$0xf] %vm11503_vm5, %v14899_v47  ;;  %11723 = vst.msk [vmem:[#allocation5 + $0x24] sm:$0xf] %vm11503_vm5, %v14904_v24 }
 0xb67   : > { %11647 = vrot.lane.b32.xlu1 %v14898_v44, %s15698_s1  ;;  %11694 = vrot.lane.b32.xlu0 %v14901_v22, %s15698_s1  ;;  %11722 = vst.msk [vmem:[#allocation5 + $0x10] sm:$0xf] %vm11503_vm5, %v14903_v13 }
 0xb6b   : > { %11696 = vrot.lane.b32.xlu1 %v14902_v20, %s15698_s1  ;;  %s15611_s1 = scalar_lea.vmem %s15610_s27, 32 }
 0xb6c   : > { %p15613_p13 = scmp.lt.s32.totalorder %s15611_s1, %s15605_s26 }
 0xb6e   : > { %v15443_v2 = vld [vmem:[#allocation5 + $0x10] ss:$20 sps:$4 sm:$0xff]   ;;  %p15614_p11 = por %p15613_p13, %p15612_p7 }
 0xb70   : > { %p15615_p0 = pnand %p15614_p11, %p15608_p8 }
 0xbcd   : > { %v11549_v15 = vpop.permute.xlu0 %11548 }
 0xbce   : > { %11555 = vst.msk [vmem:[#allocation5] sm:$0xf] %vm11554_vm6, %v11549_v15 }
 0xbd1   : > { %v11551_v35 = vpop.permute.xlu1 %11550  ;;  %v11598_v16 = vpop.permute.xlu0 %11597 }
 0xbd2   : > { %11556 = vst.msk [vmem:[#allocation5 + $0x14] sm:$0xf] %vm11554_vm6, %v11551_v35  ;;  %11603 = vst.msk [vmem:[#allocation5 + $0x4] sm:$0xf] %vm11554_vm6, %v11598_v16 }
 0xbd5   : > { %v11600_v1 = vpop.permute.xlu1 %11599  ;;  %v11646_v48 = vpop.permute.xlu0 %11645 }
 0xbd6   : > { %11604 = vst.msk [vmem:[#allocation5 + $0x18] sm:$0xf] %vm11554_vm6, %v11600_v1  ;;  %11651 = vst.msk [vmem:[#allocation5 + $0x8] sm:$0xf] %vm11554_vm6, %v11646_v48 }
 0xbd9   : > { %v11648_v41 = vpop.permute.xlu1 %11647  ;;  %v11695_v26 = vpop.permute.xlu0 %11694  ;;  %v15427_v27 = vld [vmem:[#allocation5] ss:$20 sps:$4 sm:$0xff]  }
 0xbda   : > { %11652 = vst.msk [vmem:[#allocation5 + $0x1c] sm:$0xf] %vm11554_vm6, %v11648_v41  ;;  %11700 = vst.msk [vmem:[#allocation5 + $0xc] sm:$0xf] %vm11554_vm6, %v11695_v26 }
 0xbdd   : > { %v11697_v7 = vpop.permute.xlu1 %11696  ;;  %v15429_v33 = vld [vmem:[#allocation5 + $0x4] ss:$20 sps:$4 sm:$0xff]  }
 0xbde   : > { %11701 = vst.msk [vmem:[#allocation5 + $0x20] sm:$0xf] %vm11554_vm6, %v11697_v7  ;;  %12086 = vmatprep.mubr.bf16.mxu1 %v15429_v33 }
 0xbdf   : > { %12087 = vmatmul.mubr.bf16.vlgmr.msra.gmra.mxu1 %v15427_v27 }
 0xbe0   : > { %15081 = vmatpush3.bf16.msra.mxu1 %v15431_v57  ;;  %15088 = vmatprep.mubr.msk.bf16.mxu1 %vm15702_vm0, %v20099_v37  ;;  %v12215_v57 = vld [vmem:[#allocation17] sm:$0x1] }
 0xbe1   : > { %15082 = vmatprep.subr.bf16.mxu1 %v20099_v37  ;;  %v15436_v55 = vld [vmem:[#allocation5 + $0x8] ss:$20 sps:$4 sm:$0xff]  }
 0xbe4   : > { %15083 = vmatpush3.bf16.msra.mxu1 %v15434_v52 }
 0xbe5   : > { %v15438_v39 = vld [vmem:[#allocation5 + $0xc] ss:$20 sps:$4 sm:$0xff]   ;;  %15084 = vmatprep.subr.bf16.mxu1 %v20099_v37 }
 0xbe6   : > { %12127 = vmatprep.mubr.bf16.mxu0 %v15438_v39 }
 0xbe7   : > { %12128 = vmatmul.mubr.bf16.vlgmr.msra.gmra.mxu0 %v15436_v55 }
 0xbe8   : > { %15085 = vmatpush3.bf16.msra.mxu1 %v15439_v50  ;;  %15108 = vmatprep.mubr.msk.f32.mxu0 %vm15702_vm0, %v20099_v37 }
 0xbe9   : > { %15086 = vmatprep.subr.bf16.mxu1 %v20099_v37  ;;  %15093 = vmatpush3.msra.mxu0 %v12214_v61 }
 0xbea   : > { %15094 = vmatprep.subr.mxu0 %v20099_v37 }
 0xbeb   : > { %15095 = vmatpush3.msra.mxu0 %v12213_v30 }
 0xbec   : > { %15087 = vmatpush3.bf16.msra.mxu1 %v15440_v23  ;;  %15096 = vmatprep.subr.mxu0 %v20099_v37 }
 0xbed   : > { %15097 = vmatpush3.msra.mxu0 %v12212_v21 }
 0xbee   : > { %15098 = vmatprep.subr.mxu0 %v20099_v37 }
 0xbef   : > { %15089 = vmatmul.mubr.msk.bf16.vlgmr.msra.gmra.mxu1 %vm12050_vm7, %v15443_v2  ;;  %15099 = vmatpush3.msra.mxu0 %v12211_v56 }
 0xbf0   : > { %15100 = vmatprep.subr.mxu0 %v20099_v37 }
 0xbf1   : > { %15101 = vmatpush3.msra.mxu0 %v12210_v9 }
 0xbf2   : > { %15102 = vmatprep.subr.mxu0 %v20099_v37 }
 0xbf3   : > { %15103 = vmatpush3.msra.mxu0 %v12209_v54 }
 0xbf4   : > { %15104 = vmatprep.subr.mxu0 %v20099_v37 }
 0xbf5   : > { %15105 = vmatpush3.msra.mxu0 %v12208_v12 }
 0xbf6   : > { %15106 = vmatprep.subr.mxu0 %v20099_v37  ;;  %v13791_v37 = vld [vmem:[%s19991_s18] ss:$0 sm:$0xff] }
 0xbf7   : > { %15107 = vmatpush3.msra.mxu0 %v12207_v8  ;;  %v11488_v22 = vadd.f32 %v13791_v37, %v19793_v62  ;;  %v11491_v36 = vadd.f32 %v13791_v37, %v19798_v5 }
 0xc9f   : > { %v15000_v51 = vpop.f32.mrf.mxu1 }
 0xca1   : > { %v15001_v59 = vpop.f32.mrf.mxu1 }
 0xca2   : > { %v15002_v40 = vadd.f32 %v15001_v59, %v15000_v51 }
 0xca3   : > { %v15003_v18 = vpop.f32.mrf.mxu1 }
 0xca4   : > { %v12089_v42 = vadd.f32 %v15002_v40, %v13813_v29 }
 0xca5   : > { %v15004_v0 = vpop.f32.mrf.mxu1 }
 0xca6   : > { %v15005_v53 = vadd.f32 %v15004_v0, %v15003_v18 }
 0xca7   : > { %v15022_v11 = vpop.f32.mrf.mxu0 }
 0xca8   : > { %v12092_v28 = vadd.f32 %v15005_v53, %v13813_v29 }
 0xca9   : > { %v15023_v63 = vpop.f32.mrf.mxu0 }
 0xcaa   : > { %v15024_v25 = vadd.f32 %v15023_v63, %v15022_v11 }
 0xcab   : > { %v15025_v32 = vpop.f32.mrf.mxu0 }
 0xcac   : > { %v12130_v14 = vadd.f32 %v15024_v25, %v12089_v42 }
 0xcad   : > { %v15026_v46 = vpop.f32.mrf.mxu0 }
 0xcae   : > { %v15027_v38 = vadd.f32 %v15026_v46, %v15025_v32 }
 0xcaf   : > { %v12170_v44 = vpop.f32.mrf.mxu1 }
 0xcb0   : > { %v12171_v3 = vadd.f32 %v12170_v44, %v12130_v14  ;;  %v12133_v31 = vadd.f32 %v15027_v38, %v12092_v28 }
 0xcb1   : > { %v15090_v19 = vpop.f32.mrf.mxu1 }
 0xcb2   : > { %v12177_v60 = vadd.f32 %v12171_v3, %v11488_v22 }
 0xcb3   : > { %v12173_v47 = vpop.f32.mrf.mxu1 }
 0xcb4   : > { %v12181_v4 = vcombine.high %v12177_v60, %v12177_v60  ;;  %v12174_v10 = vadd.f32 %v12173_v47, %v12133_v31  ;;  %v12185_v49 = vmax.f32 %v12177_v60, 0.0 }
 0xcb5   : > { %v15091_v6 = vpop.f32.mrf.mxu1 }
 0xcb6   : > { %v12186_v20 = vmax.f32 %v12181_v4, 0.0  ;;  %v12178_v43 = vadd.f32 %v12174_v10, %v11491_v36 }
 0xcb8   : > { %v12182_v34 = vcombine.high %v12178_v43, %v12178_v43  ;;  %v12193_v58 = vcombine.low %v12185_v49, %v12186_v20  ;;  %v12187_v45 = vmax.f32 %v12178_v43, 0.0 }
 0xcba   : > { %v12188_v13 = vmax.f32 %v12182_v34, 0.0  ;;  %v12197_v24 = vsel %vm12050_vm7, %v12193_v58, 0.0 }
 0xcbc   : > { %v12194_v62 = vcombine.low %v12187_v45, %v12188_v13 }
 0xcbe   : > { %v12198_v17 = vsel %vm12050_vm7, %v12194_v62, 0.0 }
 0xcbf   : > { %v12199_v15 = vadd.f32 %v12198_v17, %v12197_v24 }
 0xcc1   : > { %v12200_v35 = vrot.slane %v12199_v15, 4 }
 0xcc3   : > { %v12201_v5 = vadd.f32 %v12200_v35, %v12199_v15 }
 0xcc5   : > { %v12202_v16 = vrot.slane %v12201_v5, 2 }
 0xcc7   : > { %v12203_v1 = vadd.f32 %v12202_v16, %v12201_v5 }
 0xcc9   : > { %v12204_v48 = vrot.slane %v12203_v1, 1 }
 0xccb   : > { %v12205_v41 = vadd.f32 %v12204_v48, %v12203_v1 }
 0xccd   : > { %v12206_v26 = vmul.f32 0.0625, %v12205_v41 }
 0xccf   : > { %15109 = vmatmul.mubr.msk.f32.vlgmr.msra.gmra.mxu0 %vm12050_vm7, %v12206_v26 }
 0xd8f   : > { %v12285_v7 = vpop.f32.mrf.mxu0 }
 0xd90   : > { %v12286_v27 = vadd.f32 %v12285_v7, %v12215_v57 }
 0xd91   : > { %v15110_v33 = vpop.f32.mrf.mxu0 }
 0xd92   : > { %12290 = vst.msk [vmem:[%s734_s28] sm:$0x1] %vm12289_vm8, %v12286_v27 }
 0xd93   : > { %15618 = shalt.err (!%p15615_p0)
}
 0xd94   : > { %s15619_s23 = scalar_lea.hbm %s19938_s4, 16  ;;  %s15623_s0 = scalar_lea.hbm %s20109_s30, 32 }
 0xd95   : > { %p15620_p3 = scmp.ne.s32.totalorder %s19938_s4, %s15619_s23  ;;  %p15624_p1 = scmp.lt.s32.totalorder %s19938_s4, %s20109_s30 }
 0xd96   : > { %p15625_p2 = scmp.lt.s32.totalorder %s15623_s0, %s15619_s23 }
 0xd97   : > { %p15621_p12 = pnand %p15620_p3, %p15852_p5 }
 0xd98   : > { %p15626_p4 = por %p15625_p2, %p15624_p1 }
 0xd99   : > { %p15622_p10 = pneg %p15621_p12 }
 0xd9b   : > { %p15627_p9 = pnand %p15626_p4, %p15622_p10 }
 0xd9d   : > { %15630 = shalt.err (!%p15627_p9)
}
 0xd9e   : > { %15135 = dma.vmem_to_hbm [thread:$0]  (%p15852_p5), %s12305_s24, 16, %s19938_s4, %s12292_s22  }
 0xd9f PF: > { %s20110_s26 = sld [smem:[#allocation27_spill]] }
 0xda0   : > { %s20111_s27 = sld [smem:[#allocation25_spill]] }
 0xda5   : > { %p15172_p8 = scmp.ge.s32.totalorder %s20110_s26, 2 }
 0xda6   : > { %s12316_s6 = sand.u32 1, %s20111_s27  }
 0xda7   : > { %p15157_p7 = pnand %p15172_p8, %p15856_p6  ;;  %s12317_s2 = scalar_lea.sflag [#allocation10], %s12316_s6 }
 0xda9   : > { %p15158_p13 = pneg %p15157_p7 }
 0xdab   : > { %15664 = dma.done.wait (%p15158_p13), %s12317_s2, 16  }
 0xdac   : > { %15666 = vsyncadd (%p15158_p13), %s12317_s2, 4294967280  ;;  %s20113_s27 = sld [smem:[#allocation28_spill]]  ;;  %s20116_s2 = smov %s15673_s25 }
 0xdad   : > { %s20114_s23 = sld [smem:[#allocation26_spill]] }
 0xdae   : > { %s20115_s26 = sld [smem:[#allocation29_spill]] }
 0xdb2   : > { %p35_p11 = scmp.ge.s32.totalorder %s20113_s27, 4  }
 0xdb3   : > { %s20117_s25 = smov %s20114_s23 }
 0xdb4   :  { %37 = sbr.rel (!%p35_p11) target bundleno = 17 (0x11), region = 274 }
 0xdb9   :  { %12321 = vsyncpa [#allocation9], 1 }
 0xdba   :  { %12323 = vsyncpa [#allocation9 + $0x1], 1 }
 0xdbb   :  { %12324 = vsyncpa [#allocation12], 1 }
 0xdbc   :  { %12325 = vsyncpa [#allocation15], 1 }
 0xdbd   :  { %12326 = vsyncpa [#allocation18], 1 }
 0xdbe   :  { %12327 = vsyncpa [#allocation10], 1 }
 0xdbf   :  { %12329 = vsyncpa [#allocation10 + $0x1], 1 }

</bundles_post_ra>
